<compile_context>
chip_gen: v6e
topology: v6e:2x2x1
jax: 0.10.0
libtpu: 0.0.40
codegen_flags: <defaults>
</compile_context>

<pallas_src>
import functools

import jax
import jax.numpy as jnp
from jax.experimental import pallas as pl
from jax.experimental.pallas import tpu as pltpu


# ----------------------------------------------------------------------------
# Pallas kernel: fused (im2col-patches @ weight) + bias + ReLU
# ----------------------------------------------------------------------------
def _matmul_bias_relu_kernel(x_ref, w_ref, b_ref, o_ref):
    # bf16 x bf16 -> f32 accumulate on the MXU; f32 bias + ReLU epilogue.
    acc = jnp.dot(x_ref[...], w_ref[...], preferred_element_type=jnp.float32)
    acc = acc + b_ref[...]                      # (tm, Cout) + (1, Cout) broadcast
    o_ref[...] = jnp.maximum(acc, 0.0).astype(o_ref.dtype)


def _choose_tile_m(m, max_tile=512):
    """Largest multiple-of-8 divisor of m that is <= max_tile; else the full m."""
    if m <= max_tile or m % 8 != 0:
        return m
    tm = 8
    for d in range(8, max_tile + 1, 8):
        if m % d == 0:
            tm = d
    return tm


def matmul_bias_relu(patches, w_mat, b2d):
    """patches: (M, K) bf16, w_mat: (K, Cout) bf16, b2d: (1, Cout) f32 -> (M, Cout) bf16."""
    M, K = patches.shape
    _, Cout = w_mat.shape
    tm = _choose_tile_m(M)
    grid = (pl.cdiv(M, tm),)   # tm divides M by construction (or tm == M)

    return pl.pallas_call(
        _matmul_bias_relu_kernel,
        out_shape=jax.ShapeDtypeStruct((M, Cout), jnp.bfloat16),
        grid_spec=pltpu.PrefetchScalarGridSpec(
            num_scalar_prefetch=0,
            grid=grid,
            in_specs=[
                pl.BlockSpec((tm, K), lambda i: (i, 0)),     # M-tiled patches
                pl.BlockSpec((K, Cout), lambda i: (0, 0)),   # resident weight
                pl.BlockSpec((1, Cout), lambda i: (0, 0)),   # resident bias
            ],
            out_specs=pl.BlockSpec((tm, Cout), lambda i: (i, 0)),
        ),
        compiler_params=pltpu.CompilerParams(
            dimension_semantics=("parallel",),
            vmem_limit_bytes=32 * 1024 * 1024,
        ),
    )(patches, w_mat, b2d)


# ----------------------------------------------------------------------------
# Glue (plain JAX / XLA): im2col, pooling, upsampling
# ----------------------------------------------------------------------------
def _im2col(x_nhwc, pad=2, k=3):
    N, H, W, C = x_nhwc.shape
    xp = jnp.pad(x_nhwc, ((0, 0), (pad, pad), (pad, pad), (0, 0)))
    Ho = H + 2 * pad - k + 1
    Wo = W + 2 * pad - k + 1
    cols = [xp[:, kh:kh + Ho, kw:kw + Wo, :] for kh in range(k) for kw in range(k)]
    patches = jnp.concatenate(cols, axis=-1)          # (N, Ho, Wo, k*k*C), bf16
    return patches.reshape(N * Ho * Wo, k * k * C), (N, Ho, Wo)


def conv3x3_relu(x_nhwc, w_mat, b2d):
    """Conv2d(k=3, s=1, pad=2) + bias + ReLU via the Pallas matmul kernel."""
    patches, (N, Ho, Wo) = _im2col(x_nhwc, pad=2, k=3)
    out = matmul_bias_relu(patches, w_mat, b2d)        # Pallas hot path
    return out.reshape(N, Ho, Wo, w_mat.shape[1])


def maxpool2x2(x):
    N, H, W, C = x.shape
    Ho, Wo = H // 2, W // 2
    x = x[:, :Ho * 2, :Wo * 2, :].reshape(N, Ho, 2, Wo, 2, C)
    return jnp.max(x, axis=(2, 4))


def upsample_bilinear_to_2x2(x):
    # UpsamplingBilinear2d(size=(2,2)), align_corners=True: corner sampling.
    N, H, W, C = x.shape
    rows = jnp.stack([x[:, 0, :, :], x[:, H - 1, :, :]], axis=1)        # (N,2,W,C)
    return jnp.stack([rows[:, :, 0, :], rows[:, :, W - 1, :]], axis=2)  # (N,2,2,C)


# ----------------------------------------------------------------------------
# Parameter construction (deterministic, PyTorch-shaped) + one-time packing
# ----------------------------------------------------------------------------
_CONV_CHANNELS = [
    (3, 8), (8, 16),                  # Convlayer1, Convlayer2
    (16, 16), (16, 32), (32, 32),     # Convlayer3..5
    (32, 64), (64, 64),               # Convlayer6, Convlayer7
    (64, 64), (64, 64),               # DeConvlayer1, DeConvlayer2
    (64, 32), (32, 32), (32, 16),     # DeConvlayer3..5
    (16, 16), (16, 1),                # DeConvlayer6, DeConvlayer7
]


def init_params(key):
    """Raw PyTorch-layout params: [(w (Cout,Cin,3,3) f32, b (Cout,) f32), ...]."""
    params = []
    for (cin, cout) in _CONV_CHANNELS:
        key, kw, kb = jax.random.split(key, 3)
        fan_in = cin * 3 * 3
        bound = 1.0 / jnp.sqrt(fan_in)
        w = jax.random.uniform(kw, (cout, cin, 3, 3), jnp.float32, -bound, bound)
        b = jax.random.uniform(kb, (cout,), jnp.float32, -bound, bound)
        params.append((w, b))
    return params


def pack_params(raw_params, bn_eps=1e-5):
    """One-time repack: (Cout,Cin,3,3) -> (9*Cin, Cout) bf16 matching im2col column
    order (kh, kw, Cin); bias -> (1, Cout) f32.  The eval-mode BatchNorm constant
    scale 1/sqrt(1+eps) is folded into the first conv's weights."""
    bn_scale = 1.0 / jnp.sqrt(1.0 + bn_eps)
    packed = []
    for idx, (w, b) in enumerate(raw_params):
        if idx == 0:
            w = w * bn_scale
        cout = w.shape[0]
        w_mat = jnp.transpose(w, (2, 3, 1, 0)).reshape(-1, cout).astype(jnp.bfloat16)
        packed.append((w_mat, b.reshape(1, cout).astype(jnp.float32)))
    return packed


# ----------------------------------------------------------------------------
# Full SegNet forward
# ----------------------------------------------------------------------------
def segnet_forward(x_nchw, params):
    # NCHW -> NHWC; activations kept bf16 in HBM (f32 accumulate in the kernel).
    out = jnp.transpose(x_nchw, (0, 2, 3, 1)).astype(jnp.bfloat16)
    # batchNorm (eval mode, default stats) is folded into params[0]; no standalone op.

    conv = lambda o, i: conv3x3_relu(o, params[i][0], params[i][1])

    out = conv(out, 0)            # Convlayer1 (BN folded in)
    out = conv(out, 1)            # Convlayer2
    out = maxpool2x2(out)         # maxPool1
    out = conv(out, 2)            # Convlayer3 (+Dropout: identity in eval)
    out = conv(out, 3)            # Convlayer4
    out = conv(out, 4)            # Convlayer5
    out = maxpool2x2(out)         # maxPool2
    out = conv(out, 5)            # Convlayer6
    out = conv(out, 6)            # Convlayer7
    out = maxpool2x2(out)         # maxPool3
    out = upsample_bilinear_to_2x2(out)   # upSample1
    out = conv(out, 7)            # DeConvlayer1
    out = conv(out, 8)            # DeConvlayer2
    out = upsample_bilinear_to_2x2(out)   # upSample2
    out = conv(out, 9)            # DeConvlayer3
    out = conv(out, 10)           # DeConvlayer4
    out = conv(out, 11)           # DeConvlayer5
    out = upsample_bilinear_to_2x2(out)   # upSample3
    out = conv(out, 12)           # DeConvlayer6
    out = conv(out, 13)           # DeConvlayer7
    return jnp.transpose(out.astype(jnp.float32), (0, 3, 1, 2))   # NHWC -> NCHW


if __name__ == "__main__":
    key = jax.random.PRNGKey(0)
    key, kx = jax.random.split(key)
    # PyTorch-convention input: NCHW, 3 channels (required by Conv2d(3, 8, ...))
    x = jax.random.normal(kx, (2, 3, 16, 16), jnp.float32)
    raw_params = init_params(key)
    params = pack_params(raw_params)   # one-time weight repack + BN fold

    fwd = jax.jit(functools.partial(segnet_forward, params=params))
    out = jax.block_until_ready(fwd(x))

    assert out.shape == (2, 1, 6, 6), out.shape
    assert bool(jnp.all(jnp.isfinite(out)))
    print("KERNEL_OK")
</pallas_src>

<mosaic_0001>
module attributes {stable_mosaic.version = 11 : i64} {
  func.func @_matmul_bias_relu_kernel(%arg0: i32, %arg1: memref<216x27xbf16, #tpu.memory_space<vmem>>, %arg2: memref<27x8xbf16, #tpu.memory_space<vmem>>, %arg3: memref<1x8xf32, #tpu.memory_space<vmem>>, %arg4: memref<216x8xbf16, #tpu.memory_space<vmem>>) attributes {dimension_semantics = [#tpu.dimension_semantics<parallel>], iteration_bounds = array<i64: 3>, scalar_prefetch = 0 : i64, scratch_operands = 0 : i64, tpu.core_type = #tpu.core_type<tc>, window_params = [{transform_indices = @transform_0, window_bounds = array<i64: 216, 27>}, {pipeline_mode = #tpu.pipeline_mode<synchronous>, transform_indices = @transform_1, window_bounds = array<i64: 27, 8>}, {pipeline_mode = #tpu.pipeline_mode<synchronous>, transform_indices = @transform_2, window_bounds = array<i64: 1, 8>}, {transform_indices = @transform_3, window_bounds = array<i64: 216, 8>}]} {
    %c0 = arith.constant 0 : index
    %c0_0 = arith.constant 0 : index
    %0 = vector.load %arg1[%c0, %c0_0] : memref<216x27xbf16, #tpu.memory_space<vmem>>, vector<216x27xbf16>
    %c0_1 = arith.constant 0 : index
    %c0_2 = arith.constant 0 : index
    %1 = vector.load %arg2[%c0_1, %c0_2] : memref<27x8xbf16, #tpu.memory_space<vmem>>, vector<27x8xbf16>
    %cst = arith.constant dense<0.000000e+00> : vector<216x8xf32>
    %2 = tpu.matmul %0, %1, %cst {dimension_numbers = #tpu.dot_dimension_numbers<[1], [0], [0], [1], [0, 0, 1, 1], [], []>} : vector<216x27xbf16>, vector<27x8xbf16>, vector<216x8xf32> -> vector<216x8xf32>
    %c0_3 = arith.constant 0 : index
    %c0_4 = arith.constant 0 : index
    %3 = vector.load %arg3[%c0_3, %c0_4] : memref<1x8xf32, #tpu.memory_space<vmem>>, vector<1x8xf32>
    %4 = vector.broadcast %3 : vector<1x8xf32> to vector<216x8xf32>
    %5 = arith.addf %2, %4 : vector<216x8xf32>
    %cst_5 = arith.constant 0.000000e+00 : f32
    %6 = vector.broadcast %cst_5 : f32 to vector<216x8xf32>
    %7 = arith.maximumf %5, %6 : vector<216x8xf32>
    %8 = arith.truncf %7 : vector<216x8xf32> to vector<216x8xbf16>
    %c0_6 = arith.constant 0 : index
    %c0_7 = arith.constant 0 : index
    %9 = vector.load %arg4[%c0_6, %c0_7] : memref<216x8xbf16, #tpu.memory_space<vmem>>, vector<216x8xbf16>
    tpu.vector_store %arg4[%c0_6, %c0_7], %8 {strides = array<i32>} : memref<216x8xbf16, #tpu.memory_space<vmem>>, vector<216x8xbf16>,
    return
  }
  func.func @transform_0(%arg0: i32) -> (i32, i32) {
    %c0_i32 = arith.constant 0 : i32
    %c0_i32_0 = arith.constant 0 : i32
    return %arg0, %c0_i32 : i32, i32
  }
  func.func @transform_1(%arg0: i32) -> (i32, i32) {
    %c0_i32 = arith.constant 0 : i32
    %c0_i32_0 = arith.constant 0 : i32
    %c0_i32_1 = arith.constant 0 : i32
    return %c0_i32, %c0_i32_0 : i32, i32
  }
  func.func @transform_2(%arg0: i32) -> (i32, i32) {
    %c0_i32 = arith.constant 0 : i32
    %c0_i32_0 = arith.constant 0 : i32
    %c0_i32_1 = arith.constant 0 : i32
    return %c0_i32, %c0_i32_0 : i32, i32
  }
  func.func @transform_3(%arg0: i32) -> (i32, i32) {
    %c0_i32 = arith.constant 0 : i32
    %c0_i32_0 = arith.constant 0 : i32
    return %arg0, %c0_i32 : i32, i32
  }
}

module attributes {stable_mosaic.version = 11 : i64} {
  func.func @_matmul_bias_relu_kernel(%arg0: i32, %arg1: memref<400x72xbf16, #tpu.memory_space<vmem>>, %arg2: memref<72x16xbf16, #tpu.memory_space<vmem>>, %arg3: memref<1x16xf32, #tpu.memory_space<vmem>>, %arg4: memref<400x16xbf16, #tpu.memory_space<vmem>>) attributes {dimension_semantics = [#tpu.dimension_semantics<parallel>], iteration_bounds = array<i64: 2>, scalar_prefetch = 0 : i64, scratch_operands = 0 : i64, tpu.core_type = #tpu.core_type<tc>, window_params = [{transform_indices = @transform_0, window_bounds = array<i64: 400, 72>}, {pipeline_mode = #tpu.pipeline_mode<synchronous>, transform_indices = @transform_1, window_bounds = array<i64: 72, 16>}, {pipeline_mode = #tpu.pipeline_mode<synchronous>, transform_indices = @transform_2, window_bounds = array<i64: 1, 16>}, {transform_indices = @transform_3, window_bounds = array<i64: 400, 16>}]} {
    %c0 = arith.constant 0 : index
    %c0_0 = arith.constant 0 : index
    %0 = vector.load %arg1[%c0, %c0_0] : memref<400x72xbf16, #tpu.memory_space<vmem>>, vector<400x72xbf16>
    %c0_1 = arith.constant 0 : index
    %c0_2 = arith.constant 0 : index
    %1 = vector.load %arg2[%c0_1, %c0_2] : memref<72x16xbf16, #tpu.memory_space<vmem>>, vector<72x16xbf16>
    %cst = arith.constant dense<0.000000e+00> : vector<400x16xf32>
    %2 = tpu.matmul %0, %1, %cst {dimension_numbers = #tpu.dot_dimension_numbers<[1], [0], [0], [1], [0, 0, 1, 1], [], []>} : vector<400x72xbf16>, vector<72x16xbf16>, vector<400x16xf32> -> vector<400x16xf32>
    %c0_3 = arith.constant 0 : index
    %c0_4 = arith.constant 0 : index
    %3 = vector.load %arg3[%c0_3, %c0_4] : memref<1x16xf32, #tpu.memory_space<vmem>>, vector<1x16xf32>
    %4 = vector.broadcast %3 : vector<1x16xf32> to vector<400x16xf32>
    %5 = arith.addf %2, %4 : vector<400x16xf32>
    %cst_5 = arith.constant 0.000000e+00 : f32
    %6 = vector.broadcast %cst_5 : f32 to vector<400x16xf32>
    %7 = arith.maximumf %5, %6 : vector<400x16xf32>
    %8 = arith.truncf %7 : vector<400x16xf32> to vector<400x16xbf16>
    %c0_6 = arith.constant 0 : index
    %c0_7 = arith.constant 0 : index
    %9 = vector.load %arg4[%c0_6, %c0_7] : memref<400x16xbf16, #tpu.memory_space<vmem>>, vector<400x16xbf16>
    tpu.vector_store %arg4[%c0_6, %c0_7], %8 {strides = array<i32>} : memref<400x16xbf16, #tpu.memory_space<vmem>>, vector<400x16xbf16>,
    return
  }
  func.func @transform_0(%arg0: i32) -> (i32, i32) {
    %c0_i32 = arith.constant 0 : i32
    %c0_i32_0 = arith.constant 0 : i32
    return %arg0, %c0_i32 : i32, i32
  }
  func.func @transform_1(%arg0: i32) -> (i32, i32) {
    %c0_i32 = arith.constant 0 : i32
    %c0_i32_0 = arith.constant 0 : i32
    %c0_i32_1 = arith.constant 0 : i32
    return %c0_i32, %c0_i32_0 : i32, i32
  }
  func.func @transform_2(%arg0: i32) -> (i32, i32) {
    %c0_i32 = arith.constant 0 : i32
    %c0_i32_0 = arith.constant 0 : i32
    %c0_i32_1 = arith.constant 0 : i32
    return %c0_i32, %c0_i32_0 : i32, i32
  }
  func.func @transform_3(%arg0: i32) -> (i32, i32) {
    %c0_i32 = arith.constant 0 : i32
    %c0_i32_0 = arith.constant 0 : i32
    return %arg0, %c0_i32 : i32, i32
  }
}

module attributes {stable_mosaic.version = 11 : i64} {
  func.func @_matmul_bias_relu_kernel(%arg0: i32, %arg1: memref<288x144xbf16, #tpu.memory_space<vmem>>, %arg2: memref<144x16xbf16, #tpu.memory_space<vmem>>, %arg3: memref<1x16xf32, #tpu.memory_space<vmem>>, %arg4: memref<288x16xbf16, #tpu.memory_space<vmem>>) attributes {dimension_semantics = [#tpu.dimension_semantics<parallel>], iteration_bounds = array<i64: 1>, scalar_prefetch = 0 : i64, scratch_operands = 0 : i64, tpu.core_type = #tpu.core_type<tc>, window_params = [{transform_indices = @transform_0, window_bounds = array<i64: 288, 144>}, {pipeline_mode = #tpu.pipeline_mode<synchronous>, transform_indices = @transform_1, window_bounds = array<i64: 144, 16>}, {pipeline_mode = #tpu.pipeline_mode<synchronous>, transform_indices = @transform_2, window_bounds = array<i64: 1, 16>}, {transform_indices = @transform_3, window_bounds = array<i64: 288, 16>}]} {
    %c0 = arith.constant 0 : index
    %c0_0 = arith.constant 0 : index
    %0 = vector.load %arg1[%c0, %c0_0] : memref<288x144xbf16, #tpu.memory_space<vmem>>, vector<288x144xbf16>
    %c0_1 = arith.constant 0 : index
    %c0_2 = arith.constant 0 : index
    %1 = vector.load %arg2[%c0_1, %c0_2] : memref<144x16xbf16, #tpu.memory_space<vmem>>, vector<144x16xbf16>
    %cst = arith.constant dense<0.000000e+00> : vector<288x16xf32>
    %2 = tpu.matmul %0, %1, %cst {dimension_numbers = #tpu.dot_dimension_numbers<[1], [0], [0], [1], [0, 0, 1, 1], [], []>} : vector<288x144xbf16>, vector<144x16xbf16>, vector<288x16xf32> -> vector<288x16xf32>
    %c0_3 = arith.constant 0 : index
    %c0_4 = arith.constant 0 : index
    %3 = vector.load %arg3[%c0_3, %c0_4] : memref<1x16xf32, #tpu.memory_space<vmem>>, vector<1x16xf32>
    %4 = vector.broadcast %3 : vector<1x16xf32> to vector<288x16xf32>
    %5 = arith.addf %2, %4 : vector<288x16xf32>
    %cst_5 = arith.constant 0.000000e+00 : f32
    %6 = vector.broadcast %cst_5 : f32 to vector<288x16xf32>
    %7 = arith.maximumf %5, %6 : vector<288x16xf32>
    %8 = arith.truncf %7 : vector<288x16xf32> to vector<288x16xbf16>
    %c0_6 = arith.constant 0 : index
    %c0_7 = arith.constant 0 : index
    %9 = vector.load %arg4[%c0_6, %c0_7] : memref<288x16xbf16, #tpu.memory_space<vmem>>, vector<288x16xbf16>
    tpu.vector_store %arg4[%c0_6, %c0_7], %8 {strides = array<i32>} : memref<288x16xbf16, #tpu.memory_space<vmem>>, vector<288x16xbf16>,
    return
  }
  func.func @transform_0(%arg0: i32) -> (i32, i32) {
    %c0_i32 = arith.constant 0 : i32
    %c0_i32_0 = arith.constant 0 : i32
    return %arg0, %c0_i32 : i32, i32
  }
  func.func @transform_1(%arg0: i32) -> (i32, i32) {
    %c0_i32 = arith.constant 0 : i32
    %c0_i32_0 = arith.constant 0 : i32
    %c0_i32_1 = arith.constant 0 : i32
    return %c0_i32, %c0_i32_0 : i32, i32
  }
  func.func @transform_2(%arg0: i32) -> (i32, i32) {
    %c0_i32 = arith.constant 0 : i32
    %c0_i32_0 = arith.constant 0 : i32
    %c0_i32_1 = arith.constant 0 : i32
    return %c0_i32, %c0_i32_0 : i32, i32
  }
  func.func @transform_3(%arg0: i32) -> (i32, i32) {
    %c0_i32 = arith.constant 0 : i32
    %c0_i32_0 = arith.constant 0 : i32
    return %arg0, %c0_i32 : i32, i32
  }
}

module attributes {stable_mosaic.version = 11 : i64} {
  func.func @_matmul_bias_relu_kernel(%arg0: i32, %arg1: memref<392x144xbf16, #tpu.memory_space<vmem>>, %arg2: memref<144x32xbf16, #tpu.memory_space<vmem>>, %arg3: memref<1x32xf32, #tpu.memory_space<vmem>>, %arg4: memref<392x32xbf16, #tpu.memory_space<vmem>>) attributes {dimension_semantics = [#tpu.dimension_semantics<parallel>], iteration_bounds = array<i64: 1>, scalar_prefetch = 0 : i64, scratch_operands = 0 : i64, tpu.core_type = #tpu.core_type<tc>, window_params = [{transform_indices = @transform_0, window_bounds = array<i64: 392, 144>}, {pipeline_mode = #tpu.pipeline_mode<synchronous>, transform_indices = @transform_1, window_bounds = array<i64: 144, 32>}, {pipeline_mode = #tpu.pipeline_mode<synchronous>, transform_indices = @transform_2, window_bounds = array<i64: 1, 32>}, {transform_indices = @transform_3, window_bounds = array<i64: 392, 32>}]} {
    %c0 = arith.constant 0 : index
    %c0_0 = arith.constant 0 : index
    %0 = vector.load %arg1[%c0, %c0_0] : memref<392x144xbf16, #tpu.memory_space<vmem>>, vector<392x144xbf16>
    %c0_1 = arith.constant 0 : index
    %c0_2 = arith.constant 0 : index
    %1 = vector.load %arg2[%c0_1, %c0_2] : memref<144x32xbf16, #tpu.memory_space<vmem>>, vector<144x32xbf16>
    %cst = arith.constant dense<0.000000e+00> : vector<392x32xf32>
    %2 = tpu.matmul %0, %1, %cst {dimension_numbers = #tpu.dot_dimension_numbers<[1], [0], [0], [1], [0, 0, 1, 1], [], []>} : vector<392x144xbf16>, vector<144x32xbf16>, vector<392x32xf32> -> vector<392x32xf32>
    %c0_3 = arith.constant 0 : index
    %c0_4 = arith.constant 0 : index
    %3 = vector.load %arg3[%c0_3, %c0_4] : memref<1x32xf32, #tpu.memory_space<vmem>>, vector<1x32xf32>
    %4 = vector.broadcast %3 : vector<1x32xf32> to vector<392x32xf32>
    %5 = arith.addf %2, %4 : vector<392x32xf32>
    %cst_5 = arith.constant 0.000000e+00 : f32
    %6 = vector.broadcast %cst_5 : f32 to vector<392x32xf32>
    %7 = arith.maximumf %5, %6 : vector<392x32xf32>
    %8 = arith.truncf %7 : vector<392x32xf32> to vector<392x32xbf16>
    %c0_6 = arith.constant 0 : index
    %c0_7 = arith.constant 0 : index
    %9 = vector.load %arg4[%c0_6, %c0_7] : memref<392x32xbf16, #tpu.memory_space<vmem>>, vector<392x32xbf16>
    tpu.vector_store %arg4[%c0_6, %c0_7], %8 {strides = array<i32>} : memref<392x32xbf16, #tpu.memory_space<vmem>>, vector<392x32xbf16>,
    return
  }
  func.func @transform_0(%arg0: i32) -> (i32, i32) {
    %c0_i32 = arith.constant 0 : i32
    %c0_i32_0 = arith.constant 0 : i32
    return %arg0, %c0_i32 : i32, i32
  }
  func.func @transform_1(%arg0: i32) -> (i32, i32) {
    %c0_i32 = arith.constant 0 : i32
    %c0_i32_0 = arith.constant 0 : i32
    %c0_i32_1 = arith.constant 0 : i32
    return %c0_i32, %c0_i32_0 : i32, i32
  }
  func.func @transform_2(%arg0: i32) -> (i32, i32) {
    %c0_i32 = arith.constant 0 : i32
    %c0_i32_0 = arith.constant 0 : i32
    %c0_i32_1 = arith.constant 0 : i32
    return %c0_i32, %c0_i32_0 : i32, i32
  }
  func.func @transform_3(%arg0: i32) -> (i32, i32) {
    %c0_i32 = arith.constant 0 : i32
    %c0_i32_0 = arith.constant 0 : i32
    return %arg0, %c0_i32 : i32, i32
  }
}

module attributes {stable_mosaic.version = 11 : i64} {
  func.func @_matmul_bias_relu_kernel(%arg0: i32, %arg1: memref<512x288xbf16, #tpu.memory_space<vmem>>, %arg2: memref<288x32xbf16, #tpu.memory_space<vmem>>, %arg3: memref<1x32xf32, #tpu.memory_space<vmem>>, %arg4: memref<512x32xbf16, #tpu.memory_space<vmem>>) attributes {dimension_semantics = [#tpu.dimension_semantics<parallel>], iteration_bounds = array<i64: 1>, scalar_prefetch = 0 : i64, scratch_operands = 0 : i64, tpu.core_type = #tpu.core_type<tc>, window_params = [{transform_indices = @transform_0, window_bounds = array<i64: 512, 288>}, {pipeline_mode = #tpu.pipeline_mode<synchronous>, transform_indices = @transform_1, window_bounds = array<i64: 288, 32>}, {pipeline_mode = #tpu.pipeline_mode<synchronous>, transform_indices = @transform_2, window_bounds = array<i64: 1, 32>}, {transform_indices = @transform_3, window_bounds = array<i64: 512, 32>}]} {
    %c0 = arith.constant 0 : index
    %c0_0 = arith.constant 0 : index
    %0 = vector.load %arg1[%c0, %c0_0] : memref<512x288xbf16, #tpu.memory_space<vmem>>, vector<512x288xbf16>
    %c0_1 = arith.constant 0 : index
    %c0_2 = arith.constant 0 : index
    %1 = vector.load %arg2[%c0_1, %c0_2] : memref<288x32xbf16, #tpu.memory_space<vmem>>, vector<288x32xbf16>
    %cst = arith.constant dense<0.000000e+00> : vector<512x32xf32>
    %2 = tpu.matmul %0, %1, %cst {dimension_numbers = #tpu.dot_dimension_numbers<[1], [0], [0], [1], [0, 0, 1, 1], [], []>} : vector<512x288xbf16>, vector<288x32xbf16>, vector<512x32xf32> -> vector<512x32xf32>
    %c0_3 = arith.constant 0 : index
    %c0_4 = arith.constant 0 : index
    %3 = vector.load %arg3[%c0_3, %c0_4] : memref<1x32xf32, #tpu.memory_space<vmem>>, vector<1x32xf32>
    %4 = vector.broadcast %3 : vector<1x32xf32> to vector<512x32xf32>
    %5 = arith.addf %2, %4 : vector<512x32xf32>
    %cst_5 = arith.constant 0.000000e+00 : f32
    %6 = vector.broadcast %cst_5 : f32 to vector<512x32xf32>
    %7 = arith.maximumf %5, %6 : vector<512x32xf32>
    %8 = arith.truncf %7 : vector<512x32xf32> to vector<512x32xbf16>
    %c0_6 = arith.constant 0 : index
    %c0_7 = arith.constant 0 : index
    %9 = vector.load %arg4[%c0_6, %c0_7] : memref<512x32xbf16, #tpu.memory_space<vmem>>, vector<512x32xbf16>
    tpu.vector_store %arg4[%c0_6, %c0_7], %8 {strides = array<i32>} : memref<512x32xbf16, #tpu.memory_space<vmem>>, vector<512x32xbf16>,
    return
  }
  func.func @transform_0(%arg0: i32) -> (i32, i32) {
    %c0_i32 = arith.constant 0 : i32
    %c0_i32_0 = arith.constant 0 : i32
    return %arg0, %c0_i32 : i32, i32
  }
  func.func @transform_1(%arg0: i32) -> (i32, i32) {
    %c0_i32 = arith.constant 0 : i32
    %c0_i32_0 = arith.constant 0 : i32
    %c0_i32_1 = arith.constant 0 : i32
    return %c0_i32, %c0_i32_0 : i32, i32
  }
  func.func @transform_2(%arg0: i32) -> (i32, i32) {
    %c0_i32 = arith.constant 0 : i32
    %c0_i32_0 = arith.constant 0 : i32
    %c0_i32_1 = arith.constant 0 : i32
    return %c0_i32, %c0_i32_0 : i32, i32
  }
  func.func @transform_3(%arg0: i32) -> (i32, i32) {
    %c0_i32 = arith.constant 0 : i32
    %c0_i32_0 = arith.constant 0 : i32
    return %arg0, %c0_i32 : i32, i32
  }
}

module attributes {stable_mosaic.version = 11 : i64} {
  func.func @_matmul_bias_relu_kernel(%arg0: i32, %arg1: memref<200x288xbf16, #tpu.memory_space<vmem>>, %arg2: memref<288x64xbf16, #tpu.memory_space<vmem>>, %arg3: memref<1x64xf32, #tpu.memory_space<vmem>>, %arg4: memref<200x64xbf16, #tpu.memory_space<vmem>>) attributes {dimension_semantics = [#tpu.dimension_semantics<parallel>], iteration_bounds = array<i64: 1>, scalar_prefetch = 0 : i64, scratch_operands = 0 : i64, tpu.core_type = #tpu.core_type<tc>, window_params = [{transform_indices = @transform_0, window_bounds = array<i64: 200, 288>}, {pipeline_mode = #tpu.pipeline_mode<synchronous>, transform_indices = @transform_1, window_bounds = array<i64: 288, 64>}, {pipeline_mode = #tpu.pipeline_mode<synchronous>, transform_indices = @transform_2, window_bounds = array<i64: 1, 64>}, {transform_indices = @transform_3, window_bounds = array<i64: 200, 64>}]} {
    %c0 = arith.constant 0 : index
    %c0_0 = arith.constant 0 : index
    %0 = vector.load %arg1[%c0, %c0_0] : memref<200x288xbf16, #tpu.memory_space<vmem>>, vector<200x288xbf16>
    %c0_1 = arith.constant 0 : index
    %c0_2 = arith.constant 0 : index
    %1 = vector.load %arg2[%c0_1, %c0_2] : memref<288x64xbf16, #tpu.memory_space<vmem>>, vector<288x64xbf16>
    %cst = arith.constant dense<0.000000e+00> : vector<200x64xf32>
    %2 = tpu.matmul %0, %1, %cst {dimension_numbers = #tpu.dot_dimension_numbers<[1], [0], [0], [1], [0, 0, 1, 1], [], []>} : vector<200x288xbf16>, vector<288x64xbf16>, vector<200x64xf32> -> vector<200x64xf32>
    %c0_3 = arith.constant 0 : index
    %c0_4 = arith.constant 0 : index
    %3 = vector.load %arg3[%c0_3, %c0_4] : memref<1x64xf32, #tpu.memory_space<vmem>>, vector<1x64xf32>
    %4 = vector.broadcast %3 : vector<1x64xf32> to vector<200x64xf32>
    %5 = arith.addf %2, %4 : vector<200x64xf32>
    %cst_5 = arith.constant 0.000000e+00 : f32
    %6 = vector.broadcast %cst_5 : f32 to vector<200x64xf32>
    %7 = arith.maximumf %5, %6 : vector<200x64xf32>
    %8 = arith.truncf %7 : vector<200x64xf32> to vector<200x64xbf16>
    %c0_6 = arith.constant 0 : index
    %c0_7 = arith.constant 0 : index
    %9 = vector.load %arg4[%c0_6, %c0_7] : memref<200x64xbf16, #tpu.memory_space<vmem>>, vector<200x64xbf16>
    tpu.vector_store %arg4[%c0_6, %c0_7], %8 {strides = array<i32>} : memref<200x64xbf16, #tpu.memory_space<vmem>>, vector<200x64xbf16>,
    return
  }
  func.func @transform_0(%arg0: i32) -> (i32, i32) {
    %c0_i32 = arith.constant 0 : i32
    %c0_i32_0 = arith.constant 0 : i32
    return %arg0, %c0_i32 : i32, i32
  }
  func.func @transform_1(%arg0: i32) -> (i32, i32) {
    %c0_i32 = arith.constant 0 : i32
    %c0_i32_0 = arith.constant 0 : i32
    %c0_i32_1 = arith.constant 0 : i32
    return %c0_i32, %c0_i32_0 : i32, i32
  }
  func.func @transform_2(%arg0: i32) -> (i32, i32) {
    %c0_i32 = arith.constant 0 : i32
    %c0_i32_0 = arith.constant 0 : i32
    %c0_i32_1 = arith.constant 0 : i32
    return %c0_i32, %c0_i32_0 : i32, i32
  }
  func.func @transform_3(%arg0: i32) -> (i32, i32) {
    %c0_i32 = arith.constant 0 : i32
    %c0_i32_0 = arith.constant 0 : i32
    return %arg0, %c0_i32 : i32, i32
  }
}

module attributes {stable_mosaic.version = 11 : i64} {
  func.func @_matmul_bias_relu_kernel(%arg0: i32, %arg1: memref<288x576xbf16, #tpu.memory_space<vmem>>, %arg2: memref<576x64xbf16, #tpu.memory_space<vmem>>, %arg3: memref<1x64xf32, #tpu.memory_space<vmem>>, %arg4: memref<288x64xbf16, #tpu.memory_space<vmem>>) attributes {dimension_semantics = [#tpu.dimension_semantics<parallel>], iteration_bounds = array<i64: 1>, scalar_prefetch = 0 : i64, scratch_operands = 0 : i64, tpu.core_type = #tpu.core_type<tc>, window_params = [{transform_indices = @transform_0, window_bounds = array<i64: 288, 576>}, {pipeline_mode = #tpu.pipeline_mode<synchronous>, transform_indices = @transform_1, window_bounds = array<i64: 576, 64>}, {pipeline_mode = #tpu.pipeline_mode<synchronous>, transform_indices = @transform_2, window_bounds = array<i64: 1, 64>}, {transform_indices = @transform_3, window_bounds = array<i64: 288, 64>}]} {
    %c0 = arith.constant 0 : index
    %c0_0 = arith.constant 0 : index
    %0 = vector.load %arg1[%c0, %c0_0] : memref<288x576xbf16, #tpu.memory_space<vmem>>, vector<288x576xbf16>
    %c0_1 = arith.constant 0 : index
    %c0_2 = arith.constant 0 : index
    %1 = vector.load %arg2[%c0_1, %c0_2] : memref<576x64xbf16, #tpu.memory_space<vmem>>, vector<576x64xbf16>
    %cst = arith.constant dense<0.000000e+00> : vector<288x64xf32>
    %2 = tpu.matmul %0, %1, %cst {dimension_numbers = #tpu.dot_dimension_numbers<[1], [0], [0], [1], [0, 0, 1, 1], [], []>} : vector<288x576xbf16>, vector<576x64xbf16>, vector<288x64xf32> -> vector<288x64xf32>
    %c0_3 = arith.constant 0 : index
    %c0_4 = arith.constant 0 : index
    %3 = vector.load %arg3[%c0_3, %c0_4] : memref<1x64xf32, #tpu.memory_space<vmem>>, vector<1x64xf32>
    %4 = vector.broadcast %3 : vector<1x64xf32> to vector<288x64xf32>
    %5 = arith.addf %2, %4 : vector<288x64xf32>
    %cst_5 = arith.constant 0.000000e+00 : f32
    %6 = vector.broadcast %cst_5 : f32 to vector<288x64xf32>
    %7 = arith.maximumf %5, %6 : vector<288x64xf32>
    %8 = arith.truncf %7 : vector<288x64xf32> to vector<288x64xbf16>
    %c0_6 = arith.constant 0 : index
    %c0_7 = arith.constant 0 : index
    %9 = vector.load %arg4[%c0_6, %c0_7] : memref<288x64xbf16, #tpu.memory_space<vmem>>, vector<288x64xbf16>
    tpu.vector_store %arg4[%c0_6, %c0_7], %8 {strides = array<i32>} : memref<288x64xbf16, #tpu.memory_space<vmem>>, vector<288x64xbf16>,
    return
  }
  func.func @transform_0(%arg0: i32) -> (i32, i32) {
    %c0_i32 = arith.constant 0 : i32
    %c0_i32_0 = arith.constant 0 : i32
    return %arg0, %c0_i32 : i32, i32
  }
  func.func @transform_1(%arg0: i32) -> (i32, i32) {
    %c0_i32 = arith.constant 0 : i32
    %c0_i32_0 = arith.constant 0 : i32
    %c0_i32_1 = arith.constant 0 : i32
    return %c0_i32, %c0_i32_0 : i32, i32
  }
  func.func @transform_2(%arg0: i32) -> (i32, i32) {
    %c0_i32 = arith.constant 0 : i32
    %c0_i32_0 = arith.constant 0 : i32
    %c0_i32_1 = arith.constant 0 : i32
    return %c0_i32, %c0_i32_0 : i32, i32
  }
  func.func @transform_3(%arg0: i32) -> (i32, i32) {
    %c0_i32 = arith.constant 0 : i32
    %c0_i32_0 = arith.constant 0 : i32
    return %arg0, %c0_i32 : i32, i32
  }
}

module attributes {stable_mosaic.version = 11 : i64} {
  func.func @_matmul_bias_relu_kernel(%arg0: i32, %arg1: memref<32x576xbf16, #tpu.memory_space<vmem>>, %arg2: memref<576x64xbf16, #tpu.memory_space<vmem>>, %arg3: memref<1x64xf32, #tpu.memory_space<vmem>>, %arg4: memref<32x64xbf16, #tpu.memory_space<vmem>>) attributes {dimension_semantics = [#tpu.dimension_semantics<parallel>], iteration_bounds = array<i64: 1>, scalar_prefetch = 0 : i64, scratch_operands = 0 : i64, tpu.core_type = #tpu.core_type<tc>, window_params = [{transform_indices = @transform_0, window_bounds = array<i64: 32, 576>}, {pipeline_mode = #tpu.pipeline_mode<synchronous>, transform_indices = @transform_1, window_bounds = array<i64: 576, 64>}, {pipeline_mode = #tpu.pipeline_mode<synchronous>, transform_indices = @transform_2, window_bounds = array<i64: 1, 64>}, {transform_indices = @transform_3, window_bounds = array<i64: 32, 64>}]} {
    %c0 = arith.constant 0 : index
    %c0_0 = arith.constant 0 : index
    %0 = vector.load %arg1[%c0, %c0_0] : memref<32x576xbf16, #tpu.memory_space<vmem>>, vector<32x576xbf16>
    %c0_1 = arith.constant 0 : index
    %c0_2 = arith.constant 0 : index
    %1 = vector.load %arg2[%c0_1, %c0_2] : memref<576x64xbf16, #tpu.memory_space<vmem>>, vector<576x64xbf16>
    %cst = arith.constant dense<0.000000e+00> : vector<32x64xf32>
    %2 = tpu.matmul %0, %1, %cst {dimension_numbers = #tpu.dot_dimension_numbers<[1], [0], [0], [1], [0, 0, 1, 1], [], []>} : vector<32x576xbf16>, vector<576x64xbf16>, vector<32x64xf32> -> vector<32x64xf32>
    %c0_3 = arith.constant 0 : index
    %c0_4 = arith.constant 0 : index
    %3 = vector.load %arg3[%c0_3, %c0_4] : memref<1x64xf32, #tpu.memory_space<vmem>>, vector<1x64xf32>
    %4 = vector.broadcast %3 : vector<1x64xf32> to vector<32x64xf32>
    %5 = arith.addf %2, %4 : vector<32x64xf32>
    %cst_5 = arith.constant 0.000000e+00 : f32
    %6 = vector.broadcast %cst_5 : f32 to vector<32x64xf32>
    %7 = arith.maximumf %5, %6 : vector<32x64xf32>
    %8 = arith.truncf %7 : vector<32x64xf32> to vector<32x64xbf16>
    %c0_6 = arith.constant 0 : index
    %c0_7 = arith.constant 0 : index
    %9 = vector.load %arg4[%c0_6, %c0_7] : memref<32x64xbf16, #tpu.memory_space<vmem>>, vector<32x64xbf16>
    tpu.vector_store %arg4[%c0_6, %c0_7], %8 {strides = array<i32>} : memref<32x64xbf16, #tpu.memory_space<vmem>>, vector<32x64xbf16>,
    return
  }
  func.func @transform_0(%arg0: i32) -> (i32, i32) {
    %c0_i32 = arith.constant 0 : i32
    %c0_i32_0 = arith.constant 0 : i32
    return %arg0, %c0_i32 : i32, i32
  }
  func.func @transform_1(%arg0: i32) -> (i32, i32) {
    %c0_i32 = arith.constant 0 : i32
    %c0_i32_0 = arith.constant 0 : i32
    %c0_i32_1 = arith.constant 0 : i32
    return %c0_i32, %c0_i32_0 : i32, i32
  }
  func.func @transform_2(%arg0: i32) -> (i32, i32) {
    %c0_i32 = arith.constant 0 : i32
    %c0_i32_0 = arith.constant 0 : i32
    %c0_i32_1 = arith.constant 0 : i32
    return %c0_i32, %c0_i32_0 : i32, i32
  }
  func.func @transform_3(%arg0: i32) -> (i32, i32) {
    %c0_i32 = arith.constant 0 : i32
    %c0_i32_0 = arith.constant 0 : i32
    return %arg0, %c0_i32 : i32, i32
  }
}

module attributes {stable_mosaic.version = 11 : i64} {
  func.func @_matmul_bias_relu_kernel(%arg0: i32, %arg1: memref<32x576xbf16, #tpu.memory_space<vmem>>, %arg2: memref<576x32xbf16, #tpu.memory_space<vmem>>, %arg3: memref<1x32xf32, #tpu.memory_space<vmem>>, %arg4: memref<32x32xbf16, #tpu.memory_space<vmem>>) attributes {dimension_semantics = [#tpu.dimension_semantics<parallel>], iteration_bounds = array<i64: 1>, scalar_prefetch = 0 : i64, scratch_operands = 0 : i64, tpu.core_type = #tpu.core_type<tc>, window_params = [{transform_indices = @transform_0, window_bounds = array<i64: 32, 576>}, {pipeline_mode = #tpu.pipeline_mode<synchronous>, transform_indices = @transform_1, window_bounds = array<i64: 576, 32>}, {pipeline_mode = #tpu.pipeline_mode<synchronous>, transform_indices = @transform_2, window_bounds = array<i64: 1, 32>}, {transform_indices = @transform_3, window_bounds = array<i64: 32, 32>}]} {
    %c0 = arith.constant 0 : index
    %c0_0 = arith.constant 0 : index
    %0 = vector.load %arg1[%c0, %c0_0] : memref<32x576xbf16, #tpu.memory_space<vmem>>, vector<32x576xbf16>
    %c0_1 = arith.constant 0 : index
    %c0_2 = arith.constant 0 : index
    %1 = vector.load %arg2[%c0_1, %c0_2] : memref<576x32xbf16, #tpu.memory_space<vmem>>, vector<576x32xbf16>
    %cst = arith.constant dense<0.000000e+00> : vector<32x32xf32>
    %2 = tpu.matmul %0, %1, %cst {dimension_numbers = #tpu.dot_dimension_numbers<[1], [0], [0], [1], [0, 0, 1, 1], [], []>} : vector<32x576xbf16>, vector<576x32xbf16>, vector<32x32xf32> -> vector<32x32xf32>
    %c0_3 = arith.constant 0 : index
    %c0_4 = arith.constant 0 : index
    %3 = vector.load %arg3[%c0_3, %c0_4] : memref<1x32xf32, #tpu.memory_space<vmem>>, vector<1x32xf32>
    %4 = vector.broadcast %3 : vector<1x32xf32> to vector<32x32xf32>
    %5 = arith.addf %2, %4 : vector<32x32xf32>
    %cst_5 = arith.constant 0.000000e+00 : f32
    %6 = vector.broadcast %cst_5 : f32 to vector<32x32xf32>
    %7 = arith.maximumf %5, %6 : vector<32x32xf32>
    %8 = arith.truncf %7 : vector<32x32xf32> to vector<32x32xbf16>
    %c0_6 = arith.constant 0 : index
    %c0_7 = arith.constant 0 : index
    %9 = vector.load %arg4[%c0_6, %c0_7] : memref<32x32xbf16, #tpu.memory_space<vmem>>, vector<32x32xbf16>
    tpu.vector_store %arg4[%c0_6, %c0_7], %8 {strides = array<i32>} : memref<32x32xbf16, #tpu.memory_space<vmem>>, vector<32x32xbf16>,
    return
  }
  func.func @transform_0(%arg0: i32) -> (i32, i32) {
    %c0_i32 = arith.constant 0 : i32
    %c0_i32_0 = arith.constant 0 : i32
    return %arg0, %c0_i32 : i32, i32
  }
  func.func @transform_1(%arg0: i32) -> (i32, i32) {
    %c0_i32 = arith.constant 0 : i32
    %c0_i32_0 = arith.constant 0 : i32
    %c0_i32_1 = arith.constant 0 : i32
    return %c0_i32, %c0_i32_0 : i32, i32
  }
  func.func @transform_2(%arg0: i32) -> (i32, i32) {
    %c0_i32 = arith.constant 0 : i32
    %c0_i32_0 = arith.constant 0 : i32
    %c0_i32_1 = arith.constant 0 : i32
    return %c0_i32, %c0_i32_0 : i32, i32
  }
  func.func @transform_3(%arg0: i32) -> (i32, i32) {
    %c0_i32 = arith.constant 0 : i32
    %c0_i32_0 = arith.constant 0 : i32
    return %arg0, %c0_i32 : i32, i32
  }
}

module attributes {stable_mosaic.version = 11 : i64} {
  func.func @_matmul_bias_relu_kernel(%arg0: i32, %arg1: memref<72x576xbf16, #tpu.memory_space<vmem>>, %arg2: memref<576x64xbf16, #tpu.memory_space<vmem>>, %arg3: memref<1x64xf32, #tpu.memory_space<vmem>>, %arg4: memref<72x64xbf16, #tpu.memory_space<vmem>>) attributes {dimension_semantics = [#tpu.dimension_semantics<parallel>], iteration_bounds = array<i64: 1>, scalar_prefetch = 0 : i64, scratch_operands = 0 : i64, tpu.core_type = #tpu.core_type<tc>, window_params = [{transform_indices = @transform_0, window_bounds = array<i64: 72, 576>}, {pipeline_mode = #tpu.pipeline_mode<synchronous>, transform_indices = @transform_1, window_bounds = array<i64: 576, 64>}, {pipeline_mode = #tpu.pipeline_mode<synchronous>, transform_indices = @transform_2, window_bounds = array<i64: 1, 64>}, {transform_indices = @transform_3, window_bounds = array<i64: 72, 64>}]} {
    %c0 = arith.constant 0 : index
    %c0_0 = arith.constant 0 : index
    %0 = vector.load %arg1[%c0, %c0_0] : memref<72x576xbf16, #tpu.memory_space<vmem>>, vector<72x576xbf16>
    %c0_1 = arith.constant 0 : index
    %c0_2 = arith.constant 0 : index
    %1 = vector.load %arg2[%c0_1, %c0_2] : memref<576x64xbf16, #tpu.memory_space<vmem>>, vector<576x64xbf16>
    %cst = arith.constant dense<0.000000e+00> : vector<72x64xf32>
    %2 = tpu.matmul %0, %1, %cst {dimension_numbers = #tpu.dot_dimension_numbers<[1], [0], [0], [1], [0, 0, 1, 1], [], []>} : vector<72x576xbf16>, vector<576x64xbf16>, vector<72x64xf32> -> vector<72x64xf32>
    %c0_3 = arith.constant 0 : index
    %c0_4 = arith.constant 0 : index
    %3 = vector.load %arg3[%c0_3, %c0_4] : memref<1x64xf32, #tpu.memory_space<vmem>>, vector<1x64xf32>
    %4 = vector.broadcast %3 : vector<1x64xf32> to vector<72x64xf32>
    %5 = arith.addf %2, %4 : vector<72x64xf32>
    %cst_5 = arith.constant 0.000000e+00 : f32
    %6 = vector.broadcast %cst_5 : f32 to vector<72x64xf32>
    %7 = arith.maximumf %5, %6 : vector<72x64xf32>
    %8 = arith.truncf %7 : vector<72x64xf32> to vector<72x64xbf16>
    %c0_6 = arith.constant 0 : index
    %c0_7 = arith.constant 0 : index
    %9 = vector.load %arg4[%c0_6, %c0_7] : memref<72x64xbf16, #tpu.memory_space<vmem>>, vector<72x64xbf16>
    tpu.vector_store %arg4[%c0_6, %c0_7], %8 {strides = array<i32>} : memref<72x64xbf16, #tpu.memory_space<vmem>>, vector<72x64xbf16>,
    return
  }
  func.func @transform_0(%arg0: i32) -> (i32, i32) {
    %c0_i32 = arith.constant 0 : i32
    %c0_i32_0 = arith.constant 0 : i32
    return %arg0, %c0_i32 : i32, i32
  }
  func.func @transform_1(%arg0: i32) -> (i32, i32) {
    %c0_i32 = arith.constant 0 : i32
    %c0_i32_0 = arith.constant 0 : i32
    %c0_i32_1 = arith.constant 0 : i32
    return %c0_i32, %c0_i32_0 : i32, i32
  }
  func.func @transform_2(%arg0: i32) -> (i32, i32) {
    %c0_i32 = arith.constant 0 : i32
    %c0_i32_0 = arith.constant 0 : i32
    %c0_i32_1 = arith.constant 0 : i32
    return %c0_i32, %c0_i32_0 : i32, i32
  }
  func.func @transform_3(%arg0: i32) -> (i32, i32) {
    %c0_i32 = arith.constant 0 : i32
    %c0_i32_0 = arith.constant 0 : i32
    return %arg0, %c0_i32 : i32, i32
  }
}

module attributes {stable_mosaic.version = 11 : i64} {
  func.func @_matmul_bias_relu_kernel(%arg0: i32, %arg1: memref<72x288xbf16, #tpu.memory_space<vmem>>, %arg2: memref<288x32xbf16, #tpu.memory_space<vmem>>, %arg3: memref<1x32xf32, #tpu.memory_space<vmem>>, %arg4: memref<72x32xbf16, #tpu.memory_space<vmem>>) attributes {dimension_semantics = [#tpu.dimension_semantics<parallel>], iteration_bounds = array<i64: 1>, scalar_prefetch = 0 : i64, scratch_operands = 0 : i64, tpu.core_type = #tpu.core_type<tc>, window_params = [{transform_indices = @transform_0, window_bounds = array<i64: 72, 288>}, {pipeline_mode = #tpu.pipeline_mode<synchronous>, transform_indices = @transform_1, window_bounds = array<i64: 288, 32>}, {pipeline_mode = #tpu.pipeline_mode<synchronous>, transform_indices = @transform_2, window_bounds = array<i64: 1, 32>}, {transform_indices = @transform_3, window_bounds = array<i64: 72, 32>}]} {
    %c0 = arith.constant 0 : index
    %c0_0 = arith.constant 0 : index
    %0 = vector.load %arg1[%c0, %c0_0] : memref<72x288xbf16, #tpu.memory_space<vmem>>, vector<72x288xbf16>
    %c0_1 = arith.constant 0 : index
    %c0_2 = arith.constant 0 : index
    %1 = vector.load %arg2[%c0_1, %c0_2] : memref<288x32xbf16, #tpu.memory_space<vmem>>, vector<288x32xbf16>
    %cst = arith.constant dense<0.000000e+00> : vector<72x32xf32>
    %2 = tpu.matmul %0, %1, %cst {dimension_numbers = #tpu.dot_dimension_numbers<[1], [0], [0], [1], [0, 0, 1, 1], [], []>} : vector<72x288xbf16>, vector<288x32xbf16>, vector<72x32xf32> -> vector<72x32xf32>
    %c0_3 = arith.constant 0 : index
    %c0_4 = arith.constant 0 : index
    %3 = vector.load %arg3[%c0_3, %c0_4] : memref<1x32xf32, #tpu.memory_space<vmem>>, vector<1x32xf32>
    %4 = vector.broadcast %3 : vector<1x32xf32> to vector<72x32xf32>
    %5 = arith.addf %2, %4 : vector<72x32xf32>
    %cst_5 = arith.constant 0.000000e+00 : f32
    %6 = vector.broadcast %cst_5 : f32 to vector<72x32xf32>
    %7 = arith.maximumf %5, %6 : vector<72x32xf32>
    %8 = arith.truncf %7 : vector<72x32xf32> to vector<72x32xbf16>
    %c0_6 = arith.constant 0 : index
    %c0_7 = arith.constant 0 : index
    %9 = vector.load %arg4[%c0_6, %c0_7] : memref<72x32xbf16, #tpu.memory_space<vmem>>, vector<72x32xbf16>
    tpu.vector_store %arg4[%c0_6, %c0_7], %8 {strides = array<i32>} : memref<72x32xbf16, #tpu.memory_space<vmem>>, vector<72x32xbf16>,
    return
  }
  func.func @transform_0(%arg0: i32) -> (i32, i32) {
    %c0_i32 = arith.constant 0 : i32
    %c0_i32_0 = arith.constant 0 : i32
    return %arg0, %c0_i32 : i32, i32
  }
  func.func @transform_1(%arg0: i32) -> (i32, i32) {
    %c0_i32 = arith.constant 0 : i32
    %c0_i32_0 = arith.constant 0 : i32
    %c0_i32_1 = arith.constant 0 : i32
    return %c0_i32, %c0_i32_0 : i32, i32
  }
  func.func @transform_2(%arg0: i32) -> (i32, i32) {
    %c0_i32 = arith.constant 0 : i32
    %c0_i32_0 = arith.constant 0 : i32
    %c0_i32_1 = arith.constant 0 : i32
    return %c0_i32, %c0_i32_0 : i32, i32
  }
  func.func @transform_3(%arg0: i32) -> (i32, i32) {
    %c0_i32 = arith.constant 0 : i32
    %c0_i32_0 = arith.constant 0 : i32
    return %arg0, %c0_i32 : i32, i32
  }
}

module attributes {stable_mosaic.version = 11 : i64} {
  func.func @_matmul_bias_relu_kernel(%arg0: i32, %arg1: memref<128x288xbf16, #tpu.memory_space<vmem>>, %arg2: memref<288x16xbf16, #tpu.memory_space<vmem>>, %arg3: memref<1x16xf32, #tpu.memory_space<vmem>>, %arg4: memref<128x16xbf16, #tpu.memory_space<vmem>>) attributes {dimension_semantics = [#tpu.dimension_semantics<parallel>], iteration_bounds = array<i64: 1>, scalar_prefetch = 0 : i64, scratch_operands = 0 : i64, tpu.core_type = #tpu.core_type<tc>, window_params = [{transform_indices = @transform_0, window_bounds = array<i64: 128, 288>}, {pipeline_mode = #tpu.pipeline_mode<synchronous>, transform_indices = @transform_1, window_bounds = array<i64: 288, 16>}, {pipeline_mode = #tpu.pipeline_mode<synchronous>, transform_indices = @transform_2, window_bounds = array<i64: 1, 16>}, {transform_indices = @transform_3, window_bounds = array<i64: 128, 16>}]} {
    %c0 = arith.constant 0 : index
    %c0_0 = arith.constant 0 : index
    %0 = vector.load %arg1[%c0, %c0_0] : memref<128x288xbf16, #tpu.memory_space<vmem>>, vector<128x288xbf16>
    %c0_1 = arith.constant 0 : index
    %c0_2 = arith.constant 0 : index
    %1 = vector.load %arg2[%c0_1, %c0_2] : memref<288x16xbf16, #tpu.memory_space<vmem>>, vector<288x16xbf16>
    %cst = arith.constant dense<0.000000e+00> : vector<128x16xf32>
    %2 = tpu.matmul %0, %1, %cst {dimension_numbers = #tpu.dot_dimension_numbers<[1], [0], [0], [1], [0, 0, 1, 1], [], []>} : vector<128x288xbf16>, vector<288x16xbf16>, vector<128x16xf32> -> vector<128x16xf32>
    %c0_3 = arith.constant 0 : index
    %c0_4 = arith.constant 0 : index
    %3 = vector.load %arg3[%c0_3, %c0_4] : memref<1x16xf32, #tpu.memory_space<vmem>>, vector<1x16xf32>
    %4 = vector.broadcast %3 : vector<1x16xf32> to vector<128x16xf32>
    %5 = arith.addf %2, %4 : vector<128x16xf32>
    %cst_5 = arith.constant 0.000000e+00 : f32
    %6 = vector.broadcast %cst_5 : f32 to vector<128x16xf32>
    %7 = arith.maximumf %5, %6 : vector<128x16xf32>
    %8 = arith.truncf %7 : vector<128x16xf32> to vector<128x16xbf16>
    %c0_6 = arith.constant 0 : index
    %c0_7 = arith.constant 0 : index
    %9 = vector.load %arg4[%c0_6, %c0_7] : memref<128x16xbf16, #tpu.memory_space<vmem>>, vector<128x16xbf16>
    tpu.vector_store %arg4[%c0_6, %c0_7], %8 {strides = array<i32>} : memref<128x16xbf16, #tpu.memory_space<vmem>>, vector<128x16xbf16>,
    return
  }
  func.func @transform_0(%arg0: i32) -> (i32, i32) {
    %c0_i32 = arith.constant 0 : i32
    %c0_i32_0 = arith.constant 0 : i32
    return %arg0, %c0_i32 : i32, i32
  }
  func.func @transform_1(%arg0: i32) -> (i32, i32) {
    %c0_i32 = arith.constant 0 : i32
    %c0_i32_0 = arith.constant 0 : i32
    %c0_i32_1 = arith.constant 0 : i32
    return %c0_i32, %c0_i32_0 : i32, i32
  }
  func.func @transform_2(%arg0: i32) -> (i32, i32) {
    %c0_i32 = arith.constant 0 : i32
    %c0_i32_0 = arith.constant 0 : i32
    %c0_i32_1 = arith.constant 0 : i32
    return %c0_i32, %c0_i32_0 : i32, i32
  }
  func.func @transform_3(%arg0: i32) -> (i32, i32) {
    %c0_i32 = arith.constant 0 : i32
    %c0_i32_0 = arith.constant 0 : i32
    return %arg0, %c0_i32 : i32, i32
  }
}

module attributes {stable_mosaic.version = 11 : i64} {
  func.func @_matmul_bias_relu_kernel(%arg0: i32, %arg1: memref<32x144xbf16, #tpu.memory_space<vmem>>, %arg2: memref<144x16xbf16, #tpu.memory_space<vmem>>, %arg3: memref<1x16xf32, #tpu.memory_space<vmem>>, %arg4: memref<32x16xbf16, #tpu.memory_space<vmem>>) attributes {dimension_semantics = [#tpu.dimension_semantics<parallel>], iteration_bounds = array<i64: 1>, scalar_prefetch = 0 : i64, scratch_operands = 0 : i64, tpu.core_type = #tpu.core_type<tc>, window_params = [{transform_indices = @transform_0, window_bounds = array<i64: 32, 144>}, {pipeline_mode = #tpu.pipeline_mode<synchronous>, transform_indices = @transform_1, window_bounds = array<i64: 144, 16>}, {pipeline_mode = #tpu.pipeline_mode<synchronous>, transform_indices = @transform_2, window_bounds = array<i64: 1, 16>}, {transform_indices = @transform_3, window_bounds = array<i64: 32, 16>}]} {
    %c0 = arith.constant 0 : index
    %c0_0 = arith.constant 0 : index
    %0 = vector.load %arg1[%c0, %c0_0] : memref<32x144xbf16, #tpu.memory_space<vmem>>, vector<32x144xbf16>
    %c0_1 = arith.constant 0 : index
    %c0_2 = arith.constant 0 : index
    %1 = vector.load %arg2[%c0_1, %c0_2] : memref<144x16xbf16, #tpu.memory_space<vmem>>, vector<144x16xbf16>
    %cst = arith.constant dense<0.000000e+00> : vector<32x16xf32>
    %2 = tpu.matmul %0, %1, %cst {dimension_numbers = #tpu.dot_dimension_numbers<[1], [0], [0], [1], [0, 0, 1, 1], [], []>} : vector<32x144xbf16>, vector<144x16xbf16>, vector<32x16xf32> -> vector<32x16xf32>
    %c0_3 = arith.constant 0 : index
    %c0_4 = arith.constant 0 : index
    %3 = vector.load %arg3[%c0_3, %c0_4] : memref<1x16xf32, #tpu.memory_space<vmem>>, vector<1x16xf32>
    %4 = vector.broadcast %3 : vector<1x16xf32> to vector<32x16xf32>
    %5 = arith.addf %2, %4 : vector<32x16xf32>
    %cst_5 = arith.constant 0.000000e+00 : f32
    %6 = vector.broadcast %cst_5 : f32 to vector<32x16xf32>
    %7 = arith.maximumf %5, %6 : vector<32x16xf32>
    %8 = arith.truncf %7 : vector<32x16xf32> to vector<32x16xbf16>
    %c0_6 = arith.constant 0 : index
    %c0_7 = arith.constant 0 : index
    %9 = vector.load %arg4[%c0_6, %c0_7] : memref<32x16xbf16, #tpu.memory_space<vmem>>, vector<32x16xbf16>
    tpu.vector_store %arg4[%c0_6, %c0_7], %8 {strides = array<i32>} : memref<32x16xbf16, #tpu.memory_space<vmem>>, vector<32x16xbf16>,
    return
  }
  func.func @transform_0(%arg0: i32) -> (i32, i32) {
    %c0_i32 = arith.constant 0 : i32
    %c0_i32_0 = arith.constant 0 : i32
    return %arg0, %c0_i32 : i32, i32
  }
  func.func @transform_1(%arg0: i32) -> (i32, i32) {
    %c0_i32 = arith.constant 0 : i32
    %c0_i32_0 = arith.constant 0 : i32
    %c0_i32_1 = arith.constant 0 : i32
    return %c0_i32, %c0_i32_0 : i32, i32
  }
  func.func @transform_2(%arg0: i32) -> (i32, i32) {
    %c0_i32 = arith.constant 0 : i32
    %c0_i32_0 = arith.constant 0 : i32
    %c0_i32_1 = arith.constant 0 : i32
    return %c0_i32, %c0_i32_0 : i32, i32
  }
  func.func @transform_3(%arg0: i32) -> (i32, i32) {
    %c0_i32 = arith.constant 0 : i32
    %c0_i32_0 = arith.constant 0 : i32
    return %arg0, %c0_i32 : i32, i32
  }
}

module attributes {stable_mosaic.version = 11 : i64} {
  func.func @_matmul_bias_relu_kernel(%arg0: i32, %arg1: memref<72x144xbf16, #tpu.memory_space<vmem>>, %arg2: memref<144x1xbf16, #tpu.memory_space<vmem>>, %arg3: memref<1x1xf32, #tpu.memory_space<vmem>>, %arg4: memref<72x1xbf16, #tpu.memory_space<vmem>>) attributes {dimension_semantics = [#tpu.dimension_semantics<parallel>], iteration_bounds = array<i64: 1>, scalar_prefetch = 0 : i64, scratch_operands = 0 : i64, tpu.core_type = #tpu.core_type<tc>, window_params = [{transform_indices = @transform_0, window_bounds = array<i64: 72, 144>}, {pipeline_mode = #tpu.pipeline_mode<synchronous>, transform_indices = @transform_1, window_bounds = array<i64: 144, 1>}, {pipeline_mode = #tpu.pipeline_mode<synchronous>, transform_indices = @transform_2, window_bounds = array<i64: 1, 1>}, {transform_indices = @transform_3, window_bounds = array<i64: 72, 1>}]} {
    %c0 = arith.constant 0 : index
    %c0_0 = arith.constant 0 : index
    %0 = vector.load %arg1[%c0, %c0_0] : memref<72x144xbf16, #tpu.memory_space<vmem>>, vector<72x144xbf16>
    %c0_1 = arith.constant 0 : index
    %c0_2 = arith.constant 0 : index
    %1 = vector.load %arg2[%c0_1, %c0_2] : memref<144x1xbf16, #tpu.memory_space<vmem>>, vector<144x1xbf16>
    %cst = arith.constant dense<0.000000e+00> : vector<72x1xf32>
    %2 = tpu.matmul %0, %1, %cst {dimension_numbers = #tpu.dot_dimension_numbers<[1], [0], [0], [1], [0, 0, 1, 1], [], []>} : vector<72x144xbf16>, vector<144x1xbf16>, vector<72x1xf32> -> vector<72x1xf32>
    %c0_3 = arith.constant 0 : index
    %c0_4 = arith.constant 0 : index
    %3 = vector.load %arg3[%c0_3, %c0_4] : memref<1x1xf32, #tpu.memory_space<vmem>>, vector<1x1xf32>
    %4 = vector.broadcast %3 : vector<1x1xf32> to vector<72x1xf32>
    %5 = arith.addf %2, %4 : vector<72x1xf32>
    %cst_5 = arith.constant 0.000000e+00 : f32
    %6 = vector.broadcast %cst_5 : f32 to vector<72x1xf32>
    %7 = arith.maximumf %5, %6 : vector<72x1xf32>
    %8 = arith.truncf %7 : vector<72x1xf32> to vector<72x1xbf16>
    %c0_6 = arith.constant 0 : index
    %c0_7 = arith.constant 0 : index
    %9 = vector.load %arg4[%c0_6, %c0_7] : memref<72x1xbf16, #tpu.memory_space<vmem>>, vector<72x1xbf16>
    tpu.vector_store %arg4[%c0_6, %c0_7], %8 {strides = array<i32>} : memref<72x1xbf16, #tpu.memory_space<vmem>>, vector<72x1xbf16>,
    return
  }
  func.func @transform_0(%arg0: i32) -> (i32, i32) {
    %c0_i32 = arith.constant 0 : i32
    %c0_i32_0 = arith.constant 0 : i32
    return %arg0, %c0_i32 : i32, i32
  }
  func.func @transform_1(%arg0: i32) -> (i32, i32) {
    %c0_i32 = arith.constant 0 : i32
    %c0_i32_0 = arith.constant 0 : i32
    %c0_i32_1 = arith.constant 0 : i32
    return %c0_i32, %c0_i32_0 : i32, i32
  }
  func.func @transform_2(%arg0: i32) -> (i32, i32) {
    %c0_i32 = arith.constant 0 : i32
    %c0_i32_0 = arith.constant 0 : i32
    %c0_i32_1 = arith.constant 0 : i32
    return %c0_i32, %c0_i32_0 : i32, i32
  }
  func.func @transform_3(%arg0: i32) -> (i32, i32) {
    %c0_i32 = arith.constant 0 : i32
    %c0_i32_0 = arith.constant 0 : i32
    return %arg0, %c0_i32 : i32, i32
  }
}

</mosaic_0001>

<bundles_post_ra>
// kernel: segnet_forward.14
= control target key start
LH: loop header
LB: loop body
LE: loop exit
PB: predicated region body
PF: predicated region fallthrough
CT: control target
= control target key end

     0   :  { %s906_s12 = smov 0   ;;  %s1038_s0 = inlined_call_operand.vmem [shape: bf16[648,27], index: 0, kind: input, shape index: {}]   ;;  %s1039_s1 = inlined_call_operand.vmem [shape: bf16[27,8], index: 1, kind: input, shape index: {}]   ;;  %s1040_s2 = inlined_call_operand.vmem [shape: f32[1,8], index: 2, kind: input, shape index: {}]   ;;  %s1041_s3 = inlined_call_operand.vmem [shape: bf16[648,8], index: 3, kind: output, shape index: {}]  }
   0x1 LB: > { %s706_s13 = sadd.s32 4294967295, %s883_s12   ;;  %p710_p0 = scmp.ge.s32.totalorder %s883_s12, 1  ;;  %s883_s12 = sphi %s906_s12, %s13_s12  }
   0x2   : > { %p138_p1 = scmp.lt.s32.totalorder %s883_s12, 4 }
   0x4   : > { %p139_p2 = pnand %p710_p0, %p138_p1 }
   0x5   : > { %s162_s16 = smul.u32 (!%p139_p2), 27, %s706_s13 }
   0x6   : > { %142 = sbr.rel (%p139_p2) target bundleno = 254 (0xfe), region = 32 }
   0x7   : > { %p163_p3 = scmp.lt.s32.totalorder (!%p139_p2), %s162_s16, 80 }
   0xb   : > { %v861_v0 = vld [vmem:[%s1039_s1 + $0x8] sm:$0x3f]   ;;  %vm335_vm0 = vcmask 1044480   ;;  %vm336_vm1 = vcmask 1045504   ;;  %v885_v1 = vmov 65535   ;;  %v862_v5 = vld [vmem:[%s1039_s1] sm:$0xff]  }
   0xc   : > { %v337_v2 = vsel %vm335_vm0, 4294967295, %v885_v1  ;;  %s1043_s16 = smov (!%p163_p3, %s162_s16), 80  ;;  %vm292_vm2 = vcmask 220160   ;;  %v945_v20 = vld [vmem:[%s1040_s2] ss:$0 sm:$0xff]  ;;  %vm622_vm3 = vcmask 60416  }
   0xd   : > { %v338_v3 = vsel %vm336_vm1, %v337_v2, 0  ;;  %s711_s19 = sshll.u32 %s1043_s16, 2 }
   0xe   : > { %v340_v4 = vand.u32 %v861_v0, %v338_v3  ;;  %s166_s22 = scalar_lea.vmem %s1038_s0, %s711_s19  ;;  %s955_s27 = scalar_lea.vmem %s1041_s3, %s711_s19 }
   0xf   : > { %v863_v6 = vld [vmem:[%s166_s22] sm:$0xff]   ;;  %v864_v7 = vld [vmem:[%s166_s22 + $0x8] sm:$0xff]   ;;  %v867_v10 = vld [vmem:[%s166_s22 + $0x10] sm:$0xff]  }
  0x10   : > { %816 = vmatprep.subr.bf16.mxu0 %v340_v4  ;;  %848 = vmatprep.subr.bf16.mxu1 %v340_v4  ;;  %v865_v8 = vld [vmem:[%s166_s22 + $0x40] sm:$0xff]   ;;  %v866_v9 = vld [vmem:[%s166_s22 + $0x48] sm:$0xff]   ;;  %v869_v11 = vld [vmem:[%s166_s22 + $0x50] sm:$0xff]  }
  0x11   : > { %817 = vmatpush3.bf16.msra.mxu0 %v340_v4  ;;  %850 = vmatpush3.bf16.msra.mxu1 %v340_v4  ;;  %v868_v12 = vld [vmem:[%s166_s22 + $0x18] sm:$0xff]   ;;  %v871_v14 = vld [vmem:[%s166_s22 + $0x20] sm:$0xff]   ;;  %v872_v16 = vld [vmem:[%s166_s22 + $0x28] sm:$0xff]  }
  0x12   : > { %818 = vmatprep.subr.bf16.mxu0 %v862_v5  ;;  %849 = vmatprep.subr.bf16.mxu1 %v862_v5  ;;  %v870_v13 = vld [vmem:[%s166_s22 + $0x58] sm:$0xff]   ;;  %v873_v15 = vld [vmem:[%s166_s22 + $0x60] sm:$0xff]   ;;  %v874_v17 = vld [vmem:[%s166_s22 + $0x68] ss:$0 sps:$4 sm:$0xff]  }
  0x13   : > { %820 = vmatprep.mubr.msk.bf16.mxu0 %vm292_vm2, %v863_v6  ;;  %836 = vmatprep.mubr.msk.bf16.mxu1 %vm292_vm2, %v865_v8  ;;  %v875_v18 = vld [vmem:[%s166_s22 + $0x30] sm:$0xff]   ;;  %v876_v19 = vld [vmem:[%s166_s22 + $0x38] sm:$0xff]  }
  0x15   : > { %819 = vmatpush3.bf16.msra.mxu0 %v862_v5  ;;  %851 = vmatpush3.bf16.msra.mxu1 %v862_v5 }
  0x18   : > { %821 = vmatmul.mubr.msk.bf16.vlgmr.msra.gmra.mxu0 %vm292_vm2, %v864_v7  ;;  %837 = vmatmul.mubr.msk.bf16.vlgmr.msra.gmra.mxu1 %vm292_vm2, %v866_v9 }
  0x19   : > { %824 = vmatprep.mubr.msk.bf16.mxu0 %vm292_vm2, %v867_v10  ;;  %840 = vmatprep.mubr.msk.bf16.mxu1 %vm292_vm2, %v869_v11 }
  0x20   : > { %825 = vmatmul.mubr.msk.bf16.gmra.mxu0 %vm292_vm2, %v868_v12  ;;  %841 = vmatmul.mubr.msk.bf16.gmra.mxu1 %vm292_vm2, %v870_v13 }
  0x21   : > { %828 = vmatprep.mubr.msk.bf16.mxu0 %vm292_vm2, %v871_v14  ;;  %844 = vmatprep.mubr.msk.bf16.mxu1 %vm292_vm2, %v873_v15 }
  0x28   : > { %829 = vmatmul.mubr.msk.bf16.gmra.mxu0 %vm292_vm2, %v872_v16  ;;  %845 = vmatmul.mubr.msk.bf16.gmra.mxu1 %vm292_vm2, %v874_v17 }
  0x29   : > { %832 = vmatprep.mubr.msk.bf16.mxu0 %vm292_vm2, %v875_v18 }
  0x30   : > { %833 = vmatmul.mubr.msk.bf16.gmra.mxu0 %vm292_vm2, %v876_v19 }
  0xd8   : > { %v822_v21 = vpop.f32.mrf.mxu0  ;;  %v838_v23 = vpop.f32.mrf.mxu1 }
  0xd9   : > { %v385_v22 = vadd.f32 %v822_v21, %v945_v20  ;;  %v449_v25 = vadd.f32 %v838_v23, %v945_v20 }
  0xda   : > { %v376_v24 = vpop.f32.mrf.mxu0  ;;  %v440_v28 = vpop.f32.mrf.mxu1 }
  0xdb   : > { %v488_v26 = vmax.f32 %v385_v22, 0.0  ;;  %v377_v27 = vadd.f32 %v945_v20, %v376_v24  ;;  %v504_v29 = vmax.f32 %v449_v25, 0.0  ;;  %v441_v31 = vadd.f32 %v945_v20, %v440_v28 }
  0xdc   : > { %v823_v30 = vpop.f32.mrf.mxu0  ;;  %v839_v35 = vpop.f32.mrf.mxu1 }
  0xdd   : > { %v775_v32 = vpack.c.bf16 %v488_v26, %v488_v26  ;;  %v486_v33 = vmax.f32 %v377_v27, 0.0  ;;  %v388_v34 = vadd.f32 %v823_v30, %v945_v20  ;;  %v791_v36 = vpack.c.bf16 %v504_v29, %v504_v29 }
  0xde   : > { %v502_v37 = vmax.f32 %v441_v31, 0.0  ;;  %v379_v38 = vpop.f32.mrf.mxu0  ;;  %v452_v39 = vadd.f32 %v839_v35, %v945_v20  ;;  %v443_v43 = vpop.f32.mrf.mxu1 }
  0xdf   : > { %625 = vst.msk [vmem:[%s955_s27 + $0x8] sm:$0xf] %vm622_vm3, %v775_v32  ;;  %v773_v40 = vpack.c.bf16 %v486_v33, %v486_v33  ;;  %v489_v41 = vmax.f32 %v388_v34, 0.0  ;;  %v380_v42 = vadd.f32 %v945_v20, %v379_v38  ;;  %641 = vst.msk [vmem:[%s955_s27 + $0x48] sm:$0xf] %vm622_vm3, %v791_v36  ;;  %v444_v47 = vadd.f32 %v945_v20, %v443_v43 }
  0xe0   : > { %v789_v44 = vpack.c.bf16 %v502_v37, %v502_v37  ;;  %v505_v45 = vmax.f32 %v452_v39, 0.0  ;;  %v826_v46 = vpop.f32.mrf.mxu0  ;;  %v842_v51 = vpop.f32.mrf.mxu1 }
  0xe1   : > { %623 = vst.msk [vmem:[%s955_s27] sm:$0xf] %vm622_vm3, %v773_v40  ;;  %v776_v48 = vpack.c.bf16 %v489_v41, %v489_v41  ;;  %v487_v49 = vmax.f32 %v380_v42, 0.0  ;;  %v401_v50 = vadd.f32 %v826_v46, %v945_v20  ;;  %v503_v53 = vmax.f32 %v444_v47, 0.0 }
  0xe2   : > { %639 = vst.msk [vmem:[%s955_s27 + $0x40] sm:$0xf] %vm622_vm3, %v789_v44  ;;  %v792_v52 = vpack.c.bf16 %v505_v45, %v505_v45  ;;  %v392_v54 = vpop.f32.mrf.mxu0  ;;  %v465_v55 = vadd.f32 %v842_v51, %v945_v20  ;;  %v456_v59 = vpop.f32.mrf.mxu1 }
  0xe3   : > { %626 = vst.msk [vmem:[%s955_s27 + $0xc] sm:$0xf] %vm622_vm3, %v776_v48  ;;  %v774_v56 = vpack.c.bf16 %v487_v49, %v487_v49  ;;  %v492_v57 = vmax.f32 %v401_v50, 0.0  ;;  %v393_v58 = vadd.f32 %v945_v20, %v392_v54  ;;  %v790_v60 = vpack.c.bf16 %v503_v53, %v503_v53 }
  0xe4   : > { %642 = vst.msk [vmem:[%s955_s27 + $0x4c] sm:$0xf] %vm622_vm3, %v792_v52  ;;  %v508_v61 = vmax.f32 %v465_v55, 0.0  ;;  %v827_v62 = vpop.f32.mrf.mxu0  ;;  %v457_v63 = vadd.f32 %v945_v20, %v456_v59  ;;  %v843_v3 = vpop.f32.mrf.mxu1 }
  0xe5   : > { %624 = vst.msk [vmem:[%s955_s27 + $0x4] sm:$0xf] %vm622_vm3, %v774_v56  ;;  %v779_v0 = vpack.c.bf16 %v492_v57, %v492_v57  ;;  %v490_v1 = vmax.f32 %v393_v58, 0.0  ;;  %v404_v2 = vadd.f32 %v827_v62, %v945_v20  ;;  %640 = vst.msk [vmem:[%s955_s27 + $0x44] sm:$0xf] %vm622_vm3, %v790_v60  ;;  %v468_v7 = vadd.f32 %v843_v3, %v945_v20 }
  0xe6   : > { %v795_v4 = vpack.c.bf16 %v508_v61, %v508_v61  ;;  %v506_v5 = vmax.f32 %v457_v63, 0.0  ;;  %v395_v6 = vpop.f32.mrf.mxu0  ;;  %v459_v11 = vpop.f32.mrf.mxu1 }
  0xe7   : > { %629 = vst.msk [vmem:[%s955_s27 + $0x18] sm:$0xf] %vm622_vm3, %v779_v0  ;;  %v777_v8 = vpack.c.bf16 %v490_v1, %v490_v1  ;;  %v493_v9 = vmax.f32 %v404_v2, 0.0  ;;  %v396_v10 = vadd.f32 %v945_v20, %v395_v6  ;;  %v509_v13 = vmax.f32 %v468_v7, 0.0 }
  0xe8   : > { %645 = vst.msk [vmem:[%s955_s27 + $0x58] sm:$0xf] %vm622_vm3, %v795_v4  ;;  %v793_v12 = vpack.c.bf16 %v506_v5, %v506_v5  ;;  %v830_v14 = vpop.f32.mrf.mxu0  ;;  %v460_v15 = vadd.f32 %v945_v20, %v459_v11  ;;  %v846_v19 = vpop.f32.mrf.mxu1 }
  0xe9   : > { %627 = vst.msk [vmem:[%s955_s27 + $0x10] sm:$0xf] %vm622_vm3, %v777_v8  ;;  %v780_v16 = vpack.c.bf16 %v493_v9, %v493_v9  ;;  %v491_v17 = vmax.f32 %v396_v10, 0.0  ;;  %v417_v18 = vadd.f32 %v830_v14, %v945_v20  ;;  %v796_v21 = vpack.c.bf16 %v509_v13, %v509_v13 }
  0xea   : > { %643 = vst.msk [vmem:[%s955_s27 + $0x50] sm:$0xf] %vm622_vm3, %v793_v12  ;;  %v507_v22 = vmax.f32 %v460_v15, 0.0  ;;  %v408_v23 = vpop.f32.mrf.mxu0  ;;  %v481_v24 = vadd.f32 %v846_v19, %v945_v20  ;;  %v472_v28 = vpop.f32.mrf.mxu1 }
  0xeb   : > { %630 = vst.msk [vmem:[%s955_s27 + $0x1c] sm:$0xf] %vm622_vm3, %v780_v16  ;;  %v778_v25 = vpack.c.bf16 %v491_v17, %v491_v17  ;;  %v496_v26 = vmax.f32 %v417_v18, 0.0  ;;  %v409_v27 = vadd.f32 %v945_v20, %v408_v23  ;;  %646 = vst.msk [vmem:[%s955_s27 + $0x5c] sm:$0xf] %vm622_vm3, %v796_v21  ;;  %v473_v32 = vadd.f32 %v945_v20, %v472_v28 }
  0xec   : > { %v794_v29 = vpack.c.bf16 %v507_v22, %v507_v22  ;;  %v512_v30 = vmax.f32 %v481_v24, 0.0  ;;  %v831_v31 = vpop.f32.mrf.mxu0  ;;  %v847_v36 = vpop.f32.mrf.mxu1 }
  0xed   : > { %628 = vst.msk [vmem:[%s955_s27 + $0x14] sm:$0xf] %vm622_vm3, %v778_v25  ;;  %v783_v33 = vpack.c.bf16 %v496_v26, %v496_v26  ;;  %v494_v34 = vmax.f32 %v409_v27, 0.0  ;;  %v420_v35 = vadd.f32 %v831_v31, %v945_v20  ;;  %v510_v38 = vmax.f32 %v473_v32, 0.0 }
  0xee   : > { %644 = vst.msk [vmem:[%s955_s27 + $0x54] sm:$0xf] %vm622_vm3, %v794_v29  ;;  %v799_v37 = vpack.c.bf16 %v512_v30, %v512_v30  ;;  %v411_v39 = vpop.f32.mrf.mxu0  ;;  %v475_v43 = vpop.f32.mrf.mxu1 }
  0xef   : > { %633 = vst.msk [vmem:[%s955_s27 + $0x28] sm:$0xf] %vm622_vm3, %v783_v33  ;;  %v781_v40 = vpack.c.bf16 %v494_v34, %v494_v34  ;;  %v497_v41 = vmax.f32 %v420_v35, 0.0  ;;  %v412_v42 = vadd.f32 %v945_v20, %v411_v39  ;;  %v797_v44 = vpack.c.bf16 %v510_v38, %v510_v38 }
  0xf0   : > { %649 = vst.msk [vmem:[%s955_s27 + $0x68] sm:$0xf] %vm622_vm3, %v799_v37  ;;  %v834_v45 = vpop.f32.mrf.mxu0  ;;  %v476_v46 = vadd.f32 %v945_v20, %v475_v43 }
  0xf1   : > { %631 = vst.msk [vmem:[%s955_s27 + $0x20] sm:$0xf] %vm622_vm3, %v781_v40  ;;  %v784_v47 = vpack.c.bf16 %v497_v41, %v497_v41  ;;  %v495_v48 = vmax.f32 %v412_v42, 0.0  ;;  %v433_v49 = vadd.f32 %v834_v45, %v945_v20  ;;  %647 = vst.msk [vmem:[%s955_s27 + $0x60] sm:$0xf] %vm622_vm3, %v797_v44 }
  0xf2   : > { %v511_v50 = vmax.f32 %v476_v46, 0.0  ;;  %v424_v51 = vpop.f32.mrf.mxu0 }
  0xf3   : > { %634 = vst.msk [vmem:[%s955_s27 + $0x2c] sm:$0xf] %vm622_vm3, %v784_v47  ;;  %v782_v52 = vpack.c.bf16 %v495_v48, %v495_v48  ;;  %v500_v53 = vmax.f32 %v433_v49, 0.0  ;;  %v425_v54 = vadd.f32 %v945_v20, %v424_v51 }
  0xf4   : > { %v798_v55 = vpack.c.bf16 %v511_v50, %v511_v50  ;;  %v835_v56 = vpop.f32.mrf.mxu0 }
  0xf5   : > { %632 = vst.msk [vmem:[%s955_s27 + $0x24] sm:$0xf] %vm622_vm3, %v782_v52  ;;  %v787_v57 = vpack.c.bf16 %v500_v53, %v500_v53  ;;  %v498_v58 = vmax.f32 %v425_v54, 0.0  ;;  %v436_v59 = vadd.f32 %v835_v56, %v945_v20 }
  0xf6   : > { %648 = vst.msk [vmem:[%s955_s27 + $0x64] sm:$0xf] %vm622_vm3, %v798_v55  ;;  %v427_v60 = vpop.f32.mrf.mxu0 }
  0xf7   : > { %637 = vst.msk [vmem:[%s955_s27 + $0x38] sm:$0xf] %vm622_vm3, %v787_v57  ;;  %v785_v61 = vpack.c.bf16 %v498_v58, %v498_v58  ;;  %v501_v62 = vmax.f32 %v436_v59, 0.0  ;;  %v428_v63 = vadd.f32 %v945_v20, %v427_v60 }
  0xf9   : > { %635 = vst.msk [vmem:[%s955_s27 + $0x30] sm:$0xf] %vm622_vm3, %v785_v61  ;;  %v788_v0 = vpack.c.bf16 %v501_v62, %v501_v62  ;;  %v499_v1 = vmax.f32 %v428_v63, 0.0 }
  0xfb   : > { %638 = vst.msk [vmem:[%s955_s27 + $0x3c] sm:$0xf] %vm622_vm3, %v788_v0  ;;  %v786_v2 = vpack.c.bf16 %v499_v1, %v499_v1 }
  0xfd   : > { %636 = vst.msk [vmem:[%s955_s27 + $0x34] sm:$0xf] %vm622_vm3, %v786_v2 }
  0xfe PF: > { %s13_s12 = sadd.s32 1, %s883_s12  }
  0xff   : > { %p10_p4 = scmp.ge.s32.totalorder %s13_s12, 5  }
 0x101   :  { %12 = sbr.rel (!%p10_p4) target bundleno = 1 (0x1), region = 62 }

// kernel: segnet_forward.15
= control target key start
LH: loop header
LB: loop body
LE: loop exit
PB: predicated region body
PF: predicated region fallthrough
CT: control target
= control target key end

     0   :  { %s1448_s12 = smov 0   ;;  %s1756_s0 = inlined_call_operand.vmem [shape: bf16[800,72], index: 0, kind: input, shape index: {}]   ;;  %s1757_s1 = inlined_call_operand.vmem [shape: bf16[72,16], index: 1, kind: input, shape index: {}]   ;;  %s1758_s2 = inlined_call_operand.vmem [shape: f32[1,16], index: 2, kind: input, shape index: {}]   ;;  %s1759_s3 = inlined_call_operand.vmem [shape: bf16[800,16], index: 3, kind: output, shape index: {}]  }
   0x1 LB: > { %s1063_s13 = sadd.s32 4294967295, %s1424_s12   ;;  %p1067_p0 = scmp.ge.s32.totalorder %s1424_s12, 1  ;;  %s1424_s12 = sphi %s1448_s12, %s13_s12  }
   0x2   : > { %p138_p1 = scmp.lt.s32.totalorder %s1424_s12, 3 }
   0x4   : > { %p139_p2 = pnand %p1067_p0, %p138_p1 }
   0x5   : > { %s162_s18 = smul.u32 (!%p139_p2), 50, %s1063_s13 }
   0x6   : > { %142 = sbr.rel (%p139_p2) target bundleno = 333 (0x14d), region = 32 }
   0x7   : > { %p163_p3 = scmp.lt.s32.totalorder (!%p139_p2), %s162_s18, 99 }
   0xb   : > { %v1388_v0 = vld [vmem:[%s1757_s1 + $0x20] ss:$0 sps:$4 sm:$0xff]   ;;  %vm469_vm0 = vcmask 1043456   ;;  %v1426_v1 = vmov 0.0   ;;  %vm1427_vm1 = vmmov 0   ;;  %v1389_v3 = vld [vmem:[%s1757_s1 + $0x18] sm:$0xff]  }
   0xc   : > { %1258 = vmatprep.subr.bf16.mxu0 %v1426_v1  ;;  %1368 = vmatprep.subr.bf16.mxu1 %v1426_v1  ;;  %v471_v2 = vsel %vm469_vm0, %v1388_v0, 0  ;;  %v1390_v4 = vld [vmem:[%s1757_s1 + $0x10] sm:$0xff]   ;;  %s1761_s18 = smov (!%p163_p3, %s162_s18), 99  ;;  %v1391_v5 = vld [vmem:[%s1757_s1 + $0x8] sm:$0xff]   ;;  %v1392_v6 = vld [vmem:[%s1757_s1] sm:$0xff]   ;;  %vm393_vm2 = vcmask 588800  }
   0xd   : > { %1268 = vmatprep.mubr.msk.bf16.mxu0 %vm1427_vm1, %v1426_v1  ;;  %1320 = vmatprep.mubr.msk.bf16.mxu1 %vm1427_vm1, %v1426_v1  ;;  %s1068_s21 = sshll.u32 %s1761_s18, 2  ;;  %v1594_v32 = vld [vmem:[%s1758_s2] ss:$0 sm:$0xff]  ;;  %vm956_vm3 = vcmask 125952  }
   0xe   : > { %1259 = vmatpush3.bf16.msra.mxu0 %v471_v2  ;;  %1373 = vmatpush3.bf16.msra.mxu1 %v471_v2  ;;  %s1483_s24 = scalar_lea.vmem %s1756_s0, %s1068_s21  ;;  %s1603_s6 = scalar_lea.vmem %s1759_s3, %s1068_s21 }
   0xf   : > { %1260 = vmatprep.subr.bf16.mxu0 %v1426_v1  ;;  %1369 = vmatprep.subr.bf16.mxu1 %v1426_v1  ;;  %v1393_v7 = vld [vmem:[%s1483_s24] sm:$0xff]   ;;  %v1394_v8 = vld [vmem:[%s1483_s24 + $0x68] sm:$0xff]   ;;  %v1396_v10 = vld [vmem:[%s1483_s24 + $0x70] sm:$0xff]  }
  0x10   : > { %v1395_v9 = vld [vmem:[%s1483_s24 + $0x8] sm:$0xff]   ;;  %v1397_v11 = vld [vmem:[%s1483_s24 + $0x10] sm:$0xff]   ;;  %v1398_v12 = vld [vmem:[%s1483_s24 + $0x78] sm:$0xff]  }
  0x11   : > { %v1399_v13 = vld [vmem:[%s1483_s24 + $0x18] sm:$0xff]   ;;  %v1400_v14 = vld [vmem:[%s1483_s24 + $0x80] sm:$0xff]   ;;  %v1402_v16 = vld [vmem:[%s1483_s24 + $0x88] sm:$0xff]  }
  0x12   : > { %1261 = vmatpush3.bf16.msra.mxu0 %v1389_v3  ;;  %1374 = vmatpush3.bf16.msra.mxu1 %v1389_v3  ;;  %v1401_v15 = vld [vmem:[%s1483_s24 + $0x20] sm:$0xff]   ;;  %v1403_v17 = vld [vmem:[%s1483_s24 + $0x28] sm:$0xff]   ;;  %v1404_v18 = vld [vmem:[%s1483_s24 + $0x90] sm:$0xff]  }
  0x13   : > { %1262 = vmatprep.subr.bf16.mxu0 %v1426_v1  ;;  %1370 = vmatprep.subr.bf16.mxu1 %v1426_v1  ;;  %v1405_v19 = vld [vmem:[%s1483_s24 + $0x30] sm:$0xff]   ;;  %v1406_v20 = vld [vmem:[%s1483_s24 + $0x98] sm:$0xff]   ;;  %v1408_v22 = vld [vmem:[%s1483_s24 + $0xa0] sm:$0xff]  }
  0x14   : > { %v1407_v21 = vld [vmem:[%s1483_s24 + $0x38] sm:$0xff]   ;;  %v1409_v23 = vld [vmem:[%s1483_s24 + $0x40] sm:$0xff]   ;;  %v1410_v24 = vld [vmem:[%s1483_s24 + $0xa8] sm:$0xff]  }
  0x15   : > { %v1411_v25 = vld [vmem:[%s1483_s24 + $0x48] sm:$0xff]   ;;  %v1412_v26 = vld [vmem:[%s1483_s24 + $0xb0] sm:$0xff]   ;;  %v1414_v28 = vld [vmem:[%s1483_s24 + $0xb8] sm:$0xff]  }
  0x16   : > { %1263 = vmatpush3.bf16.msra.mxu0 %v1390_v4  ;;  %1375 = vmatpush3.bf16.msra.mxu1 %v1390_v4  ;;  %v1413_v27 = vld [vmem:[%s1483_s24 + $0x50] sm:$0xff]   ;;  %v1415_v29 = vld [vmem:[%s1483_s24 + $0x58] sm:$0xff]   ;;  %v1416_v30 = vld [vmem:[%s1483_s24 + $0xc0] sm:$0xff]  }
  0x17   : > { %1264 = vmatprep.subr.bf16.mxu0 %v1426_v1  ;;  %1371 = vmatprep.subr.bf16.mxu1 %v1426_v1  ;;  %v1417_v31 = vld [vmem:[%s1483_s24 + $0x60] sm:$0xff]  }
  0x1a   : > { %1265 = vmatpush3.bf16.msra.mxu0 %v1391_v5  ;;  %1376 = vmatpush3.bf16.msra.mxu1 %v1391_v5 }
  0x1b   : > { %1266 = vmatprep.subr.bf16.mxu0 %v1426_v1  ;;  %1372 = vmatprep.subr.bf16.mxu1 %v1426_v1 }
  0x1e   : > { %1267 = vmatpush3.bf16.msra.mxu0 %v1392_v6  ;;  %1377 = vmatpush3.bf16.msra.mxu1 %v1392_v6 }
  0x21   : > { %1269 = vmatmul.mubr.msk.bf16.vlgmr.msra.gmra.mxu0 %vm393_vm2, %v1393_v7  ;;  %1321 = vmatmul.mubr.msk.bf16.vlgmr.msra.gmra.mxu1 %vm393_vm2, %v1394_v8 }
  0x22   : > { %1272 = vmatprep.mubr.msk.bf16.mxu0 %vm1427_vm1, %v1426_v1  ;;  %1324 = vmatprep.mubr.msk.bf16.mxu1 %vm1427_vm1, %v1426_v1 }
  0x29   : > { %1273 = vmatmul.mubr.msk.bf16.gmra.mxu0 %vm393_vm2, %v1395_v9  ;;  %1325 = vmatmul.mubr.msk.bf16.gmra.mxu1 %vm393_vm2, %v1396_v10 }
  0x2a   : > { %1276 = vmatprep.mubr.msk.bf16.mxu0 %vm1427_vm1, %v1426_v1  ;;  %1328 = vmatprep.mubr.msk.bf16.mxu1 %vm1427_vm1, %v1426_v1 }
  0x31   : > { %1277 = vmatmul.mubr.msk.bf16.gmra.mxu0 %vm393_vm2, %v1397_v11  ;;  %1329 = vmatmul.mubr.msk.bf16.gmra.mxu1 %vm393_vm2, %v1398_v12 }
  0x32   : > { %1280 = vmatprep.mubr.msk.bf16.mxu0 %vm1427_vm1, %v1426_v1  ;;  %1332 = vmatprep.mubr.msk.bf16.mxu1 %vm1427_vm1, %v1426_v1 }
  0x39   : > { %1281 = vmatmul.mubr.msk.bf16.gmra.mxu0 %vm393_vm2, %v1399_v13  ;;  %1333 = vmatmul.mubr.msk.bf16.gmra.mxu1 %vm393_vm2, %v1400_v14 }
  0x3a   : > { %1284 = vmatprep.mubr.msk.bf16.mxu0 %vm1427_vm1, %v1426_v1  ;;  %1336 = vmatprep.mubr.msk.bf16.mxu1 %vm1427_vm1, %v1426_v1 }
  0x41   : > { %1285 = vmatmul.mubr.msk.bf16.gmra.mxu0 %vm393_vm2, %v1401_v15  ;;  %1337 = vmatmul.mubr.msk.bf16.gmra.mxu1 %vm393_vm2, %v1402_v16 }
  0x42   : > { %1288 = vmatprep.mubr.msk.bf16.mxu0 %vm1427_vm1, %v1426_v1  ;;  %1340 = vmatprep.mubr.msk.bf16.mxu1 %vm1427_vm1, %v1426_v1 }
  0x49   : > { %1289 = vmatmul.mubr.msk.bf16.gmra.mxu0 %vm393_vm2, %v1403_v17  ;;  %1341 = vmatmul.mubr.msk.bf16.gmra.mxu1 %vm393_vm2, %v1404_v18 }
  0x4a   : > { %1292 = vmatprep.mubr.msk.bf16.mxu0 %vm1427_vm1, %v1426_v1  ;;  %1344 = vmatprep.mubr.msk.bf16.mxu1 %vm1427_vm1, %v1426_v1 }
  0x51   : > { %1293 = vmatmul.mubr.msk.bf16.gmra.mxu0 %vm393_vm2, %v1405_v19  ;;  %1345 = vmatmul.mubr.msk.bf16.gmra.mxu1 %vm393_vm2, %v1406_v20 }
  0x52   : > { %1296 = vmatprep.mubr.msk.bf16.mxu0 %vm1427_vm1, %v1426_v1  ;;  %1348 = vmatprep.mubr.msk.bf16.mxu1 %vm1427_vm1, %v1426_v1 }
  0x59   : > { %1297 = vmatmul.mubr.msk.bf16.gmra.mxu0 %vm393_vm2, %v1407_v21  ;;  %1349 = vmatmul.mubr.msk.bf16.gmra.mxu1 %vm393_vm2, %v1408_v22 }
  0x5a   : > { %1300 = vmatprep.mubr.msk.bf16.mxu0 %vm1427_vm1, %v1426_v1  ;;  %1352 = vmatprep.mubr.msk.bf16.mxu1 %vm1427_vm1, %v1426_v1 }
  0x61   : > { %1301 = vmatmul.mubr.msk.bf16.gmra.mxu0 %vm393_vm2, %v1409_v23  ;;  %1353 = vmatmul.mubr.msk.bf16.gmra.mxu1 %vm393_vm2, %v1410_v24 }
  0x62   : > { %1304 = vmatprep.mubr.msk.bf16.mxu0 %vm1427_vm1, %v1426_v1  ;;  %1356 = vmatprep.mubr.msk.bf16.mxu1 %vm1427_vm1, %v1426_v1 }
  0x69   : > { %1305 = vmatmul.mubr.msk.bf16.gmra.mxu0 %vm393_vm2, %v1411_v25  ;;  %1357 = vmatmul.mubr.msk.bf16.gmra.mxu1 %vm393_vm2, %v1412_v26 }
  0x6a   : > { %1308 = vmatprep.mubr.msk.bf16.mxu0 %vm1427_vm1, %v1426_v1  ;;  %1360 = vmatprep.mubr.msk.bf16.mxu1 %vm1427_vm1, %v1426_v1 }
  0x71   : > { %1309 = vmatmul.mubr.msk.bf16.gmra.mxu0 %vm393_vm2, %v1413_v27  ;;  %1361 = vmatmul.mubr.msk.bf16.gmra.mxu1 %vm393_vm2, %v1414_v28 }
  0x72   : > { %1312 = vmatprep.mubr.msk.bf16.mxu0 %vm1427_vm1, %v1426_v1  ;;  %1364 = vmatprep.mubr.msk.bf16.mxu1 %vm1427_vm1, %v1426_v1 }
  0x79   : > { %1313 = vmatmul.mubr.msk.bf16.gmra.mxu0 %vm393_vm2, %v1415_v29  ;;  %1365 = vmatmul.mubr.msk.bf16.gmra.mxu1 %vm393_vm2, %v1416_v30 }
  0x7a   : > { %1316 = vmatprep.mubr.msk.bf16.mxu0 %vm1427_vm1, %v1426_v1 }
  0x81   : > { %1317 = vmatmul.mubr.msk.bf16.gmra.mxu0 %vm393_vm2, %v1417_v31 }
  0xe1   : > { %v507_v33 = vpop.f32.mrf.mxu0  ;;  %v611_v34 = vpop.f32.mrf.mxu1 }
  0xe2   : > { %v508_v35 = vadd.f32 %v1594_v32, %v507_v33  ;;  %v612_v36 = vadd.f32 %v1594_v32, %v611_v34 }
  0xe3   : > { %v1270_v37 = vpop.f32.mrf.mxu0  ;;  %v1322_v38 = vpop.f32.mrf.mxu1 }
  0xe4   : > { %v706_v39 = vmax.f32 %v508_v35, 0.0  ;;  %v732_v40 = vmax.f32 %v612_v36, 0.0 }
  0xe5   : > { %v510_v41 = vpop.f32.mrf.mxu0  ;;  %v614_v42 = vpop.f32.mrf.mxu1 }
  0xe6   : > { %v1178_v43 = vpack.c.bf16 %v706_v39, %v706_v39  ;;  %v1204_v44 = vpack.c.bf16 %v732_v40, %v732_v40  ;;  %v511_v45 = vadd.f32 %v1594_v32, %v510_v41  ;;  %v615_v46 = vadd.f32 %v1594_v32, %v614_v42 }
  0xe7   : > { %v1271_v47 = vpop.f32.mrf.mxu0  ;;  %v1323_v48 = vpop.f32.mrf.mxu1 }
  0xe8   : > { %957 = vst.msk [vmem:[%s1603_s6] sm:$0xf] %vm956_vm3, %v1178_v43  ;;  %983 = vst.msk [vmem:[%s1603_s6 + $0x68] sm:$0xf] %vm956_vm3, %v1204_v44  ;;  %v707_v49 = vmax.f32 %v511_v45, 0.0  ;;  %v733_v50 = vmax.f32 %v615_v46, 0.0 }
  0xe9   : > { %v515_v51 = vpop.f32.mrf.mxu0  ;;  %v619_v52 = vpop.f32.mrf.mxu1 }
  0xea   : > { %v1179_v53 = vpack.c.bf16 %v707_v49, %v707_v49  ;;  %v1205_v54 = vpack.c.bf16 %v733_v50, %v733_v50  ;;  %v516_v55 = vadd.f32 %v1594_v32, %v515_v51  ;;  %v620_v56 = vadd.f32 %v1594_v32, %v619_v52 }
  0xeb   : > { %v1274_v57 = vpop.f32.mrf.mxu0  ;;  %v1326_v58 = vpop.f32.mrf.mxu1 }
  0xec   : > { %958 = vst.msk [vmem:[%s1603_s6 + $0x4] sm:$0xf] %vm956_vm3, %v1179_v53  ;;  %984 = vst.msk [vmem:[%s1603_s6 + $0x6c] sm:$0xf] %vm956_vm3, %v1205_v54  ;;  %v708_v59 = vmax.f32 %v516_v55, 0.0  ;;  %v734_v60 = vmax.f32 %v620_v56, 0.0 }
  0xed   : > { %v518_v61 = vpop.f32.mrf.mxu0  ;;  %v622_v62 = vpop.f32.mrf.mxu1 }
  0xee   : > { %v1180_v63 = vpack.c.bf16 %v708_v59, %v708_v59  ;;  %v1206_v0 = vpack.c.bf16 %v734_v60, %v734_v60  ;;  %v519_v1 = vadd.f32 %v1594_v32, %v518_v61  ;;  %v623_v2 = vadd.f32 %v1594_v32, %v622_v62 }
  0xef   : > { %v1275_v3 = vpop.f32.mrf.mxu0  ;;  %v1327_v4 = vpop.f32.mrf.mxu1 }
  0xf0   : > { %959 = vst.msk [vmem:[%s1603_s6 + $0x8] sm:$0xf] %vm956_vm3, %v1180_v63  ;;  %985 = vst.msk [vmem:[%s1603_s6 + $0x70] sm:$0xf] %vm956_vm3, %v1206_v0  ;;  %v709_v5 = vmax.f32 %v519_v1, 0.0  ;;  %v735_v6 = vmax.f32 %v623_v2, 0.0 }
  0xf1   : > { %v523_v7 = vpop.f32.mrf.mxu0  ;;  %v627_v8 = vpop.f32.mrf.mxu1 }
  0xf2   : > { %v1181_v9 = vpack.c.bf16 %v709_v5, %v709_v5  ;;  %v1207_v10 = vpack.c.bf16 %v735_v6, %v735_v6  ;;  %v524_v11 = vadd.f32 %v1594_v32, %v523_v7  ;;  %v628_v12 = vadd.f32 %v1594_v32, %v627_v8 }
  0xf3   : > { %v1278_v13 = vpop.f32.mrf.mxu0  ;;  %v1330_v14 = vpop.f32.mrf.mxu1 }
  0xf4   : > { %960 = vst.msk [vmem:[%s1603_s6 + $0xc] sm:$0xf] %vm956_vm3, %v1181_v9  ;;  %986 = vst.msk [vmem:[%s1603_s6 + $0x74] sm:$0xf] %vm956_vm3, %v1207_v10  ;;  %v710_v15 = vmax.f32 %v524_v11, 0.0  ;;  %v736_v16 = vmax.f32 %v628_v12, 0.0 }
  0xf5   : > { %v526_v17 = vpop.f32.mrf.mxu0  ;;  %v630_v18 = vpop.f32.mrf.mxu1 }
  0xf6   : > { %v1182_v19 = vpack.c.bf16 %v710_v15, %v710_v15  ;;  %v1208_v20 = vpack.c.bf16 %v736_v16, %v736_v16  ;;  %v527_v21 = vadd.f32 %v1594_v32, %v526_v17  ;;  %v631_v22 = vadd.f32 %v1594_v32, %v630_v18 }
  0xf7   : > { %v1279_v23 = vpop.f32.mrf.mxu0  ;;  %v1331_v24 = vpop.f32.mrf.mxu1 }
  0xf8   : > { %961 = vst.msk [vmem:[%s1603_s6 + $0x10] sm:$0xf] %vm956_vm3, %v1182_v19  ;;  %987 = vst.msk [vmem:[%s1603_s6 + $0x78] sm:$0xf] %vm956_vm3, %v1208_v20  ;;  %v711_v25 = vmax.f32 %v527_v21, 0.0  ;;  %v737_v26 = vmax.f32 %v631_v22, 0.0 }
  0xf9   : > { %v531_v27 = vpop.f32.mrf.mxu0  ;;  %v635_v28 = vpop.f32.mrf.mxu1 }
  0xfa   : > { %v1183_v29 = vpack.c.bf16 %v711_v25, %v711_v25  ;;  %v1209_v30 = vpack.c.bf16 %v737_v26, %v737_v26  ;;  %v532_v31 = vadd.f32 %v1594_v32, %v531_v27  ;;  %v636_v33 = vadd.f32 %v1594_v32, %v635_v28 }
  0xfb   : > { %v1282_v34 = vpop.f32.mrf.mxu0  ;;  %v1334_v35 = vpop.f32.mrf.mxu1 }
  0xfc   : > { %962 = vst.msk [vmem:[%s1603_s6 + $0x14] sm:$0xf] %vm956_vm3, %v1183_v29  ;;  %988 = vst.msk [vmem:[%s1603_s6 + $0x7c] sm:$0xf] %vm956_vm3, %v1209_v30  ;;  %v712_v36 = vmax.f32 %v532_v31, 0.0  ;;  %v738_v37 = vmax.f32 %v636_v33, 0.0 }
  0xfd   : > { %v534_v38 = vpop.f32.mrf.mxu0  ;;  %v638_v39 = vpop.f32.mrf.mxu1 }
  0xfe   : > { %v1184_v40 = vpack.c.bf16 %v712_v36, %v712_v36  ;;  %v1210_v41 = vpack.c.bf16 %v738_v37, %v738_v37  ;;  %v535_v42 = vadd.f32 %v1594_v32, %v534_v38  ;;  %v639_v43 = vadd.f32 %v1594_v32, %v638_v39 }
  0xff   : > { %v1283_v44 = vpop.f32.mrf.mxu0  ;;  %v1335_v45 = vpop.f32.mrf.mxu1 }
 0x100   : > { %963 = vst.msk [vmem:[%s1603_s6 + $0x18] sm:$0xf] %vm956_vm3, %v1184_v40  ;;  %989 = vst.msk [vmem:[%s1603_s6 + $0x80] sm:$0xf] %vm956_vm3, %v1210_v41  ;;  %v713_v46 = vmax.f32 %v535_v42, 0.0  ;;  %v739_v47 = vmax.f32 %v639_v43, 0.0 }
 0x101   : > { %v539_v48 = vpop.f32.mrf.mxu0  ;;  %v643_v49 = vpop.f32.mrf.mxu1 }
 0x102   : > { %v1185_v50 = vpack.c.bf16 %v713_v46, %v713_v46  ;;  %v1211_v51 = vpack.c.bf16 %v739_v47, %v739_v47  ;;  %v540_v52 = vadd.f32 %v1594_v32, %v539_v48  ;;  %v644_v53 = vadd.f32 %v1594_v32, %v643_v49 }
 0x103   : > { %v1286_v54 = vpop.f32.mrf.mxu0  ;;  %v1338_v55 = vpop.f32.mrf.mxu1 }
 0x104   : > { %964 = vst.msk [vmem:[%s1603_s6 + $0x1c] sm:$0xf] %vm956_vm3, %v1185_v50  ;;  %990 = vst.msk [vmem:[%s1603_s6 + $0x84] sm:$0xf] %vm956_vm3, %v1211_v51  ;;  %v714_v56 = vmax.f32 %v540_v52, 0.0  ;;  %v740_v57 = vmax.f32 %v644_v53, 0.0 }
 0x105   : > { %v542_v58 = vpop.f32.mrf.mxu0  ;;  %v646_v59 = vpop.f32.mrf.mxu1 }
 0x106   : > { %v1186_v60 = vpack.c.bf16 %v714_v56, %v714_v56  ;;  %v1212_v61 = vpack.c.bf16 %v740_v57, %v740_v57  ;;  %v543_v62 = vadd.f32 %v1594_v32, %v542_v58  ;;  %v647_v63 = vadd.f32 %v1594_v32, %v646_v59 }
 0x107   : > { %v1287_v0 = vpop.f32.mrf.mxu0  ;;  %v1339_v1 = vpop.f32.mrf.mxu1 }
 0x108   : > { %965 = vst.msk [vmem:[%s1603_s6 + $0x20] sm:$0xf] %vm956_vm3, %v1186_v60  ;;  %991 = vst.msk [vmem:[%s1603_s6 + $0x88] sm:$0xf] %vm956_vm3, %v1212_v61  ;;  %v715_v2 = vmax.f32 %v543_v62, 0.0  ;;  %v741_v3 = vmax.f32 %v647_v63, 0.0 }
 0x109   : > { %v547_v4 = vpop.f32.mrf.mxu0  ;;  %v651_v5 = vpop.f32.mrf.mxu1 }
 0x10a   : > { %v1187_v6 = vpack.c.bf16 %v715_v2, %v715_v2  ;;  %v1213_v7 = vpack.c.bf16 %v741_v3, %v741_v3  ;;  %v548_v8 = vadd.f32 %v1594_v32, %v547_v4  ;;  %v652_v9 = vadd.f32 %v1594_v32, %v651_v5 }
 0x10b   : > { %v1290_v10 = vpop.f32.mrf.mxu0  ;;  %v1342_v11 = vpop.f32.mrf.mxu1 }
 0x10c   : > { %966 = vst.msk [vmem:[%s1603_s6 + $0x24] sm:$0xf] %vm956_vm3, %v1187_v6  ;;  %992 = vst.msk [vmem:[%s1603_s6 + $0x8c] sm:$0xf] %vm956_vm3, %v1213_v7  ;;  %v716_v12 = vmax.f32 %v548_v8, 0.0  ;;  %v742_v13 = vmax.f32 %v652_v9, 0.0 }
 0x10d   : > { %v550_v14 = vpop.f32.mrf.mxu0  ;;  %v654_v15 = vpop.f32.mrf.mxu1 }
 0x10e   : > { %v1188_v16 = vpack.c.bf16 %v716_v12, %v716_v12  ;;  %v1214_v17 = vpack.c.bf16 %v742_v13, %v742_v13  ;;  %v551_v18 = vadd.f32 %v1594_v32, %v550_v14  ;;  %v655_v19 = vadd.f32 %v1594_v32, %v654_v15 }
 0x10f   : > { %v1291_v20 = vpop.f32.mrf.mxu0  ;;  %v1343_v21 = vpop.f32.mrf.mxu1 }
 0x110   : > { %967 = vst.msk [vmem:[%s1603_s6 + $0x28] sm:$0xf] %vm956_vm3, %v1188_v16  ;;  %993 = vst.msk [vmem:[%s1603_s6 + $0x90] sm:$0xf] %vm956_vm3, %v1214_v17  ;;  %v717_v22 = vmax.f32 %v551_v18, 0.0  ;;  %v743_v23 = vmax.f32 %v655_v19, 0.0 }
 0x111   : > { %v555_v24 = vpop.f32.mrf.mxu0  ;;  %v659_v25 = vpop.f32.mrf.mxu1 }
 0x112   : > { %v1189_v26 = vpack.c.bf16 %v717_v22, %v717_v22  ;;  %v1215_v27 = vpack.c.bf16 %v743_v23, %v743_v23  ;;  %v556_v28 = vadd.f32 %v1594_v32, %v555_v24  ;;  %v660_v29 = vadd.f32 %v1594_v32, %v659_v25 }
 0x113   : > { %v1294_v30 = vpop.f32.mrf.mxu0  ;;  %v1346_v31 = vpop.f32.mrf.mxu1 }
 0x114   : > { %968 = vst.msk [vmem:[%s1603_s6 + $0x2c] sm:$0xf] %vm956_vm3, %v1189_v26  ;;  %994 = vst.msk [vmem:[%s1603_s6 + $0x94] sm:$0xf] %vm956_vm3, %v1215_v27  ;;  %v718_v33 = vmax.f32 %v556_v28, 0.0  ;;  %v744_v34 = vmax.f32 %v660_v29, 0.0 }
 0x115   : > { %v558_v35 = vpop.f32.mrf.mxu0  ;;  %v662_v36 = vpop.f32.mrf.mxu1 }
 0x116   : > { %v1190_v37 = vpack.c.bf16 %v718_v33, %v718_v33  ;;  %v1216_v38 = vpack.c.bf16 %v744_v34, %v744_v34  ;;  %v559_v39 = vadd.f32 %v1594_v32, %v558_v35  ;;  %v663_v40 = vadd.f32 %v1594_v32, %v662_v36 }
 0x117   : > { %v1295_v41 = vpop.f32.mrf.mxu0  ;;  %v1347_v42 = vpop.f32.mrf.mxu1 }
 0x118   : > { %969 = vst.msk [vmem:[%s1603_s6 + $0x30] sm:$0xf] %vm956_vm3, %v1190_v37  ;;  %995 = vst.msk [vmem:[%s1603_s6 + $0x98] sm:$0xf] %vm956_vm3, %v1216_v38  ;;  %v719_v43 = vmax.f32 %v559_v39, 0.0  ;;  %v745_v44 = vmax.f32 %v663_v40, 0.0 }
 0x119   : > { %v563_v45 = vpop.f32.mrf.mxu0  ;;  %v667_v46 = vpop.f32.mrf.mxu1 }
 0x11a   : > { %v1191_v47 = vpack.c.bf16 %v719_v43, %v719_v43  ;;  %v1217_v48 = vpack.c.bf16 %v745_v44, %v745_v44  ;;  %v564_v49 = vadd.f32 %v1594_v32, %v563_v45  ;;  %v668_v50 = vadd.f32 %v1594_v32, %v667_v46 }
 0x11b   : > { %v1298_v51 = vpop.f32.mrf.mxu0  ;;  %v1350_v52 = vpop.f32.mrf.mxu1 }
 0x11c   : > { %970 = vst.msk [vmem:[%s1603_s6 + $0x34] sm:$0xf] %vm956_vm3, %v1191_v47  ;;  %996 = vst.msk [vmem:[%s1603_s6 + $0x9c] sm:$0xf] %vm956_vm3, %v1217_v48  ;;  %v720_v53 = vmax.f32 %v564_v49, 0.0  ;;  %v746_v54 = vmax.f32 %v668_v50, 0.0 }
 0x11d   : > { %v566_v55 = vpop.f32.mrf.mxu0  ;;  %v670_v56 = vpop.f32.mrf.mxu1 }
 0x11e   : > { %v1192_v57 = vpack.c.bf16 %v720_v53, %v720_v53  ;;  %v1218_v58 = vpack.c.bf16 %v746_v54, %v746_v54  ;;  %v567_v59 = vadd.f32 %v1594_v32, %v566_v55  ;;  %v671_v60 = vadd.f32 %v1594_v32, %v670_v56 }
 0x11f   : > { %v1299_v61 = vpop.f32.mrf.mxu0  ;;  %v1351_v62 = vpop.f32.mrf.mxu1 }
 0x120   : > { %971 = vst.msk [vmem:[%s1603_s6 + $0x38] sm:$0xf] %vm956_vm3, %v1192_v57  ;;  %997 = vst.msk [vmem:[%s1603_s6 + $0xa0] sm:$0xf] %vm956_vm3, %v1218_v58  ;;  %v721_v63 = vmax.f32 %v567_v59, 0.0  ;;  %v747_v0 = vmax.f32 %v671_v60, 0.0 }
 0x121   : > { %v571_v1 = vpop.f32.mrf.mxu0  ;;  %v675_v2 = vpop.f32.mrf.mxu1 }
 0x122   : > { %v1193_v3 = vpack.c.bf16 %v721_v63, %v721_v63  ;;  %v1219_v4 = vpack.c.bf16 %v747_v0, %v747_v0  ;;  %v572_v5 = vadd.f32 %v1594_v32, %v571_v1  ;;  %v676_v6 = vadd.f32 %v1594_v32, %v675_v2 }
 0x123   : > { %v1302_v7 = vpop.f32.mrf.mxu0  ;;  %v1354_v8 = vpop.f32.mrf.mxu1 }
 0x124   : > { %972 = vst.msk [vmem:[%s1603_s6 + $0x3c] sm:$0xf] %vm956_vm3, %v1193_v3  ;;  %998 = vst.msk [vmem:[%s1603_s6 + $0xa4] sm:$0xf] %vm956_vm3, %v1219_v4  ;;  %v722_v9 = vmax.f32 %v572_v5, 0.0  ;;  %v748_v10 = vmax.f32 %v676_v6, 0.0 }
 0x125   : > { %v574_v11 = vpop.f32.mrf.mxu0  ;;  %v678_v12 = vpop.f32.mrf.mxu1 }
 0x126   : > { %v1194_v13 = vpack.c.bf16 %v722_v9, %v722_v9  ;;  %v1220_v14 = vpack.c.bf16 %v748_v10, %v748_v10  ;;  %v575_v15 = vadd.f32 %v1594_v32, %v574_v11  ;;  %v679_v16 = vadd.f32 %v1594_v32, %v678_v12 }
 0x127   : > { %v1303_v17 = vpop.f32.mrf.mxu0  ;;  %v1355_v18 = vpop.f32.mrf.mxu1 }
 0x128   : > { %973 = vst.msk [vmem:[%s1603_s6 + $0x40] sm:$0xf] %vm956_vm3, %v1194_v13  ;;  %999 = vst.msk [vmem:[%s1603_s6 + $0xa8] sm:$0xf] %vm956_vm3, %v1220_v14  ;;  %v723_v19 = vmax.f32 %v575_v15, 0.0  ;;  %v749_v20 = vmax.f32 %v679_v16, 0.0 }
 0x129   : > { %v579_v21 = vpop.f32.mrf.mxu0  ;;  %v683_v22 = vpop.f32.mrf.mxu1 }
 0x12a   : > { %v1195_v23 = vpack.c.bf16 %v723_v19, %v723_v19  ;;  %v1221_v24 = vpack.c.bf16 %v749_v20, %v749_v20  ;;  %v580_v25 = vadd.f32 %v1594_v32, %v579_v21  ;;  %v684_v26 = vadd.f32 %v1594_v32, %v683_v22 }
 0x12b   : > { %v1306_v27 = vpop.f32.mrf.mxu0  ;;  %v1358_v28 = vpop.f32.mrf.mxu1 }
 0x12c   : > { %974 = vst.msk [vmem:[%s1603_s6 + $0x44] sm:$0xf] %vm956_vm3, %v1195_v23  ;;  %1000 = vst.msk [vmem:[%s1603_s6 + $0xac] sm:$0xf] %vm956_vm3, %v1221_v24  ;;  %v724_v29 = vmax.f32 %v580_v25, 0.0  ;;  %v750_v30 = vmax.f32 %v684_v26, 0.0 }
 0x12d   : > { %v582_v31 = vpop.f32.mrf.mxu0  ;;  %v686_v33 = vpop.f32.mrf.mxu1 }
 0x12e   : > { %v1196_v34 = vpack.c.bf16 %v724_v29, %v724_v29  ;;  %v1222_v35 = vpack.c.bf16 %v750_v30, %v750_v30  ;;  %v583_v36 = vadd.f32 %v1594_v32, %v582_v31  ;;  %v687_v37 = vadd.f32 %v1594_v32, %v686_v33 }
 0x12f   : > { %v1307_v38 = vpop.f32.mrf.mxu0  ;;  %v1359_v39 = vpop.f32.mrf.mxu1 }
 0x130   : > { %975 = vst.msk [vmem:[%s1603_s6 + $0x48] sm:$0xf] %vm956_vm3, %v1196_v34  ;;  %1001 = vst.msk [vmem:[%s1603_s6 + $0xb0] sm:$0xf] %vm956_vm3, %v1222_v35  ;;  %v725_v40 = vmax.f32 %v583_v36, 0.0  ;;  %v751_v41 = vmax.f32 %v687_v37, 0.0 }
 0x131   : > { %v587_v42 = vpop.f32.mrf.mxu0  ;;  %v691_v43 = vpop.f32.mrf.mxu1 }
 0x132   : > { %v1197_v44 = vpack.c.bf16 %v725_v40, %v725_v40  ;;  %v1223_v45 = vpack.c.bf16 %v751_v41, %v751_v41  ;;  %v588_v46 = vadd.f32 %v1594_v32, %v587_v42  ;;  %v692_v47 = vadd.f32 %v1594_v32, %v691_v43 }
 0x133   : > { %v1310_v48 = vpop.f32.mrf.mxu0  ;;  %v1362_v49 = vpop.f32.mrf.mxu1 }
 0x134   : > { %976 = vst.msk [vmem:[%s1603_s6 + $0x4c] sm:$0xf] %vm956_vm3, %v1197_v44  ;;  %1002 = vst.msk [vmem:[%s1603_s6 + $0xb4] sm:$0xf] %vm956_vm3, %v1223_v45  ;;  %v726_v50 = vmax.f32 %v588_v46, 0.0  ;;  %v752_v51 = vmax.f32 %v692_v47, 0.0 }
 0x135   : > { %v590_v52 = vpop.f32.mrf.mxu0  ;;  %v694_v53 = vpop.f32.mrf.mxu1 }
 0x136   : > { %v1198_v54 = vpack.c.bf16 %v726_v50, %v726_v50  ;;  %v1224_v55 = vpack.c.bf16 %v752_v51, %v752_v51  ;;  %v591_v56 = vadd.f32 %v1594_v32, %v590_v52  ;;  %v695_v57 = vadd.f32 %v1594_v32, %v694_v53 }
 0x137   : > { %v1311_v58 = vpop.f32.mrf.mxu0  ;;  %v1363_v59 = vpop.f32.mrf.mxu1 }
 0x138   : > { %977 = vst.msk [vmem:[%s1603_s6 + $0x50] sm:$0xf] %vm956_vm3, %v1198_v54  ;;  %1003 = vst.msk [vmem:[%s1603_s6 + $0xb8] sm:$0xf] %vm956_vm3, %v1224_v55  ;;  %v727_v60 = vmax.f32 %v591_v56, 0.0  ;;  %v753_v61 = vmax.f32 %v695_v57, 0.0 }
 0x139   : > { %v595_v62 = vpop.f32.mrf.mxu0  ;;  %v699_v63 = vpop.f32.mrf.mxu1 }
 0x13a   : > { %v1199_v0 = vpack.c.bf16 %v727_v60, %v727_v60  ;;  %v1225_v1 = vpack.c.bf16 %v753_v61, %v753_v61  ;;  %v596_v2 = vadd.f32 %v1594_v32, %v595_v62  ;;  %v700_v3 = vadd.f32 %v1594_v32, %v699_v63 }
 0x13b   : > { %v1314_v4 = vpop.f32.mrf.mxu0  ;;  %v1366_v5 = vpop.f32.mrf.mxu1 }
 0x13c   : > { %978 = vst.msk [vmem:[%s1603_s6 + $0x54] sm:$0xf] %vm956_vm3, %v1199_v0  ;;  %1004 = vst.msk [vmem:[%s1603_s6 + $0xbc] sm:$0xf] %vm956_vm3, %v1225_v1  ;;  %v728_v6 = vmax.f32 %v596_v2, 0.0  ;;  %v754_v7 = vmax.f32 %v700_v3, 0.0 }
 0x13d   : > { %v598_v8 = vpop.f32.mrf.mxu0  ;;  %v702_v9 = vpop.f32.mrf.mxu1 }
 0x13e   : > { %v1200_v10 = vpack.c.bf16 %v728_v6, %v728_v6  ;;  %v1226_v11 = vpack.c.bf16 %v754_v7, %v754_v7  ;;  %v599_v12 = vadd.f32 %v1594_v32, %v598_v8  ;;  %v703_v13 = vadd.f32 %v1594_v32, %v702_v9 }
 0x13f   : > { %v1315_v14 = vpop.f32.mrf.mxu0  ;;  %v1367_v15 = vpop.f32.mrf.mxu1 }
 0x140   : > { %979 = vst.msk [vmem:[%s1603_s6 + $0x58] sm:$0xf] %vm956_vm3, %v1200_v10  ;;  %1005 = vst.msk [vmem:[%s1603_s6 + $0xc0] sm:$0xf] %vm956_vm3, %v1226_v11  ;;  %v729_v16 = vmax.f32 %v599_v12, 0.0  ;;  %v755_v17 = vmax.f32 %v703_v13, 0.0 }
 0x141   : > { %v603_v18 = vpop.f32.mrf.mxu0 }
 0x142   : > { %v1201_v19 = vpack.c.bf16 %v729_v16, %v729_v16  ;;  %v1227_v20 = vpack.c.bf16 %v755_v17, %v755_v17  ;;  %v604_v21 = vadd.f32 %v1594_v32, %v603_v18 }
 0x143   : > { %v1318_v22 = vpop.f32.mrf.mxu0 }
 0x144   : > { %980 = vst.msk [vmem:[%s1603_s6 + $0x5c] sm:$0xf] %vm956_vm3, %v1201_v19  ;;  %1006 = vst.msk [vmem:[%s1603_s6 + $0xc4] sm:$0xf] %vm956_vm3, %v1227_v20  ;;  %v730_v23 = vmax.f32 %v604_v21, 0.0 }
 0x145   : > { %v606_v24 = vpop.f32.mrf.mxu0 }
 0x146   : > { %v1202_v25 = vpack.c.bf16 %v730_v23, %v730_v23  ;;  %v607_v26 = vadd.f32 %v1594_v32, %v606_v24 }
 0x147   : > { %v1319_v27 = vpop.f32.mrf.mxu0 }
 0x148   : > { %981 = vst.msk [vmem:[%s1603_s6 + $0x60] sm:$0xf] %vm956_vm3, %v1202_v25  ;;  %v731_v28 = vmax.f32 %v607_v26, 0.0 }
 0x14a   : > { %v1203_v29 = vpack.c.bf16 %v731_v28, %v731_v28 }
 0x14c   : > { %982 = vst.msk [vmem:[%s1603_s6 + $0x64] sm:$0xf] %vm956_vm3, %v1203_v29 }
 0x14d PF: > { %s13_s12 = sadd.s32 1, %s1424_s12  }
 0x14e   : > { %p10_p4 = scmp.ge.s32.totalorder %s13_s12, 4  }
 0x150   :  { %12 = sbr.rel (!%p10_p4) target bundleno = 1 (0x1), region = 62 }

// kernel: segnet_forward.16
= control target key start
LH: loop header
LB: loop body
LE: loop exit
PB: predicated region body
PF: predicated region fallthrough
CT: control target
= control target key end

     0   :  { %v963_v0 = vmov 0   ;;  %vm292_vm0 = vcmask 130048   ;;  %vm704_vm1 = vcmask 125952   ;;  %s1322_s1 = inlined_call_operand.vmem [shape: bf16[144,16], index: 1, kind: input, shape index: {}]   ;;  %s1323_s0 = inlined_call_operand.vmem [shape: bf16[288,144], index: 0, kind: input, shape index: {}]   ;;  %s1324_s2 = inlined_call_operand.vmem [shape: f32[1,16], index: 2, kind: input, shape index: {}]   ;;  %s1325_s3 = inlined_call_operand.vmem [shape: bf16[288,16], index: 3, kind: output, shape index: {}]  }
   0x1   :  { %347 = vmatprep.subr.bf16.mxu0 %v963_v0  ;;  %881 = vmatprep.subr.bf16.mxu1 %v963_v0  ;;  %v900_v1 = vld [vmem:[%s1322_s1 + $0x38] sm:$0xff]   ;;  %v901_v2 = vld [vmem:[%s1322_s1 + $0x30] sm:$0xff]   ;;  %v902_v3 = vld [vmem:[%s1322_s1 + $0x28] sm:$0xff]  }
   0x2   :  { %348 = vmatpush1.bf16.msra.mxu0 %v900_v1  ;;  %890 = vmatpush1.bf16.msra.mxu1 %v900_v1  ;;  %v903_v4 = vld [vmem:[%s1322_s1 + $0x20] sm:$0xff]   ;;  %v914_v6 = vld [vmem:[%s1323_s0 + $0x94] ss:$8 sps:$4 sm:$0xff]   ;;  %v906_v9 = vld [vmem:[%s1322_s1 + $0x8] sm:$0xff]  }
   0x3   :  { %349 = vmatprep.subr.bf16.mxu0 %v963_v0  ;;  %882 = vmatprep.subr.bf16.mxu1 %v963_v0  ;;  %v911_v5 = vld [vmem:[%s1323_s0 + $0x4] ss:$8 sps:$4 sm:$0xff]   ;;  %v904_v7 = vld [vmem:[%s1322_s1 + $0x18] sm:$0xff]   ;;  %v905_v8 = vld [vmem:[%s1322_s1 + $0x10] sm:$0xff]  }
   0x4   :  { %791 = vmatprep.mubr.msk.bf16.mxu0 %vm292_vm0, %v911_v5  ;;  %800 = vmatprep.mubr.msk.bf16.mxu1 %vm292_vm0, %v914_v6  ;;  %v907_v10 = vld [vmem:[%s1322_s1] sm:$0xff]   ;;  %v912_v13 = vld [vmem:[%s1323_s0 + $0x90] ss:$8 sps:$4 sm:$0xff]   ;;  %v915_v14 = vld [vmem:[%s1323_s0 + $0x14] ss:$8 sps:$4 sm:$0xff]  }
   0x5   :  { %v908_v11 = vld [vmem:[%s1322_s1 + $0x40] sm:$0xff]   ;;  %v919_v16 = vld [vmem:[%s1323_s0 + $0x10] ss:$8 sps:$4 sm:$0xff]   ;;  %v923_v19 = vld [vmem:[%s1323_s0 + $0xb4] ss:$8 sps:$4 sm:$0xff]  }
   0x6   :  { %350 = vmatpush1.bf16.msra.mxu0 %v901_v2  ;;  %891 = vmatpush1.bf16.msra.mxu1 %v901_v2  ;;  %v909_v12 = vld [vmem:[%s1323_s0] ss:$8 sps:$4 sm:$0xff]   ;;  %v917_v15 = vld [vmem:[%s1323_s0 + $0xa4] ss:$8 sps:$4 sm:$0xff]   ;;  %v926_v21 = vld [vmem:[%s1323_s0 + $0xb0] ss:$8 sps:$4 sm:$0xff]  }
   0x7   :  { %351 = vmatprep.subr.bf16.mxu0 %v963_v0  ;;  %883 = vmatprep.subr.bf16.mxu1 %v963_v0  ;;  %v920_v17 = vld [vmem:[%s1323_s0 + $0xa0] ss:$8 sps:$4 sm:$0xff]   ;;  %v921_v18 = vld [vmem:[%s1323_s0 + $0x24] ss:$8 sps:$4 sm:$0xff]   ;;  %v927_v22 = vld [vmem:[%s1323_s0 + $0x34] ss:$8 sps:$4 sm:$0xff]  }
   0x8   :  { %v925_v20 = vld [vmem:[%s1323_s0 + $0x20] ss:$8 sps:$4 sm:$0xff]   ;;  %v929_v23 = vld [vmem:[%s1323_s0 + $0xc4] ss:$8 sps:$4 sm:$0xff]   ;;  %v931_v24 = vld [vmem:[%s1323_s0 + $0x30] ss:$8 sps:$4 sm:$0xff]  }
   0x9   :  { %v932_v25 = vld [vmem:[%s1323_s0 + $0xc0] ss:$8 sps:$4 sm:$0xff]   ;;  %v933_v26 = vld [vmem:[%s1323_s0 + $0x44] ss:$8 sps:$4 sm:$0xff]   ;;  %v935_v27 = vld [vmem:[%s1323_s0 + $0xd4] ss:$8 sps:$4 sm:$0xff]  }
   0xa   :  { %352 = vmatpush1.bf16.msra.mxu0 %v902_v3  ;;  %892 = vmatpush1.bf16.msra.mxu1 %v902_v3  ;;  %v937_v28 = vld [vmem:[%s1323_s0 + $0x40] ss:$8 sps:$4 sm:$0xff]   ;;  %v938_v29 = vld [vmem:[%s1323_s0 + $0xd0] ss:$8 sps:$4 sm:$0xff]   ;;  %v939_v30 = vld [vmem:[%s1323_s0 + $0x54] ss:$8 sps:$4 sm:$0xff]  }
   0xb   :  { %353 = vmatprep.subr.bf16.mxu0 %v963_v0  ;;  %884 = vmatprep.subr.bf16.mxu1 %v963_v0  ;;  %v941_v31 = vld [vmem:[%s1323_s0 + $0xe4] ss:$8 sps:$4 sm:$0xff]   ;;  %v943_v32 = vld [vmem:[%s1323_s0 + $0x50] ss:$8 sps:$4 sm:$0xff]   ;;  %v944_v33 = vld [vmem:[%s1323_s0 + $0xe0] ss:$8 sps:$4 sm:$0xff]  }
   0xc   :  { %v945_v34 = vld [vmem:[%s1323_s0 + $0x64] ss:$8 sps:$4 sm:$0xff]   ;;  %v947_v35 = vld [vmem:[%s1323_s0 + $0xf4] ss:$8 sps:$4 sm:$0xff]   ;;  %v949_v36 = vld [vmem:[%s1323_s0 + $0x60] ss:$8 sps:$4 sm:$0xff]  }
   0xd   :  { %v950_v37 = vld [vmem:[%s1323_s0 + $0xf0] ss:$8 sps:$4 sm:$0xff]   ;;  %v951_v38 = vld [vmem:[%s1323_s0 + $0x74] ss:$8 sps:$4 sm:$0xff]   ;;  %v953_v39 = vld [vmem:[%s1323_s0 + $0x104] ss:$8 sps:$4 sm:$0xff]  }
   0xe   :  { %354 = vmatpush1.bf16.msra.mxu0 %v903_v4  ;;  %893 = vmatpush1.bf16.msra.mxu1 %v903_v4  ;;  %v955_v40 = vld [vmem:[%s1323_s0 + $0x70] ss:$8 sps:$4 sm:$0xff]   ;;  %v956_v41 = vld [vmem:[%s1323_s0 + $0x100] ss:$8 sps:$4 sm:$0xff]   ;;  %v957_v42 = vld [vmem:[%s1323_s0 + $0x84] ss:$8 sps:$4 sm:$0xff]  }
   0xf   :  { %355 = vmatprep.subr.bf16.mxu0 %v963_v0  ;;  %885 = vmatprep.subr.bf16.mxu1 %v963_v0  ;;  %v959_v43 = vld [vmem:[%s1323_s0 + $0x114] ss:$8 sps:$4 sm:$0xff]   ;;  %v961_v44 = vld [vmem:[%s1323_s0 + $0x80] ss:$8 sps:$4 sm:$0xff]   ;;  %v962_v45 = vld [vmem:[%s1323_s0 + $0x110] ss:$8 sps:$4 sm:$0xff]  }
  0x10   :  { %v1140_v46 = vld [vmem:[%s1324_s2] ss:$0 sm:$0xff] }
  0x12   :  { %356 = vmatpush1.bf16.msra.mxu0 %v904_v7  ;;  %894 = vmatpush1.bf16.msra.mxu1 %v904_v7 }
  0x13   :  { %357 = vmatprep.subr.bf16.mxu0 %v963_v0  ;;  %886 = vmatprep.subr.bf16.mxu1 %v963_v0 }
  0x16   :  { %358 = vmatpush1.bf16.msra.mxu0 %v905_v8  ;;  %895 = vmatpush1.bf16.msra.mxu1 %v905_v8 }
  0x17   :  { %359 = vmatprep.subr.bf16.mxu0 %v963_v0  ;;  %887 = vmatprep.subr.bf16.mxu1 %v963_v0 }
  0x1a   :  { %360 = vmatpush1.bf16.msra.mxu0 %v906_v9  ;;  %896 = vmatpush1.bf16.msra.mxu1 %v906_v9 }
  0x1b   :  { %361 = vmatprep.subr.bf16.mxu0 %v963_v0  ;;  %888 = vmatprep.subr.bf16.mxu1 %v963_v0 }
  0x1e   :  { %362 = vmatpush1.bf16.msra.mxu0 %v907_v10  ;;  %897 = vmatpush1.bf16.msra.mxu1 %v907_v10 }
  0x1f   :  { %377 = vmatprep.subr.bf16.mxu0 %v963_v0  ;;  %889 = vmatprep.subr.bf16.mxu1 %v963_v0 }
  0x22   :  { %378 = vmatpush2.bf16.msra.mxu0 %v908_v11  ;;  %898 = vmatpush2.bf16.msra.mxu1 %v908_v11 }
  0x25   :  { %380 = vmatmul.mubr.bf16.vlgmr.msra.gmra.mxu0 %v909_v12  ;;  %452 = vmatmul.mubr.bf16.vlgmr.msra.gmra.mxu1 %v912_v13 }
  0x26   :  { %792 = vmatprep.mubr.msk.bf16.mxu0 %vm292_vm0, %v915_v14  ;;  %801 = vmatprep.mubr.msk.bf16.mxu1 %vm292_vm0, %v917_v15 }
  0x2d   :  { %388 = vmatmul.mubr.bf16.gmra.mxu0 %v919_v16  ;;  %460 = vmatmul.mubr.bf16.gmra.mxu1 %v920_v17 }
  0x2e   :  { %793 = vmatprep.mubr.msk.bf16.mxu0 %vm292_vm0, %v921_v18  ;;  %802 = vmatprep.mubr.msk.bf16.mxu1 %vm292_vm0, %v923_v19 }
  0x35   :  { %396 = vmatmul.mubr.bf16.gmra.mxu0 %v925_v20  ;;  %468 = vmatmul.mubr.bf16.gmra.mxu1 %v926_v21 }
  0x36   :  { %794 = vmatprep.mubr.msk.bf16.mxu0 %vm292_vm0, %v927_v22  ;;  %803 = vmatprep.mubr.msk.bf16.mxu1 %vm292_vm0, %v929_v23 }
  0x3d   :  { %404 = vmatmul.mubr.bf16.gmra.mxu0 %v931_v24  ;;  %476 = vmatmul.mubr.bf16.gmra.mxu1 %v932_v25 }
  0x3e   :  { %795 = vmatprep.mubr.msk.bf16.mxu0 %vm292_vm0, %v933_v26  ;;  %804 = vmatprep.mubr.msk.bf16.mxu1 %vm292_vm0, %v935_v27 }
  0x45   :  { %412 = vmatmul.mubr.bf16.gmra.mxu0 %v937_v28  ;;  %484 = vmatmul.mubr.bf16.gmra.mxu1 %v938_v29 }
  0x46   :  { %796 = vmatprep.mubr.msk.bf16.mxu0 %vm292_vm0, %v939_v30  ;;  %805 = vmatprep.mubr.msk.bf16.mxu1 %vm292_vm0, %v941_v31 }
  0x4d   :  { %420 = vmatmul.mubr.bf16.gmra.mxu0 %v943_v32  ;;  %492 = vmatmul.mubr.bf16.gmra.mxu1 %v944_v33 }
  0x4e   :  { %797 = vmatprep.mubr.msk.bf16.mxu0 %vm292_vm0, %v945_v34  ;;  %806 = vmatprep.mubr.msk.bf16.mxu1 %vm292_vm0, %v947_v35 }
  0x55   :  { %428 = vmatmul.mubr.bf16.gmra.mxu0 %v949_v36  ;;  %500 = vmatmul.mubr.bf16.gmra.mxu1 %v950_v37 }
  0x56   :  { %798 = vmatprep.mubr.msk.bf16.mxu0 %vm292_vm0, %v951_v38  ;;  %807 = vmatprep.mubr.msk.bf16.mxu1 %vm292_vm0, %v953_v39 }
  0x5d   :  { %436 = vmatmul.mubr.bf16.gmra.mxu0 %v955_v40  ;;  %508 = vmatmul.mubr.bf16.gmra.mxu1 %v956_v41 }
  0x5e   :  { %799 = vmatprep.mubr.msk.bf16.mxu0 %vm292_vm0, %v957_v42  ;;  %808 = vmatprep.mubr.msk.bf16.mxu1 %vm292_vm0, %v959_v43 }
  0x65   :  { %444 = vmatmul.mubr.bf16.gmra.mxu0 %v961_v44  ;;  %516 = vmatmul.mubr.bf16.gmra.mxu1 %v962_v45 }
  0xe5   :  { %v381_v47 = vpop.f32.mrf.mxu0  ;;  %v453_v48 = vpop.f32.mrf.mxu1 }
  0xe6   :  { %v382_v49 = vadd.f32 %v1140_v46, %v381_v47  ;;  %v454_v50 = vadd.f32 %v1140_v46, %v453_v48 }
  0xe7   :  { %v383_v51 = vpop.f32.mrf.mxu0  ;;  %v455_v52 = vpop.f32.mrf.mxu1 }
  0xe8   :  { %v524_v53 = vmax.f32 %v382_v49, 0.0  ;;  %v542_v54 = vmax.f32 %v454_v50, 0.0 }
  0xe9   :  { %v384_v55 = vpop.f32.mrf.mxu0  ;;  %v456_v56 = vpop.f32.mrf.mxu1 }
  0xea   :  { %v845_v57 = vpack.c.bf16 %v524_v53, %v524_v53  ;;  %v863_v58 = vpack.c.bf16 %v542_v54, %v542_v54  ;;  %v385_v59 = vadd.f32 %v1140_v46, %v384_v55  ;;  %v457_v60 = vadd.f32 %v1140_v46, %v456_v56 }
  0xeb   :  { %v386_v61 = vpop.f32.mrf.mxu0  ;;  %v458_v62 = vpop.f32.mrf.mxu1 }
  0xec   :  { %705 = vst.msk [vmem:[%s1325_s3] sm:$0xf] %vm704_vm1, %v845_v57  ;;  %723 = vst.msk [vmem:[%s1325_s3 + $0x48] sm:$0xf] %vm704_vm1, %v863_v58  ;;  %v525_v63 = vmax.f32 %v385_v59, 0.0  ;;  %v543_v0 = vmax.f32 %v457_v60, 0.0 }
  0xed   :  { %v389_v1 = vpop.f32.mrf.mxu0  ;;  %v461_v2 = vpop.f32.mrf.mxu1 }
  0xee   :  { %v846_v3 = vpack.c.bf16 %v525_v63, %v525_v63  ;;  %v864_v4 = vpack.c.bf16 %v543_v0, %v543_v0  ;;  %v390_v5 = vadd.f32 %v1140_v46, %v389_v1  ;;  %v462_v6 = vadd.f32 %v1140_v46, %v461_v2 }
  0xef   :  { %v391_v7 = vpop.f32.mrf.mxu0  ;;  %v463_v8 = vpop.f32.mrf.mxu1 }
  0xf0   :  { %706 = vst.msk [vmem:[%s1325_s3 + $0x4] sm:$0xf] %vm704_vm1, %v846_v3  ;;  %724 = vst.msk [vmem:[%s1325_s3 + $0x4c] sm:$0xf] %vm704_vm1, %v864_v4  ;;  %v526_v9 = vmax.f32 %v390_v5, 0.0  ;;  %v544_v10 = vmax.f32 %v462_v6, 0.0 }
  0xf1   :  { %v392_v11 = vpop.f32.mrf.mxu0  ;;  %v464_v12 = vpop.f32.mrf.mxu1 }
  0xf2   :  { %v847_v13 = vpack.c.bf16 %v526_v9, %v526_v9  ;;  %v865_v14 = vpack.c.bf16 %v544_v10, %v544_v10  ;;  %v393_v15 = vadd.f32 %v1140_v46, %v392_v11  ;;  %v465_v16 = vadd.f32 %v1140_v46, %v464_v12 }
  0xf3   :  { %v394_v17 = vpop.f32.mrf.mxu0  ;;  %v466_v18 = vpop.f32.mrf.mxu1 }
  0xf4   :  { %707 = vst.msk [vmem:[%s1325_s3 + $0x8] sm:$0xf] %vm704_vm1, %v847_v13  ;;  %725 = vst.msk [vmem:[%s1325_s3 + $0x50] sm:$0xf] %vm704_vm1, %v865_v14  ;;  %v527_v19 = vmax.f32 %v393_v15, 0.0  ;;  %v545_v20 = vmax.f32 %v465_v16, 0.0 }
  0xf5   :  { %v397_v21 = vpop.f32.mrf.mxu0  ;;  %v469_v22 = vpop.f32.mrf.mxu1 }
  0xf6   :  { %v848_v23 = vpack.c.bf16 %v527_v19, %v527_v19  ;;  %v866_v24 = vpack.c.bf16 %v545_v20, %v545_v20  ;;  %v398_v25 = vadd.f32 %v1140_v46, %v397_v21  ;;  %v470_v26 = vadd.f32 %v1140_v46, %v469_v22 }
  0xf7   :  { %v399_v27 = vpop.f32.mrf.mxu0  ;;  %v471_v28 = vpop.f32.mrf.mxu1 }
  0xf8   :  { %708 = vst.msk [vmem:[%s1325_s3 + $0xc] sm:$0xf] %vm704_vm1, %v848_v23  ;;  %726 = vst.msk [vmem:[%s1325_s3 + $0x54] sm:$0xf] %vm704_vm1, %v866_v24  ;;  %v528_v29 = vmax.f32 %v398_v25, 0.0  ;;  %v546_v30 = vmax.f32 %v470_v26, 0.0 }
  0xf9   :  { %v400_v31 = vpop.f32.mrf.mxu0  ;;  %v472_v32 = vpop.f32.mrf.mxu1 }
  0xfa   :  { %v849_v33 = vpack.c.bf16 %v528_v29, %v528_v29  ;;  %v867_v34 = vpack.c.bf16 %v546_v30, %v546_v30  ;;  %v401_v35 = vadd.f32 %v1140_v46, %v400_v31  ;;  %v473_v36 = vadd.f32 %v1140_v46, %v472_v32 }
  0xfb   :  { %v402_v37 = vpop.f32.mrf.mxu0  ;;  %v474_v38 = vpop.f32.mrf.mxu1 }
  0xfc   :  { %709 = vst.msk [vmem:[%s1325_s3 + $0x10] sm:$0xf] %vm704_vm1, %v849_v33  ;;  %727 = vst.msk [vmem:[%s1325_s3 + $0x58] sm:$0xf] %vm704_vm1, %v867_v34  ;;  %v529_v39 = vmax.f32 %v401_v35, 0.0  ;;  %v547_v40 = vmax.f32 %v473_v36, 0.0 }
  0xfd   :  { %v405_v41 = vpop.f32.mrf.mxu0  ;;  %v477_v42 = vpop.f32.mrf.mxu1 }
  0xfe   :  { %v850_v43 = vpack.c.bf16 %v529_v39, %v529_v39  ;;  %v868_v44 = vpack.c.bf16 %v547_v40, %v547_v40  ;;  %v406_v45 = vadd.f32 %v1140_v46, %v405_v41  ;;  %v478_v47 = vadd.f32 %v1140_v46, %v477_v42 }
  0xff   :  { %v407_v48 = vpop.f32.mrf.mxu0  ;;  %v479_v49 = vpop.f32.mrf.mxu1 }
 0x100   :  { %710 = vst.msk [vmem:[%s1325_s3 + $0x14] sm:$0xf] %vm704_vm1, %v850_v43  ;;  %728 = vst.msk [vmem:[%s1325_s3 + $0x5c] sm:$0xf] %vm704_vm1, %v868_v44  ;;  %v530_v50 = vmax.f32 %v406_v45, 0.0  ;;  %v548_v51 = vmax.f32 %v478_v47, 0.0 }
 0x101   :  { %v408_v52 = vpop.f32.mrf.mxu0  ;;  %v480_v53 = vpop.f32.mrf.mxu1 }
 0x102   :  { %v851_v54 = vpack.c.bf16 %v530_v50, %v530_v50  ;;  %v869_v55 = vpack.c.bf16 %v548_v51, %v548_v51  ;;  %v409_v56 = vadd.f32 %v1140_v46, %v408_v52  ;;  %v481_v57 = vadd.f32 %v1140_v46, %v480_v53 }
 0x103   :  { %v410_v58 = vpop.f32.mrf.mxu0  ;;  %v482_v59 = vpop.f32.mrf.mxu1 }
 0x104   :  { %711 = vst.msk [vmem:[%s1325_s3 + $0x18] sm:$0xf] %vm704_vm1, %v851_v54  ;;  %729 = vst.msk [vmem:[%s1325_s3 + $0x60] sm:$0xf] %vm704_vm1, %v869_v55  ;;  %v531_v60 = vmax.f32 %v409_v56, 0.0  ;;  %v549_v61 = vmax.f32 %v481_v57, 0.0 }
 0x105   :  { %v413_v62 = vpop.f32.mrf.mxu0  ;;  %v485_v63 = vpop.f32.mrf.mxu1 }
 0x106   :  { %v852_v0 = vpack.c.bf16 %v531_v60, %v531_v60  ;;  %v870_v1 = vpack.c.bf16 %v549_v61, %v549_v61  ;;  %v414_v2 = vadd.f32 %v1140_v46, %v413_v62  ;;  %v486_v3 = vadd.f32 %v1140_v46, %v485_v63 }
 0x107   :  { %v415_v4 = vpop.f32.mrf.mxu0  ;;  %v487_v5 = vpop.f32.mrf.mxu1 }
 0x108   :  { %712 = vst.msk [vmem:[%s1325_s3 + $0x1c] sm:$0xf] %vm704_vm1, %v852_v0  ;;  %730 = vst.msk [vmem:[%s1325_s3 + $0x64] sm:$0xf] %vm704_vm1, %v870_v1  ;;  %v532_v6 = vmax.f32 %v414_v2, 0.0  ;;  %v550_v7 = vmax.f32 %v486_v3, 0.0 }
 0x109   :  { %v416_v8 = vpop.f32.mrf.mxu0  ;;  %v488_v9 = vpop.f32.mrf.mxu1 }
 0x10a   :  { %v853_v10 = vpack.c.bf16 %v532_v6, %v532_v6  ;;  %v871_v11 = vpack.c.bf16 %v550_v7, %v550_v7  ;;  %v417_v12 = vadd.f32 %v1140_v46, %v416_v8  ;;  %v489_v13 = vadd.f32 %v1140_v46, %v488_v9 }
 0x10b   :  { %v418_v14 = vpop.f32.mrf.mxu0  ;;  %v490_v15 = vpop.f32.mrf.mxu1 }
 0x10c   :  { %713 = vst.msk [vmem:[%s1325_s3 + $0x20] sm:$0xf] %vm704_vm1, %v853_v10  ;;  %731 = vst.msk [vmem:[%s1325_s3 + $0x68] sm:$0xf] %vm704_vm1, %v871_v11  ;;  %v533_v16 = vmax.f32 %v417_v12, 0.0  ;;  %v551_v17 = vmax.f32 %v489_v13, 0.0 }
 0x10d   :  { %v421_v18 = vpop.f32.mrf.mxu0  ;;  %v493_v19 = vpop.f32.mrf.mxu1 }
 0x10e   :  { %v854_v20 = vpack.c.bf16 %v533_v16, %v533_v16  ;;  %v872_v21 = vpack.c.bf16 %v551_v17, %v551_v17  ;;  %v422_v22 = vadd.f32 %v1140_v46, %v421_v18  ;;  %v494_v23 = vadd.f32 %v1140_v46, %v493_v19 }
 0x10f   :  { %v423_v24 = vpop.f32.mrf.mxu0  ;;  %v495_v25 = vpop.f32.mrf.mxu1 }
 0x110   :  { %714 = vst.msk [vmem:[%s1325_s3 + $0x24] sm:$0xf] %vm704_vm1, %v854_v20  ;;  %732 = vst.msk [vmem:[%s1325_s3 + $0x6c] sm:$0xf] %vm704_vm1, %v872_v21  ;;  %v534_v26 = vmax.f32 %v422_v22, 0.0  ;;  %v552_v27 = vmax.f32 %v494_v23, 0.0 }
 0x111   :  { %v424_v28 = vpop.f32.mrf.mxu0  ;;  %v496_v29 = vpop.f32.mrf.mxu1 }
 0x112   :  { %v855_v30 = vpack.c.bf16 %v534_v26, %v534_v26  ;;  %v873_v31 = vpack.c.bf16 %v552_v27, %v552_v27  ;;  %v425_v32 = vadd.f32 %v1140_v46, %v424_v28  ;;  %v497_v33 = vadd.f32 %v1140_v46, %v496_v29 }
 0x113   :  { %v426_v34 = vpop.f32.mrf.mxu0  ;;  %v498_v35 = vpop.f32.mrf.mxu1 }
 0x114   :  { %715 = vst.msk [vmem:[%s1325_s3 + $0x28] sm:$0xf] %vm704_vm1, %v855_v30  ;;  %733 = vst.msk [vmem:[%s1325_s3 + $0x70] sm:$0xf] %vm704_vm1, %v873_v31  ;;  %v535_v36 = vmax.f32 %v425_v32, 0.0  ;;  %v553_v37 = vmax.f32 %v497_v33, 0.0 }
 0x115   :  { %v429_v38 = vpop.f32.mrf.mxu0  ;;  %v501_v39 = vpop.f32.mrf.mxu1 }
 0x116   :  { %v856_v40 = vpack.c.bf16 %v535_v36, %v535_v36  ;;  %v874_v41 = vpack.c.bf16 %v553_v37, %v553_v37  ;;  %v430_v42 = vadd.f32 %v1140_v46, %v429_v38  ;;  %v502_v43 = vadd.f32 %v1140_v46, %v501_v39 }
 0x117   :  { %v431_v44 = vpop.f32.mrf.mxu0  ;;  %v503_v45 = vpop.f32.mrf.mxu1 }
 0x118   :  { %716 = vst.msk [vmem:[%s1325_s3 + $0x2c] sm:$0xf] %vm704_vm1, %v856_v40  ;;  %734 = vst.msk [vmem:[%s1325_s3 + $0x74] sm:$0xf] %vm704_vm1, %v874_v41  ;;  %v536_v47 = vmax.f32 %v430_v42, 0.0  ;;  %v554_v48 = vmax.f32 %v502_v43, 0.0 }
 0x119   :  { %v432_v49 = vpop.f32.mrf.mxu0  ;;  %v504_v50 = vpop.f32.mrf.mxu1 }
 0x11a   :  { %v857_v51 = vpack.c.bf16 %v536_v47, %v536_v47  ;;  %v875_v52 = vpack.c.bf16 %v554_v48, %v554_v48  ;;  %v433_v53 = vadd.f32 %v1140_v46, %v432_v49  ;;  %v505_v54 = vadd.f32 %v1140_v46, %v504_v50 }
 0x11b   :  { %v434_v55 = vpop.f32.mrf.mxu0  ;;  %v506_v56 = vpop.f32.mrf.mxu1 }
 0x11c   :  { %717 = vst.msk [vmem:[%s1325_s3 + $0x30] sm:$0xf] %vm704_vm1, %v857_v51  ;;  %735 = vst.msk [vmem:[%s1325_s3 + $0x78] sm:$0xf] %vm704_vm1, %v875_v52  ;;  %v537_v57 = vmax.f32 %v433_v53, 0.0  ;;  %v555_v58 = vmax.f32 %v505_v54, 0.0 }
 0x11d   :  { %v437_v59 = vpop.f32.mrf.mxu0  ;;  %v509_v60 = vpop.f32.mrf.mxu1 }
 0x11e   :  { %v858_v61 = vpack.c.bf16 %v537_v57, %v537_v57  ;;  %v876_v62 = vpack.c.bf16 %v555_v58, %v555_v58  ;;  %v438_v63 = vadd.f32 %v1140_v46, %v437_v59  ;;  %v510_v0 = vadd.f32 %v1140_v46, %v509_v60 }
 0x11f   :  { %v439_v1 = vpop.f32.mrf.mxu0  ;;  %v511_v2 = vpop.f32.mrf.mxu1 }
 0x120   :  { %718 = vst.msk [vmem:[%s1325_s3 + $0x34] sm:$0xf] %vm704_vm1, %v858_v61  ;;  %736 = vst.msk [vmem:[%s1325_s3 + $0x7c] sm:$0xf] %vm704_vm1, %v876_v62  ;;  %v538_v3 = vmax.f32 %v438_v63, 0.0  ;;  %v556_v4 = vmax.f32 %v510_v0, 0.0 }
 0x121   :  { %v440_v5 = vpop.f32.mrf.mxu0  ;;  %v512_v6 = vpop.f32.mrf.mxu1 }
 0x122   :  { %v859_v7 = vpack.c.bf16 %v538_v3, %v538_v3  ;;  %v877_v8 = vpack.c.bf16 %v556_v4, %v556_v4  ;;  %v441_v9 = vadd.f32 %v1140_v46, %v440_v5  ;;  %v513_v10 = vadd.f32 %v1140_v46, %v512_v6 }
 0x123   :  { %v442_v11 = vpop.f32.mrf.mxu0  ;;  %v514_v12 = vpop.f32.mrf.mxu1 }
 0x124   :  { %719 = vst.msk [vmem:[%s1325_s3 + $0x38] sm:$0xf] %vm704_vm1, %v859_v7  ;;  %737 = vst.msk [vmem:[%s1325_s3 + $0x80] sm:$0xf] %vm704_vm1, %v877_v8  ;;  %v539_v13 = vmax.f32 %v441_v9, 0.0  ;;  %v557_v14 = vmax.f32 %v513_v10, 0.0 }
 0x125   :  { %v445_v15 = vpop.f32.mrf.mxu0  ;;  %v517_v16 = vpop.f32.mrf.mxu1 }
 0x126   :  { %v860_v17 = vpack.c.bf16 %v539_v13, %v539_v13  ;;  %v878_v18 = vpack.c.bf16 %v557_v14, %v557_v14  ;;  %v446_v19 = vadd.f32 %v1140_v46, %v445_v15  ;;  %v518_v20 = vadd.f32 %v1140_v46, %v517_v16 }
 0x127   :  { %v447_v21 = vpop.f32.mrf.mxu0  ;;  %v519_v22 = vpop.f32.mrf.mxu1 }
 0x128   :  { %720 = vst.msk [vmem:[%s1325_s3 + $0x3c] sm:$0xf] %vm704_vm1, %v860_v17  ;;  %738 = vst.msk [vmem:[%s1325_s3 + $0x84] sm:$0xf] %vm704_vm1, %v878_v18  ;;  %v540_v23 = vmax.f32 %v446_v19, 0.0  ;;  %v558_v24 = vmax.f32 %v518_v20, 0.0 }
 0x129   :  { %v448_v25 = vpop.f32.mrf.mxu0  ;;  %v520_v26 = vpop.f32.mrf.mxu1 }
 0x12a   :  { %v861_v27 = vpack.c.bf16 %v540_v23, %v540_v23  ;;  %v879_v28 = vpack.c.bf16 %v558_v24, %v558_v24  ;;  %v449_v29 = vadd.f32 %v1140_v46, %v448_v25  ;;  %v521_v30 = vadd.f32 %v1140_v46, %v520_v26 }
 0x12b   :  { %v450_v31 = vpop.f32.mrf.mxu0  ;;  %v522_v32 = vpop.f32.mrf.mxu1 }
 0x12c   :  { %721 = vst.msk [vmem:[%s1325_s3 + $0x40] sm:$0xf] %vm704_vm1, %v861_v27  ;;  %739 = vst.msk [vmem:[%s1325_s3 + $0x88] sm:$0xf] %vm704_vm1, %v879_v28  ;;  %v541_v33 = vmax.f32 %v449_v29, 0.0  ;;  %v559_v34 = vmax.f32 %v521_v30, 0.0 }
 0x12e   :  { %v862_v35 = vpack.c.bf16 %v541_v33, %v541_v33  ;;  %v880_v36 = vpack.c.bf16 %v559_v34, %v559_v34 }
 0x130   :  { %722 = vst.msk [vmem:[%s1325_s3 + $0x44] sm:$0xf] %vm704_vm1, %v862_v35  ;;  %740 = vst.msk [vmem:[%s1325_s3 + $0x8c] sm:$0xf] %vm704_vm1, %v880_v36 }

// kernel: segnet_forward.17
= control target key start
LH: loop header
LB: loop body
LE: loop exit
PB: predicated region body
PF: predicated region fallthrough
CT: control target
= control target key end

     0   :  { %v1258_v0 = vmov 0   ;;  %vm365_vm0 = vcmask 130048   ;;  %vm919_vm1 = vcmask 257024   ;;  %s1728_s1 = inlined_call_operand.vmem [shape: bf16[144,32], index: 1, kind: input, shape index: {}]   ;;  %s1729_s0 = inlined_call_operand.vmem [shape: bf16[392,144], index: 0, kind: input, shape index: {}]   ;;  %s1730_s2 = inlined_call_operand.vmem [shape: f32[1,32], index: 2, kind: input, shape index: {}]   ;;  %s1731_s3 = inlined_call_operand.vmem [shape: bf16[392,32], index: 3, kind: output, shape index: {}]  }
   0x1   :  { %441 = vmatprep.subr.bf16.mxu0 %v1258_v0  ;;  %v1175_v1 = vld [vmem:[%s1728_s1 + $0x38] sm:$0xff]   ;;  %1156 = vmatprep.subr.bf16.mxu1 %v1258_v0  ;;  %v1176_v2 = vld [vmem:[%s1728_s1 + $0x30] sm:$0xff]   ;;  %v1177_v3 = vld [vmem:[%s1728_s1 + $0x28] sm:$0xff]  }
   0x2   :  { %442 = vmatpush1.bf16.msra.mxu0 %v1175_v1  ;;  %1165 = vmatpush1.bf16.msra.mxu1 %v1175_v1  ;;  %v1178_v4 = vld [vmem:[%s1728_s1 + $0x20] sm:$0xff]   ;;  %v1189_v6 = vld [vmem:[%s1729_s0 + $0xd4] ss:$8 sps:$4 sm:$0xff]   ;;  %v1181_v9 = vld [vmem:[%s1728_s1 + $0x8] sm:$0xff]  }
   0x3   :  { %443 = vmatprep.subr.bf16.mxu0 %v1258_v0  ;;  %1157 = vmatprep.subr.bf16.mxu1 %v1258_v0  ;;  %v1186_v5 = vld [vmem:[%s1729_s0 + $0x4] ss:$8 sps:$4 sm:$0xff]   ;;  %v1179_v7 = vld [vmem:[%s1728_s1 + $0x18] sm:$0xff]   ;;  %v1180_v8 = vld [vmem:[%s1728_s1 + $0x10] sm:$0xff]  }
   0x4   :  { %1033 = vmatprep.mubr.msk.bf16.mxu0 %vm365_vm0, %v1186_v5  ;;  %1046 = vmatprep.mubr.msk.bf16.mxu1 %vm365_vm0, %v1189_v6  ;;  %v1182_v10 = vld [vmem:[%s1728_s1] sm:$0xff]   ;;  %v1187_v13 = vld [vmem:[%s1729_s0 + $0xd0] ss:$8 sps:$4 sm:$0xff]   ;;  %v1190_v14 = vld [vmem:[%s1729_s0 + $0x14] ss:$8 sps:$4 sm:$0xff]  }
   0x5   :  { %v1183_v11 = vld [vmem:[%s1728_s1 + $0x40] sm:$0xff]   ;;  %v1192_v16 = vld [vmem:[%s1729_s0 + $0x10] ss:$8 sps:$4 sm:$0xff]   ;;  %v1199_v19 = vld [vmem:[%s1729_s0 + $0xf4] ss:$8 sps:$4 sm:$0xff]  }
   0x6   :  { %444 = vmatpush1.bf16.msra.mxu0 %v1176_v2  ;;  %1166 = vmatpush1.bf16.msra.mxu1 %v1176_v2  ;;  %v1184_v12 = vld [vmem:[%s1729_s0] ss:$8 sps:$4 sm:$0xff]   ;;  %v1193_v15 = vld [vmem:[%s1729_s0 + $0xe4] ss:$8 sps:$4 sm:$0xff]   ;;  %v1201_v21 = vld [vmem:[%s1729_s0 + $0xf0] ss:$8 sps:$4 sm:$0xff]  }
   0x7   :  { %445 = vmatprep.subr.bf16.mxu0 %v1258_v0  ;;  %1158 = vmatprep.subr.bf16.mxu1 %v1258_v0  ;;  %v1195_v17 = vld [vmem:[%s1729_s0 + $0xe0] ss:$8 sps:$4 sm:$0xff]   ;;  %v1196_v18 = vld [vmem:[%s1729_s0 + $0x24] ss:$8 sps:$4 sm:$0xff]   ;;  %v1202_v22 = vld [vmem:[%s1729_s0 + $0x34] ss:$8 sps:$4 sm:$0xff]  }
   0x8   :  { %v1198_v20 = vld [vmem:[%s1729_s0 + $0x20] ss:$8 sps:$4 sm:$0xff]   ;;  %v1205_v23 = vld [vmem:[%s1729_s0 + $0x104] ss:$8 sps:$4 sm:$0xff]   ;;  %v1204_v24 = vld [vmem:[%s1729_s0 + $0x30] ss:$8 sps:$4 sm:$0xff]  }
   0x9   :  { %v1207_v25 = vld [vmem:[%s1729_s0 + $0x100] ss:$8 sps:$4 sm:$0xff]   ;;  %v1208_v26 = vld [vmem:[%s1729_s0 + $0x44] ss:$8 sps:$4 sm:$0xff]   ;;  %v1211_v27 = vld [vmem:[%s1729_s0 + $0x114] ss:$8 sps:$4 sm:$0xff]  }
   0xa   :  { %446 = vmatpush1.bf16.msra.mxu0 %v1177_v3  ;;  %1167 = vmatpush1.bf16.msra.mxu1 %v1177_v3  ;;  %v1210_v28 = vld [vmem:[%s1729_s0 + $0x40] ss:$8 sps:$4 sm:$0xff]   ;;  %v1213_v29 = vld [vmem:[%s1729_s0 + $0x110] ss:$8 sps:$4 sm:$0xff]   ;;  %v1214_v30 = vld [vmem:[%s1729_s0 + $0x54] ss:$8 sps:$4 sm:$0xff]  }
   0xb   :  { %447 = vmatprep.subr.bf16.mxu0 %v1258_v0  ;;  %1159 = vmatprep.subr.bf16.mxu1 %v1258_v0  ;;  %v1217_v31 = vld [vmem:[%s1729_s0 + $0x124] ss:$8 sps:$4 sm:$0xff]   ;;  %v1216_v32 = vld [vmem:[%s1729_s0 + $0x50] ss:$8 sps:$4 sm:$0xff]   ;;  %v1219_v33 = vld [vmem:[%s1729_s0 + $0x120] ss:$8 sps:$4 sm:$0xff]  }
   0xc   :  { %v1220_v34 = vld [vmem:[%s1729_s0 + $0x64] ss:$8 sps:$4 sm:$0xff]   ;;  %v1223_v35 = vld [vmem:[%s1729_s0 + $0x134] ss:$8 sps:$4 sm:$0xff]   ;;  %v1222_v36 = vld [vmem:[%s1729_s0 + $0x60] ss:$8 sps:$4 sm:$0xff]  }
   0xd   :  { %v1225_v37 = vld [vmem:[%s1729_s0 + $0x130] ss:$8 sps:$4 sm:$0xff]   ;;  %v1226_v38 = vld [vmem:[%s1729_s0 + $0x74] ss:$8 sps:$4 sm:$0xff]   ;;  %v1229_v39 = vld [vmem:[%s1729_s0 + $0x144] ss:$8 sps:$4 sm:$0xff]  }
   0xe   :  { %448 = vmatpush1.bf16.msra.mxu0 %v1178_v4  ;;  %1168 = vmatpush1.bf16.msra.mxu1 %v1178_v4  ;;  %v1228_v40 = vld [vmem:[%s1729_s0 + $0x70] ss:$8 sps:$4 sm:$0xff]   ;;  %v1231_v41 = vld [vmem:[%s1729_s0 + $0x140] ss:$8 sps:$4 sm:$0xff]   ;;  %v1232_v42 = vld [vmem:[%s1729_s0 + $0x84] ss:$8 sps:$4 sm:$0xff]  }
   0xf   :  { %449 = vmatprep.subr.bf16.mxu0 %v1258_v0  ;;  %1160 = vmatprep.subr.bf16.mxu1 %v1258_v0  ;;  %v1235_v43 = vld [vmem:[%s1729_s0 + $0x154] ss:$8 sps:$4 sm:$0xff]   ;;  %v1234_v44 = vld [vmem:[%s1729_s0 + $0x80] ss:$8 sps:$4 sm:$0xff]   ;;  %v1237_v45 = vld [vmem:[%s1729_s0 + $0x150] ss:$8 sps:$4 sm:$0xff]  }
  0x10   :  { %v1238_v46 = vld [vmem:[%s1729_s0 + $0x94] ss:$8 sps:$4 sm:$0xff]   ;;  %v1241_v47 = vld [vmem:[%s1729_s0 + $0x164] ss:$8 sps:$4 sm:$0xff]   ;;  %v1240_v48 = vld [vmem:[%s1729_s0 + $0x90] ss:$8 sps:$4 sm:$0xff]  }
  0x11   :  { %v1243_v49 = vld [vmem:[%s1729_s0 + $0x160] ss:$8 sps:$4 sm:$0xff]   ;;  %v1244_v50 = vld [vmem:[%s1729_s0 + $0xa4] ss:$8 sps:$4 sm:$0xff]   ;;  %v1247_v51 = vld [vmem:[%s1729_s0 + $0x174] ss:$8 sps:$4 sm:$0xff]  }
  0x12   :  { %450 = vmatpush1.bf16.msra.mxu0 %v1179_v7  ;;  %1169 = vmatpush1.bf16.msra.mxu1 %v1179_v7  ;;  %v63_v52 = vld [vmem:[%s1729_s0 + $0x180] sm:$0xff]  ;;  %v1249_v54 = vld [vmem:[%s1729_s0 + $0x170] ss:$8 sps:$4 sm:$0xff]   ;;  %v1250_v55 = vld [vmem:[%s1729_s0 + $0xb4] ss:$8 sps:$4 sm:$0xff]  }
  0x13   :  { %451 = vmatprep.subr.bf16.mxu0 %v1258_v0  ;;  %1161 = vmatprep.subr.bf16.mxu1 %v1258_v0  ;;  %v1246_v53 = vld [vmem:[%s1729_s0 + $0xa0] ss:$8 sps:$4 sm:$0xff]   ;;  %v1023_v56 = vcombine.high %v63_v52, %v63_v52  ;;  %v1252_v57 = vld [vmem:[%s1729_s0 + $0xb0] ss:$8 sps:$4 sm:$0xff]   ;;  %v1022_v58 = vcombine.low %v63_v52, %v63_v52  ;;  %v1255_v59 = vld [vmem:[%s1729_s0 + $0xc4] ss:$8 sps:$4 sm:$0xff]  }
  0x14   :  { %v1257_v60 = vld [vmem:[%s1729_s0 + $0xc0] ss:$8 sps:$4 sm:$0xff]  }
  0x15   :  { %v1481_v61 = vld [vmem:[%s1730_s2] ss:$0 sm:$0xff] }
  0x16   :  { %452 = vmatpush1.bf16.msra.mxu0 %v1180_v8  ;;  %1170 = vmatpush1.bf16.msra.mxu1 %v1180_v8 }
  0x17   :  { %453 = vmatprep.subr.bf16.mxu0 %v1258_v0  ;;  %1162 = vmatprep.subr.bf16.mxu1 %v1258_v0 }
  0x1a   :  { %454 = vmatpush1.bf16.msra.mxu0 %v1181_v9  ;;  %1171 = vmatpush1.bf16.msra.mxu1 %v1181_v9 }
  0x1b   :  { %455 = vmatprep.subr.bf16.mxu0 %v1258_v0  ;;  %1163 = vmatprep.subr.bf16.mxu1 %v1258_v0 }
  0x1e   :  { %456 = vmatpush1.bf16.msra.mxu0 %v1182_v10  ;;  %1172 = vmatpush1.bf16.msra.mxu1 %v1182_v10 }
  0x1f   :  { %471 = vmatprep.subr.bf16.mxu0 %v1258_v0  ;;  %1164 = vmatprep.subr.bf16.mxu1 %v1258_v0 }
  0x22   :  { %472 = vmatpush2.bf16.msra.mxu0 %v1183_v11  ;;  %1173 = vmatpush2.bf16.msra.mxu1 %v1183_v11 }
  0x25   :  { %474 = vmatmul.mubr.bf16.vlgmr.msra.gmra.mxu0 %v1184_v12  ;;  %578 = vmatmul.mubr.bf16.vlgmr.msra.gmra.mxu1 %v1187_v13 }
  0x26   :  { %1034 = vmatprep.mubr.msk.bf16.mxu0 %vm365_vm0, %v1190_v14  ;;  %1047 = vmatprep.mubr.msk.bf16.mxu1 %vm365_vm0, %v1193_v15 }
  0x2d   :  { %482 = vmatmul.mubr.bf16.gmra.mxu0 %v1192_v16  ;;  %586 = vmatmul.mubr.bf16.gmra.mxu1 %v1195_v17 }
  0x2e   :  { %1035 = vmatprep.mubr.msk.bf16.mxu0 %vm365_vm0, %v1196_v18  ;;  %1048 = vmatprep.mubr.msk.bf16.mxu1 %vm365_vm0, %v1199_v19 }
  0x35   :  { %490 = vmatmul.mubr.bf16.gmra.mxu0 %v1198_v20  ;;  %594 = vmatmul.mubr.bf16.gmra.mxu1 %v1201_v21 }
  0x36   :  { %1036 = vmatprep.mubr.msk.bf16.mxu0 %vm365_vm0, %v1202_v22  ;;  %1049 = vmatprep.mubr.msk.bf16.mxu1 %vm365_vm0, %v1205_v23 }
  0x3d   :  { %498 = vmatmul.mubr.bf16.gmra.mxu0 %v1204_v24  ;;  %602 = vmatmul.mubr.bf16.gmra.mxu1 %v1207_v25 }
  0x3e   :  { %1037 = vmatprep.mubr.msk.bf16.mxu0 %vm365_vm0, %v1208_v26  ;;  %1050 = vmatprep.mubr.msk.bf16.mxu1 %vm365_vm0, %v1211_v27 }
  0x45   :  { %506 = vmatmul.mubr.bf16.gmra.mxu0 %v1210_v28  ;;  %610 = vmatmul.mubr.bf16.gmra.mxu1 %v1213_v29 }
  0x46   :  { %1038 = vmatprep.mubr.msk.bf16.mxu0 %vm365_vm0, %v1214_v30  ;;  %1051 = vmatprep.mubr.msk.bf16.mxu1 %vm365_vm0, %v1217_v31 }
  0x4d   :  { %514 = vmatmul.mubr.bf16.gmra.mxu0 %v1216_v32  ;;  %618 = vmatmul.mubr.bf16.gmra.mxu1 %v1219_v33 }
  0x4e   :  { %1039 = vmatprep.mubr.msk.bf16.mxu0 %vm365_vm0, %v1220_v34  ;;  %1052 = vmatprep.mubr.msk.bf16.mxu1 %vm365_vm0, %v1223_v35 }
  0x55   :  { %522 = vmatmul.mubr.bf16.gmra.mxu0 %v1222_v36  ;;  %626 = vmatmul.mubr.bf16.gmra.mxu1 %v1225_v37 }
  0x56   :  { %1040 = vmatprep.mubr.msk.bf16.mxu0 %vm365_vm0, %v1226_v38  ;;  %1053 = vmatprep.mubr.msk.bf16.mxu1 %vm365_vm0, %v1229_v39 }
  0x5d   :  { %530 = vmatmul.mubr.bf16.gmra.mxu0 %v1228_v40  ;;  %634 = vmatmul.mubr.bf16.gmra.mxu1 %v1231_v41 }
  0x5e   :  { %1041 = vmatprep.mubr.msk.bf16.mxu0 %vm365_vm0, %v1232_v42  ;;  %1054 = vmatprep.mubr.msk.bf16.mxu1 %vm365_vm0, %v1235_v43 }
  0x65   :  { %538 = vmatmul.mubr.bf16.gmra.mxu0 %v1234_v44  ;;  %642 = vmatmul.mubr.bf16.gmra.mxu1 %v1237_v45 }
  0x66   :  { %1042 = vmatprep.mubr.msk.bf16.mxu0 %vm365_vm0, %v1238_v46  ;;  %1055 = vmatprep.mubr.msk.bf16.mxu1 %vm365_vm0, %v1241_v47 }
  0x6d   :  { %546 = vmatmul.mubr.bf16.gmra.mxu0 %v1240_v48  ;;  %650 = vmatmul.mubr.bf16.gmra.mxu1 %v1243_v49 }
  0x6e   :  { %1043 = vmatprep.mubr.msk.bf16.mxu0 %vm365_vm0, %v1244_v50  ;;  %1056 = vmatprep.mubr.msk.bf16.mxu1 %vm365_vm0, %v1247_v51 }
  0x75   :  { %554 = vmatmul.mubr.bf16.gmra.mxu0 %v1246_v53  ;;  %658 = vmatmul.mubr.bf16.gmra.mxu1 %v1249_v54 }
  0x76   :  { %1044 = vmatprep.mubr.msk.bf16.mxu0 %vm365_vm0, %v1250_v55  ;;  %1057 = vmatprep.mubr.msk.bf16.mxu1 %vm365_vm0, %v1023_v56 }
  0x7d   :  { %562 = vmatmul.mubr.bf16.gmra.mxu0 %v1252_v57  ;;  %666 = vmatmul.mubr.bf16.gmra.mxu1 %v1022_v58 }
  0x7e   :  { %1045 = vmatprep.mubr.msk.bf16.mxu0 %vm365_vm0, %v1255_v59 }
  0x85   :  { %570 = vmatmul.mubr.bf16.gmra.mxu0 %v1257_v60 }
  0xe5   :  { %v475_v62 = vpop.f32.mrf.mxu0  ;;  %v579_v63 = vpop.f32.mrf.mxu1 }
  0xe6   :  { %v476_v0 = vadd.f32 %v1481_v61, %v475_v62  ;;  %v580_v1 = vadd.f32 %v1481_v61, %v579_v63 }
  0xe7   :  { %v477_v2 = vpop.f32.mrf.mxu0  ;;  %v581_v3 = vpop.f32.mrf.mxu1 }
  0xe8   :  { %v673_v4 = vmax.f32 %v476_v0, 0.0  ;;  %v699_v5 = vmax.f32 %v580_v1, 0.0 }
  0xe9   :  { %v478_v6 = vpop.f32.mrf.mxu0  ;;  %v582_v7 = vpop.f32.mrf.mxu1 }
  0xea   :  { %v1107_v8 = vpack.c.bf16 %v673_v4, %v673_v4  ;;  %v479_v9 = vadd.f32 %v1481_v61, %v478_v6  ;;  %v1133_v10 = vpack.c.bf16 %v699_v5, %v699_v5  ;;  %v583_v11 = vadd.f32 %v1481_v61, %v582_v7 }
  0xeb   :  { %v480_v12 = vpop.f32.mrf.mxu0  ;;  %v584_v13 = vpop.f32.mrf.mxu1 }
  0xec   :  { %920 = vst.msk [vmem:[%s1731_s3] sm:$0xf] %vm919_vm1, %v1107_v8  ;;  %v674_v14 = vmax.f32 %v479_v9, 0.0  ;;  %946 = vst.msk [vmem:[%s1731_s3 + $0x68] sm:$0xf] %vm919_vm1, %v1133_v10  ;;  %v700_v15 = vmax.f32 %v583_v11, 0.0 }
  0xed   :  { %v483_v16 = vpop.f32.mrf.mxu0  ;;  %v587_v17 = vpop.f32.mrf.mxu1 }
  0xee   :  { %v1108_v18 = vpack.c.bf16 %v674_v14, %v674_v14  ;;  %v484_v19 = vadd.f32 %v1481_v61, %v483_v16  ;;  %v1134_v20 = vpack.c.bf16 %v700_v15, %v700_v15  ;;  %v588_v21 = vadd.f32 %v1481_v61, %v587_v17 }
  0xef   :  { %v485_v22 = vpop.f32.mrf.mxu0  ;;  %v589_v23 = vpop.f32.mrf.mxu1 }
  0xf0   :  { %921 = vst.msk [vmem:[%s1731_s3 + $0x4] sm:$0xf] %vm919_vm1, %v1108_v18  ;;  %v675_v24 = vmax.f32 %v484_v19, 0.0  ;;  %947 = vst.msk [vmem:[%s1731_s3 + $0x6c] sm:$0xf] %vm919_vm1, %v1134_v20  ;;  %v701_v25 = vmax.f32 %v588_v21, 0.0 }
  0xf1   :  { %v486_v26 = vpop.f32.mrf.mxu0  ;;  %v590_v27 = vpop.f32.mrf.mxu1 }
  0xf2   :  { %v1109_v28 = vpack.c.bf16 %v675_v24, %v675_v24  ;;  %v487_v29 = vadd.f32 %v1481_v61, %v486_v26  ;;  %v1135_v30 = vpack.c.bf16 %v701_v25, %v701_v25  ;;  %v591_v31 = vadd.f32 %v1481_v61, %v590_v27 }
  0xf3   :  { %v488_v32 = vpop.f32.mrf.mxu0  ;;  %v592_v33 = vpop.f32.mrf.mxu1 }
  0xf4   :  { %922 = vst.msk [vmem:[%s1731_s3 + $0x8] sm:$0xf] %vm919_vm1, %v1109_v28  ;;  %v676_v34 = vmax.f32 %v487_v29, 0.0  ;;  %948 = vst.msk [vmem:[%s1731_s3 + $0x70] sm:$0xf] %vm919_vm1, %v1135_v30  ;;  %v702_v35 = vmax.f32 %v591_v31, 0.0 }
  0xf5   :  { %v491_v36 = vpop.f32.mrf.mxu0  ;;  %v595_v37 = vpop.f32.mrf.mxu1 }
  0xf6   :  { %v1110_v38 = vpack.c.bf16 %v676_v34, %v676_v34  ;;  %v492_v39 = vadd.f32 %v1481_v61, %v491_v36  ;;  %v1136_v40 = vpack.c.bf16 %v702_v35, %v702_v35  ;;  %v596_v41 = vadd.f32 %v1481_v61, %v595_v37 }
  0xf7   :  { %v493_v42 = vpop.f32.mrf.mxu0  ;;  %v597_v43 = vpop.f32.mrf.mxu1 }
  0xf8   :  { %923 = vst.msk [vmem:[%s1731_s3 + $0xc] sm:$0xf] %vm919_vm1, %v1110_v38  ;;  %v677_v44 = vmax.f32 %v492_v39, 0.0  ;;  %949 = vst.msk [vmem:[%s1731_s3 + $0x74] sm:$0xf] %vm919_vm1, %v1136_v40  ;;  %v703_v45 = vmax.f32 %v596_v41, 0.0 }
  0xf9   :  { %v494_v46 = vpop.f32.mrf.mxu0  ;;  %v598_v47 = vpop.f32.mrf.mxu1 }
  0xfa   :  { %v1111_v48 = vpack.c.bf16 %v677_v44, %v677_v44  ;;  %v495_v49 = vadd.f32 %v1481_v61, %v494_v46  ;;  %v1137_v50 = vpack.c.bf16 %v703_v45, %v703_v45  ;;  %v599_v51 = vadd.f32 %v1481_v61, %v598_v47 }
  0xfb   :  { %v496_v52 = vpop.f32.mrf.mxu0  ;;  %v600_v53 = vpop.f32.mrf.mxu1 }
  0xfc   :  { %924 = vst.msk [vmem:[%s1731_s3 + $0x10] sm:$0xf] %vm919_vm1, %v1111_v48  ;;  %v678_v54 = vmax.f32 %v495_v49, 0.0  ;;  %950 = vst.msk [vmem:[%s1731_s3 + $0x78] sm:$0xf] %vm919_vm1, %v1137_v50  ;;  %v704_v55 = vmax.f32 %v599_v51, 0.0 }
  0xfd   :  { %v499_v56 = vpop.f32.mrf.mxu0  ;;  %v603_v57 = vpop.f32.mrf.mxu1 }
  0xfe   :  { %v1112_v58 = vpack.c.bf16 %v678_v54, %v678_v54  ;;  %v500_v59 = vadd.f32 %v1481_v61, %v499_v56  ;;  %v1138_v60 = vpack.c.bf16 %v704_v55, %v704_v55  ;;  %v604_v62 = vadd.f32 %v1481_v61, %v603_v57 }
  0xff   :  { %v501_v63 = vpop.f32.mrf.mxu0  ;;  %v605_v0 = vpop.f32.mrf.mxu1 }
 0x100   :  { %925 = vst.msk [vmem:[%s1731_s3 + $0x14] sm:$0xf] %vm919_vm1, %v1112_v58  ;;  %v679_v1 = vmax.f32 %v500_v59, 0.0  ;;  %951 = vst.msk [vmem:[%s1731_s3 + $0x7c] sm:$0xf] %vm919_vm1, %v1138_v60  ;;  %v705_v2 = vmax.f32 %v604_v62, 0.0 }
 0x101   :  { %v502_v3 = vpop.f32.mrf.mxu0  ;;  %v606_v4 = vpop.f32.mrf.mxu1 }
 0x102   :  { %v1113_v5 = vpack.c.bf16 %v679_v1, %v679_v1  ;;  %v503_v6 = vadd.f32 %v1481_v61, %v502_v3  ;;  %v1139_v7 = vpack.c.bf16 %v705_v2, %v705_v2  ;;  %v607_v8 = vadd.f32 %v1481_v61, %v606_v4 }
 0x103   :  { %v504_v9 = vpop.f32.mrf.mxu0  ;;  %v608_v10 = vpop.f32.mrf.mxu1 }
 0x104   :  { %926 = vst.msk [vmem:[%s1731_s3 + $0x18] sm:$0xf] %vm919_vm1, %v1113_v5  ;;  %v680_v11 = vmax.f32 %v503_v6, 0.0  ;;  %952 = vst.msk [vmem:[%s1731_s3 + $0x80] sm:$0xf] %vm919_vm1, %v1139_v7  ;;  %v706_v12 = vmax.f32 %v607_v8, 0.0 }
 0x105   :  { %v507_v13 = vpop.f32.mrf.mxu0  ;;  %v611_v14 = vpop.f32.mrf.mxu1 }
 0x106   :  { %v1114_v15 = vpack.c.bf16 %v680_v11, %v680_v11  ;;  %v508_v16 = vadd.f32 %v1481_v61, %v507_v13  ;;  %v1140_v17 = vpack.c.bf16 %v706_v12, %v706_v12  ;;  %v612_v18 = vadd.f32 %v1481_v61, %v611_v14 }
 0x107   :  { %v509_v19 = vpop.f32.mrf.mxu0  ;;  %v613_v20 = vpop.f32.mrf.mxu1 }
 0x108   :  { %927 = vst.msk [vmem:[%s1731_s3 + $0x1c] sm:$0xf] %vm919_vm1, %v1114_v15  ;;  %v681_v21 = vmax.f32 %v508_v16, 0.0  ;;  %953 = vst.msk [vmem:[%s1731_s3 + $0x84] sm:$0xf] %vm919_vm1, %v1140_v17  ;;  %v707_v22 = vmax.f32 %v612_v18, 0.0 }
 0x109   :  { %v510_v23 = vpop.f32.mrf.mxu0  ;;  %v614_v24 = vpop.f32.mrf.mxu1 }
 0x10a   :  { %v1115_v25 = vpack.c.bf16 %v681_v21, %v681_v21  ;;  %v511_v26 = vadd.f32 %v1481_v61, %v510_v23  ;;  %v1141_v27 = vpack.c.bf16 %v707_v22, %v707_v22  ;;  %v615_v28 = vadd.f32 %v1481_v61, %v614_v24 }
 0x10b   :  { %v512_v29 = vpop.f32.mrf.mxu0  ;;  %v616_v30 = vpop.f32.mrf.mxu1 }
 0x10c   :  { %928 = vst.msk [vmem:[%s1731_s3 + $0x20] sm:$0xf] %vm919_vm1, %v1115_v25  ;;  %v682_v31 = vmax.f32 %v511_v26, 0.0  ;;  %954 = vst.msk [vmem:[%s1731_s3 + $0x88] sm:$0xf] %vm919_vm1, %v1141_v27  ;;  %v708_v32 = vmax.f32 %v615_v28, 0.0 }
 0x10d   :  { %v515_v33 = vpop.f32.mrf.mxu0  ;;  %v619_v34 = vpop.f32.mrf.mxu1 }
 0x10e   :  { %v1116_v35 = vpack.c.bf16 %v682_v31, %v682_v31  ;;  %v516_v36 = vadd.f32 %v1481_v61, %v515_v33  ;;  %v1142_v37 = vpack.c.bf16 %v708_v32, %v708_v32  ;;  %v620_v38 = vadd.f32 %v1481_v61, %v619_v34 }
 0x10f   :  { %v517_v39 = vpop.f32.mrf.mxu0  ;;  %v621_v40 = vpop.f32.mrf.mxu1 }
 0x110   :  { %929 = vst.msk [vmem:[%s1731_s3 + $0x24] sm:$0xf] %vm919_vm1, %v1116_v35  ;;  %v683_v41 = vmax.f32 %v516_v36, 0.0  ;;  %955 = vst.msk [vmem:[%s1731_s3 + $0x8c] sm:$0xf] %vm919_vm1, %v1142_v37  ;;  %v709_v42 = vmax.f32 %v620_v38, 0.0 }
 0x111   :  { %v518_v43 = vpop.f32.mrf.mxu0  ;;  %v622_v44 = vpop.f32.mrf.mxu1 }
 0x112   :  { %v1117_v45 = vpack.c.bf16 %v683_v41, %v683_v41  ;;  %v519_v46 = vadd.f32 %v1481_v61, %v518_v43  ;;  %v1143_v47 = vpack.c.bf16 %v709_v42, %v709_v42  ;;  %v623_v48 = vadd.f32 %v1481_v61, %v622_v44 }
 0x113   :  { %v520_v49 = vpop.f32.mrf.mxu0  ;;  %v624_v50 = vpop.f32.mrf.mxu1 }
 0x114   :  { %930 = vst.msk [vmem:[%s1731_s3 + $0x28] sm:$0xf] %vm919_vm1, %v1117_v45  ;;  %v684_v51 = vmax.f32 %v519_v46, 0.0  ;;  %956 = vst.msk [vmem:[%s1731_s3 + $0x90] sm:$0xf] %vm919_vm1, %v1143_v47  ;;  %v710_v52 = vmax.f32 %v623_v48, 0.0 }
 0x115   :  { %v523_v53 = vpop.f32.mrf.mxu0  ;;  %v627_v54 = vpop.f32.mrf.mxu1 }
 0x116   :  { %v1118_v55 = vpack.c.bf16 %v684_v51, %v684_v51  ;;  %v524_v56 = vadd.f32 %v1481_v61, %v523_v53  ;;  %v1144_v57 = vpack.c.bf16 %v710_v52, %v710_v52  ;;  %v628_v58 = vadd.f32 %v1481_v61, %v627_v54 }
 0x117   :  { %v525_v59 = vpop.f32.mrf.mxu0  ;;  %v629_v60 = vpop.f32.mrf.mxu1 }
 0x118   :  { %931 = vst.msk [vmem:[%s1731_s3 + $0x2c] sm:$0xf] %vm919_vm1, %v1118_v55  ;;  %v685_v62 = vmax.f32 %v524_v56, 0.0  ;;  %957 = vst.msk [vmem:[%s1731_s3 + $0x94] sm:$0xf] %vm919_vm1, %v1144_v57  ;;  %v711_v63 = vmax.f32 %v628_v58, 0.0 }
 0x119   :  { %v526_v0 = vpop.f32.mrf.mxu0  ;;  %v630_v1 = vpop.f32.mrf.mxu1 }
 0x11a   :  { %v1119_v2 = vpack.c.bf16 %v685_v62, %v685_v62  ;;  %v527_v3 = vadd.f32 %v1481_v61, %v526_v0  ;;  %v1145_v4 = vpack.c.bf16 %v711_v63, %v711_v63  ;;  %v631_v5 = vadd.f32 %v1481_v61, %v630_v1 }
 0x11b   :  { %v528_v6 = vpop.f32.mrf.mxu0  ;;  %v632_v7 = vpop.f32.mrf.mxu1 }
 0x11c   :  { %932 = vst.msk [vmem:[%s1731_s3 + $0x30] sm:$0xf] %vm919_vm1, %v1119_v2  ;;  %v686_v8 = vmax.f32 %v527_v3, 0.0  ;;  %958 = vst.msk [vmem:[%s1731_s3 + $0x98] sm:$0xf] %vm919_vm1, %v1145_v4  ;;  %v712_v9 = vmax.f32 %v631_v5, 0.0 }
 0x11d   :  { %v531_v10 = vpop.f32.mrf.mxu0  ;;  %v635_v11 = vpop.f32.mrf.mxu1 }
 0x11e   :  { %v1120_v12 = vpack.c.bf16 %v686_v8, %v686_v8  ;;  %v532_v13 = vadd.f32 %v1481_v61, %v531_v10  ;;  %v1146_v14 = vpack.c.bf16 %v712_v9, %v712_v9  ;;  %v636_v15 = vadd.f32 %v1481_v61, %v635_v11 }
 0x11f   :  { %v533_v16 = vpop.f32.mrf.mxu0  ;;  %v637_v17 = vpop.f32.mrf.mxu1 }
 0x120   :  { %933 = vst.msk [vmem:[%s1731_s3 + $0x34] sm:$0xf] %vm919_vm1, %v1120_v12  ;;  %v687_v18 = vmax.f32 %v532_v13, 0.0  ;;  %959 = vst.msk [vmem:[%s1731_s3 + $0x9c] sm:$0xf] %vm919_vm1, %v1146_v14  ;;  %v713_v19 = vmax.f32 %v636_v15, 0.0 }
 0x121   :  { %v534_v20 = vpop.f32.mrf.mxu0  ;;  %v638_v21 = vpop.f32.mrf.mxu1 }
 0x122   :  { %v1121_v22 = vpack.c.bf16 %v687_v18, %v687_v18  ;;  %v535_v23 = vadd.f32 %v1481_v61, %v534_v20  ;;  %v1147_v24 = vpack.c.bf16 %v713_v19, %v713_v19  ;;  %v639_v25 = vadd.f32 %v1481_v61, %v638_v21 }
 0x123   :  { %v536_v26 = vpop.f32.mrf.mxu0  ;;  %v640_v27 = vpop.f32.mrf.mxu1 }
 0x124   :  { %934 = vst.msk [vmem:[%s1731_s3 + $0x38] sm:$0xf] %vm919_vm1, %v1121_v22  ;;  %v688_v28 = vmax.f32 %v535_v23, 0.0  ;;  %960 = vst.msk [vmem:[%s1731_s3 + $0xa0] sm:$0xf] %vm919_vm1, %v1147_v24  ;;  %v714_v29 = vmax.f32 %v639_v25, 0.0 }
 0x125   :  { %v539_v30 = vpop.f32.mrf.mxu0  ;;  %v643_v31 = vpop.f32.mrf.mxu1 }
 0x126   :  { %v1122_v32 = vpack.c.bf16 %v688_v28, %v688_v28  ;;  %v540_v33 = vadd.f32 %v1481_v61, %v539_v30  ;;  %v1148_v34 = vpack.c.bf16 %v714_v29, %v714_v29  ;;  %v644_v35 = vadd.f32 %v1481_v61, %v643_v31 }
 0x127   :  { %v541_v36 = vpop.f32.mrf.mxu0  ;;  %v645_v37 = vpop.f32.mrf.mxu1 }
 0x128   :  { %935 = vst.msk [vmem:[%s1731_s3 + $0x3c] sm:$0xf] %vm919_vm1, %v1122_v32  ;;  %v689_v38 = vmax.f32 %v540_v33, 0.0  ;;  %961 = vst.msk [vmem:[%s1731_s3 + $0xa4] sm:$0xf] %vm919_vm1, %v1148_v34  ;;  %v715_v39 = vmax.f32 %v644_v35, 0.0 }
 0x129   :  { %v542_v40 = vpop.f32.mrf.mxu0  ;;  %v646_v41 = vpop.f32.mrf.mxu1 }
 0x12a   :  { %v1123_v42 = vpack.c.bf16 %v689_v38, %v689_v38  ;;  %v543_v43 = vadd.f32 %v1481_v61, %v542_v40  ;;  %v1149_v44 = vpack.c.bf16 %v715_v39, %v715_v39  ;;  %v647_v45 = vadd.f32 %v1481_v61, %v646_v41 }
 0x12b   :  { %v544_v46 = vpop.f32.mrf.mxu0  ;;  %v648_v47 = vpop.f32.mrf.mxu1 }
 0x12c   :  { %936 = vst.msk [vmem:[%s1731_s3 + $0x40] sm:$0xf] %vm919_vm1, %v1123_v42  ;;  %v690_v48 = vmax.f32 %v543_v43, 0.0  ;;  %962 = vst.msk [vmem:[%s1731_s3 + $0xa8] sm:$0xf] %vm919_vm1, %v1149_v44  ;;  %v716_v49 = vmax.f32 %v647_v45, 0.0 }
 0x12d   :  { %v547_v50 = vpop.f32.mrf.mxu0  ;;  %v651_v51 = vpop.f32.mrf.mxu1 }
 0x12e   :  { %v1124_v52 = vpack.c.bf16 %v690_v48, %v690_v48  ;;  %v548_v53 = vadd.f32 %v1481_v61, %v547_v50  ;;  %v1150_v54 = vpack.c.bf16 %v716_v49, %v716_v49  ;;  %v652_v55 = vadd.f32 %v1481_v61, %v651_v51 }
 0x12f   :  { %v549_v56 = vpop.f32.mrf.mxu0  ;;  %v653_v57 = vpop.f32.mrf.mxu1 }
 0x130   :  { %937 = vst.msk [vmem:[%s1731_s3 + $0x44] sm:$0xf] %vm919_vm1, %v1124_v52  ;;  %v691_v58 = vmax.f32 %v548_v53, 0.0  ;;  %963 = vst.msk [vmem:[%s1731_s3 + $0xac] sm:$0xf] %vm919_vm1, %v1150_v54  ;;  %v717_v59 = vmax.f32 %v652_v55, 0.0 }
 0x131   :  { %v550_v60 = vpop.f32.mrf.mxu0  ;;  %v654_v62 = vpop.f32.mrf.mxu1 }
 0x132   :  { %v1125_v63 = vpack.c.bf16 %v691_v58, %v691_v58  ;;  %v551_v0 = vadd.f32 %v1481_v61, %v550_v60  ;;  %v1151_v1 = vpack.c.bf16 %v717_v59, %v717_v59  ;;  %v655_v2 = vadd.f32 %v1481_v61, %v654_v62 }
 0x133   :  { %v552_v3 = vpop.f32.mrf.mxu0  ;;  %v656_v4 = vpop.f32.mrf.mxu1 }
 0x134   :  { %938 = vst.msk [vmem:[%s1731_s3 + $0x48] sm:$0xf] %vm919_vm1, %v1125_v63  ;;  %v692_v5 = vmax.f32 %v551_v0, 0.0  ;;  %964 = vst.msk [vmem:[%s1731_s3 + $0xb0] sm:$0xf] %vm919_vm1, %v1151_v1  ;;  %v718_v6 = vmax.f32 %v655_v2, 0.0 }
 0x135   :  { %v555_v7 = vpop.f32.mrf.mxu0  ;;  %v659_v8 = vpop.f32.mrf.mxu1 }
 0x136   :  { %v1126_v9 = vpack.c.bf16 %v692_v5, %v692_v5  ;;  %v556_v10 = vadd.f32 %v1481_v61, %v555_v7  ;;  %v1152_v11 = vpack.c.bf16 %v718_v6, %v718_v6  ;;  %v660_v12 = vadd.f32 %v1481_v61, %v659_v8 }
 0x137   :  { %v557_v13 = vpop.f32.mrf.mxu0  ;;  %v661_v14 = vpop.f32.mrf.mxu1 }
 0x138   :  { %939 = vst.msk [vmem:[%s1731_s3 + $0x4c] sm:$0xf] %vm919_vm1, %v1126_v9  ;;  %v693_v15 = vmax.f32 %v556_v10, 0.0  ;;  %965 = vst.msk [vmem:[%s1731_s3 + $0xb4] sm:$0xf] %vm919_vm1, %v1152_v11  ;;  %v719_v16 = vmax.f32 %v660_v12, 0.0 }
 0x139   :  { %v558_v17 = vpop.f32.mrf.mxu0  ;;  %v662_v18 = vpop.f32.mrf.mxu1 }
 0x13a   :  { %v1127_v19 = vpack.c.bf16 %v693_v15, %v693_v15  ;;  %v559_v20 = vadd.f32 %v1481_v61, %v558_v17  ;;  %v1153_v21 = vpack.c.bf16 %v719_v16, %v719_v16  ;;  %v663_v22 = vadd.f32 %v1481_v61, %v662_v18 }
 0x13b   :  { %v560_v23 = vpop.f32.mrf.mxu0  ;;  %v664_v24 = vpop.f32.mrf.mxu1 }
 0x13c   :  { %940 = vst.msk [vmem:[%s1731_s3 + $0x50] sm:$0xf] %vm919_vm1, %v1127_v19  ;;  %v694_v25 = vmax.f32 %v559_v20, 0.0  ;;  %966 = vst.msk [vmem:[%s1731_s3 + $0xb8] sm:$0xf] %vm919_vm1, %v1153_v21  ;;  %v720_v26 = vmax.f32 %v663_v22, 0.0 }
 0x13d   :  { %v563_v27 = vpop.f32.mrf.mxu0  ;;  %v667_v28 = vpop.f32.mrf.mxu1 }
 0x13e   :  { %v1128_v29 = vpack.c.bf16 %v694_v25, %v694_v25  ;;  %v564_v30 = vadd.f32 %v1481_v61, %v563_v27  ;;  %v1154_v31 = vpack.c.bf16 %v720_v26, %v720_v26  ;;  %v668_v32 = vadd.f32 %v1481_v61, %v667_v28 }
 0x13f   :  { %v565_v33 = vpop.f32.mrf.mxu0  ;;  %v669_v34 = vpop.f32.mrf.mxu1 }
 0x140   :  { %941 = vst.msk [vmem:[%s1731_s3 + $0x54] sm:$0xf] %vm919_vm1, %v1128_v29  ;;  %v695_v35 = vmax.f32 %v564_v30, 0.0  ;;  %967 = vst.msk [vmem:[%s1731_s3 + $0xbc] sm:$0xf] %vm919_vm1, %v1154_v31  ;;  %v721_v36 = vmax.f32 %v668_v32, 0.0 }
 0x141   :  { %v566_v37 = vpop.f32.mrf.mxu0  ;;  %v670_v38 = vpop.f32.mrf.mxu1 }
 0x142   :  { %v1129_v39 = vpack.c.bf16 %v695_v35, %v695_v35  ;;  %v567_v40 = vadd.f32 %v1481_v61, %v566_v37  ;;  %v1155_v41 = vpack.c.bf16 %v721_v36, %v721_v36 }
 0x143   :  { %v568_v42 = vpop.f32.mrf.mxu0  ;;  %v671_v43 = vpop.f32.mrf.mxu1 }
 0x144   :  { %942 = vst.msk [vmem:[%s1731_s3 + $0x58] sm:$0xf] %vm919_vm1, %v1129_v39  ;;  %v696_v44 = vmax.f32 %v567_v40, 0.0  ;;  %968 = vst.msk [vmem:[%s1731_s3 + $0xc0] sm:$0xf] %vm919_vm1, %v1155_v41 }
 0x145   :  { %v571_v45 = vpop.f32.mrf.mxu0 }
 0x146   :  { %v1130_v46 = vpack.c.bf16 %v696_v44, %v696_v44  ;;  %v572_v47 = vadd.f32 %v1481_v61, %v571_v45 }
 0x147   :  { %v573_v48 = vpop.f32.mrf.mxu0 }
 0x148   :  { %943 = vst.msk [vmem:[%s1731_s3 + $0x5c] sm:$0xf] %vm919_vm1, %v1130_v46  ;;  %v697_v49 = vmax.f32 %v572_v47, 0.0 }
 0x149   :  { %v574_v50 = vpop.f32.mrf.mxu0 }
 0x14a   :  { %v1131_v51 = vpack.c.bf16 %v697_v49, %v697_v49  ;;  %v575_v52 = vadd.f32 %v1481_v61, %v574_v50 }
 0x14b   :  { %v576_v53 = vpop.f32.mrf.mxu0 }
 0x14c   :  { %944 = vst.msk [vmem:[%s1731_s3 + $0x60] sm:$0xf] %vm919_vm1, %v1131_v51  ;;  %v698_v54 = vmax.f32 %v575_v52, 0.0 }
 0x14e   :  { %v1132_v55 = vpack.c.bf16 %v698_v54, %v698_v54 }
 0x150   :  { %945 = vst.msk [vmem:[%s1731_s3 + $0x64] sm:$0xf] %vm919_vm1, %v1132_v55 }

// kernel: segnet_forward.18
= control target key start
LH: loop header
LB: loop body
LE: loop exit
PB: predicated region body
PF: predicated region fallthrough
CT: control target
= control target key end

     0   :  { %v2394_v0 = vmov 0   ;;  %vm774_vm0 = vcmask 261120   ;;  %vm1769_vm1 = vcmask 257024   ;;  %s3269_s1 = inlined_call_operand.vmem [shape: bf16[288,32], index: 1, kind: input, shape index: {}]   ;;  %s3270_s0 = inlined_call_operand.vmem [shape: bf16[512,288], index: 0, kind: input, shape index: {}]   ;;  %s3271_s2 = inlined_call_operand.vmem [shape: f32[1,32], index: 2, kind: input, shape index: {}]   ;;  %s3272_s3 = inlined_call_operand.vmem [shape: bf16[512,32], index: 3, kind: output, shape index: {}]  }
   0x1   :  { %871 = vmatprep.subr.bf16.mxu0 %v2394_v0  ;;  %2215 = vmatprep.subr.bf16.mxu1 %v2394_v0  ;;  %v2248_v1 = vld [vmem:[%s3269_s1 + $0x38] sm:$0xff]   ;;  %v2249_v2 = vld [vmem:[%s3269_s1 + $0x30] sm:$0xff]   ;;  %v2250_v3 = vld [vmem:[%s3269_s1 + $0x28] sm:$0xff]  }
   0x2   :  { %872 = vmatpush1.bf16.msra.mxu0 %v2248_v1  ;;  %2231 = vmatpush1.bf16.msra.mxu1 %v2248_v1  ;;  %v2251_v4 = vld [vmem:[%s3269_s1 + $0x20] sm:$0xff]   ;;  %v2252_v5 = vld [vmem:[%s3269_s1 + $0x18] sm:$0xff]   ;;  %v2253_v7 = vld [vmem:[%s3269_s1 + $0x10] sm:$0xff]  }
   0x3   :  { %873 = vmatprep.subr.bf16.mxu0 %v2394_v0  ;;  %2216 = vmatprep.subr.bf16.mxu1 %v2394_v0  ;;  %v2266_v6 = vld [vmem:[%s3270_s0 + $0x4] ss:$12 sps:$4 sm:$0xff]   ;;  %v2254_v9 = vld [vmem:[%s3269_s1 + $0x8] sm:$0xff]   ;;  %v2256_v11 = vld [vmem:[%s3269_s1 + $0x78] sm:$0xff]  }
   0x4   :  { %v2269_v8 = vld [vmem:[%s3270_s0 + $0x244] ss:$12 sps:$4 sm:$0xff]   ;;  %903 = vmatprep.mubr.bf16.mxu0 %v2266_v6  ;;  %v2258_v13 = vld [vmem:[%s3269_s1 + $0x68] sm:$0xff]   ;;  %v2260_v15 = vld [vmem:[%s3269_s1 + $0x58] sm:$0xff]  }
   0x5   :  { %1095 = vmatprep.mubr.bf16.mxu1 %v2269_v8  ;;  %v2255_v10 = vld [vmem:[%s3269_s1] sm:$0xff]   ;;  %v2257_v12 = vld [vmem:[%s3269_s1 + $0x70] sm:$0xff]   ;;  %v2262_v17 = vld [vmem:[%s3269_s1 + $0x48] sm:$0xff]  }
   0x6   :  { %874 = vmatpush1.bf16.msra.mxu0 %v2249_v2  ;;  %2232 = vmatpush1.bf16.msra.mxu1 %v2249_v2  ;;  %v2259_v14 = vld [vmem:[%s3269_s1 + $0x60] sm:$0xff]   ;;  %v2261_v16 = vld [vmem:[%s3269_s1 + $0x50] sm:$0xff]   ;;  %v2270_v19 = vld [vmem:[%s3269_s1 + $0x88] sm:$0xff]  }
   0x7   :  { %875 = vmatprep.subr.bf16.mxu0 %v2394_v0  ;;  %2217 = vmatprep.subr.bf16.mxu1 %v2394_v0  ;;  %v2263_v18 = vld [vmem:[%s3269_s1 + $0x40] sm:$0xff]   ;;  %v2271_v22 = vld [vmem:[%s3270_s0 + $0x1c] ss:$12 sps:$4 sm:$0xff]   ;;  %v2283_v31 = vld [vmem:[%s3270_s0 + $0x4c] ss:$12 sps:$4 sm:$0xff]  }
   0x8   :  { %v2264_v20 = vld [vmem:[%s3270_s0] ss:$12 sps:$4 sm:$0xff]   ;;  %v2273_v23 = vld [vmem:[%s3270_s0 + $0x25c] ss:$12 sps:$4 sm:$0xff]   ;;  %v2275_v25 = vld [vmem:[%s3270_s0 + $0x18] ss:$12 sps:$4 sm:$0xff]  }
   0x9   :  { %v2267_v21 = vld [vmem:[%s3270_s0 + $0x240] ss:$12 sps:$4 sm:$0xff]   ;;  %v2276_v26 = vld [vmem:[%s3270_s0 + $0x258] ss:$12 sps:$4 sm:$0xff]   ;;  %v2281_v29 = vld [vmem:[%s3270_s0 + $0x30] ss:$12 sps:$4 sm:$0xff]  }
   0xa   :  { %876 = vmatpush1.bf16.msra.mxu0 %v2250_v3  ;;  %2233 = vmatpush1.bf16.msra.mxu1 %v2250_v3  ;;  %v2295_v24 = vld [vmem:[%s3269_s1 + $0x80] sm:$0xff]   ;;  %v2282_v30 = vld [vmem:[%s3270_s0 + $0x270] ss:$12 sps:$4 sm:$0xff]   ;;  %v2285_v32 = vld [vmem:[%s3270_s0 + $0x28c] ss:$12 sps:$4 sm:$0xff]  }
   0xb   :  { %877 = vmatprep.subr.bf16.mxu0 %v2394_v0  ;;  %2218 = vmatprep.subr.bf16.mxu1 %v2394_v0  ;;  %v2277_v27 = vld [vmem:[%s3270_s0 + $0x34] ss:$12 sps:$4 sm:$0xff]   ;;  %v2289_v35 = vld [vmem:[%s3270_s0 + $0x64] ss:$12 sps:$4 sm:$0xff]   ;;  %v2296_v39 = vld [vmem:[%s3270_s0 + $0x7c] ss:$12 sps:$4 sm:$0xff]  }
   0xc   :  { %v2279_v28 = vld [vmem:[%s3270_s0 + $0x274] ss:$12 sps:$4 sm:$0xff]   ;;  %v2291_v36 = vld [vmem:[%s3270_s0 + $0x2a4] ss:$12 sps:$4 sm:$0xff]   ;;  %v2298_v40 = vld [vmem:[%s3270_s0 + $0x2bc] ss:$12 sps:$4 sm:$0xff]  }
   0xd   :  { %v2287_v33 = vld [vmem:[%s3270_s0 + $0x48] ss:$12 sps:$4 sm:$0xff]   ;;  %v2293_v37 = vld [vmem:[%s3270_s0 + $0x60] ss:$12 sps:$4 sm:$0xff]   ;;  %v2300_v41 = vld [vmem:[%s3270_s0 + $0x78] ss:$12 sps:$4 sm:$0xff]  }
   0xe   :  { %878 = vmatpush1.bf16.msra.mxu0 %v2251_v4  ;;  %2234 = vmatpush1.bf16.msra.mxu1 %v2251_v4  ;;  %v2288_v34 = vld [vmem:[%s3270_s0 + $0x288] ss:$12 sps:$4 sm:$0xff]   ;;  %v2294_v38 = vld [vmem:[%s3270_s0 + $0x2a0] ss:$12 sps:$4 sm:$0xff]   ;;  %v2301_v42 = vld [vmem:[%s3270_s0 + $0x2b8] ss:$12 sps:$4 sm:$0xff]  }
   0xf   :  { %879 = vmatprep.subr.bf16.mxu0 %v2394_v0  ;;  %2219 = vmatprep.subr.bf16.mxu1 %v2394_v0  ;;  %v2302_v43 = vld [vmem:[%s3270_s0 + $0x94] ss:$12 sps:$4 sm:$0xff]   ;;  %v2306_v45 = vld [vmem:[%s3270_s0 + $0x90] ss:$12 sps:$4 sm:$0xff]   ;;  %v2308_v47 = vld [vmem:[%s3270_s0 + $0xac] ss:$12 sps:$4 sm:$0xff]  }
  0x10   :  { %v2304_v44 = vld [vmem:[%s3270_s0 + $0x2d4] ss:$12 sps:$4 sm:$0xff]   ;;  %v2307_v46 = vld [vmem:[%s3270_s0 + $0x2d0] ss:$12 sps:$4 sm:$0xff]   ;;  %v2310_v48 = vld [vmem:[%s3270_s0 + $0x2ec] ss:$12 sps:$4 sm:$0xff]  }
  0x11   :  { %v2312_v49 = vld [vmem:[%s3270_s0 + $0xa8] ss:$12 sps:$4 sm:$0xff]   ;;  %v2314_v51 = vld [vmem:[%s3270_s0 + $0xc4] ss:$12 sps:$4 sm:$0xff]   ;;  %v2317_v53 = vld [vmem:[%s3270_s0 + $0xc0] ss:$12 sps:$4 sm:$0xff]  }
  0x12   :  { %880 = vmatpush1.bf16.msra.mxu0 %v2252_v5  ;;  %2235 = vmatpush1.bf16.msra.mxu1 %v2252_v5  ;;  %v2313_v50 = vld [vmem:[%s3270_s0 + $0x2e8] ss:$12 sps:$4 sm:$0xff]   ;;  %v2318_v54 = vld [vmem:[%s3270_s0 + $0x20] ss:$12 sps:$4 sm:$0xff]   ;;  %v2321_v56 = vld [vmem:[%s3270_s0 + $0x38] ss:$12 sps:$4 sm:$0xff]  }
  0x13   :  { %881 = vmatprep.subr.bf16.mxu0 %v2394_v0  ;;  %2220 = vmatprep.subr.bf16.mxu1 %v2394_v0  ;;  %v2316_v52 = vld [vmem:[%s3270_s0 + $0x8] ss:$12 sps:$4 sm:$0xff]   ;;  %v2322_v57 = vld [vmem:[%s3270_s0 + $0xd8] ss:$12 sps:$4 sm:$0xff]   ;;  %v2323_v58 = vld [vmem:[%s3270_s0 + $0x50] ss:$12 sps:$4 sm:$0xff]  }
  0x14   :  { %v2319_v55 = vld [vmem:[%s3270_s0 + $0xdc] ss:$12 sps:$4 sm:$0xff]   ;;  %v2324_v59 = vld [vmem:[%s3270_s0 + $0xf4] ss:$12 sps:$4 sm:$0xff]   ;;  %v2329_v63 = vld [vmem:[%s3270_s0 + $0x10c] ss:$12 sps:$4 sm:$0xff]  }
  0x15   :  { %v2326_v60 = vld [vmem:[%s3270_s0 + $0x68] ss:$12 sps:$4 sm:$0xff]   ;;  %v2327_v61 = vld [vmem:[%s3270_s0 + $0xf0] ss:$12 sps:$4 sm:$0xff]   ;;  %v2328_v62 = vld [vmem:[%s3270_s0 + $0x80] ss:$12 sps:$4 sm:$0xff]  }
  0x16   :  { %882 = vmatpush1.bf16.msra.mxu0 %v2253_v7  ;;  %2236 = vmatpush1.bf16.msra.mxu1 %v2253_v7  ;;  %v2332_v1 = vld [vmem:[%s3270_s0 + $0x108] ss:$12 sps:$4 sm:$0xff]   ;;  %v2333_v2 = vld [vmem:[%s3270_s0 + $0xb0] ss:$12 sps:$4 sm:$0xff]   ;;  %v2337_v5 = vld [vmem:[%s3270_s0 + $0x120] ss:$12 sps:$4 sm:$0xff]  }
  0x17   :  { %883 = vmatprep.subr.bf16.mxu0 %v2394_v0  ;;  %2221 = vmatprep.subr.bf16.mxu1 %v2394_v0  ;;  %v2334_v3 = vld [vmem:[%s3270_s0 + $0x124] ss:$12 sps:$4 sm:$0xff]   ;;  %v2336_v4 = vld [vmem:[%s3270_s0 + $0xc8] ss:$12 sps:$4 sm:$0xff]   ;;  %v2338_v6 = vld [vmem:[%s3270_s0 + $0xe0] ss:$12 sps:$4 sm:$0xff]  }
  0x18   :  { %v2339_v7 = vld [vmem:[%s3270_s0 + $0x13c] ss:$12 sps:$4 sm:$0xff]   ;;  %v2341_v8 = vld [vmem:[%s3270_s0 + $0xf8] ss:$12 sps:$4 sm:$0xff]  }
  0x1a   :  { %884 = vmatpush1.bf16.msra.mxu0 %v2254_v9  ;;  %2237 = vmatpush1.bf16.msra.mxu1 %v2254_v9  ;;  %v2342_v9 = vld [vmem:[%s3270_s0 + $0x138] ss:$12 sps:$4 sm:$0xff]  }
  0x1b   :  { %885 = vmatprep.subr.bf16.mxu0 %v2394_v0  ;;  %2222 = vmatprep.subr.bf16.mxu1 %v2394_v0 }
  0x1e   :  { %886 = vmatpush1.bf16.msra.mxu0 %v2255_v10  ;;  %2238 = vmatpush1.bf16.msra.mxu1 %v2255_v10  ;;  %v2343_v10 = vld [vmem:[%s3270_s0 + $0x110] ss:$12 sps:$4 sm:$0xff]  }
  0x1f   :  { %887 = vmatprep.subr.bf16.mxu0 %v2394_v0  ;;  %2223 = vmatprep.subr.bf16.mxu1 %v2394_v0 }
  0x22   :  { %888 = vmatpush2.bf16.msra.mxu0 %v2256_v11  ;;  %2239 = vmatpush2.bf16.msra.mxu1 %v2256_v11  ;;  %v2344_v11 = vld [vmem:[%s3270_s0 + $0x154] ss:$12 sps:$4 sm:$0xff]  }
  0x23   :  { %889 = vmatprep.subr.bf16.mxu0 %v2394_v0  ;;  %2224 = vmatprep.subr.bf16.mxu1 %v2394_v0 }
  0x26   :  { %890 = vmatpush2.bf16.msra.mxu0 %v2257_v12  ;;  %2240 = vmatpush2.bf16.msra.mxu1 %v2257_v12  ;;  %v2346_v12 = vld [vmem:[%s3270_s0 + $0x128] ss:$12 sps:$4 sm:$0xff]  }
  0x27   :  { %891 = vmatprep.subr.bf16.mxu0 %v2394_v0  ;;  %2225 = vmatprep.subr.bf16.mxu1 %v2394_v0 }
  0x2a   :  { %892 = vmatpush2.bf16.msra.mxu0 %v2258_v13  ;;  %2241 = vmatpush2.bf16.msra.mxu1 %v2258_v13  ;;  %v2347_v13 = vld [vmem:[%s3270_s0 + $0x150] ss:$12 sps:$4 sm:$0xff]  }
  0x2b   :  { %893 = vmatprep.subr.bf16.mxu0 %v2394_v0  ;;  %2226 = vmatprep.subr.bf16.mxu1 %v2394_v0 }
  0x2e   :  { %894 = vmatpush2.bf16.msra.mxu0 %v2259_v14  ;;  %2242 = vmatpush2.bf16.msra.mxu1 %v2259_v14  ;;  %v2348_v14 = vld [vmem:[%s3270_s0 + $0x140] ss:$12 sps:$4 sm:$0xff]  }
  0x2f   :  { %895 = vmatprep.subr.bf16.mxu0 %v2394_v0  ;;  %2227 = vmatprep.subr.bf16.mxu1 %v2394_v0 }
  0x32   :  { %896 = vmatpush2.bf16.msra.mxu0 %v2260_v15  ;;  %2243 = vmatpush2.bf16.msra.mxu1 %v2260_v15  ;;  %v2349_v15 = vld [vmem:[%s3270_s0 + $0x16c] ss:$12 sps:$4 sm:$0xff]  }
  0x33   :  { %897 = vmatprep.subr.bf16.mxu0 %v2394_v0  ;;  %2228 = vmatprep.subr.bf16.mxu1 %v2394_v0 }
  0x36   :  { %898 = vmatpush2.bf16.msra.mxu0 %v2261_v16  ;;  %2244 = vmatpush2.bf16.msra.mxu1 %v2261_v16  ;;  %v2351_v16 = vld [vmem:[%s3270_s0 + $0x158] ss:$12 sps:$4 sm:$0xff]  }
  0x37   :  { %899 = vmatprep.subr.bf16.mxu0 %v2394_v0  ;;  %2229 = vmatprep.subr.bf16.mxu1 %v2394_v0 }
  0x3a   :  { %900 = vmatpush2.bf16.msra.mxu0 %v2262_v17  ;;  %2245 = vmatpush2.bf16.msra.mxu1 %v2262_v17  ;;  %v2352_v17 = vld [vmem:[%s3270_s0 + $0x168] ss:$12 sps:$4 sm:$0xff]  }
  0x3b   :  { %901 = vmatprep.subr.bf16.mxu0 %v2394_v0  ;;  %2230 = vmatprep.subr.bf16.mxu1 %v2394_v0  ;;  %v2331_v0 = vld [vmem:[%s3270_s0 + $0x98] ss:$12 sps:$4 sm:$0xff]  }
  0x3e   :  { %902 = vmatpush2.bf16.msra.mxu0 %v2263_v18  ;;  %2246 = vmatpush2.bf16.msra.mxu1 %v2263_v18  ;;  %v2353_v18 = vld [vmem:[%s3270_s0 + $0x170] ss:$12 sps:$4 sm:$0xff]  }
  0x3f   :  { %2147 = vmatprep.subr.bf16.mxu1 %v2270_v19 }
  0x41   :  { %904 = vmatmul.mubr.bf16.vlgmr.msra.gmra.mxu0 %v2264_v20  ;;  %1096 = vmatmul.mubr.bf16.vlgmr.msra.gmra.mxu1 %v2267_v21  ;;  %v2356_v20 = vld [vmem:[%s3270_s0 + $0x188] ss:$12 sps:$4 sm:$0xff]   ;;  %v2357_v21 = vld [vmem:[%s3270_s0 + $0x180] ss:$12 sps:$4 sm:$0xff]  }
  0x42   :  { %2148 = vmatpush3.bf16.msra.mxu1 %v2270_v19  ;;  %911 = vmatprep.mubr.bf16.mxu0 %v2271_v22  ;;  %v2354_v19 = vld [vmem:[%s3270_s0 + $0x184] ss:$12 sps:$4 sm:$0xff]   ;;  %v2358_v22 = vld [vmem:[%s3270_s0 + $0x1a0] ss:$12 sps:$4 sm:$0xff]  }
  0x43   :  { %1103 = vmatprep.mubr.bf16.mxu1 %v2273_v23  ;;  %2149 = vmatprep.subr.bf16.mxu1 %v2295_v24  ;;  %v2359_v23 = vld [vmem:[%s3270_s0 + $0x19c] ss:$12 sps:$4 sm:$0xff]  }
  0x46   :  { %2150 = vmatpush3.bf16.msra.mxu1 %v2295_v24  ;;  %v2361_v24 = vld [vmem:[%s3270_s0 + $0x1b8] ss:$12 sps:$4 sm:$0xff]  }
  0x49   :  { %912 = vmatmul.mubr.bf16.gmra.mxu0 %v2275_v25  ;;  %1104 = vmatmul.mubr.bf16.gmra.mxu1 %v2276_v26  ;;  %v2362_v25 = vld [vmem:[%s3270_s0 + $0x198] ss:$12 sps:$4 sm:$0xff]   ;;  %v2363_v26 = vld [vmem:[%s3270_s0 + $0x1d0] ss:$12 sps:$4 sm:$0xff]  }
  0x4a   :  { %919 = vmatprep.mubr.bf16.mxu0 %v2277_v27  ;;  %1111 = vmatprep.mubr.bf16.mxu1 %v2279_v28  ;;  %v2364_v27 = vld [vmem:[%s3270_s0 + $0x1b4] ss:$12 sps:$4 sm:$0xff]  }
  0x4b   :  { %v2366_v28 = vld [vmem:[%s3270_s0 + $0x1e8] ss:$12 sps:$4 sm:$0xff]  }
  0x51   :  { %920 = vmatmul.mubr.bf16.gmra.mxu0 %v2281_v29  ;;  %1112 = vmatmul.mubr.bf16.gmra.mxu1 %v2282_v30  ;;  %v2367_v29 = vld [vmem:[%s3270_s0 + $0x1b0] ss:$12 sps:$4 sm:$0xff]   ;;  %v2368_v30 = vld [vmem:[%s3270_s0 + $0x200] ss:$12 sps:$4 sm:$0xff]  }
  0x52   :  { %927 = vmatprep.mubr.bf16.mxu0 %v2283_v31  ;;  %1119 = vmatprep.mubr.bf16.mxu1 %v2285_v32  ;;  %v2369_v31 = vld [vmem:[%s3270_s0 + $0x1cc] ss:$12 sps:$4 sm:$0xff]  }
  0x53   :  { %v2371_v32 = vld [vmem:[%s3270_s0 + $0x218] ss:$12 sps:$4 sm:$0xff]  }
  0x59   :  { %928 = vmatmul.mubr.bf16.gmra.mxu0 %v2287_v33  ;;  %1120 = vmatmul.mubr.bf16.gmra.mxu1 %v2288_v34  ;;  %v2372_v33 = vld [vmem:[%s3270_s0 + $0x1c8] ss:$12 sps:$4 sm:$0xff]   ;;  %v2373_v34 = vld [vmem:[%s3270_s0 + $0x230] ss:$12 sps:$4 sm:$0xff]  }
  0x5a   :  { %935 = vmatprep.mubr.bf16.mxu0 %v2289_v35  ;;  %1127 = vmatprep.mubr.bf16.mxu1 %v2291_v36  ;;  %v2374_v35 = vld [vmem:[%s3270_s0 + $0x1e4] ss:$12 sps:$4 sm:$0xff]   ;;  %v2376_v36 = vld [vmem:[%s3270_s0 + $0x248] ss:$12 sps:$4 sm:$0xff]  }
  0x61   :  { %936 = vmatmul.mubr.bf16.gmra.mxu0 %v2293_v37  ;;  %1128 = vmatmul.mubr.bf16.gmra.mxu1 %v2294_v38  ;;  %v2377_v37 = vld [vmem:[%s3270_s0 + $0x1e0] ss:$12 sps:$4 sm:$0xff]  }
  0x62   :  { %943 = vmatprep.mubr.bf16.mxu0 %v2296_v39  ;;  %1135 = vmatprep.mubr.bf16.mxu1 %v2298_v40  ;;  %v2378_v38 = vld [vmem:[%s3270_s0 + $0x260] ss:$12 sps:$4 sm:$0xff]   ;;  %v2379_v39 = vld [vmem:[%s3270_s0 + $0x1fc] ss:$12 sps:$4 sm:$0xff]   ;;  %v2381_v40 = vld [vmem:[%s3270_s0 + $0x278] ss:$12 sps:$4 sm:$0xff]  }
  0x69   :  { %944 = vmatmul.mubr.bf16.gmra.mxu0 %v2300_v41  ;;  %1136 = vmatmul.mubr.bf16.gmra.mxu1 %v2301_v42  ;;  %v2382_v41 = vld [vmem:[%s3270_s0 + $0x1f8] ss:$12 sps:$4 sm:$0xff]   ;;  %v2383_v42 = vld [vmem:[%s3270_s0 + $0x290] ss:$12 sps:$4 sm:$0xff]  }
  0x6a   :  { %951 = vmatprep.mubr.bf16.mxu0 %v2302_v43  ;;  %1143 = vmatprep.mubr.bf16.mxu1 %v2304_v44  ;;  %v2384_v43 = vld [vmem:[%s3270_s0 + $0x214] ss:$12 sps:$4 sm:$0xff]  }
  0x6b   :  { %v2386_v44 = vld [vmem:[%s3270_s0 + $0x2a8] ss:$12 sps:$4 sm:$0xff]  }
  0x71   :  { %952 = vmatmul.mubr.bf16.gmra.mxu0 %v2306_v45  ;;  %1144 = vmatmul.mubr.bf16.gmra.mxu1 %v2307_v46  ;;  %v2387_v45 = vld [vmem:[%s3270_s0 + $0x210] ss:$12 sps:$4 sm:$0xff]   ;;  %v2388_v46 = vld [vmem:[%s3270_s0 + $0x2c0] ss:$12 sps:$4 sm:$0xff]  }
  0x72   :  { %959 = vmatprep.mubr.bf16.mxu0 %v2308_v47  ;;  %1151 = vmatprep.mubr.bf16.mxu1 %v2310_v48  ;;  %v2389_v47 = vld [vmem:[%s3270_s0 + $0x22c] ss:$12 sps:$4 sm:$0xff]  }
  0x73   :  { %v2391_v48 = vld [vmem:[%s3270_s0 + $0x2d8] ss:$12 sps:$4 sm:$0xff]  }
  0x79   :  { %960 = vmatmul.mubr.bf16.gmra.mxu0 %v2312_v49  ;;  %1152 = vmatmul.mubr.bf16.gmra.mxu1 %v2313_v50  ;;  %v2392_v49 = vld [vmem:[%s3270_s0 + $0x228] ss:$12 sps:$4 sm:$0xff]   ;;  %v2393_v50 = vld [vmem:[%s3270_s0 + $0x2f0] ss:$12 sps:$4 sm:$0xff]  }
  0x7a   :  { %967 = vmatprep.mubr.bf16.mxu0 %v2314_v51  ;;  %2151 = vmatprep.mubr.msk.bf16.mxu1 %vm774_vm0, %v2316_v52 }
  0x81   :  { %968 = vmatmul.mubr.bf16.gmra.mxu0 %v2317_v53  ;;  %2152 = vmatmul.mubr.msk.bf16.vlgmr.msra.gmra.mxu1 %vm774_vm0, %v2318_v54 }
  0x82   :  { %975 = vmatprep.mubr.bf16.mxu0 %v2319_v55  ;;  %2155 = vmatprep.mubr.msk.bf16.mxu1 %vm774_vm0, %v2321_v56 }
  0x89   :  { %976 = vmatmul.mubr.bf16.gmra.mxu0 %v2322_v57  ;;  %2156 = vmatmul.mubr.msk.bf16.gmra.mxu1 %vm774_vm0, %v2323_v58 }
  0x8a   :  { %983 = vmatprep.mubr.bf16.mxu0 %v2324_v59  ;;  %2159 = vmatprep.mubr.msk.bf16.mxu1 %vm774_vm0, %v2326_v60 }
  0x91   :  { %984 = vmatmul.mubr.bf16.gmra.mxu0 %v2327_v61  ;;  %2160 = vmatmul.mubr.msk.bf16.gmra.mxu1 %vm774_vm0, %v2328_v62 }
  0x92   :  { %991 = vmatprep.mubr.bf16.mxu0 %v2329_v63  ;;  %2163 = vmatprep.mubr.msk.bf16.mxu1 %vm774_vm0, %v2331_v0 }
  0x99   :  { %992 = vmatmul.mubr.bf16.gmra.mxu0 %v2332_v1  ;;  %2164 = vmatmul.mubr.msk.bf16.gmra.mxu1 %vm774_vm0, %v2333_v2 }
  0x9a   :  { %999 = vmatprep.mubr.bf16.mxu0 %v2334_v3  ;;  %2167 = vmatprep.mubr.msk.bf16.mxu1 %vm774_vm0, %v2336_v4 }
  0xa1   :  { %1000 = vmatmul.mubr.bf16.gmra.mxu0 %v2337_v5  ;;  %2168 = vmatmul.mubr.msk.bf16.gmra.mxu1 %vm774_vm0, %v2338_v6 }
  0xa2   :  { %1007 = vmatprep.mubr.bf16.mxu0 %v2339_v7  ;;  %2171 = vmatprep.mubr.msk.bf16.mxu1 %vm774_vm0, %v2341_v8 }
  0xa9   :  { %1008 = vmatmul.mubr.bf16.gmra.mxu0 %v2342_v9  ;;  %2172 = vmatmul.mubr.msk.bf16.gmra.mxu1 %vm774_vm0, %v2343_v10 }
  0xaa   :  { %1015 = vmatprep.mubr.bf16.mxu0 %v2344_v11  ;;  %2175 = vmatprep.mubr.msk.bf16.mxu1 %vm774_vm0, %v2346_v12 }
  0xb1   :  { %1016 = vmatmul.mubr.bf16.gmra.mxu0 %v2347_v13  ;;  %2176 = vmatmul.mubr.msk.bf16.gmra.mxu1 %vm774_vm0, %v2348_v14 }
  0xb2   :  { %1023 = vmatprep.mubr.bf16.mxu0 %v2349_v15  ;;  %2179 = vmatprep.mubr.msk.bf16.mxu1 %vm774_vm0, %v2351_v16 }
  0xb9   :  { %1024 = vmatmul.mubr.bf16.gmra.mxu0 %v2352_v17  ;;  %2180 = vmatmul.mubr.msk.bf16.gmra.mxu1 %vm774_vm0, %v2353_v18 }
  0xba   :  { %1031 = vmatprep.mubr.bf16.mxu0 %v2354_v19  ;;  %2183 = vmatprep.mubr.msk.bf16.mxu1 %vm774_vm0, %v2356_v20 }
  0xc1   :  { %1032 = vmatmul.mubr.bf16.gmra.mxu0 %v2357_v21  ;;  %2184 = vmatmul.mubr.msk.bf16.gmra.mxu1 %vm774_vm0, %v2358_v22 }
  0xc2   :  { %1039 = vmatprep.mubr.bf16.mxu0 %v2359_v23  ;;  %2187 = vmatprep.mubr.msk.bf16.mxu1 %vm774_vm0, %v2361_v24 }
  0xc9   :  { %1040 = vmatmul.mubr.bf16.gmra.mxu0 %v2362_v25  ;;  %2188 = vmatmul.mubr.msk.bf16.gmra.mxu1 %vm774_vm0, %v2363_v26 }
  0xca   :  { %1047 = vmatprep.mubr.bf16.mxu0 %v2364_v27  ;;  %2191 = vmatprep.mubr.msk.bf16.mxu1 %vm774_vm0, %v2366_v28 }
  0xd1   :  { %1048 = vmatmul.mubr.bf16.gmra.mxu0 %v2367_v29  ;;  %2192 = vmatmul.mubr.msk.bf16.gmra.mxu1 %vm774_vm0, %v2368_v30 }
  0xd2   :  { %1055 = vmatprep.mubr.bf16.mxu0 %v2369_v31  ;;  %2195 = vmatprep.mubr.msk.bf16.mxu1 %vm774_vm0, %v2371_v32 }
  0xd9   :  { %1056 = vmatmul.mubr.bf16.gmra.mxu0 %v2372_v33  ;;  %2196 = vmatmul.mubr.msk.bf16.gmra.mxu1 %vm774_vm0, %v2373_v34 }
  0xda   :  { %1063 = vmatprep.mubr.bf16.mxu0 %v2374_v35  ;;  %2199 = vmatprep.mubr.msk.bf16.mxu1 %vm774_vm0, %v2376_v36 }
  0xe1   :  { %1064 = vmatmul.mubr.bf16.gmra.mxu0 %v2377_v37  ;;  %2200 = vmatmul.mubr.msk.bf16.gmra.mxu1 %vm774_vm0, %v2378_v38 }
  0xe2   :  { %1071 = vmatprep.mubr.bf16.mxu0 %v2379_v39  ;;  %2203 = vmatprep.mubr.msk.bf16.mxu1 %vm774_vm0, %v2381_v40 }
  0xe9   :  { %1072 = vmatmul.mubr.bf16.gmra.mxu0 %v2382_v41  ;;  %2204 = vmatmul.mubr.msk.bf16.gmra.mxu1 %vm774_vm0, %v2383_v42 }
  0xea   :  { %1079 = vmatprep.mubr.bf16.mxu0 %v2384_v43  ;;  %2207 = vmatprep.mubr.msk.bf16.mxu1 %vm774_vm0, %v2386_v44 }
  0xf1   :  { %1080 = vmatmul.mubr.bf16.gmra.mxu0 %v2387_v45  ;;  %2208 = vmatmul.mubr.msk.bf16.gmra.mxu1 %vm774_vm0, %v2388_v46 }
  0xf2   :  { %1087 = vmatprep.mubr.bf16.mxu0 %v2389_v47  ;;  %2211 = vmatprep.mubr.msk.bf16.mxu1 %vm774_vm0, %v2391_v48 }
  0xf9   :  { %1088 = vmatmul.mubr.bf16.gmra.mxu0 %v2392_v49  ;;  %2212 = vmatmul.mubr.msk.bf16.gmra.mxu1 %vm774_vm0, %v2393_v50  ;;  %v2882_v49 = vld [vmem:[%s3271_s2] ss:$0 sm:$0xff] }
 0x101   :  { %v2821_v51 = vpop.f32.mrf.mxu0  ;;  %v2823_v52 = vpop.f32.mrf.mxu1 }
 0x103   :  { %v907_v53 = vpop.f32.mrf.mxu0  ;;  %v1099_v54 = vpop.f32.mrf.mxu1 }
 0x105   :  { %v2825_v55 = vpop.f32.mrf.mxu0  ;;  %v2827_v56 = vpop.f32.mrf.mxu1 }
 0x107   :  { %v910_v57 = vpop.f32.mrf.mxu0  ;;  %v1102_v58 = vpop.f32.mrf.mxu1 }
 0x109   :  { %v913_v59 = vpop.f32.mrf.mxu0  ;;  %v2829_v60 = vpop.f32.mrf.mxu1 }
 0x10a   :  { %v914_v54 = vadd.f32 %v2882_v49, %v913_v59  ;;  %v909_v59 = vadd.f32 %v2882_v49, %v2825_v55 }
 0x10b   :  { %v915_v61 = vpop.f32.mrf.mxu0  ;;  %v1107_v62 = vpop.f32.mrf.mxu1 }
 0x10c   :  { %v906_v61 = vadd.f32 %v2882_v49, %v2821_v51 }
 0x10d   :  { %v916_v63 = vpop.f32.mrf.mxu0  ;;  %v2831_v0 = vpop.f32.mrf.mxu1 }
 0x10f   :  { %v918_v1 = vpop.f32.mrf.mxu0  ;;  %v1110_v2 = vpop.f32.mrf.mxu1 }
 0x111   :  { %v2833_v3 = vpop.f32.mrf.mxu0  ;;  %v2835_v4 = vpop.f32.mrf.mxu1 }
 0x112   :  { %v922_v55 = vadd.f32 %v2882_v49, %v2833_v3 }
 0x113   :  { %v923_v5 = vpop.f32.mrf.mxu0  ;;  %v1115_v6 = vpop.f32.mrf.mxu1 }
 0x114   :  { %v917_v5 = vadd.f32 %v2882_v49, %v916_v63 }
 0x115   :  { %v2837_v7 = vpop.f32.mrf.mxu0  ;;  %v2839_v8 = vpop.f32.mrf.mxu1 }
 0x117   :  { %v926_v9 = vpop.f32.mrf.mxu0  ;;  %v1118_v10 = vpop.f32.mrf.mxu1 }
 0x119   :  { %v929_v11 = vpop.f32.mrf.mxu0  ;;  %v2841_v12 = vpop.f32.mrf.mxu1 }
 0x11a   :  { %v930_v51 = vadd.f32 %v2882_v49, %v929_v11 }
 0x11b   :  { %v931_v13 = vpop.f32.mrf.mxu0  ;;  %v1123_v14 = vpop.f32.mrf.mxu1 }
 0x11d   :  { %v2843_v15 = vpop.f32.mrf.mxu0  ;;  %v2845_v16 = vpop.f32.mrf.mxu1 }
 0x11f   :  { %v934_v17 = vpop.f32.mrf.mxu0  ;;  %v1126_v18 = vpop.f32.mrf.mxu1 }
 0x121   :  { %v2847_v19 = vpop.f32.mrf.mxu0  ;;  %v2849_v20 = vpop.f32.mrf.mxu1 }
 0x123   :  { %v939_v21 = vpop.f32.mrf.mxu0  ;;  %v1131_v22 = vpop.f32.mrf.mxu1 }
 0x125   :  { %v2851_v23 = vpop.f32.mrf.mxu0  ;;  %v2853_v24 = vpop.f32.mrf.mxu1 }
 0x127   :  { %v942_v25 = vpop.f32.mrf.mxu0  ;;  %v1134_v26 = vpop.f32.mrf.mxu1 }
 0x129   :  { %v2855_v27 = vpop.f32.mrf.mxu0  ;;  %v2857_v28 = vpop.f32.mrf.mxu1 }
 0x12b   :  { %v947_v29 = vpop.f32.mrf.mxu0  ;;  %v1139_v30 = vpop.f32.mrf.mxu1 }
 0x12d   :  { %v2859_v31 = vpop.f32.mrf.mxu0  ;;  %v2861_v32 = vpop.f32.mrf.mxu1 }
 0x12f   :  { %v950_v33 = vpop.f32.mrf.mxu0  ;;  %v1142_v34 = vpop.f32.mrf.mxu1 }
 0x131   :  { %v2863_v35 = vpop.f32.mrf.mxu0  ;;  %v2865_v36 = vpop.f32.mrf.mxu1 }
 0x133   :  { %v955_v37 = vpop.f32.mrf.mxu0  ;;  %v1147_v38 = vpop.f32.mrf.mxu1 }
 0x135   :  { %v2867_v39 = vpop.f32.mrf.mxu0  ;;  %v2869_v40 = vpop.f32.mrf.mxu1 }
 0x137   :  { %v958_v41 = vpop.f32.mrf.mxu0  ;;  %v1150_v42 = vpop.f32.mrf.mxu1 }
 0x138   :  { %v933_v41 = vadd.f32 %v2882_v49, %v2843_v15 }
 0x139   :  { %v2871_v43 = vpop.f32.mrf.mxu0  ;;  %v2873_v44 = vpop.f32.mrf.mxu1 }
 0x13b   :  { %v963_v45 = vpop.f32.mrf.mxu0  ;;  %v1155_v46 = vpop.f32.mrf.mxu1 }
 0x13d   :  { %v2875_v47 = vpop.f32.mrf.mxu0  ;;  %v2877_v48 = vpop.f32.mrf.mxu1 }
 0x13f   :  { %v966_v50 = vpop.f32.mrf.mxu0  ;;  %v1158_v53 = vpop.f32.mrf.mxu1 }
 0x140   :  { %v925_v53 = vadd.f32 %v2882_v49, %v2837_v7 }
 0x141   :  { %v2885_v57 = vpop.f32.mrf.mxu0  ;;  %v2153_v58 = vpop.f32.mrf.mxu1 }
 0x142   :  { %v1203_v62 = vadd.f32 %v2153_v58, %v914_v54 }
 0x143   :  { %v971_v1 = vpop.f32.mrf.mxu0  ;;  %v1194_v2 = vpop.f32.mrf.mxu1 }
 0x144   :  { %v1451_v6 = vmax.f32 %v1203_v62, 0.0  ;;  %v1195_v9 = vadd.f32 %v1194_v2, %v906_v61  ;;  %v946_v1 = vadd.f32 %v2882_v49, %v2855_v27 }
 0x145   :  { %v2890_v10 = vpop.f32.mrf.mxu0  ;;  %v2154_v13 = vpop.f32.mrf.mxu1 }
 0x146   :  { %v2051_v14 = vpack.c.bf16 %v1451_v6, %v1451_v6  ;;  %v1449_v17 = vmax.f32 %v1195_v9, 0.0  ;;  %v1206_v18 = vadd.f32 %v2154_v13, %v917_v5  ;;  %v938_v13 = vadd.f32 %v2882_v49, %v2847_v19 }
 0x147   :  { %v974_v21 = vpop.f32.mrf.mxu0  ;;  %v1197_v22 = vpop.f32.mrf.mxu1 }
 0x148   :  { %1772 = vst.msk [vmem:[%s3272_s3 + $0x8] sm:$0xf] %vm1769_vm1, %v2051_v14  ;;  %v2049_v63 = vpack.c.bf16 %v1449_v17, %v1449_v17  ;;  %v1452_v25 = vmax.f32 %v1206_v18, 0.0  ;;  %v1198_v26 = vadd.f32 %v1197_v22, %v909_v59  ;;  %v949_v21 = vadd.f32 %v2882_v49, %v2859_v31 }
 0x149   :  { %v2899_v29 = vpop.f32.mrf.mxu0  ;;  %v2157_v30 = vpop.f32.mrf.mxu1 }
 0x14a   :  { %1770 = vst.msk [vmem:[%s3272_s3] sm:$0xf] %vm1769_vm1, %v2049_v63  ;;  %v2052_v11 = vpack.c.bf16 %v1452_v25, %v1452_v25  ;;  %v1450_v33 = vmax.f32 %v1198_v26, 0.0  ;;  %v1219_v34 = vadd.f32 %v2157_v30, %v930_v51  ;;  %v941_v26 = vadd.f32 %v2882_v49, %v2851_v23 }
 0x14b   :  { %v979_v37 = vpop.f32.mrf.mxu0  ;;  %v1210_v38 = vpop.f32.mrf.mxu1 }
 0x14c   :  { %1773 = vst.msk [vmem:[%s3272_s3 + $0xc] sm:$0xf] %vm1769_vm1, %v2052_v11  ;;  %v2050_v42 = vpack.c.bf16 %v1450_v33, %v1450_v33  ;;  %v1455_v3 = vmax.f32 %v1219_v34, 0.0  ;;  %v1211_v45 = vadd.f32 %v1210_v38, %v922_v55  ;;  %v962_v34 = vadd.f32 %v2882_v49, %v2871_v43 }
 0x14d   :  { %v2913_v46 = vpop.f32.mrf.mxu0  ;;  %v2158_v50 = vpop.f32.mrf.mxu1 }
 0x14e   :  { %1771 = vst.msk [vmem:[%s3272_s3 + $0x4] sm:$0xf] %vm1769_vm1, %v2050_v42  ;;  %v2055_v15 = vpack.c.bf16 %v1455_v3, %v1455_v3  ;;  %v1453_v54 = vmax.f32 %v1211_v45, 0.0  ;;  %v1222_v58 = vadd.f32 %v2158_v50, %v933_v41  ;;  %v954_v3 = vadd.f32 %v2882_v49, %v2863_v35 }
 0x14f   :  { %v982_v61 = vpop.f32.mrf.mxu0  ;;  %v1213_v62 = vpop.f32.mrf.mxu1 }
 0x150   :  { %1776 = vst.msk [vmem:[%s3272_s3 + $0x18] sm:$0xf] %vm1769_vm1, %v2055_v15  ;;  %v2053_v2 = vpack.c.bf16 %v1453_v54, %v1453_v54  ;;  %v1456_v7 = vmax.f32 %v1222_v58, 0.0  ;;  %v1214_v5 = vadd.f32 %v1213_v62, %v925_v53  ;;  %v965_v54 = vadd.f32 %v2882_v49, %v2875_v47 }
 0x151   :  { %v2927_v6 = vpop.f32.mrf.mxu0  ;;  %v2161_v9 = vpop.f32.mrf.mxu1 }
 0x152   :  { %1774 = vst.msk [vmem:[%s3272_s3 + $0x10] sm:$0xf] %vm1769_vm1, %v2053_v2  ;;  %v2056_v27 = vpack.c.bf16 %v1456_v7, %v1456_v7  ;;  %v1454_v59 = vmax.f32 %v1214_v5, 0.0  ;;  %v1235_v14 = vadd.f32 %v2161_v9, %v946_v1  ;;  %v957_v2 = vadd.f32 %v2882_v49, %v2867_v39 }
 0x153   :  { %v987_v17 = vpop.f32.mrf.mxu0  ;;  %v1226_v18 = vpop.f32.mrf.mxu1 }
 0x154   :  { %1777 = vst.msk [vmem:[%s3272_s3 + $0x1c] sm:$0xf] %vm1769_vm1, %v2056_v27  ;;  %v2054_v22 = vpack.c.bf16 %v1454_v59, %v1454_v59  ;;  %v1459_v19 = vmax.f32 %v1235_v14, 0.0  ;;  %v1227_v51 = vadd.f32 %v1226_v18, %v938_v13  ;;  %v978_v27 = vadd.f32 %v2882_v49, %v2899_v29 }
 0x155   :  { %v2941_v63 = vpop.f32.mrf.mxu0  ;;  %v2162_v25 = vpop.f32.mrf.mxu1 }
 0x156   :  { %1775 = vst.msk [vmem:[%s3272_s3 + $0x14] sm:$0xf] %vm1769_vm1, %v2054_v22  ;;  %v2059_v31 = vpack.c.bf16 %v1459_v19, %v1459_v19  ;;  %v1457_v30 = vmax.f32 %v1227_v51, 0.0  ;;  %v1238_v55 = vadd.f32 %v2162_v25, %v949_v21  ;;  %v970_v21 = vadd.f32 %v2882_v49, %v2885_v57 }
 0x157   :  { %v990_v11 = vpop.f32.mrf.mxu0  ;;  %v1229_v33 = vpop.f32.mrf.mxu1 }
 0x158   :  { %1780 = vst.msk [vmem:[%s3272_s3 + $0x28] sm:$0xf] %vm1769_vm1, %v2059_v31  ;;  %v2057_v37 = vpack.c.bf16 %v1457_v30, %v1457_v30  ;;  %v1460_v23 = vmax.f32 %v1238_v55, 0.0  ;;  %v1230_v38 = vadd.f32 %v1229_v33, %v941_v26  ;;  %v981_v26 = vadd.f32 %v2882_v49, %v2913_v46 }
 0x159   :  { %v993_v41 = vpop.f32.mrf.mxu0  ;;  %v2165_v42 = vpop.f32.mrf.mxu1  ;;  %v973_v33 = vadd.f32 %v2882_v49, %v2890_v10 }
 0x15a   :  { %1778 = vst.msk [vmem:[%s3272_s3 + $0x20] sm:$0xf] %vm1769_vm1, %v2057_v37  ;;  %v2060_v45 = vpack.c.bf16 %v1460_v23, %v1460_v23  ;;  %v1458_v43 = vmax.f32 %v1230_v38, 0.0  ;;  %v1251_v50 = vadd.f32 %v2165_v42, %v962_v34  ;;  %v994_v42 = vadd.f32 %v2882_v49, %v993_v41 }
 0x15b   :  { %v995_v53 = vpop.f32.mrf.mxu0  ;;  %v1242_v15 = vpop.f32.mrf.mxu1 }
 0x15c   :  { %1781 = vst.msk [vmem:[%s3272_s3 + $0x2c] sm:$0xf] %vm1769_vm1, %v2060_v45  ;;  %v2058_v58 = vpack.c.bf16 %v1458_v43, %v1458_v43  ;;  %v1463_v35 = vmax.f32 %v1251_v50, 0.0  ;;  %v1243_v61 = vadd.f32 %v1242_v15, %v954_v3  ;;  %v986_v53 = vadd.f32 %v2882_v49, %v2927_v6 }
 0x15d   :  { %v996_v62 = vpop.f32.mrf.mxu0  ;;  %v2166_v1 = vpop.f32.mrf.mxu1 }
 0x15e   :  { %1779 = vst.msk [vmem:[%s3272_s3 + $0x24] sm:$0xf] %vm1769_vm1, %v2058_v58  ;;  %v2063_v7 = vpack.c.bf16 %v1463_v35, %v1463_v35  ;;  %v1461_v47 = vmax.f32 %v1243_v61, 0.0  ;;  %v1254_v5 = vadd.f32 %v2166_v1, %v965_v54  ;;  %v997_v61 = vadd.f32 %v2882_v49, %v996_v62 }
 0x15f   :  { %v998_v9 = vpop.f32.mrf.mxu0  ;;  %v1245_v13 = vpop.f32.mrf.mxu1 }
 0x160   :  { %1784 = vst.msk [vmem:[%s3272_s3 + $0x38] sm:$0xf] %vm1769_vm1, %v2063_v7  ;;  %v2061_v59 = vpack.c.bf16 %v1461_v47, %v1461_v47  ;;  %v1464_v39 = vmax.f32 %v1254_v5, 0.0  ;;  %v1246_v14 = vadd.f32 %v1245_v13, %v957_v2  ;;  %v989_v5 = vadd.f32 %v2882_v49, %v2941_v63 }
 0x161   :  { %v1001_v17 = vpop.f32.mrf.mxu0  ;;  %v2169_v18 = vpop.f32.mrf.mxu1 }
 0x162   :  { %1782 = vst.msk [vmem:[%s3272_s3 + $0x30] sm:$0xf] %vm1769_vm1, %v2061_v59  ;;  %v2064_v22 = vpack.c.bf16 %v1464_v39, %v1464_v39  ;;  %v1462_v29 = vmax.f32 %v1246_v14, 0.0  ;;  %v1267_v19 = vadd.f32 %v2169_v18, %v978_v27 }
 0x163   :  { %v1003_v51 = vpop.f32.mrf.mxu0  ;;  %v1258_v25 = vpop.f32.mrf.mxu1 }
 0x164   :  { %1785 = vst.msk [vmem:[%s3272_s3 + $0x3c] sm:$0xf] %vm1769_vm1, %v2064_v22  ;;  %v2062_v31 = vpack.c.bf16 %v1462_v29, %v1462_v29  ;;  %v1467_v57 = vmax.f32 %v1267_v19, 0.0  ;;  %v1259_v30 = vadd.f32 %v1258_v25, %v970_v21  ;;  %v1002_v29 = vadd.f32 %v2882_v49, %v1001_v17 }
 0x165   :  { %v1004_v55 = vpop.f32.mrf.mxu0  ;;  %v2170_v11 = vpop.f32.mrf.mxu1 }
 0x166   :  { %1783 = vst.msk [vmem:[%s3272_s3 + $0x34] sm:$0xf] %vm1769_vm1, %v2062_v31  ;;  %v2067_v34 = vpack.c.bf16 %v1467_v57, %v1467_v57  ;;  %v1465_v46 = vmax.f32 %v1259_v30, 0.0  ;;  %v1270_v37 = vadd.f32 %v2170_v11, %v981_v26 }
 0x167   :  { %v1006_v23 = vpop.f32.mrf.mxu0  ;;  %v1261_v38 = vpop.f32.mrf.mxu1 }
 0x168   :  { %1788 = vst.msk [vmem:[%s3272_s3 + $0x48] sm:$0xf] %vm1769_vm1, %v2067_v34  ;;  %v2065_v3 = vpack.c.bf16 %v1465_v46, %v1465_v46  ;;  %v1468_v45 = vmax.f32 %v1270_v37, 0.0  ;;  %v1262_v10 = vadd.f32 %v1261_v38, %v973_v33  ;;  %v1005_v46 = vadd.f32 %v2882_v49, %v1004_v55 }
 0x169   :  { %v1009_v43 = vpop.f32.mrf.mxu0  ;;  %v2173_v50 = vpop.f32.mrf.mxu1 }
 0x16a   :  { %1786 = vst.msk [vmem:[%s3272_s3 + $0x40] sm:$0xf] %vm1769_vm1, %v2065_v3  ;;  %v2068_v15 = vpack.c.bf16 %v1468_v45, %v1468_v45  ;;  %v1466_v41 = vmax.f32 %v1262_v10, 0.0  ;;  %v1283_v54 = vadd.f32 %v2173_v50, %v994_v42  ;;  %v1010_v39 = vadd.f32 %v2882_v49, %v1009_v43 }
 0x16b   :  { %v1011_v58 = vpop.f32.mrf.mxu0  ;;  %v1274_v35 = vpop.f32.mrf.mxu1 }
 0x16c   :  { %1789 = vst.msk [vmem:[%s3272_s3 + $0x4c] sm:$0xf] %vm1769_vm1, %v2068_v15  ;;  %v2066_v1 = vpack.c.bf16 %v1466_v41, %v1466_v41  ;;  %v1471_v2 = vmax.f32 %v1283_v54, 0.0  ;;  %v1275_v6 = vadd.f32 %v1274_v35, %v986_v53 }
 0x16d   :  { %v1012_v7 = vpop.f32.mrf.mxu0  ;;  %v2174_v47 = vpop.f32.mrf.mxu1 }
 0x16e   :  { %1787 = vst.msk [vmem:[%s3272_s3 + $0x44] sm:$0xf] %vm1769_vm1, %v2066_v1  ;;  %v2071_v9 = vpack.c.bf16 %v1471_v2, %v1471_v2  ;;  %v1469_v62 = vmax.f32 %v1275_v6, 0.0  ;;  %v1286_v13 = vadd.f32 %v2174_v47, %v997_v61  ;;  %v1013_v57 = vadd.f32 %v2882_v49, %v1012_v7 }
 0x16f   :  { %v1014_v27 = vpop.f32.mrf.mxu0  ;;  %v1277_v59 = vpop.f32.mrf.mxu1 }
 0x170   :  { %1792 = vst.msk [vmem:[%s3272_s3 + $0x58] sm:$0xf] %vm1769_vm1, %v2071_v9  ;;  %v2069_v14 = vpack.c.bf16 %v1469_v62, %v1469_v62  ;;  %v1472_v18 = vmax.f32 %v1286_v13, 0.0  ;;  %v1278_v63 = vadd.f32 %v1277_v59, %v989_v5 }
 0x171   :  { %v1017_v21 = vpop.f32.mrf.mxu0  ;;  %v2177_v22 = vpop.f32.mrf.mxu1 }
 0x172   :  { %1790 = vst.msk [vmem:[%s3272_s3 + $0x50] sm:$0xf] %vm1769_vm1, %v2069_v14  ;;  %v2072_v19 = vpack.c.bf16 %v1472_v18, %v1472_v18  ;;  %v1470_v51 = vmax.f32 %v1278_v63, 0.0  ;;  %v1299_v25 = vadd.f32 %v2177_v22, %v1010_v39  ;;  %v1018_v53 = vadd.f32 %v2882_v49, %v1017_v21 }
 0x173   :  { %v1019_v26 = vpop.f32.mrf.mxu0  ;;  %v1290_v31 = vpop.f32.mrf.mxu1 }
 0x174   :  { %1793 = vst.msk [vmem:[%s3272_s3 + $0x5c] sm:$0xf] %vm1769_vm1, %v2072_v19  ;;  %v2070_v30 = vpack.c.bf16 %v1470_v51, %v1470_v51  ;;  %v1475_v11 = vmax.f32 %v1299_v25, 0.0  ;;  %v1291_v17 = vadd.f32 %v1290_v31, %v1002_v29 }
 0x175   :  { %v1020_v33 = vpop.f32.mrf.mxu0  ;;  %v2178_v34 = vpop.f32.mrf.mxu1 }
 0x176   :  { %1791 = vst.msk [vmem:[%s3272_s3 + $0x54] sm:$0xf] %vm1769_vm1, %v2070_v30  ;;  %v2075_v37 = vpack.c.bf16 %v1475_v11, %v1475_v11  ;;  %v1473_v23 = vmax.f32 %v1291_v17, 0.0  ;;  %v1302_v38 = vadd.f32 %v2178_v34, %v1013_v57  ;;  %v1021_v47 = vadd.f32 %v2882_v49, %v1020_v33 }
 0x177   :  { %v1022_v42 = vpop.f32.mrf.mxu0  ;;  %v1293_v3 = vpop.f32.mrf.mxu1 }
 0x178   :  { %1796 = vst.msk [vmem:[%s3272_s3 + $0x68] sm:$0xf] %vm1769_vm1, %v2075_v37  ;;  %v2073_v45 = vpack.c.bf16 %v1473_v23, %v1473_v23  ;;  %v1476_v10 = vmax.f32 %v1302_v38, 0.0  ;;  %v1294_v43 = vadd.f32 %v1293_v3, %v1005_v46 }
 0x179   :  { %v1025_v50 = vpop.f32.mrf.mxu0  ;;  %v2181_v55 = vpop.f32.mrf.mxu1 }
 0x17a   :  { %1794 = vst.msk [vmem:[%s3272_s3 + $0x60] sm:$0xf] %vm1769_vm1, %v2073_v45  ;;  %v2076_v15 = vpack.c.bf16 %v1476_v10, %v1476_v10  ;;  %v1474_v41 = vmax.f32 %v1294_v43, 0.0  ;;  %v1026_v54 = vadd.f32 %v2882_v49, %v1025_v50 }
 0x17b   :  { %v1027_v58 = vpop.f32.mrf.mxu0  ;;  %v1306_v35 = vpop.f32.mrf.mxu1 }
 0x17c   :  { %1797 = vst.msk [vmem:[%s3272_s3 + $0x6c] sm:$0xf] %vm1769_vm1, %v2076_v15  ;;  %v2074_v61 = vpack.c.bf16 %v1474_v41, %v1474_v41  ;;  %v1315_v1 = vadd.f32 %v2181_v55, %v1026_v54  ;;  %v1307_v2 = vadd.f32 %v1306_v35, %v1018_v53 }
 0x17d   :  { %v1028_v6 = vpop.f32.mrf.mxu0  ;;  %v2182_v7 = vpop.f32.mrf.mxu1 }
 0x17e   :  { %1795 = vst.msk [vmem:[%s3272_s3 + $0x64] sm:$0xf] %vm1769_vm1, %v2074_v61  ;;  %v1479_v5 = vmax.f32 %v1315_v1, 0.0  ;;  %v1477_v9 = vmax.f32 %v1307_v2, 0.0  ;;  %v1029_v62 = vadd.f32 %v2882_v49, %v1028_v6 }
 0x17f   :  { %v1030_v13 = vpop.f32.mrf.mxu0  ;;  %v1309_v27 = vpop.f32.mrf.mxu1 }
 0x180   :  { %v2079_v59 = vpack.c.bf16 %v1479_v5, %v1479_v5  ;;  %v2077_v39 = vpack.c.bf16 %v1477_v9, %v1477_v9  ;;  %v1318_v14 = vadd.f32 %v2182_v7, %v1029_v62  ;;  %v1310_v18 = vadd.f32 %v1309_v27, %v1021_v47 }
 0x181   :  { %v1033_v63 = vpop.f32.mrf.mxu0  ;;  %v2185_v21 = vpop.f32.mrf.mxu1 }
 0x182   :  { %1800 = vst.msk [vmem:[%s3272_s3 + $0x78] sm:$0xf] %vm1769_vm1, %v2079_v59  ;;  %1798 = vst.msk [vmem:[%s3272_s3 + $0x70] sm:$0xf] %vm1769_vm1, %v2077_v39  ;;  %v1480_v22 = vmax.f32 %v1318_v14, 0.0  ;;  %v1478_v29 = vmax.f32 %v1310_v18, 0.0  ;;  %v1034_v19 = vadd.f32 %v2882_v49, %v1033_v63 }
 0x183   :  { %v1035_v51 = vpop.f32.mrf.mxu0  ;;  %v1322_v25 = vpop.f32.mrf.mxu1 }
 0x184   :  { %v2080_v26 = vpack.c.bf16 %v1480_v22, %v1480_v22  ;;  %v2078_v31 = vpack.c.bf16 %v1478_v29, %v1478_v29  ;;  %v1323_v57 = vadd.f32 %v1322_v25, %v1034_v19 }
 0x185   :  { %v1036_v30 = vpop.f32.mrf.mxu0  ;;  %v2186_v11 = vpop.f32.mrf.mxu1 }
 0x186   :  { %1801 = vst.msk [vmem:[%s3272_s3 + $0x7c] sm:$0xf] %vm1769_vm1, %v2080_v26  ;;  %1799 = vst.msk [vmem:[%s3272_s3 + $0x74] sm:$0xf] %vm1769_vm1, %v2078_v31  ;;  %v1481_v17 = vmax.f32 %v1323_v57, 0.0  ;;  %v1037_v33 = vadd.f32 %v2882_v49, %v1036_v30 }
 0x187   :  { %v1038_v34 = vpop.f32.mrf.mxu0  ;;  %v1325_v46 = vpop.f32.mrf.mxu1 }
 0x188   :  { %v2081_v37 = vpack.c.bf16 %v1481_v17, %v1481_v17  ;;  %v1326_v23 = vadd.f32 %v1325_v46, %v1037_v33 }
 0x189   :  { %v1041_v38 = vpop.f32.mrf.mxu0  ;;  %v2189_v42 = vpop.f32.mrf.mxu1 }
 0x18a   :  { %1802 = vst.msk [vmem:[%s3272_s3 + $0x80] sm:$0xf] %vm1769_vm1, %v2081_v37  ;;  %v1482_v3 = vmax.f32 %v1326_v23, 0.0  ;;  %v1042_v45 = vadd.f32 %v2882_v49, %v1041_v38  ;;  %v1106_v23 = vadd.f32 %v2882_v49, %v2829_v60 }
 0x18b   :  { %v1043_v10 = vpop.f32.mrf.mxu0  ;;  %v1338_v43 = vpop.f32.mrf.mxu1 }
 0x18c   :  { %v2082_v50 = vpack.c.bf16 %v1482_v3, %v1482_v3  ;;  %v1331_v55 = vadd.f32 %v2185_v21, %v1042_v45  ;;  %v1098_v10 = vadd.f32 %v2882_v49, %v2823_v52  ;;  %v1109_v52 = vadd.f32 %v2882_v49, %v2831_v0 }
 0x18d   :  { %v1044_v53 = vpop.f32.mrf.mxu0  ;;  %v2190_v15 = vpop.f32.mrf.mxu1 }
 0x18e   :  { %1803 = vst.msk [vmem:[%s3272_s3 + $0x84] sm:$0xf] %vm1769_vm1, %v2082_v50  ;;  %v1483_v41 = vmax.f32 %v1331_v55, 0.0  ;;  %v1045_v54 = vadd.f32 %v2882_v49, %v1044_v53 }
 0x18f   :  { %v1046_v58 = vpop.f32.mrf.mxu0  ;;  %v1341_v35 = vpop.f32.mrf.mxu1 }
 0x190   :  { %v2083_v61 = vpack.c.bf16 %v1483_v41, %v1483_v41  ;;  %v1334_v1 = vadd.f32 %v2186_v11, %v1045_v54 }
 0x191   :  { %v1049_v2 = vpop.f32.mrf.mxu0  ;;  %v3087_v6 = vpop.f32.mrf.mxu1 }
 0x192   :  { %1804 = vst.msk [vmem:[%s3272_s3 + $0x88] sm:$0xf] %vm1769_vm1, %v2083_v61  ;;  %v1484_v7 = vmax.f32 %v1334_v1, 0.0  ;;  %v1050_v47 = vadd.f32 %v2882_v49, %v1049_v2 }
 0x193   :  { %v1051_v5 = vpop.f32.mrf.mxu0  ;;  %v1354_v9 = vpop.f32.mrf.mxu1 }
 0x194   :  { %v2084_v62 = vpack.c.bf16 %v1484_v7, %v1484_v7  ;;  %v1339_v13 = vadd.f32 %v1338_v43, %v1050_v47 }
 0x195   :  { %v1052_v27 = vpop.f32.mrf.mxu0  ;;  %v3094_v59 = vpop.f32.mrf.mxu1 }
 0x196   :  { %1805 = vst.msk [vmem:[%s3272_s3 + $0x8c] sm:$0xf] %vm1769_vm1, %v2084_v62  ;;  %v1485_v39 = vmax.f32 %v1339_v13, 0.0  ;;  %v1053_v14 = vadd.f32 %v2882_v49, %v1052_v27 }
 0x197   :  { %v1054_v18 = vpop.f32.mrf.mxu0  ;;  %v1357_v63 = vpop.f32.mrf.mxu1 }
 0x198   :  { %v2085_v21 = vpack.c.bf16 %v1485_v39, %v1485_v39  ;;  %v1342_v22 = vadd.f32 %v1341_v35, %v1053_v14  ;;  %v1101_v35 = vadd.f32 %v2882_v49, %v2827_v56 }
 0x199   :  { %v1057_v29 = vpop.f32.mrf.mxu0  ;;  %v3101_v19 = vpop.f32.mrf.mxu1 }
 0x19a   :  { %1806 = vst.msk [vmem:[%s3272_s3 + $0x90] sm:$0xf] %vm1769_vm1, %v2085_v21  ;;  %v1486_v51 = vmax.f32 %v1342_v22, 0.0  ;;  %v1058_v25 = vadd.f32 %v2882_v49, %v1057_v29 }
 0x19b   :  { %v1059_v26 = vpop.f32.mrf.mxu0  ;;  %v3108_v31 = vpop.f32.mrf.mxu1 }
 0x19c   :  { %v2086_v57 = vpack.c.bf16 %v1486_v51, %v1486_v51  ;;  %v1347_v30 = vadd.f32 %v2189_v42, %v1058_v25  ;;  %v1125_v26 = vadd.f32 %v2882_v49, %v2845_v16 }
 0x19d   :  { %v1060_v11 = vpop.f32.mrf.mxu0  ;;  %v3110_v17 = vpop.f32.mrf.mxu1 }
 0x19e   :  { %1807 = vst.msk [vmem:[%s3272_s3 + $0x94] sm:$0xf] %vm1769_vm1, %v2086_v57  ;;  %v1487_v33 = vmax.f32 %v1347_v30, 0.0  ;;  %v1061_v34 = vadd.f32 %v2882_v49, %v1060_v11 }
 0x19f   :  { %v1062_v46 = vpop.f32.mrf.mxu0  ;;  %v3117_v37 = vpop.f32.mrf.mxu1 }
 0x1a0   :  { %v2087_v38 = vpack.c.bf16 %v1487_v33, %v1487_v33  ;;  %v1350_v3 = vadd.f32 %v2190_v15, %v1061_v34 }
 0x1a1   :  { %v1065_v42 = vpop.f32.mrf.mxu0  ;;  %v2201_v45 = vpop.f32.mrf.mxu1 }
 0x1a2   :  { %1808 = vst.msk [vmem:[%s3272_s3 + $0x98] sm:$0xf] %vm1769_vm1, %v2087_v38  ;;  %v1488_v43 = vmax.f32 %v1350_v3, 0.0  ;;  %v1066_v50 = vadd.f32 %v2882_v49, %v1065_v42  ;;  %v1395_v55 = vadd.f32 %v2201_v45, %v1106_v23  ;;  %v1117_v38 = vadd.f32 %v2882_v49, %v2839_v8 }
 0x1a3   :  { %v1067_v53 = vpop.f32.mrf.mxu0  ;;  %v1386_v41 = vpop.f32.mrf.mxu1 }
 0x1a4   :  { %v2088_v54 = vpack.c.bf16 %v1488_v43, %v1488_v43  ;;  %v1355_v60 = vadd.f32 %v1354_v9, %v1066_v50  ;;  %v1499_v58 = vmax.f32 %v1395_v55, 0.0  ;;  %v1387_v15 = vadd.f32 %v1386_v41, %v1098_v10 }
 0x1a5   :  { %v1068_v61 = vpop.f32.mrf.mxu0  ;;  %v2202_v1 = vpop.f32.mrf.mxu1  ;;  %v1122_v9 = vadd.f32 %v2882_v49, %v2841_v12 }
 0x1a6   :  { %1809 = vst.msk [vmem:[%s3272_s3 + $0x9c] sm:$0xf] %vm1769_vm1, %v2088_v54  ;;  %v1489_v2 = vmax.f32 %v1355_v60, 0.0  ;;  %v2099_v7 = vpack.c.bf16 %v1499_v58, %v1499_v58  ;;  %v1497_v47 = vmax.f32 %v1387_v15, 0.0  ;;  %v1069_v5 = vadd.f32 %v2882_v49, %v1068_v61 }
 0x1a7   :  { %v1398_v62 = vadd.f32 %v2202_v1, %v1109_v52  ;;  %v1070_v56 = vpop.f32.mrf.mxu0  ;;  %v1389_v13 = vpop.f32.mrf.mxu1  ;;  %v1130_v60 = vadd.f32 %v2882_v49, %v2849_v20  ;;  %v1138_v58 = vadd.f32 %v2882_v49, %v2857_v28 }
 0x1a8   :  { %v2089_v27 = vpack.c.bf16 %v1489_v2, %v1489_v2  ;;  %1820 = vst.msk [vmem:[%s3272_s3 + $0xc8] sm:$0xf] %vm1769_vm1, %v2099_v7  ;;  %v2097_v0 = vpack.c.bf16 %v1497_v47, %v1497_v47  ;;  %v1358_v39 = vadd.f32 %v1357_v63, %v1069_v5  ;;  %v1390_v14 = vadd.f32 %v1389_v13, %v1101_v35 }
 0x1a9   :  { %v1500_v18 = vmax.f32 %v1398_v62, 0.0  ;;  %v1073_v21 = vpop.f32.mrf.mxu0  ;;  %v2205_v22 = vpop.f32.mrf.mxu1  ;;  %v1114_v63 = vadd.f32 %v2882_v49, %v2835_v4  ;;  %v1141_v7 = vadd.f32 %v2882_v49, %v2861_v32 }
 0x1aa   :  { %1810 = vst.msk [vmem:[%s3272_s3 + $0xa0] sm:$0xf] %vm1769_vm1, %v2089_v27  ;;  %1818 = vst.msk [vmem:[%s3272_s3 + $0xc0] sm:$0xf] %vm1769_vm1, %v2097_v0  ;;  %v1490_v12 = vmax.f32 %v1358_v39, 0.0  ;;  %v1498_v29 = vmax.f32 %v1390_v14, 0.0  ;;  %v1074_v51 = vadd.f32 %v2882_v49, %v1073_v21  ;;  %v1411_v25 = vadd.f32 %v2205_v22, %v1122_v9 }
 0x1ab   :  { %v2100_v57 = vpack.c.bf16 %v1500_v18, %v1500_v18  ;;  %v1075_v30 = vpop.f32.mrf.mxu0  ;;  %v1402_v11 = vpop.f32.mrf.mxu1  ;;  %v1154_v21 = vadd.f32 %v2882_v49, %v2873_v44 }
 0x1ac   :  { %v2090_v33 = vpack.c.bf16 %v1490_v12, %v1490_v12  ;;  %v2098_v34 = vpack.c.bf16 %v1498_v29, %v1498_v29  ;;  %v1363_v46 = vadd.f32 %v3087_v6, %v1074_v51  ;;  %v1503_v23 = vmax.f32 %v1411_v25, 0.0 }
 0x1ad   :  { %1821 = vst.msk [vmem:[%s3272_s3 + $0xcc] sm:$0xf] %vm1769_vm1, %v2100_v57  ;;  %v1403_v4 = vadd.f32 %v1402_v11, %v1114_v63  ;;  %v1076_v3 = vpop.f32.mrf.mxu0  ;;  %v2206_v42 = vpop.f32.mrf.mxu1  ;;  %v1146_v57 = vadd.f32 %v2882_v49, %v2865_v36 }
 0x1ae   :  { %1811 = vst.msk [vmem:[%s3272_s3 + $0xa4] sm:$0xf] %vm1769_vm1, %v2090_v33  ;;  %1819 = vst.msk [vmem:[%s3272_s3 + $0xc4] sm:$0xf] %vm1769_vm1, %v2098_v34  ;;  %v1491_v16 = vmax.f32 %v1363_v46, 0.0  ;;  %v2103_v8 = vpack.c.bf16 %v1503_v23, %v1503_v23  ;;  %v1077_v6 = vadd.f32 %v2882_v49, %v1076_v3  ;;  %v1414_v45 = vadd.f32 %v2206_v42, %v1125_v26 }
 0x1af   :  { %v1501_v10 = vmax.f32 %v1403_v4, 0.0  ;;  %v1078_v43 = vpop.f32.mrf.mxu0  ;;  %v1405_v50 = vpop.f32.mrf.mxu1 }
 0x1b0   :  { %v2091_v55 = vpack.c.bf16 %v1491_v16, %v1491_v16  ;;  %1824 = vst.msk [vmem:[%s3272_s3 + $0xd8] sm:$0xf] %vm1769_vm1, %v2103_v8  ;;  %v1366_v53 = vadd.f32 %v3094_v59, %v1077_v6  ;;  %v1504_v41 = vmax.f32 %v1414_v45, 0.0  ;;  %v1406_v54 = vadd.f32 %v1405_v50, %v1117_v38 }
 0x1b1   :  { %v2101_v15 = vpack.c.bf16 %v1501_v10, %v1501_v10  ;;  %v1081_v35 = vpop.f32.mrf.mxu0  ;;  %v2209_v52 = vpop.f32.mrf.mxu1  ;;  %v1149_v16 = vadd.f32 %v2882_v49, %v2869_v40  ;;  %v1157_v8 = vadd.f32 %v2882_v49, %v2877_v48 }
 0x1b2   :  { %1812 = vst.msk [vmem:[%s3272_s3 + $0xa8] sm:$0xf] %vm1769_vm1, %v2091_v55  ;;  %v1492_v61 = vmax.f32 %v1366_v53, 0.0  ;;  %v2104_v1 = vpack.c.bf16 %v1504_v41, %v1504_v41  ;;  %v1502_v2 = vmax.f32 %v1406_v54, 0.0  ;;  %v1082_v59 = vadd.f32 %v2882_v49, %v1081_v35 }
 0x1b3   :  { %1822 = vst.msk [vmem:[%s3272_s3 + $0xd0] sm:$0xf] %vm1769_vm1, %v2101_v15  ;;  %v1427_v20 = vadd.f32 %v2209_v52, %v1138_v58  ;;  %v1083_v28 = vpop.f32.mrf.mxu0  ;;  %v1418_v47 = vpop.f32.mrf.mxu1 }
 0x1b4   :  { %v2092_v5 = vpack.c.bf16 %v1492_v61, %v1492_v61  ;;  %1825 = vst.msk [vmem:[%s3272_s3 + $0xdc] sm:$0xf] %vm1769_vm1, %v2104_v1  ;;  %v2102_v9 = vpack.c.bf16 %v1502_v2, %v1502_v2  ;;  %v1371_v62 = vadd.f32 %v3108_v31, %v1082_v59  ;;  %v1419_v56 = vadd.f32 %v1418_v47, %v1130_v60 }
 0x1b5   :  { %v1507_v13 = vmax.f32 %v1427_v20, 0.0  ;;  %v1084_v32 = vpop.f32.mrf.mxu0  ;;  %v2210_v27 = vpop.f32.mrf.mxu1  ;;  %v1133_v31 = vadd.f32 %v2882_v49, %v2853_v24 }
 0x1b6   :  { %1813 = vst.msk [vmem:[%s3272_s3 + $0xac] sm:$0xf] %vm1769_vm1, %v2092_v5  ;;  %1823 = vst.msk [vmem:[%s3272_s3 + $0xd4] sm:$0xf] %vm1769_vm1, %v2102_v9  ;;  %v1493_v0 = vmax.f32 %v1371_v62, 0.0  ;;  %v1505_v39 = vmax.f32 %v1419_v56, 0.0  ;;  %v1085_v14 = vadd.f32 %v2882_v49, %v1084_v32  ;;  %v1430_v18 = vadd.f32 %v2210_v27, %v1141_v7 }
 0x1b7   :  { %v2107_v22 = vpack.c.bf16 %v1507_v13, %v1507_v13  ;;  %v1086_v12 = vpop.f32.mrf.mxu0  ;;  %v1421_v29 = vpop.f32.mrf.mxu1 }
 0x1b8   :  { %v2093_v51 = vpack.c.bf16 %v1493_v0, %v1493_v0  ;;  %v2105_v25 = vpack.c.bf16 %v1505_v39, %v1505_v39  ;;  %v1374_v63 = vadd.f32 %v3117_v37, %v1085_v14  ;;  %v1508_v26 = vmax.f32 %v1430_v18, 0.0 }
 0x1b9   :  { %1828 = vst.msk [vmem:[%s3272_s3 + $0xe8] sm:$0xf] %vm1769_vm1, %v2107_v22  ;;  %v1422_v24 = vadd.f32 %v1421_v29, %v1133_v31  ;;  %v1089_v30 = vpop.f32.mrf.mxu0  ;;  %v2213_v11 = vpop.f32.mrf.mxu1 }
 0x1ba   :  { %1814 = vst.msk [vmem:[%s3272_s3 + $0xb0] sm:$0xf] %vm1769_vm1, %v2093_v51  ;;  %1826 = vst.msk [vmem:[%s3272_s3 + $0xe0] sm:$0xf] %vm1769_vm1, %v2105_v25  ;;  %v1494_v44 = vmax.f32 %v1374_v63, 0.0  ;;  %v2108_v36 = vpack.c.bf16 %v1508_v26, %v1508_v26  ;;  %v1090_v37 = vadd.f32 %v2882_v49, %v1089_v30  ;;  %v1443_v33 = vadd.f32 %v2213_v11, %v1154_v21 }
 0x1bb   :  { %v1506_v34 = vmax.f32 %v1422_v24, 0.0  ;;  %v1091_v46 = vpop.f32.mrf.mxu0  ;;  %v1434_v23 = vpop.f32.mrf.mxu1 }
 0x1bc   :  { %v2094_v38 = vpack.c.bf16 %v1494_v44, %v1494_v44  ;;  %1829 = vst.msk [vmem:[%s3272_s3 + $0xec] sm:$0xf] %vm1769_vm1, %v2108_v36  ;;  %v1379_v4 = vadd.f32 %v3101_v19, %v1090_v37  ;;  %v1511_v3 = vmax.f32 %v1443_v33, 0.0  ;;  %v1435_v42 = vadd.f32 %v1434_v23, %v1146_v57 }
 0x1bd   :  { %v2106_v6 = vpack.c.bf16 %v1506_v34, %v1506_v34  ;;  %v1092_v45 = vpop.f32.mrf.mxu0  ;;  %v2214_v10 = vpop.f32.mrf.mxu1 }
 0x1be   :  { %1815 = vst.msk [vmem:[%s3272_s3 + $0xb4] sm:$0xf] %vm1769_vm1, %v2094_v38  ;;  %v1495_v43 = vmax.f32 %v1379_v4, 0.0  ;;  %v2111_v50 = vpack.c.bf16 %v1511_v3, %v1511_v3  ;;  %v1509_v55 = vmax.f32 %v1435_v42, 0.0  ;;  %v1093_v19 = vadd.f32 %v2882_v49, %v1092_v45 }
 0x1bf   :  { %1827 = vst.msk [vmem:[%s3272_s3 + $0xe4] sm:$0xf] %vm1769_vm1, %v2106_v6  ;;  %v1446_v40 = vadd.f32 %v2214_v10, %v1157_v8  ;;  %v1094_v48 = vpop.f32.mrf.mxu0  ;;  %v1437_v53 = vpop.f32.mrf.mxu1 }
 0x1c0   :  { %v2095_v41 = vpack.c.bf16 %v1495_v43, %v1495_v43  ;;  %1832 = vst.msk [vmem:[%s3272_s3 + $0xf8] sm:$0xf] %vm1769_vm1, %v2111_v50  ;;  %v2109_v54 = vpack.c.bf16 %v1509_v55, %v1509_v55  ;;  %v1382_v60 = vadd.f32 %v3110_v17, %v1093_v19  ;;  %v1438_v58 = vadd.f32 %v1437_v53, %v1149_v16 }
 0x1c1   :  { %v1512_v15 = vmax.f32 %v1446_v40, 0.0 }
 0x1c2   :  { %1816 = vst.msk [vmem:[%s3272_s3 + $0xb8] sm:$0xf] %vm1769_vm1, %v2095_v41  ;;  %1830 = vst.msk [vmem:[%s3272_s3 + $0xf0] sm:$0xf] %vm1769_vm1, %v2109_v54  ;;  %v1496_v49 = vmax.f32 %v1382_v60, 0.0  ;;  %v1510_v35 = vmax.f32 %v1438_v58, 0.0 }
 0x1c3   :  { %v2112_v52 = vpack.c.bf16 %v1512_v15, %v1512_v15 }
 0x1c4   :  { %v2096_v61 = vpack.c.bf16 %v1496_v49, %v1496_v49  ;;  %v2110_v1 = vpack.c.bf16 %v1510_v35, %v1510_v35 }
 0x1c5   :  { %1833 = vst.msk [vmem:[%s3272_s3 + $0xfc] sm:$0xf] %vm1769_vm1, %v2112_v52 }
 0x1c6   :  { %1817 = vst.msk [vmem:[%s3272_s3 + $0xbc] sm:$0xf] %vm1769_vm1, %v2096_v61  ;;  %1831 = vst.msk [vmem:[%s3272_s3 + $0xf4] sm:$0xf] %vm1769_vm1, %v2110_v1 }

// kernel: segnet_forward.19
= control target key start
LH: loop header
LB: loop body
LE: loop exit
PB: predicated region body
PF: predicated region fallthrough
CT: control target
= control target key end

     0   :  { %v1231_v1 = vmov 0.0   ;;  %vm1232_vm0 = vmmov 0   ;;  %vm406_vm1 = vcmask 261120   ;;  %vm844_vm2 = vcmask 519168   ;;  %s1592_s1 = inlined_call_operand.vmem [shape: bf16[288,64], index: 1, kind: input, shape index: {}]   ;;  %s1593_s0 = inlined_call_operand.vmem [shape: bf16[200,288], index: 0, kind: input, shape index: {}]   ;;  %s1594_s2 = inlined_call_operand.vmem [shape: f32[1,64], index: 2, kind: input, shape index: {}]   ;;  %s1595_s3 = inlined_call_operand.vmem [shape: bf16[200,64], index: 3, kind: output, shape index: {}]  }
   0x1   :  { %v1162_v0 = vld [vmem:[%s1592_s1 + $0x78] sm:$0xff]   ;;  %1104 = vmatprep.subr.bf16.mxu1 %v1231_v1  ;;  %1108 = vmatprep.mubr.msk.bf16.mxu1 %vm1232_vm0, %v1231_v1  ;;  %v1164_v3 = vld [vmem:[%s1592_s1 + $0x70] sm:$0xff]   ;;  %v1166_v5 = vld [vmem:[%s1592_s1 + $0x68] sm:$0xff]  }
   0x2   :  { %v1163_v2 = vld [vmem:[%s1592_s1 + $0x38] sm:$0xff]   ;;  %995 = vmatprep.subr.bf16.mxu0 %v1162_v0  ;;  %v1165_v4 = vld [vmem:[%s1592_s1 + $0x30] sm:$0xff]   ;;  %v1167_v6 = vld [vmem:[%s1592_s1 + $0x28] sm:$0xff]  }
   0x3   :  { %996 = vmatpush3.bf16.msra.mxu0 %v1163_v2  ;;  %v1168_v7 = vld [vmem:[%s1592_s1 + $0x60] sm:$0xff]   ;;  %v1170_v9 = vld [vmem:[%s1592_s1 + $0x58] sm:$0xff]   ;;  %v1176_v10 = vld [vmem:[%s1592_s1 + $0x88] sm:$0xff]  }
   0x4   :  { %997 = vmatprep.subr.bf16.mxu0 %v1164_v3  ;;  %v1169_v8 = vld [vmem:[%s1592_s1 + $0x20] sm:$0xff]   ;;  %v1171_v11 = vld [vmem:[%s1592_s1 + $0x18] sm:$0xff]   ;;  %v1172_v12 = vld [vmem:[%s1592_s1 + $0x50] sm:$0xff]   ;;  %1105 = vmatpush3.bf16.msra.mxu1 %v1176_v10 }
   0x5   :  { %v1173_v13 = vld [vmem:[%s1592_s1 + $0x10] sm:$0xff]   ;;  %1106 = vmatprep.subr.bf16.mxu1 %v1231_v1  ;;  %v1179_v14 = vld [vmem:[%s1592_s1 + $0x80] sm:$0xff]   ;;  %v1174_v15 = vld [vmem:[%s1592_s1 + $0x48] sm:$0xff]  }
   0x6   :  { %v1182_v16 = vld [vmem:[%s1593_s0 + $0x4] ss:$12 sps:$4 sm:$0xff]   ;;  %v1183_v17 = vld [vmem:[%s1593_s0 + $0x8] ss:$12 sps:$4 sm:$0xff]   ;;  %v1187_v21 = vld [vmem:[%s1593_s0 + $0x20] ss:$12 sps:$4 sm:$0xff]  }
   0x7   :  { %998 = vmatpush3.bf16.msra.mxu0 %v1165_v4  ;;  %478 = vmatprep.mubr.bf16.mxu0 %v1182_v16  ;;  %v1175_v18 = vld [vmem:[%s1592_s1 + $0x8] sm:$0xff]   ;;  %v1177_v19 = vld [vmem:[%s1592_s1 + $0x40] sm:$0xff]   ;;  %v1195_v27 = vld [vmem:[%s1593_s0 + $0x50] ss:$12 sps:$4 sm:$0xff]  }
   0x8   :  { %999 = vmatprep.subr.bf16.mxu0 %v1166_v5  ;;  %1107 = vmatpush3.bf16.msra.mxu1 %v1179_v14  ;;  %v1178_v20 = vld [vmem:[%s1592_s1] sm:$0xff]   ;;  %v1184_v23 = vld [vmem:[%s1593_s0 + $0x1c] ss:$12 sps:$4 sm:$0xff]   ;;  %v1192_v29 = vld [vmem:[%s1593_s0 + $0x4c] ss:$12 sps:$4 sm:$0xff]  }
   0x9   :  { %v1180_v22 = vld [vmem:[%s1593_s0] ss:$12 sps:$4 sm:$0xff]   ;;  %v1191_v24 = vld [vmem:[%s1593_s0 + $0x38] ss:$12 sps:$4 sm:$0xff]   ;;  %v1190_v28 = vld [vmem:[%s1593_s0 + $0x30] ss:$12 sps:$4 sm:$0xff]  }
   0xa   :  { %v1186_v25 = vld [vmem:[%s1593_s0 + $0x18] ss:$12 sps:$4 sm:$0xff]   ;;  %v1188_v26 = vld [vmem:[%s1593_s0 + $0x34] ss:$12 sps:$4 sm:$0xff]   ;;  %v1200_v35 = vld [vmem:[%s1593_s0 + $0x7c] ss:$12 sps:$4 sm:$0xff]  }
   0xb   :  { %1000 = vmatpush3.bf16.msra.mxu0 %v1167_v6  ;;  %1109 = vmatmul.mubr.msk.bf16.vlgmr.msra.gmra.mxu1 %vm406_vm1, %v1183_v17  ;;  %v1199_v30 = vld [vmem:[%s1593_s0 + $0x68] ss:$12 sps:$4 sm:$0xff]   ;;  %v1196_v32 = vld [vmem:[%s1593_s0 + $0x64] ss:$12 sps:$4 sm:$0xff]   ;;  %v1203_v33 = vld [vmem:[%s1593_s0 + $0x80] ss:$12 sps:$4 sm:$0xff]  }
   0xc   :  { %1001 = vmatprep.subr.bf16.mxu0 %v1168_v7  ;;  %1112 = vmatprep.mubr.msk.bf16.mxu1 %vm1232_vm0, %v1231_v1  ;;  %v1194_v31 = vld [vmem:[%s1593_s0 + $0x48] ss:$12 sps:$4 sm:$0xff]   ;;  %v1198_v34 = vld [vmem:[%s1593_s0 + $0x60] ss:$12 sps:$4 sm:$0xff]   ;;  %v1207_v36 = vld [vmem:[%s1593_s0 + $0x98] ss:$12 sps:$4 sm:$0xff]  }
   0xd   :  { %v1202_v37 = vld [vmem:[%s1593_s0 + $0x78] ss:$12 sps:$4 sm:$0xff]   ;;  %v1204_v38 = vld [vmem:[%s1593_s0 + $0x94] ss:$12 sps:$4 sm:$0xff]   ;;  %v1211_v39 = vld [vmem:[%s1593_s0 + $0xb0] ss:$12 sps:$4 sm:$0xff]  }
   0xe   :  { %v1206_v40 = vld [vmem:[%s1593_s0 + $0x90] ss:$12 sps:$4 sm:$0xff]   ;;  %v1208_v41 = vld [vmem:[%s1593_s0 + $0xac] ss:$12 sps:$4 sm:$0xff]   ;;  %v1215_v42 = vld [vmem:[%s1593_s0 + $0xc8] ss:$12 sps:$4 sm:$0xff]  }
   0xf   :  { %1002 = vmatpush3.bf16.msra.mxu0 %v1169_v8  ;;  %v1210_v43 = vld [vmem:[%s1593_s0 + $0xa8] ss:$12 sps:$4 sm:$0xff]   ;;  %v1212_v44 = vld [vmem:[%s1593_s0 + $0xc4] ss:$12 sps:$4 sm:$0xff]   ;;  %v1219_v45 = vld [vmem:[%s1593_s0 + $0xe0] ss:$12 sps:$4 sm:$0xff]  }
  0x10   :  { %1003 = vmatprep.subr.bf16.mxu0 %v1170_v9  ;;  %v1214_v46 = vld [vmem:[%s1593_s0 + $0xc0] ss:$12 sps:$4 sm:$0xff]   ;;  %v1216_v47 = vld [vmem:[%s1593_s0 + $0xdc] ss:$12 sps:$4 sm:$0xff]   ;;  %v1223_v48 = vld [vmem:[%s1593_s0 + $0xf8] ss:$12 sps:$4 sm:$0xff]  }
  0x11   :  { %v1218_v49 = vld [vmem:[%s1593_s0 + $0xd8] ss:$12 sps:$4 sm:$0xff]   ;;  %v1220_v50 = vld [vmem:[%s1593_s0 + $0xf4] ss:$12 sps:$4 sm:$0xff]   ;;  %v1227_v51 = vld [vmem:[%s1593_s0 + $0x110] ss:$12 sps:$4 sm:$0xff]  }
  0x12   :  { %v1222_v52 = vld [vmem:[%s1593_s0 + $0xf0] ss:$12 sps:$4 sm:$0xff]   ;;  %v1224_v53 = vld [vmem:[%s1593_s0 + $0x10c] ss:$12 sps:$4 sm:$0xff]   ;;  %v1230_v54 = vld [vmem:[%s1593_s0 + $0x128] ss:$0 sps:$4 sm:$0xff]  }
  0x13   :  { %1004 = vmatpush3.bf16.msra.mxu0 %v1171_v11  ;;  %1113 = vmatmul.mubr.msk.bf16.gmra.mxu1 %vm406_vm1, %v1187_v21  ;;  %v63_v55 = vld [vmem:[%s1593_s0 + $0x120] sm:$0xff]  ;;  %v1226_v56 = vld [vmem:[%s1593_s0 + $0x108] ss:$12 sps:$4 sm:$0xff]  }
  0x14   :  { %1005 = vmatprep.subr.bf16.mxu0 %v1172_v12  ;;  %1116 = vmatprep.mubr.msk.bf16.mxu1 %vm1232_vm0, %v1231_v1  ;;  %v912_v57 = vcombine.high %v63_v55, %v63_v55  ;;  %v911_v58 = vcombine.low %v63_v55, %v63_v55  ;;  %v1465_v3 = vld [vmem:[%s1594_s2] ss:$0 sm:$0xff] }
  0x17   :  { %1006 = vmatpush3.bf16.msra.mxu0 %v1173_v13 }
  0x18   :  { %1007 = vmatprep.subr.bf16.mxu0 %v1174_v15 }
  0x1b   :  { %1008 = vmatpush3.bf16.msra.mxu0 %v1175_v18  ;;  %1117 = vmatmul.mubr.msk.bf16.gmra.mxu1 %vm406_vm1, %v1191_v24 }
  0x1c   :  { %1009 = vmatprep.subr.bf16.mxu0 %v1177_v19  ;;  %1120 = vmatprep.mubr.msk.bf16.mxu1 %vm1232_vm0, %v1231_v1 }
  0x1f   :  { %1010 = vmatpush3.bf16.msra.mxu0 %v1178_v20 }
  0x22   :  { %479 = vmatmul.mubr.bf16.vlgmr.msra.gmra.mxu0 %v1180_v22 }
  0x23   :  { %486 = vmatprep.mubr.bf16.mxu0 %v1184_v23  ;;  %1121 = vmatmul.mubr.msk.bf16.gmra.mxu1 %vm406_vm1, %v1195_v27 }
  0x24   :  { %1124 = vmatprep.mubr.msk.bf16.mxu1 %vm1232_vm0, %v1231_v1 }
  0x2a   :  { %487 = vmatmul.mubr.bf16.gmra.mxu0 %v1186_v25 }
  0x2b   :  { %494 = vmatprep.mubr.bf16.mxu0 %v1188_v26  ;;  %1125 = vmatmul.mubr.msk.bf16.gmra.mxu1 %vm406_vm1, %v1199_v30 }
  0x2c   :  { %1128 = vmatprep.mubr.msk.bf16.mxu1 %vm1232_vm0, %v1231_v1 }
  0x32   :  { %495 = vmatmul.mubr.bf16.gmra.mxu0 %v1190_v28 }
  0x33   :  { %502 = vmatprep.mubr.bf16.mxu0 %v1192_v29  ;;  %1129 = vmatmul.mubr.msk.bf16.gmra.mxu1 %vm406_vm1, %v1203_v33 }
  0x34   :  { %1132 = vmatprep.mubr.msk.bf16.mxu1 %vm1232_vm0, %v1231_v1 }
  0x3a   :  { %503 = vmatmul.mubr.bf16.gmra.mxu0 %v1194_v31 }
  0x3b   :  { %510 = vmatprep.mubr.bf16.mxu0 %v1196_v32  ;;  %1133 = vmatmul.mubr.msk.bf16.gmra.mxu1 %vm406_vm1, %v1207_v36 }
  0x3c   :  { %1136 = vmatprep.mubr.msk.bf16.mxu1 %vm1232_vm0, %v1231_v1 }
  0x42   :  { %511 = vmatmul.mubr.bf16.gmra.mxu0 %v1198_v34 }
  0x43   :  { %518 = vmatprep.mubr.bf16.mxu0 %v1200_v35  ;;  %1137 = vmatmul.mubr.msk.bf16.gmra.mxu1 %vm406_vm1, %v1211_v39 }
  0x44   :  { %1140 = vmatprep.mubr.msk.bf16.mxu1 %vm1232_vm0, %v1231_v1 }
  0x4a   :  { %519 = vmatmul.mubr.bf16.gmra.mxu0 %v1202_v37 }
  0x4b   :  { %526 = vmatprep.mubr.bf16.mxu0 %v1204_v38  ;;  %1141 = vmatmul.mubr.msk.bf16.gmra.mxu1 %vm406_vm1, %v1215_v42 }
  0x4c   :  { %1144 = vmatprep.mubr.msk.bf16.mxu1 %vm1232_vm0, %v1231_v1 }
  0x52   :  { %527 = vmatmul.mubr.bf16.gmra.mxu0 %v1206_v40 }
  0x53   :  { %534 = vmatprep.mubr.bf16.mxu0 %v1208_v41  ;;  %1145 = vmatmul.mubr.msk.bf16.gmra.mxu1 %vm406_vm1, %v1219_v45 }
  0x54   :  { %1148 = vmatprep.mubr.msk.bf16.mxu1 %vm1232_vm0, %v1231_v1 }
  0x5a   :  { %535 = vmatmul.mubr.bf16.gmra.mxu0 %v1210_v43 }
  0x5b   :  { %542 = vmatprep.mubr.bf16.mxu0 %v1212_v44  ;;  %1149 = vmatmul.mubr.msk.bf16.gmra.mxu1 %vm406_vm1, %v1223_v48 }
  0x5c   :  { %1152 = vmatprep.mubr.msk.bf16.mxu1 %vm1232_vm0, %v1231_v1 }
  0x62   :  { %543 = vmatmul.mubr.bf16.gmra.mxu0 %v1214_v46 }
  0x63   :  { %550 = vmatprep.mubr.bf16.mxu0 %v1216_v47  ;;  %1153 = vmatmul.mubr.msk.bf16.gmra.mxu1 %vm406_vm1, %v1227_v51 }
  0x64   :  { %1156 = vmatprep.mubr.msk.bf16.mxu1 %vm1232_vm0, %v1231_v1 }
  0x6a   :  { %551 = vmatmul.mubr.bf16.gmra.mxu0 %v1218_v49 }
  0x6b   :  { %558 = vmatprep.mubr.bf16.mxu0 %v1220_v50  ;;  %1157 = vmatmul.mubr.msk.bf16.gmra.mxu1 %vm406_vm1, %v1230_v54 }
  0x72   :  { %559 = vmatmul.mubr.bf16.gmra.mxu0 %v1222_v52 }
  0x73   :  { %566 = vmatprep.mubr.bf16.mxu0 %v1224_v53 }
  0x7a   :  { %567 = vmatmul.mubr.bf16.gmra.mxu0 %v1226_v56 }
  0x7b   :  { %574 = vmatprep.mubr.bf16.mxu0 %v912_v57 }
  0x82   :  { %575 = vmatmul.mubr.bf16.gmra.mxu0 %v911_v58 }
  0xcb   :  { %v616_v59 = vpop.f32.mrf.mxu1 }
  0xcd   :  { %v1110_v60 = vpop.f32.mrf.mxu1 }
  0xcf   :  { %v619_v61 = vpop.f32.mrf.mxu1 }
  0xd1   :  { %v1111_v62 = vpop.f32.mrf.mxu1 }
  0xd3   :  { %v624_v63 = vpop.f32.mrf.mxu1 }
  0xd5   :  { %v1114_v0 = vpop.f32.mrf.mxu1 }
  0xd7   :  { %v627_v2 = vpop.f32.mrf.mxu1 }
  0xd9   :  { %v1115_v6 = vpop.f32.mrf.mxu1 }
  0xdb   :  { %v632_v9 = vpop.f32.mrf.mxu1 }
  0xdd   :  { %v1118_v13 = vpop.f32.mrf.mxu1 }
  0xdf   :  { %v635_v17 = vpop.f32.mrf.mxu1 }
  0xe1   :  { %v1119_v22 = vpop.f32.mrf.mxu1 }
  0xe2   :  { %v1011_v1 = vpop.f32.mrf.mxu0 }
  0xe3   :  { %v640_v26 = vpop.f32.mrf.mxu1 }
  0xe4   :  { %v1012_v4 = vpop.f32.mrf.mxu0 }
  0xe5   :  { %v1013_v5 = vadd.f32 %v1012_v4, %v1011_v1  ;;  %v1122_v31 = vpop.f32.mrf.mxu1 }
  0xe6   :  { %v1014_v7 = vpop.f32.mrf.mxu0 }
  0xe7   :  { %v481_v8 = vadd.f32 %v1013_v5, %v1465_v3  ;;  %v643_v35 = vpop.f32.mrf.mxu1 }
  0xe8   :  { %v1015_v10 = vpop.f32.mrf.mxu0 }
  0xe9   :  { %v617_v11 = vadd.f32 %v616_v59, %v481_v8  ;;  %v1016_v12 = vadd.f32 %v1015_v10, %v1014_v7  ;;  %v1123_v40 = vpop.f32.mrf.mxu1 }
  0xea   :  { %v1017_v14 = vpop.f32.mrf.mxu0 }
  0xeb   :  { %v718_v15 = vmax.f32 %v617_v11, 0.0  ;;  %v484_v16 = vadd.f32 %v1016_v12, %v1465_v3  ;;  %v648_v44 = vpop.f32.mrf.mxu1 }
  0xec   :  { %v1018_v18 = vpop.f32.mrf.mxu0 }
  0xed   :  { %v970_v19 = vpack.c.bf16 %v718_v15, %v718_v15  ;;  %v620_v20 = vadd.f32 %v619_v61, %v484_v16  ;;  %v1019_v21 = vadd.f32 %v1018_v18, %v1017_v14  ;;  %v1126_v49 = vpop.f32.mrf.mxu1 }
  0xee   :  { %v1020_v23 = vpop.f32.mrf.mxu0 }
  0xef   :  { %845 = vst.msk [vmem:[%s1595_s3] sm:$0xf] %vm844_vm2, %v970_v19  ;;  %v719_v24 = vmax.f32 %v620_v20, 0.0  ;;  %v489_v25 = vadd.f32 %v1019_v21, %v1465_v3  ;;  %v651_v53 = vpop.f32.mrf.mxu1 }
  0xf0   :  { %v1021_v27 = vpop.f32.mrf.mxu0 }
  0xf1   :  { %v971_v28 = vpack.c.bf16 %v719_v24, %v719_v24  ;;  %v625_v29 = vadd.f32 %v624_v63, %v489_v25  ;;  %v1022_v30 = vadd.f32 %v1021_v27, %v1020_v23  ;;  %v1127_v58 = vpop.f32.mrf.mxu1 }
  0xf2   :  { %v1023_v32 = vpop.f32.mrf.mxu0 }
  0xf3   :  { %846 = vst.msk [vmem:[%s1595_s3 + $0x4] sm:$0xf] %vm844_vm2, %v971_v28  ;;  %v720_v33 = vmax.f32 %v625_v29, 0.0  ;;  %v492_v34 = vadd.f32 %v1022_v30, %v1465_v3  ;;  %v656_v62 = vpop.f32.mrf.mxu1 }
  0xf4   :  { %v1024_v36 = vpop.f32.mrf.mxu0 }
  0xf5   :  { %v972_v37 = vpack.c.bf16 %v720_v33, %v720_v33  ;;  %v628_v38 = vadd.f32 %v627_v2, %v492_v34  ;;  %v1025_v39 = vadd.f32 %v1024_v36, %v1023_v32  ;;  %v1130_v4 = vpop.f32.mrf.mxu1 }
  0xf6   :  { %v1026_v41 = vpop.f32.mrf.mxu0 }
  0xf7   :  { %847 = vst.msk [vmem:[%s1595_s3 + $0x8] sm:$0xf] %vm844_vm2, %v972_v37  ;;  %v721_v42 = vmax.f32 %v628_v38, 0.0  ;;  %v497_v43 = vadd.f32 %v1025_v39, %v1465_v3  ;;  %v659_v8 = vpop.f32.mrf.mxu1 }
  0xf8   :  { %v1027_v45 = vpop.f32.mrf.mxu0 }
  0xf9   :  { %v973_v46 = vpack.c.bf16 %v721_v42, %v721_v42  ;;  %v633_v47 = vadd.f32 %v632_v9, %v497_v43  ;;  %v1028_v48 = vadd.f32 %v1027_v45, %v1026_v41  ;;  %v1131_v13 = vpop.f32.mrf.mxu1 }
  0xfa   :  { %v1029_v50 = vpop.f32.mrf.mxu0 }
  0xfb   :  { %848 = vst.msk [vmem:[%s1595_s3 + $0xc] sm:$0xf] %vm844_vm2, %v973_v46  ;;  %v722_v51 = vmax.f32 %v633_v47, 0.0  ;;  %v500_v52 = vadd.f32 %v1028_v48, %v1465_v3 }
  0xfc   :  { %v1030_v54 = vpop.f32.mrf.mxu0 }
  0xfd   :  { %v974_v55 = vpack.c.bf16 %v722_v51, %v722_v51  ;;  %v636_v56 = vadd.f32 %v635_v17, %v500_v52  ;;  %v1031_v57 = vadd.f32 %v1030_v54, %v1029_v50  ;;  %v664_v17 = vpop.f32.mrf.mxu1 }
  0xfe   :  { %v1032_v59 = vpop.f32.mrf.mxu0 }
  0xff   :  { %849 = vst.msk [vmem:[%s1595_s3 + $0x10] sm:$0xf] %vm844_vm2, %v974_v55  ;;  %v723_v60 = vmax.f32 %v636_v56, 0.0  ;;  %v505_v61 = vadd.f32 %v1031_v57, %v1465_v3  ;;  %v1134_v22 = vpop.f32.mrf.mxu1 }
 0x100   :  { %v1033_v63 = vpop.f32.mrf.mxu0 }
 0x101   :  { %v975_v0 = vpack.c.bf16 %v723_v60, %v723_v60  ;;  %v641_v1 = vadd.f32 %v640_v26, %v505_v61  ;;  %v1034_v2 = vadd.f32 %v1033_v63, %v1032_v59  ;;  %v667_v26 = vpop.f32.mrf.mxu1 }
 0x102   :  { %v1035_v5 = vpop.f32.mrf.mxu0 }
 0x103   :  { %850 = vst.msk [vmem:[%s1595_s3 + $0x14] sm:$0xf] %vm844_vm2, %v975_v0  ;;  %v724_v6 = vmax.f32 %v641_v1, 0.0  ;;  %v508_v7 = vadd.f32 %v1034_v2, %v1465_v3  ;;  %v1135_v31 = vpop.f32.mrf.mxu1 }
 0x104   :  { %v1036_v9 = vpop.f32.mrf.mxu0 }
 0x105   :  { %v976_v10 = vpack.c.bf16 %v724_v6, %v724_v6  ;;  %v644_v11 = vadd.f32 %v643_v35, %v508_v7  ;;  %v1037_v12 = vadd.f32 %v1036_v9, %v1035_v5  ;;  %v672_v35 = vpop.f32.mrf.mxu1 }
 0x106   :  { %v1038_v14 = vpop.f32.mrf.mxu0 }
 0x107   :  { %851 = vst.msk [vmem:[%s1595_s3 + $0x18] sm:$0xf] %vm844_vm2, %v976_v10  ;;  %v725_v15 = vmax.f32 %v644_v11, 0.0  ;;  %v513_v16 = vadd.f32 %v1037_v12, %v1465_v3  ;;  %v1138_v40 = vpop.f32.mrf.mxu1 }
 0x108   :  { %v1039_v18 = vpop.f32.mrf.mxu0 }
 0x109   :  { %v977_v19 = vpack.c.bf16 %v725_v15, %v725_v15  ;;  %v649_v20 = vadd.f32 %v648_v44, %v513_v16  ;;  %v1040_v21 = vadd.f32 %v1039_v18, %v1038_v14  ;;  %v675_v44 = vpop.f32.mrf.mxu1 }
 0x10a   :  { %v1041_v23 = vpop.f32.mrf.mxu0 }
 0x10b   :  { %852 = vst.msk [vmem:[%s1595_s3 + $0x1c] sm:$0xf] %vm844_vm2, %v977_v19  ;;  %v726_v24 = vmax.f32 %v649_v20, 0.0  ;;  %v516_v25 = vadd.f32 %v1040_v21, %v1465_v3  ;;  %v1139_v49 = vpop.f32.mrf.mxu1 }
 0x10c   :  { %v1042_v27 = vpop.f32.mrf.mxu0 }
 0x10d   :  { %v978_v28 = vpack.c.bf16 %v726_v24, %v726_v24  ;;  %v652_v29 = vadd.f32 %v651_v53, %v516_v25  ;;  %v1043_v30 = vadd.f32 %v1042_v27, %v1041_v23  ;;  %v680_v53 = vpop.f32.mrf.mxu1 }
 0x10e   :  { %v1044_v32 = vpop.f32.mrf.mxu0 }
 0x10f   :  { %853 = vst.msk [vmem:[%s1595_s3 + $0x20] sm:$0xf] %vm844_vm2, %v978_v28  ;;  %v727_v33 = vmax.f32 %v652_v29, 0.0  ;;  %v521_v34 = vadd.f32 %v1043_v30, %v1465_v3  ;;  %v1142_v58 = vpop.f32.mrf.mxu1 }
 0x110   :  { %v1045_v36 = vpop.f32.mrf.mxu0 }
 0x111   :  { %v979_v37 = vpack.c.bf16 %v727_v33, %v727_v33  ;;  %v657_v38 = vadd.f32 %v656_v62, %v521_v34  ;;  %v1046_v39 = vadd.f32 %v1045_v36, %v1044_v32  ;;  %v683_v62 = vpop.f32.mrf.mxu1 }
 0x112   :  { %v1047_v41 = vpop.f32.mrf.mxu0 }
 0x113   :  { %854 = vst.msk [vmem:[%s1595_s3 + $0x24] sm:$0xf] %vm844_vm2, %v979_v37  ;;  %v728_v42 = vmax.f32 %v657_v38, 0.0  ;;  %v524_v43 = vadd.f32 %v1046_v39, %v1465_v3  ;;  %v1143_v4 = vpop.f32.mrf.mxu1 }
 0x114   :  { %v1048_v45 = vpop.f32.mrf.mxu0 }
 0x115   :  { %v980_v46 = vpack.c.bf16 %v728_v42, %v728_v42  ;;  %v660_v47 = vadd.f32 %v659_v8, %v524_v43  ;;  %v1049_v48 = vadd.f32 %v1048_v45, %v1047_v41  ;;  %v688_v8 = vpop.f32.mrf.mxu1 }
 0x116   :  { %v1050_v50 = vpop.f32.mrf.mxu0 }
 0x117   :  { %855 = vst.msk [vmem:[%s1595_s3 + $0x28] sm:$0xf] %vm844_vm2, %v980_v46  ;;  %v729_v51 = vmax.f32 %v660_v47, 0.0  ;;  %v529_v52 = vadd.f32 %v1049_v48, %v1465_v3  ;;  %v1146_v13 = vpop.f32.mrf.mxu1 }
 0x118   :  { %v1051_v54 = vpop.f32.mrf.mxu0 }
 0x119   :  { %v981_v55 = vpack.c.bf16 %v729_v51, %v729_v51  ;;  %v665_v56 = vadd.f32 %v664_v17, %v529_v52  ;;  %v1052_v57 = vadd.f32 %v1051_v54, %v1050_v50  ;;  %v691_v17 = vpop.f32.mrf.mxu1 }
 0x11a   :  { %v1053_v59 = vpop.f32.mrf.mxu0 }
 0x11b   :  { %856 = vst.msk [vmem:[%s1595_s3 + $0x2c] sm:$0xf] %vm844_vm2, %v981_v55  ;;  %v730_v60 = vmax.f32 %v665_v56, 0.0  ;;  %v532_v61 = vadd.f32 %v1052_v57, %v1465_v3  ;;  %v1147_v22 = vpop.f32.mrf.mxu1 }
 0x11c   :  { %v1054_v63 = vpop.f32.mrf.mxu0 }
 0x11d   :  { %v982_v0 = vpack.c.bf16 %v730_v60, %v730_v60  ;;  %v668_v1 = vadd.f32 %v667_v26, %v532_v61  ;;  %v1055_v2 = vadd.f32 %v1054_v63, %v1053_v59  ;;  %v696_v26 = vpop.f32.mrf.mxu1 }
 0x11e   :  { %v1056_v5 = vpop.f32.mrf.mxu0 }
 0x11f   :  { %857 = vst.msk [vmem:[%s1595_s3 + $0x30] sm:$0xf] %vm844_vm2, %v982_v0  ;;  %v731_v6 = vmax.f32 %v668_v1, 0.0  ;;  %v537_v7 = vadd.f32 %v1055_v2, %v1465_v3  ;;  %v1150_v31 = vpop.f32.mrf.mxu1 }
 0x120   :  { %v1057_v9 = vpop.f32.mrf.mxu0 }
 0x121   :  { %v983_v10 = vpack.c.bf16 %v731_v6, %v731_v6  ;;  %v673_v11 = vadd.f32 %v672_v35, %v537_v7  ;;  %v1058_v12 = vadd.f32 %v1057_v9, %v1056_v5  ;;  %v699_v35 = vpop.f32.mrf.mxu1 }
 0x122   :  { %v1059_v14 = vpop.f32.mrf.mxu0 }
 0x123   :  { %858 = vst.msk [vmem:[%s1595_s3 + $0x34] sm:$0xf] %vm844_vm2, %v983_v10  ;;  %v732_v15 = vmax.f32 %v673_v11, 0.0  ;;  %v540_v16 = vadd.f32 %v1058_v12, %v1465_v3  ;;  %v1151_v40 = vpop.f32.mrf.mxu1 }
 0x124   :  { %v1060_v18 = vpop.f32.mrf.mxu0 }
 0x125   :  { %v984_v19 = vpack.c.bf16 %v732_v15, %v732_v15  ;;  %v676_v20 = vadd.f32 %v675_v44, %v540_v16  ;;  %v1061_v21 = vadd.f32 %v1060_v18, %v1059_v14  ;;  %v704_v44 = vpop.f32.mrf.mxu1 }
 0x126   :  { %v1062_v23 = vpop.f32.mrf.mxu0 }
 0x127   :  { %859 = vst.msk [vmem:[%s1595_s3 + $0x38] sm:$0xf] %vm844_vm2, %v984_v19  ;;  %v733_v24 = vmax.f32 %v676_v20, 0.0  ;;  %v545_v25 = vadd.f32 %v1061_v21, %v1465_v3  ;;  %v1154_v49 = vpop.f32.mrf.mxu1 }
 0x128   :  { %v1063_v27 = vpop.f32.mrf.mxu0 }
 0x129   :  { %v985_v28 = vpack.c.bf16 %v733_v24, %v733_v24  ;;  %v681_v29 = vadd.f32 %v680_v53, %v545_v25  ;;  %v1064_v30 = vadd.f32 %v1063_v27, %v1062_v23  ;;  %v707_v53 = vpop.f32.mrf.mxu1 }
 0x12a   :  { %v1065_v32 = vpop.f32.mrf.mxu0 }
 0x12b   :  { %860 = vst.msk [vmem:[%s1595_s3 + $0x3c] sm:$0xf] %vm844_vm2, %v985_v28  ;;  %v734_v33 = vmax.f32 %v681_v29, 0.0  ;;  %v548_v34 = vadd.f32 %v1064_v30, %v1465_v3  ;;  %v1155_v58 = vpop.f32.mrf.mxu1 }
 0x12c   :  { %v1066_v36 = vpop.f32.mrf.mxu0 }
 0x12d   :  { %v986_v37 = vpack.c.bf16 %v734_v33, %v734_v33  ;;  %v684_v38 = vadd.f32 %v683_v62, %v548_v34  ;;  %v1067_v39 = vadd.f32 %v1066_v36, %v1065_v32  ;;  %v712_v62 = vpop.f32.mrf.mxu1 }
 0x12e   :  { %v1068_v41 = vpop.f32.mrf.mxu0 }
 0x12f   :  { %861 = vst.msk [vmem:[%s1595_s3 + $0x40] sm:$0xf] %vm844_vm2, %v986_v37  ;;  %v735_v42 = vmax.f32 %v684_v38, 0.0  ;;  %v553_v43 = vadd.f32 %v1067_v39, %v1465_v3  ;;  %v1158_v4 = vpop.f32.mrf.mxu1 }
 0x130   :  { %v1069_v45 = vpop.f32.mrf.mxu0 }
 0x131   :  { %v987_v46 = vpack.c.bf16 %v735_v42, %v735_v42  ;;  %v689_v47 = vadd.f32 %v688_v8, %v553_v43  ;;  %v1070_v48 = vadd.f32 %v1069_v45, %v1068_v41  ;;  %v715_v8 = vpop.f32.mrf.mxu1 }
 0x132   :  { %v1071_v50 = vpop.f32.mrf.mxu0 }
 0x133   :  { %862 = vst.msk [vmem:[%s1595_s3 + $0x44] sm:$0xf] %vm844_vm2, %v987_v46  ;;  %v736_v51 = vmax.f32 %v689_v47, 0.0  ;;  %v556_v52 = vadd.f32 %v1070_v48, %v1465_v3  ;;  %v1159_v13 = vpop.f32.mrf.mxu1 }
 0x134   :  { %v1072_v54 = vpop.f32.mrf.mxu0 }
 0x135   :  { %v988_v55 = vpack.c.bf16 %v736_v51, %v736_v51  ;;  %v692_v56 = vadd.f32 %v691_v17, %v556_v52  ;;  %v1073_v57 = vadd.f32 %v1072_v54, %v1071_v50 }
 0x136   :  { %v1074_v59 = vpop.f32.mrf.mxu0 }
 0x137   :  { %863 = vst.msk [vmem:[%s1595_s3 + $0x48] sm:$0xf] %vm844_vm2, %v988_v55  ;;  %v737_v60 = vmax.f32 %v692_v56, 0.0  ;;  %v561_v61 = vadd.f32 %v1073_v57, %v1465_v3 }
 0x138   :  { %v1075_v63 = vpop.f32.mrf.mxu0 }
 0x139   :  { %v989_v0 = vpack.c.bf16 %v737_v60, %v737_v60  ;;  %v697_v1 = vadd.f32 %v696_v26, %v561_v61  ;;  %v1076_v2 = vadd.f32 %v1075_v63, %v1074_v59 }
 0x13a   :  { %v1077_v5 = vpop.f32.mrf.mxu0 }
 0x13b   :  { %864 = vst.msk [vmem:[%s1595_s3 + $0x4c] sm:$0xf] %vm844_vm2, %v989_v0  ;;  %v738_v6 = vmax.f32 %v697_v1, 0.0  ;;  %v564_v7 = vadd.f32 %v1076_v2, %v1465_v3 }
 0x13c   :  { %v1078_v9 = vpop.f32.mrf.mxu0 }
 0x13d   :  { %v990_v10 = vpack.c.bf16 %v738_v6, %v738_v6  ;;  %v700_v11 = vadd.f32 %v699_v35, %v564_v7  ;;  %v1079_v12 = vadd.f32 %v1078_v9, %v1077_v5 }
 0x13e   :  { %v1080_v14 = vpop.f32.mrf.mxu0 }
 0x13f   :  { %865 = vst.msk [vmem:[%s1595_s3 + $0x50] sm:$0xf] %vm844_vm2, %v990_v10  ;;  %v739_v15 = vmax.f32 %v700_v11, 0.0  ;;  %v569_v16 = vadd.f32 %v1079_v12, %v1465_v3 }
 0x140   :  { %v1081_v17 = vpop.f32.mrf.mxu0 }
 0x141   :  { %v991_v18 = vpack.c.bf16 %v739_v15, %v739_v15  ;;  %v705_v19 = vadd.f32 %v704_v44, %v569_v16  ;;  %v1082_v20 = vadd.f32 %v1081_v17, %v1080_v14 }
 0x142   :  { %v1083_v21 = vpop.f32.mrf.mxu0 }
 0x143   :  { %866 = vst.msk [vmem:[%s1595_s3 + $0x54] sm:$0xf] %vm844_vm2, %v991_v18  ;;  %v740_v22 = vmax.f32 %v705_v19, 0.0  ;;  %v572_v23 = vadd.f32 %v1082_v20, %v1465_v3 }
 0x144   :  { %v1084_v24 = vpop.f32.mrf.mxu0 }
 0x145   :  { %v992_v25 = vpack.c.bf16 %v740_v22, %v740_v22  ;;  %v708_v26 = vadd.f32 %v707_v53, %v572_v23  ;;  %v1085_v27 = vadd.f32 %v1084_v24, %v1083_v21 }
 0x146   :  { %v1086_v28 = vpop.f32.mrf.mxu0 }
 0x147   :  { %867 = vst.msk [vmem:[%s1595_s3 + $0x58] sm:$0xf] %vm844_vm2, %v992_v25  ;;  %v741_v29 = vmax.f32 %v708_v26, 0.0  ;;  %v577_v30 = vadd.f32 %v1085_v27, %v1465_v3 }
 0x148   :  { %v1087_v31 = vpop.f32.mrf.mxu0 }
 0x149   :  { %v993_v32 = vpack.c.bf16 %v741_v29, %v741_v29  ;;  %v713_v33 = vadd.f32 %v712_v62, %v577_v30 }
 0x14b   :  { %868 = vst.msk [vmem:[%s1595_s3 + $0x5c] sm:$0xf] %vm844_vm2, %v993_v32  ;;  %v742_v34 = vmax.f32 %v713_v33, 0.0 }
 0x14d   :  { %v994_v35 = vpack.c.bf16 %v742_v34, %v742_v34 }
 0x14f   :  { %869 = vst.msk [vmem:[%s1595_s3 + $0x60] sm:$0xf] %vm844_vm2, %v994_v35 }

// kernel: segnet_forward.20
= control target key start
LH: loop header
LB: loop body
LE: loop exit
PB: predicated region body
PF: predicated region fallthrough
CT: control target
= control target key end

     0   :  { %v2129_v0 = vmov 0   ;;  %vm868_vm0 = vcmask 523264   ;;  %vm1634_vm1 = vcmask 519168   ;;  %s2907_s1 = inlined_call_operand.vmem [shape: bf16[576,64], index: 1, kind: input, shape index: {}]   ;;  %s2908_s0 = inlined_call_operand.vmem [shape: bf16[288,576], index: 0, kind: input, shape index: {}]   ;;  %s2909_s2 = inlined_call_operand.vmem [shape: f32[1,64], index: 2, kind: input, shape index: {}]   ;;  %s2910_s3 = inlined_call_operand.vmem [shape: bf16[288,64], index: 3, kind: output, shape index: {}]  }
   0x1   :  { %923 = vmatprep.subr.bf16.mxu0 %v2129_v0  ;;  %1100 = vmatprep.subr.bf16.mxu1 %v2129_v0  ;;  %v1967_v1 = vld [vmem:[%s2907_s1 + $0x38] sm:$0xff]   ;;  %v1969_v3 = vld [vmem:[%s2907_s1 + $0x30] sm:$0xff]   ;;  %v1971_v5 = vld [vmem:[%s2907_s1 + $0x28] sm:$0xff]  }
   0x2   :  { %v1968_v2 = vld [vmem:[%s2907_s1 + $0xb8] sm:$0xff]   ;;  %924 = vmatpush1.bf16.msra.mxu0 %v1967_v1  ;;  %v1970_v4 = vld [vmem:[%s2907_s1 + $0xb0] sm:$0xff]   ;;  %v1972_v6 = vld [vmem:[%s2907_s1 + $0xa8] sm:$0xff]  }
   0x3   :  { %1101 = vmatpush1.bf16.msra.mxu1 %v1968_v2  ;;  %925 = vmatprep.subr.bf16.mxu0 %v2129_v0  ;;  %v1973_v7 = vld [vmem:[%s2907_s1 + $0x20] sm:$0xff]   ;;  %v1975_v9 = vld [vmem:[%s2907_s1 + $0x18] sm:$0xff]   ;;  %v1977_v11 = vld [vmem:[%s2907_s1 + $0x10] sm:$0xff]  }
   0x4   :  { %1102 = vmatprep.subr.bf16.mxu1 %v2129_v0  ;;  %v1974_v8 = vld [vmem:[%s2907_s1 + $0xa0] sm:$0xff]   ;;  %v1976_v10 = vld [vmem:[%s2907_s1 + $0x98] sm:$0xff]   ;;  %v1978_v12 = vld [vmem:[%s2907_s1 + $0x90] sm:$0xff]  }
   0x5   :  { %v1979_v13 = vld [vmem:[%s2907_s1 + $0x8] sm:$0xff]   ;;  %v1981_v15 = vld [vmem:[%s2907_s1] sm:$0xff]   ;;  %v1983_v17 = vld [vmem:[%s2907_s1 + $0x78] sm:$0xff]  }
   0x6   :  { %926 = vmatpush1.bf16.msra.mxu0 %v1969_v3  ;;  %v1980_v14 = vld [vmem:[%s2907_s1 + $0x88] sm:$0xff]   ;;  %v1982_v16 = vld [vmem:[%s2907_s1 + $0x80] sm:$0xff]   ;;  %v1984_v18 = vld [vmem:[%s2907_s1 + $0xf8] sm:$0xff]  }
   0x7   :  { %1103 = vmatpush1.bf16.msra.mxu1 %v1970_v4  ;;  %927 = vmatprep.subr.bf16.mxu0 %v2129_v0  ;;  %v2001_v19 = vld [vmem:[%s2908_s0 + $0x4] ss:$20 sps:$4 sm:$0xff]   ;;  %v1985_v20 = vld [vmem:[%s2907_s1 + $0x70] sm:$0xff]   ;;  %v2004_v21 = vld [vmem:[%s2908_s0 + $0xc] ss:$20 sps:$4 sm:$0xff]  }
   0x8   :  { %1104 = vmatprep.subr.bf16.mxu1 %v2129_v0  ;;  %v1986_v22 = vld [vmem:[%s2907_s1 + $0xf0] sm:$0xff]   ;;  %955 = vmatprep.mubr.bf16.mxu0 %v2001_v19  ;;  %v1987_v23 = vld [vmem:[%s2907_s1 + $0x68] sm:$0xff]   ;;  %v1989_v25 = vld [vmem:[%s2907_s1 + $0x60] sm:$0xff]  }
   0x9   :  { %1132 = vmatprep.mubr.bf16.mxu1 %v2004_v21  ;;  %v1988_v24 = vld [vmem:[%s2907_s1 + $0xe8] sm:$0xff]   ;;  %v1990_v26 = vld [vmem:[%s2907_s1 + $0xe0] sm:$0xff]   ;;  %v1991_v27 = vld [vmem:[%s2907_s1 + $0x58] sm:$0xff]  }
   0xa   :  { %928 = vmatpush1.bf16.msra.mxu0 %v1971_v5  ;;  %v1992_v28 = vld [vmem:[%s2907_s1 + $0xd8] sm:$0xff]   ;;  %v1993_v29 = vld [vmem:[%s2907_s1 + $0x50] sm:$0xff]   ;;  %v1995_v31 = vld [vmem:[%s2907_s1 + $0x48] sm:$0xff]  }
   0xb   :  { %1105 = vmatpush1.bf16.msra.mxu1 %v1972_v6  ;;  %929 = vmatprep.subr.bf16.mxu0 %v2129_v0  ;;  %v1994_v30 = vld [vmem:[%s2907_s1 + $0xd0] sm:$0xff]   ;;  %v1996_v32 = vld [vmem:[%s2907_s1 + $0xc8] sm:$0xff]   ;;  %v1997_v33 = vld [vmem:[%s2907_s1 + $0x40] sm:$0xff]  }
   0xc   :  { %1106 = vmatprep.subr.bf16.mxu1 %v2129_v0  ;;  %v1998_v34 = vld [vmem:[%s2907_s1 + $0xc0] sm:$0xff]   ;;  %v2005_v35 = vld [vmem:[%s2907_s1 + $0x118] sm:$0xff]   ;;  %v2008_v39 = vld [vmem:[%s2908_s0 + $0x34] ss:$20 sps:$4 sm:$0xff]  }
   0xd   :  { %v1999_v36 = vld [vmem:[%s2908_s0] ss:$20 sps:$4 sm:$0xff]   ;;  %v2002_v37 = vld [vmem:[%s2908_s0 + $0x8] ss:$20 sps:$4 sm:$0xff]   ;;  %v2011_v43 = vld [vmem:[%s2908_s0 + $0x30] ss:$20 sps:$4 sm:$0xff]  }
   0xe   :  { %930 = vmatpush1.bf16.msra.mxu0 %v1973_v7  ;;  %v2006_v38 = vld [vmem:[%s2908_s0 + $0x2c] ss:$20 sps:$4 sm:$0xff]   ;;  %v2030_v40 = vld [vmem:[%s2907_s1 + $0x110] sm:$0xff]   ;;  %v2010_v42 = vld [vmem:[%s2908_s0 + $0x28] ss:$20 sps:$4 sm:$0xff]  }
   0xf   :  { %1107 = vmatpush1.bf16.msra.mxu1 %v1974_v8  ;;  %931 = vmatprep.subr.bf16.mxu0 %v2129_v0  ;;  %v2061_v41 = vld [vmem:[%s2907_s1 + $0x108] sm:$0xff]   ;;  %v2014_v45 = vld [vmem:[%s2908_s0 + $0x5c] ss:$20 sps:$4 sm:$0xff]   ;;  %v2086_v46 = vld [vmem:[%s2907_s1 + $0x100] sm:$0xff]  }
  0x10   :  { %1108 = vmatprep.subr.bf16.mxu1 %v2129_v0  ;;  %v2012_v44 = vld [vmem:[%s2908_s0 + $0x54] ss:$20 sps:$4 sm:$0xff]   ;;  %v2016_v47 = vld [vmem:[%s2908_s0 + $0x50] ss:$20 sps:$4 sm:$0xff]   ;;  %v2017_v48 = vld [vmem:[%s2908_s0 + $0x58] ss:$20 sps:$4 sm:$0xff]  }
  0x11   :  { %v2018_v49 = vld [vmem:[%s2908_s0 + $0x7c] ss:$20 sps:$4 sm:$0xff]   ;;  %v2020_v50 = vld [vmem:[%s2908_s0 + $0x84] ss:$20 sps:$4 sm:$0xff]   ;;  %v2023_v52 = vld [vmem:[%s2908_s0 + $0x80] ss:$20 sps:$4 sm:$0xff]  }
  0x12   :  { %932 = vmatpush1.bf16.msra.mxu0 %v1975_v9  ;;  %v2022_v51 = vld [vmem:[%s2908_s0 + $0x78] ss:$20 sps:$4 sm:$0xff]   ;;  %v2028_v55 = vld [vmem:[%s2908_s0 + $0xa0] ss:$20 sps:$4 sm:$0xff]   ;;  %v2029_v56 = vld [vmem:[%s2908_s0 + $0xa8] ss:$20 sps:$4 sm:$0xff]  }
  0x13   :  { %1109 = vmatpush1.bf16.msra.mxu1 %v1976_v10  ;;  %933 = vmatprep.subr.bf16.mxu0 %v2129_v0  ;;  %v2024_v53 = vld [vmem:[%s2908_s0 + $0xa4] ss:$20 sps:$4 sm:$0xff]   ;;  %v2026_v54 = vld [vmem:[%s2908_s0 + $0xac] ss:$20 sps:$4 sm:$0xff]   ;;  %v2033_v58 = vld [vmem:[%s2908_s0 + $0xd4] ss:$20 sps:$4 sm:$0xff]  }
  0x14   :  { %1110 = vmatprep.subr.bf16.mxu1 %v2129_v0  ;;  %v2031_v57 = vld [vmem:[%s2908_s0 + $0xcc] ss:$20 sps:$4 sm:$0xff]   ;;  %v2035_v59 = vld [vmem:[%s2908_s0 + $0xc8] ss:$20 sps:$4 sm:$0xff]   ;;  %v2036_v60 = vld [vmem:[%s2908_s0 + $0xd0] ss:$20 sps:$4 sm:$0xff]  }
  0x15   :  { %v2037_v61 = vld [vmem:[%s2908_s0 + $0xf4] ss:$20 sps:$4 sm:$0xff]   ;;  %v2039_v62 = vld [vmem:[%s2908_s0 + $0xfc] ss:$20 sps:$4 sm:$0xff]   ;;  %v2045_v2 = vld [vmem:[%s2908_s0 + $0x124] ss:$20 sps:$4 sm:$0xff]  }
  0x16   :  { %934 = vmatpush1.bf16.msra.mxu0 %v1977_v11  ;;  %v2041_v63 = vld [vmem:[%s2908_s0 + $0xf0] ss:$20 sps:$4 sm:$0xff]   ;;  %v2047_v3 = vld [vmem:[%s2908_s0 + $0x118] ss:$20 sps:$4 sm:$0xff]   ;;  %v2048_v4 = vld [vmem:[%s2908_s0 + $0x120] ss:$20 sps:$4 sm:$0xff]  }
  0x17   :  { %1111 = vmatpush1.bf16.msra.mxu1 %v1978_v12  ;;  %935 = vmatprep.subr.bf16.mxu0 %v2129_v0  ;;  %v2043_v1 = vld [vmem:[%s2908_s0 + $0x11c] ss:$20 sps:$4 sm:$0xff]   ;;  %v2049_v5 = vld [vmem:[%s2908_s0 + $0x144] ss:$20 sps:$4 sm:$0xff]   ;;  %v2051_v6 = vld [vmem:[%s2908_s0 + $0x14c] ss:$20 sps:$4 sm:$0xff]  }
  0x18   :  { %1112 = vmatprep.subr.bf16.mxu1 %v2129_v0  ;;  %v2053_v7 = vld [vmem:[%s2908_s0 + $0x140] ss:$20 sps:$4 sm:$0xff]   ;;  %v2054_v8 = vld [vmem:[%s2908_s0 + $0x148] ss:$20 sps:$4 sm:$0xff]   ;;  %v2060_v12 = vld [vmem:[%s2908_s0 + $0x170] ss:$20 sps:$4 sm:$0xff]  }
  0x19   :  { %v2055_v9 = vld [vmem:[%s2908_s0 + $0x16c] ss:$20 sps:$4 sm:$0xff]   ;;  %v2057_v10 = vld [vmem:[%s2908_s0 + $0x174] ss:$20 sps:$4 sm:$0xff]   ;;  %v2074_v21 = vld [vmem:[%s2908_s0 + $0x1e4] ss:$20 sps:$4 sm:$0xff]  }
  0x1a   :  { %936 = vmatpush1.bf16.msra.mxu0 %v1979_v13  ;;  %v2059_v11 = vld [vmem:[%s2908_s0 + $0x168] ss:$20 sps:$4 sm:$0xff]   ;;  %v2072_v19 = vld [vmem:[%s2908_s0 + $0x1b8] ss:$20 sps:$4 sm:$0xff]  }
  0x1b   :  { %1113 = vmatpush1.bf16.msra.mxu1 %v1980_v14  ;;  %937 = vmatprep.subr.bf16.mxu0 %v2129_v0  ;;  %v2062_v13 = vld [vmem:[%s2908_s0 + $0x194] ss:$20 sps:$4 sm:$0xff]   ;;  %v2064_v14 = vld [vmem:[%s2908_s0 + $0x19c] ss:$20 sps:$4 sm:$0xff]  }
  0x1c   :  { %1114 = vmatprep.subr.bf16.mxu1 %v2129_v0 }
  0x1e   :  { %938 = vmatpush1.bf16.msra.mxu0 %v1981_v15  ;;  %v2066_v15 = vld [vmem:[%s2908_s0 + $0x190] ss:$20 sps:$4 sm:$0xff]  }
  0x1f   :  { %1115 = vmatpush1.bf16.msra.mxu1 %v1982_v16  ;;  %939 = vmatprep.subr.bf16.mxu0 %v2129_v0  ;;  %v2067_v16 = vld [vmem:[%s2908_s0 + $0x198] ss:$20 sps:$4 sm:$0xff]  }
  0x20   :  { %1116 = vmatprep.subr.bf16.mxu1 %v2129_v0 }
  0x22   :  { %940 = vmatpush2.bf16.msra.mxu0 %v1983_v17  ;;  %v2068_v17 = vld [vmem:[%s2908_s0 + $0x1bc] ss:$20 sps:$4 sm:$0xff]  }
  0x23   :  { %1117 = vmatpush2.bf16.msra.mxu1 %v1984_v18  ;;  %941 = vmatprep.subr.bf16.mxu0 %v2129_v0  ;;  %v2070_v18 = vld [vmem:[%s2908_s0 + $0x1c4] ss:$20 sps:$4 sm:$0xff]  }
  0x24   :  { %1118 = vmatprep.subr.bf16.mxu1 %v2129_v0 }
  0x26   :  { %942 = vmatpush2.bf16.msra.mxu0 %v1985_v20  ;;  %v2073_v20 = vld [vmem:[%s2908_s0 + $0x1c0] ss:$20 sps:$4 sm:$0xff]  }
  0x27   :  { %1119 = vmatpush2.bf16.msra.mxu1 %v1986_v22  ;;  %943 = vmatprep.subr.bf16.mxu0 %v2129_v0  ;;  %v2076_v22 = vld [vmem:[%s2908_s0 + $0x1ec] ss:$20 sps:$4 sm:$0xff]  }
  0x28   :  { %1120 = vmatprep.subr.bf16.mxu1 %v2129_v0 }
  0x2a   :  { %944 = vmatpush2.bf16.msra.mxu0 %v1987_v23  ;;  %v2078_v23 = vld [vmem:[%s2908_s0 + $0x1e0] ss:$20 sps:$4 sm:$0xff]  }
  0x2b   :  { %1121 = vmatpush2.bf16.msra.mxu1 %v1988_v24  ;;  %945 = vmatprep.subr.bf16.mxu0 %v2129_v0  ;;  %v2079_v24 = vld [vmem:[%s2908_s0 + $0x1e8] ss:$20 sps:$4 sm:$0xff]  }
  0x2c   :  { %1122 = vmatprep.subr.bf16.mxu1 %v2129_v0 }
  0x2e   :  { %946 = vmatpush2.bf16.msra.mxu0 %v1989_v25  ;;  %v2080_v25 = vld [vmem:[%s2908_s0 + $0x20c] ss:$20 sps:$4 sm:$0xff]  }
  0x2f   :  { %1123 = vmatpush2.bf16.msra.mxu1 %v1990_v26  ;;  %947 = vmatprep.subr.bf16.mxu0 %v2129_v0  ;;  %v2082_v26 = vld [vmem:[%s2908_s0 + $0x214] ss:$20 sps:$4 sm:$0xff]  }
  0x30   :  { %1124 = vmatprep.subr.bf16.mxu1 %v2129_v0 }
  0x32   :  { %948 = vmatpush2.bf16.msra.mxu0 %v1991_v27  ;;  %v2084_v27 = vld [vmem:[%s2908_s0 + $0x208] ss:$20 sps:$4 sm:$0xff]  }
  0x33   :  { %1125 = vmatpush2.bf16.msra.mxu1 %v1992_v28  ;;  %949 = vmatprep.subr.bf16.mxu0 %v2129_v0  ;;  %v2085_v28 = vld [vmem:[%s2908_s0 + $0x210] ss:$20 sps:$4 sm:$0xff]  }
  0x34   :  { %1126 = vmatprep.subr.bf16.mxu1 %v2129_v0 }
  0x36   :  { %950 = vmatpush2.bf16.msra.mxu0 %v1993_v29  ;;  %v2087_v29 = vld [vmem:[%s2908_s0 + $0x234] ss:$20 sps:$4 sm:$0xff]  }
  0x37   :  { %1127 = vmatpush2.bf16.msra.mxu1 %v1994_v30  ;;  %951 = vmatprep.subr.bf16.mxu0 %v2129_v0  ;;  %v2089_v30 = vld [vmem:[%s2908_s0 + $0x23c] ss:$20 sps:$4 sm:$0xff]  }
  0x38   :  { %1128 = vmatprep.subr.bf16.mxu1 %v2129_v0 }
  0x3a   :  { %952 = vmatpush2.bf16.msra.mxu0 %v1995_v31  ;;  %v2091_v31 = vld [vmem:[%s2908_s0 + $0x230] ss:$20 sps:$4 sm:$0xff]  }
  0x3b   :  { %1129 = vmatpush2.bf16.msra.mxu1 %v1996_v32  ;;  %953 = vmatprep.subr.bf16.mxu0 %v2129_v0  ;;  %v2092_v32 = vld [vmem:[%s2908_s0 + $0x238] ss:$20 sps:$4 sm:$0xff]  }
  0x3c   :  { %1130 = vmatprep.subr.bf16.mxu1 %v2129_v0  ;;  %v2042_v0 = vld [vmem:[%s2908_s0 + $0xf8] ss:$20 sps:$4 sm:$0xff]  }
  0x3e   :  { %954 = vmatpush2.bf16.msra.mxu0 %v1997_v33  ;;  %v2093_v33 = vld [vmem:[%s2908_s0 + $0x25c] ss:$20 sps:$4 sm:$0xff]  }
  0x3f   :  { %1131 = vmatpush2.bf16.msra.mxu1 %v1998_v34  ;;  %1914 = vmatprep.subr.bf16.mxu0 %v2005_v35  ;;  %v2095_v34 = vld [vmem:[%s2908_s0 + $0x264] ss:$20 sps:$4 sm:$0xff]  }
  0x40   :  { %1958 = vmatprep.subr.bf16.mxu1 %v2005_v35 }
  0x41   :  { %956 = vmatmul.mubr.bf16.vlgmr.msra.gmra.mxu0 %v1999_v36  ;;  %v2098_v36 = vld [vmem:[%s2908_s0 + $0x260] ss:$20 sps:$4 sm:$0xff]  }
  0x42   :  { %1133 = vmatmul.mubr.bf16.vlgmr.msra.gmra.mxu1 %v2002_v37  ;;  %1915 = vmatpush3.bf16.msra.mxu0 %v2005_v35  ;;  %v2099_v37 = vld [vmem:[%s2908_s0 + $0x284] ss:$20 sps:$4 sm:$0xff]  }
  0x43   :  { %963 = vmatprep.mubr.bf16.mxu0 %v2006_v38  ;;  %1140 = vmatprep.mubr.bf16.mxu1 %v2008_v39  ;;  %v2101_v38 = vld [vmem:[%s2908_s0 + $0x28c] ss:$20 sps:$4 sm:$0xff]  }
  0x44   :  { %1962 = vmatpush3.bf16.msra.mxu1 %v2005_v35  ;;  %1916 = vmatprep.subr.bf16.mxu0 %v2030_v40  ;;  %v2097_v35 = vld [vmem:[%s2908_s0 + $0x258] ss:$20 sps:$4 sm:$0xff]   ;;  %v2103_v39 = vld [vmem:[%s2908_s0 + $0x280] ss:$20 sps:$4 sm:$0xff]  }
  0x45   :  { %1959 = vmatprep.subr.bf16.mxu1 %v2030_v40 }
  0x46   :  { %1917 = vmatpush3.bf16.msra.mxu0 %v2030_v40 }
  0x47   :  { %1918 = vmatprep.subr.bf16.mxu0 %v2061_v41 }
  0x48   :  { %1963 = vmatpush3.bf16.msra.mxu1 %v2030_v40  ;;  %v2104_v40 = vld [vmem:[%s2908_s0 + $0x288] ss:$20 sps:$4 sm:$0xff]  }
  0x49   :  { %964 = vmatmul.mubr.bf16.gmra.mxu0 %v2010_v42  ;;  %1960 = vmatprep.subr.bf16.mxu1 %v2061_v41  ;;  %v2107_v42 = vld [vmem:[%s2908_s0 + $0x2b4] ss:$20 sps:$4 sm:$0xff]  }
  0x4a   :  { %1141 = vmatmul.mubr.bf16.gmra.mxu1 %v2011_v43  ;;  %971 = vmatprep.mubr.bf16.mxu0 %v2012_v44  ;;  %v2109_v43 = vld [vmem:[%s2908_s0 + $0x2a8] ss:$20 sps:$4 sm:$0xff]   ;;  %v2110_v44 = vld [vmem:[%s2908_s0 + $0x2b0] ss:$20 sps:$4 sm:$0xff]  }
  0x4b   :  { %1148 = vmatprep.mubr.bf16.mxu1 %v2014_v45  ;;  %1919 = vmatpush3.bf16.msra.mxu0 %v2061_v41  ;;  %v2111_v45 = vld [vmem:[%s2908_s0 + $0x10] ss:$20 sps:$4 sm:$0xff]  }
  0x4c   :  { %1964 = vmatpush3.bf16.msra.mxu1 %v2061_v41  ;;  %1920 = vmatprep.subr.bf16.mxu0 %v2086_v46  ;;  %v2105_v41 = vld [vmem:[%s2908_s0 + $0x2ac] ss:$20 sps:$4 sm:$0xff]  }
  0x4d   :  { %1961 = vmatprep.subr.bf16.mxu1 %v2086_v46 }
  0x4f   :  { %1921 = vmatpush3.bf16.msra.mxu0 %v2086_v46 }
  0x50   :  { %1965 = vmatpush3.bf16.msra.mxu1 %v2086_v46  ;;  %v2112_v46 = vld [vmem:[%s2908_s0 + $0x1a0] ss:$20 sps:$4 sm:$0xff]  }
  0x51   :  { %972 = vmatmul.mubr.bf16.gmra.mxu0 %v2016_v47  ;;  %v2113_v47 = vld [vmem:[%s2908_s0 + $0x38] ss:$20 sps:$4 sm:$0xff]  }
  0x52   :  { %1149 = vmatmul.mubr.bf16.gmra.mxu1 %v2017_v48  ;;  %979 = vmatprep.mubr.bf16.mxu0 %v2018_v49  ;;  %v2114_v48 = vld [vmem:[%s2908_s0 + $0x1c8] ss:$20 sps:$4 sm:$0xff]   ;;  %v2115_v49 = vld [vmem:[%s2908_s0 + $0x60] ss:$20 sps:$4 sm:$0xff]  }
  0x53   :  { %1156 = vmatprep.mubr.bf16.mxu1 %v2020_v50  ;;  %v2116_v50 = vld [vmem:[%s2908_s0 + $0x1f0] ss:$20 sps:$4 sm:$0xff]  }
  0x59   :  { %980 = vmatmul.mubr.bf16.gmra.mxu0 %v2022_v51  ;;  %v2117_v51 = vld [vmem:[%s2908_s0 + $0x88] ss:$20 sps:$4 sm:$0xff]  }
  0x5a   :  { %1157 = vmatmul.mubr.bf16.gmra.mxu1 %v2023_v52  ;;  %987 = vmatprep.mubr.bf16.mxu0 %v2024_v53  ;;  %v2118_v52 = vld [vmem:[%s2908_s0 + $0x218] ss:$20 sps:$4 sm:$0xff]   ;;  %v2119_v53 = vld [vmem:[%s2908_s0 + $0xb0] ss:$20 sps:$4 sm:$0xff]  }
  0x5b   :  { %1164 = vmatprep.mubr.bf16.mxu1 %v2026_v54  ;;  %v2120_v54 = vld [vmem:[%s2908_s0 + $0x240] ss:$20 sps:$4 sm:$0xff]  }
  0x61   :  { %988 = vmatmul.mubr.bf16.gmra.mxu0 %v2028_v55  ;;  %v2121_v55 = vld [vmem:[%s2908_s0 + $0xd8] ss:$20 sps:$4 sm:$0xff]  }
  0x62   :  { %1165 = vmatmul.mubr.bf16.gmra.mxu1 %v2029_v56  ;;  %995 = vmatprep.mubr.bf16.mxu0 %v2031_v57  ;;  %v2122_v56 = vld [vmem:[%s2908_s0 + $0x268] ss:$20 sps:$4 sm:$0xff]   ;;  %v2123_v57 = vld [vmem:[%s2908_s0 + $0x100] ss:$20 sps:$4 sm:$0xff]  }
  0x63   :  { %1172 = vmatprep.mubr.bf16.mxu1 %v2033_v58  ;;  %v2124_v58 = vld [vmem:[%s2908_s0 + $0x290] ss:$20 sps:$4 sm:$0xff]  }
  0x69   :  { %996 = vmatmul.mubr.bf16.gmra.mxu0 %v2035_v59  ;;  %v2125_v59 = vld [vmem:[%s2908_s0 + $0x128] ss:$20 sps:$4 sm:$0xff]  }
  0x6a   :  { %1173 = vmatmul.mubr.bf16.gmra.mxu1 %v2036_v60  ;;  %1003 = vmatprep.mubr.bf16.mxu0 %v2037_v61  ;;  %v2126_v60 = vld [vmem:[%s2908_s0 + $0x2b8] ss:$20 sps:$4 sm:$0xff]   ;;  %v2127_v61 = vld [vmem:[%s2908_s0 + $0x150] ss:$20 sps:$4 sm:$0xff]  }
  0x6b   :  { %1180 = vmatprep.mubr.bf16.mxu1 %v2039_v62  ;;  %v2128_v62 = vld [vmem:[%s2908_s0 + $0x178] ss:$20 sps:$4 sm:$0xff]  }
  0x71   :  { %1004 = vmatmul.mubr.bf16.gmra.mxu0 %v2041_v63  ;;  %v2581_v63 = vld [vmem:[%s2909_s2] ss:$0 sm:$0xff] }
  0x72   :  { %1181 = vmatmul.mubr.bf16.gmra.mxu1 %v2042_v0  ;;  %1011 = vmatprep.mubr.bf16.mxu0 %v2043_v1 }
  0x73   :  { %1188 = vmatprep.mubr.bf16.mxu1 %v2045_v2 }
  0x79   :  { %1012 = vmatmul.mubr.bf16.gmra.mxu0 %v2047_v3 }
  0x7a   :  { %1189 = vmatmul.mubr.bf16.gmra.mxu1 %v2048_v4  ;;  %1019 = vmatprep.mubr.bf16.mxu0 %v2049_v5 }
  0x7b   :  { %1196 = vmatprep.mubr.bf16.mxu1 %v2051_v6 }
  0x81   :  { %1020 = vmatmul.mubr.bf16.gmra.mxu0 %v2053_v7 }
  0x82   :  { %1197 = vmatmul.mubr.bf16.gmra.mxu1 %v2054_v8  ;;  %1027 = vmatprep.mubr.bf16.mxu0 %v2055_v9 }
  0x83   :  { %1204 = vmatprep.mubr.bf16.mxu1 %v2057_v10 }
  0x89   :  { %1028 = vmatmul.mubr.bf16.gmra.mxu0 %v2059_v11 }
  0x8a   :  { %1205 = vmatmul.mubr.bf16.gmra.mxu1 %v2060_v12  ;;  %1035 = vmatprep.mubr.bf16.mxu0 %v2062_v13 }
  0x8b   :  { %1212 = vmatprep.mubr.bf16.mxu1 %v2064_v14 }
  0x91   :  { %1036 = vmatmul.mubr.bf16.gmra.mxu0 %v2066_v15 }
  0x92   :  { %1213 = vmatmul.mubr.bf16.gmra.mxu1 %v2067_v16  ;;  %1043 = vmatprep.mubr.bf16.mxu0 %v2068_v17 }
  0x93   :  { %1220 = vmatprep.mubr.bf16.mxu1 %v2070_v18 }
  0x99   :  { %1044 = vmatmul.mubr.bf16.gmra.mxu0 %v2072_v19 }
  0x9a   :  { %1221 = vmatmul.mubr.bf16.gmra.mxu1 %v2073_v20  ;;  %1051 = vmatprep.mubr.bf16.mxu0 %v2074_v21 }
  0x9b   :  { %1228 = vmatprep.mubr.bf16.mxu1 %v2076_v22 }
  0xa1   :  { %1052 = vmatmul.mubr.bf16.gmra.mxu0 %v2078_v23 }
  0xa2   :  { %1229 = vmatmul.mubr.bf16.gmra.mxu1 %v2079_v24  ;;  %1059 = vmatprep.mubr.bf16.mxu0 %v2080_v25 }
  0xa3   :  { %1236 = vmatprep.mubr.bf16.mxu1 %v2082_v26 }
  0xa9   :  { %1060 = vmatmul.mubr.bf16.gmra.mxu0 %v2084_v27 }
  0xaa   :  { %1237 = vmatmul.mubr.bf16.gmra.mxu1 %v2085_v28  ;;  %1067 = vmatprep.mubr.bf16.mxu0 %v2087_v29 }
  0xab   :  { %1244 = vmatprep.mubr.bf16.mxu1 %v2089_v30 }
  0xb1   :  { %1068 = vmatmul.mubr.bf16.gmra.mxu0 %v2091_v31 }
  0xb2   :  { %1245 = vmatmul.mubr.bf16.gmra.mxu1 %v2092_v32  ;;  %1075 = vmatprep.mubr.bf16.mxu0 %v2093_v33 }
  0xb3   :  { %1252 = vmatprep.mubr.bf16.mxu1 %v2095_v34 }
  0xb9   :  { %1076 = vmatmul.mubr.bf16.gmra.mxu0 %v2097_v35 }
  0xba   :  { %1253 = vmatmul.mubr.bf16.gmra.mxu1 %v2098_v36  ;;  %1083 = vmatprep.mubr.bf16.mxu0 %v2099_v37 }
  0xbb   :  { %1260 = vmatprep.mubr.bf16.mxu1 %v2101_v38 }
  0xc1   :  { %1084 = vmatmul.mubr.bf16.gmra.mxu0 %v2103_v39 }
  0xc2   :  { %1261 = vmatmul.mubr.bf16.gmra.mxu1 %v2104_v40  ;;  %1091 = vmatprep.mubr.bf16.mxu0 %v2105_v41 }
  0xc3   :  { %1268 = vmatprep.mubr.bf16.mxu1 %v2107_v42 }
  0xc9   :  { %1092 = vmatmul.mubr.bf16.gmra.mxu0 %v2109_v43 }
  0xca   :  { %1269 = vmatmul.mubr.bf16.gmra.mxu1 %v2110_v44  ;;  %1922 = vmatprep.mubr.msk.bf16.mxu0 %vm868_vm0, %v2111_v45 }
  0xcb   :  { %1942 = vmatprep.mubr.msk.bf16.mxu1 %vm868_vm0, %v2112_v46 }
  0xd1   :  { %1923 = vmatmul.mubr.msk.bf16.vlgmr.msra.gmra.mxu0 %vm868_vm0, %v2113_v47 }
  0xd2   :  { %1943 = vmatmul.mubr.msk.bf16.vlgmr.msra.gmra.mxu1 %vm868_vm0, %v2114_v48  ;;  %1926 = vmatprep.mubr.msk.bf16.mxu0 %vm868_vm0, %v2115_v49 }
  0xd3   :  { %1946 = vmatprep.mubr.msk.bf16.mxu1 %vm868_vm0, %v2116_v50 }
  0xd9   :  { %1927 = vmatmul.mubr.msk.bf16.gmra.mxu0 %vm868_vm0, %v2117_v51 }
  0xda   :  { %1947 = vmatmul.mubr.msk.bf16.gmra.mxu1 %vm868_vm0, %v2118_v52  ;;  %1930 = vmatprep.mubr.msk.bf16.mxu0 %vm868_vm0, %v2119_v53 }
  0xdb   :  { %1950 = vmatprep.mubr.msk.bf16.mxu1 %vm868_vm0, %v2120_v54 }
  0xe1   :  { %1931 = vmatmul.mubr.msk.bf16.gmra.mxu0 %vm868_vm0, %v2121_v55 }
  0xe2   :  { %1951 = vmatmul.mubr.msk.bf16.gmra.mxu1 %vm868_vm0, %v2122_v56  ;;  %1934 = vmatprep.mubr.msk.bf16.mxu0 %vm868_vm0, %v2123_v57 }
  0xe3   :  { %1954 = vmatprep.mubr.msk.bf16.mxu1 %vm868_vm0, %v2124_v58 }
  0xe9   :  { %1935 = vmatmul.mubr.msk.bf16.gmra.mxu0 %vm868_vm0, %v2125_v59 }
  0xea   :  { %1955 = vmatmul.mubr.msk.bf16.gmra.mxu1 %vm868_vm0, %v2126_v60  ;;  %1938 = vmatprep.mubr.msk.bf16.mxu0 %vm868_vm0, %v2127_v61 }
  0xf1   :  { %1939 = vmatmul.mubr.msk.bf16.gmra.mxu0 %vm868_vm0, %v2128_v62 }
 0x101   :  { %v957_v0 = vpop.f32.mrf.mxu0 }
 0x102   :  { %v958_v1 = vadd.f32 %v2581_v63, %v957_v0  ;;  %v1134_v2 = vpop.f32.mrf.mxu1 }
 0x103   :  { %v959_v3 = vpop.f32.mrf.mxu0 }
 0x104   :  { %v2584_v4 = vadd.f32 %v1134_v2, %v958_v1  ;;  %v1136_v5 = vpop.f32.mrf.mxu1 }
 0x105   :  { %v960_v6 = vpop.f32.mrf.mxu0 }
 0x106   :  { %v961_v7 = vadd.f32 %v2581_v63, %v960_v6  ;;  %v1137_v8 = vpop.f32.mrf.mxu1 }
 0x107   :  { %v962_v9 = vpop.f32.mrf.mxu0 }
 0x108   :  { %v2587_v10 = vadd.f32 %v1137_v8, %v961_v7  ;;  %v1139_v11 = vpop.f32.mrf.mxu1 }
 0x109   :  { %v965_v12 = vpop.f32.mrf.mxu0 }
 0x10a   :  { %v966_v13 = vadd.f32 %v2581_v63, %v965_v12  ;;  %v1142_v14 = vpop.f32.mrf.mxu1 }
 0x10b   :  { %v967_v15 = vpop.f32.mrf.mxu0 }
 0x10c   :  { %v2590_v16 = vadd.f32 %v1142_v14, %v966_v13  ;;  %v1144_v17 = vpop.f32.mrf.mxu1 }
 0x10d   :  { %v968_v18 = vpop.f32.mrf.mxu0 }
 0x10e   :  { %v969_v19 = vadd.f32 %v2581_v63, %v968_v18  ;;  %v1145_v20 = vpop.f32.mrf.mxu1 }
 0x10f   :  { %v970_v21 = vpop.f32.mrf.mxu0 }
 0x110   :  { %v2593_v22 = vadd.f32 %v1145_v20, %v969_v19  ;;  %v1147_v23 = vpop.f32.mrf.mxu1 }
 0x111   :  { %v973_v24 = vpop.f32.mrf.mxu0 }
 0x112   :  { %v974_v25 = vadd.f32 %v2581_v63, %v973_v24  ;;  %v1150_v26 = vpop.f32.mrf.mxu1 }
 0x113   :  { %v975_v27 = vpop.f32.mrf.mxu0 }
 0x114   :  { %v2596_v28 = vadd.f32 %v1150_v26, %v974_v25  ;;  %v1152_v29 = vpop.f32.mrf.mxu1 }
 0x115   :  { %v976_v30 = vpop.f32.mrf.mxu0 }
 0x116   :  { %v977_v31 = vadd.f32 %v2581_v63, %v976_v30  ;;  %v1153_v32 = vpop.f32.mrf.mxu1 }
 0x117   :  { %v978_v33 = vpop.f32.mrf.mxu0 }
 0x118   :  { %v2599_v34 = vadd.f32 %v1153_v32, %v977_v31  ;;  %v1155_v35 = vpop.f32.mrf.mxu1 }
 0x119   :  { %v981_v36 = vpop.f32.mrf.mxu0 }
 0x11a   :  { %v982_v37 = vadd.f32 %v2581_v63, %v981_v36  ;;  %v1158_v38 = vpop.f32.mrf.mxu1 }
 0x11b   :  { %v983_v39 = vpop.f32.mrf.mxu0 }
 0x11c   :  { %v2602_v40 = vadd.f32 %v1158_v38, %v982_v37  ;;  %v1160_v41 = vpop.f32.mrf.mxu1 }
 0x11d   :  { %v984_v42 = vpop.f32.mrf.mxu0 }
 0x11e   :  { %v985_v43 = vadd.f32 %v2581_v63, %v984_v42  ;;  %v1161_v44 = vpop.f32.mrf.mxu1 }
 0x11f   :  { %v986_v45 = vpop.f32.mrf.mxu0 }
 0x120   :  { %v2605_v46 = vadd.f32 %v1161_v44, %v985_v43  ;;  %v1163_v47 = vpop.f32.mrf.mxu1 }
 0x121   :  { %v989_v48 = vpop.f32.mrf.mxu0 }
 0x122   :  { %v990_v49 = vadd.f32 %v2581_v63, %v989_v48  ;;  %v1166_v50 = vpop.f32.mrf.mxu1 }
 0x123   :  { %v991_v51 = vpop.f32.mrf.mxu0 }
 0x124   :  { %v2608_v52 = vadd.f32 %v1166_v50, %v990_v49  ;;  %v1168_v53 = vpop.f32.mrf.mxu1 }
 0x125   :  { %v992_v54 = vpop.f32.mrf.mxu0 }
 0x126   :  { %v993_v55 = vadd.f32 %v2581_v63, %v992_v54  ;;  %v1169_v56 = vpop.f32.mrf.mxu1 }
 0x127   :  { %v994_v57 = vpop.f32.mrf.mxu0 }
 0x128   :  { %v2611_v58 = vadd.f32 %v1169_v56, %v993_v55  ;;  %v1171_v59 = vpop.f32.mrf.mxu1 }
 0x129   :  { %v997_v60 = vpop.f32.mrf.mxu0 }
 0x12a   :  { %v998_v61 = vadd.f32 %v2581_v63, %v997_v60  ;;  %v1174_v62 = vpop.f32.mrf.mxu1 }
 0x12b   :  { %v999_v0 = vpop.f32.mrf.mxu0 }
 0x12c   :  { %v2614_v1 = vadd.f32 %v1174_v62, %v998_v61  ;;  %v1176_v2 = vpop.f32.mrf.mxu1 }
 0x12d   :  { %v1000_v3 = vpop.f32.mrf.mxu0 }
 0x12e   :  { %v1001_v5 = vadd.f32 %v2581_v63, %v1000_v3  ;;  %v1177_v6 = vpop.f32.mrf.mxu1 }
 0x12f   :  { %v1002_v7 = vpop.f32.mrf.mxu0 }
 0x130   :  { %v2617_v8 = vadd.f32 %v1177_v6, %v1001_v5  ;;  %v1179_v9 = vpop.f32.mrf.mxu1 }
 0x131   :  { %v1005_v11 = vpop.f32.mrf.mxu0 }
 0x132   :  { %v1006_v12 = vadd.f32 %v2581_v63, %v1005_v11  ;;  %v1182_v13 = vpop.f32.mrf.mxu1 }
 0x133   :  { %v1007_v14 = vpop.f32.mrf.mxu0 }
 0x134   :  { %v2620_v15 = vadd.f32 %v1182_v13, %v1006_v12  ;;  %v1184_v17 = vpop.f32.mrf.mxu1 }
 0x135   :  { %v1008_v18 = vpop.f32.mrf.mxu0 }
 0x136   :  { %v1009_v19 = vadd.f32 %v2581_v63, %v1008_v18  ;;  %v1185_v20 = vpop.f32.mrf.mxu1 }
 0x137   :  { %v1010_v21 = vpop.f32.mrf.mxu0 }
 0x138   :  { %v2623_v23 = vadd.f32 %v1185_v20, %v1009_v19  ;;  %v1187_v24 = vpop.f32.mrf.mxu1 }
 0x139   :  { %v1013_v25 = vpop.f32.mrf.mxu0 }
 0x13a   :  { %v1014_v26 = vadd.f32 %v2581_v63, %v1013_v25  ;;  %v1190_v27 = vpop.f32.mrf.mxu1 }
 0x13b   :  { %v1015_v29 = vpop.f32.mrf.mxu0 }
 0x13c   :  { %v2626_v30 = vadd.f32 %v1190_v27, %v1014_v26  ;;  %v1192_v31 = vpop.f32.mrf.mxu1 }
 0x13d   :  { %v1016_v32 = vpop.f32.mrf.mxu0 }
 0x13e   :  { %v1017_v33 = vadd.f32 %v2581_v63, %v1016_v32  ;;  %v1193_v35 = vpop.f32.mrf.mxu1 }
 0x13f   :  { %v1018_v36 = vpop.f32.mrf.mxu0 }
 0x140   :  { %v2629_v37 = vadd.f32 %v1193_v35, %v1017_v33  ;;  %v1195_v38 = vpop.f32.mrf.mxu1 }
 0x141   :  { %v1021_v39 = vpop.f32.mrf.mxu0 }
 0x142   :  { %v1022_v41 = vadd.f32 %v2581_v63, %v1021_v39  ;;  %v1198_v42 = vpop.f32.mrf.mxu1 }
 0x143   :  { %v1023_v43 = vpop.f32.mrf.mxu0 }
 0x144   :  { %v2632_v44 = vadd.f32 %v1198_v42, %v1022_v41  ;;  %v1200_v45 = vpop.f32.mrf.mxu1 }
 0x145   :  { %v1024_v47 = vpop.f32.mrf.mxu0 }
 0x146   :  { %2911 = vst [vmem:[#allocation2_spill] sm:$0xff] %v2632_v44  ;;  %v1025_v48 = vadd.f32 %v2581_v63, %v1024_v47  ;;  %v1201_v49 = vpop.f32.mrf.mxu1 }
 0x147   :  { %v1026_v50 = vpop.f32.mrf.mxu0 }
 0x148   :  { %v2635_v51 = vadd.f32 %v1201_v49, %v1025_v48  ;;  %v1203_v53 = vpop.f32.mrf.mxu1 }
 0x149   :  { %v1029_v54 = vpop.f32.mrf.mxu0 }
 0x14a   :  { %2912 = vst [vmem:[#allocation3_spill] sm:$0xff] %v2635_v51  ;;  %v1030_v55 = vadd.f32 %v2581_v63, %v1029_v54  ;;  %v1206_v56 = vpop.f32.mrf.mxu1 }
 0x14b   :  { %v1031_v57 = vpop.f32.mrf.mxu0 }
 0x14c   :  { %v2638_v59 = vadd.f32 %v1206_v56, %v1030_v55  ;;  %v1208_v60 = vpop.f32.mrf.mxu1 }
 0x14d   :  { %v1032_v61 = vpop.f32.mrf.mxu0 }
 0x14e   :  { %v1033_v62 = vadd.f32 %v2581_v63, %v1032_v61  ;;  %v1209_v0 = vpop.f32.mrf.mxu1 }
 0x14f   :  { %v1034_v2 = vpop.f32.mrf.mxu0 }
 0x150   :  { %v2641_v3 = vadd.f32 %v1209_v0, %v1033_v62  ;;  %v1211_v5 = vpop.f32.mrf.mxu1 }
 0x151   :  { %v2643_v6 = vpop.f32.mrf.mxu0 }
 0x152   :  { %2913 = vst [vmem:[#allocation4_spill] sm:$0xff] %v2641_v3  ;;  %v2645_v7 = vpop.f32.mrf.mxu1 }
 0x153   :  { %v1039_v9 = vpop.f32.mrf.mxu0 }
 0x154   :  { %v1216_v11 = vpop.f32.mrf.mxu1 }
 0x155   :  { %v2647_v12 = vpop.f32.mrf.mxu0 }
 0x156   :  { %v2649_v13 = vpop.f32.mrf.mxu1 }
 0x157   :  { %v1042_v14 = vpop.f32.mrf.mxu0 }
 0x158   :  { %v1219_v17 = vpop.f32.mrf.mxu1 }
 0x159   :  { %v1045_v18 = vpop.f32.mrf.mxu0 }
 0x15a   :  { %v1222_v19 = vpop.f32.mrf.mxu1 }
 0x15b   :  { %v1047_v20 = vpop.f32.mrf.mxu0 }
 0x15c   :  { %v1224_v21 = vpop.f32.mrf.mxu1 }
 0x15d   :  { %v1048_v24 = vpop.f32.mrf.mxu0 }
 0x15e   :  { %v2651_v25 = vpop.f32.mrf.mxu1 }
 0x15f   :  { %v1050_v26 = vpop.f32.mrf.mxu0 }
 0x160   :  { %v1227_v27 = vpop.f32.mrf.mxu1 }
 0x161   :  { %v2653_v29 = vpop.f32.mrf.mxu0 }
 0x162   :  { %v2655_v31 = vpop.f32.mrf.mxu1 }
 0x163   :  { %v1055_v32 = vpop.f32.mrf.mxu0 }
 0x164   :  { %v1232_v33 = vpop.f32.mrf.mxu1 }
 0x165   :  { %v2657_v35 = vpop.f32.mrf.mxu0 }
 0x166   :  { %v2659_v36 = vpop.f32.mrf.mxu1 }
 0x167   :  { %v1058_v38 = vpop.f32.mrf.mxu0 }
 0x168   :  { %v1235_v39 = vpop.f32.mrf.mxu1 }
 0x169   :  { %v1061_v41 = vpop.f32.mrf.mxu0 }
 0x16a   :  { %v2661_v42 = vpop.f32.mrf.mxu1  ;;  %v1062_v3 = vadd.f32 %v2581_v63, %v1061_v41 }
 0x16b   :  { %v1063_v43 = vpop.f32.mrf.mxu0 }
 0x16c   :  { %v1240_v45 = vpop.f32.mrf.mxu1 }
 0x16d   :  { %v2663_v47 = vpop.f32.mrf.mxu0 }
 0x16e   :  { %v2665_v48 = vpop.f32.mrf.mxu1 }
 0x16f   :  { %v1066_v49 = vpop.f32.mrf.mxu0 }
 0x170   :  { %v1243_v50 = vpop.f32.mrf.mxu1 }
 0x171   :  { %v2667_v53 = vpop.f32.mrf.mxu0 }
 0x172   :  { %v2669_v54 = vpop.f32.mrf.mxu1 }
 0x173   :  { %v1071_v55 = vpop.f32.mrf.mxu0 }
 0x174   :  { %v1248_v56 = vpop.f32.mrf.mxu1 }
 0x175   :  { %v2671_v57 = vpop.f32.mrf.mxu0  ;;  %v1046_v56 = vadd.f32 %v2581_v63, %v1045_v18  ;;  %v1041_v18 = vadd.f32 %v2581_v63, %v2647_v12 }
 0x176   :  { %v2673_v60 = vpop.f32.mrf.mxu1 }
 0x177   :  { %v1074_v61 = vpop.f32.mrf.mxu0  ;;  %v1218_v41 = vadd.f32 %v2649_v13, %v1041_v18 }
 0x178   :  { %v1251_v62 = vpop.f32.mrf.mxu1 }
 0x179   :  { %v2675_v0 = vpop.f32.mrf.mxu0 }
 0x17a   :  { %v2677_v2 = vpop.f32.mrf.mxu1 }
 0x17b   :  { %v1079_v5 = vpop.f32.mrf.mxu0 }
 0x17c   :  { %v1256_v9 = vpop.f32.mrf.mxu1  ;;  %v1038_v5 = vadd.f32 %v2581_v63, %v2643_v6 }
 0x17d   :  { %v2679_v11 = vpop.f32.mrf.mxu0 }
 0x17e   :  { %v2681_v14 = vpop.f32.mrf.mxu1 }
 0x17f   :  { %v1082_v17 = vpop.f32.mrf.mxu0 }
 0x180   :  { %v1259_v20 = vpop.f32.mrf.mxu1 }
 0x181   :  { %v2683_v21 = vpop.f32.mrf.mxu0  ;;  %v1223_v20 = vadd.f32 %v1222_v19, %v1046_v56 }
 0x182   :  { %v2685_v26 = vpop.f32.mrf.mxu1 }
 0x183   :  { %v1087_v27 = vpop.f32.mrf.mxu0 }
 0x184   :  { %v1264_v32 = vpop.f32.mrf.mxu1  ;;  %v1049_v27 = vadd.f32 %v2581_v63, %v1048_v24 }
 0x185   :  { %v2687_v33 = vpop.f32.mrf.mxu0 }
 0x186   :  { %v2689_v38 = vpop.f32.mrf.mxu1  ;;  %v1226_v19 = vadd.f32 %v2651_v25, %v1049_v27  ;;  %v1239_v25 = vadd.f32 %v2661_v42, %v1062_v3 }
 0x187   :  { %v1090_v39 = vpop.f32.mrf.mxu0 }
 0x188   :  { %v1267_v43 = vpop.f32.mrf.mxu1 }
 0x189   :  { %v2691_v45 = vpop.f32.mrf.mxu0 }
 0x18a   :  { %v2693_v49 = vpop.f32.mrf.mxu1 }
 0x18b   :  { %v1095_v50 = vpop.f32.mrf.mxu0 }
 0x18c   :  { %v1272_v55 = vpop.f32.mrf.mxu1  ;;  %v1215_v50 = vadd.f32 %v2645_v7, %v1038_v5  ;;  %v1054_v7 = vadd.f32 %v2581_v63, %v2653_v29 }
 0x18d   :  { %v2696_v61 = vpop.f32.mrf.mxu0 }
 0x18e   :  { %v2698_v62 = vpop.f32.mrf.mxu1  ;;  %v1231_v18 = vadd.f32 %v2655_v31, %v1054_v7 }
 0x18f   :  { %v1098_v9 = vpop.f32.mrf.mxu0 }
 0x190   :  { %v1275_v17 = vpop.f32.mrf.mxu1 }
 0x191   :  { %v1924_v32 = vpop.f32.mrf.mxu0 }
 0x192   :  { %v1320_v39 = vadd.f32 %v1924_v32, %v2590_v16  ;;  %v1944_v43 = vpop.f32.mrf.mxu1 }
 0x193   :  { %v1400_v55 = vadd.f32 %v1944_v43, %v1223_v20  ;;  %v1311_v51 = vpop.f32.mrf.mxu0 }
 0x194   :  { %v1456_v44 = vmax.f32 %v1320_v39, 0.0  ;;  %v1312_v6 = vadd.f32 %v1311_v51, %v2584_v4  ;;  %v1391_v9 = vpop.f32.mrf.mxu1 }
 0x195   :  { %v1476_v24 = vmax.f32 %v1400_v55, 0.0  ;;  %v1392_v56 = vadd.f32 %v1391_v9, %v1215_v50  ;;  %v1925_v16 = vpop.f32.mrf.mxu0  ;;  %v1057_v9 = vadd.f32 %v2581_v63, %v2657_v35 }
 0x196   :  { %v1858_v5 = vpack.c.bf16 %v1456_v44, %v1456_v44  ;;  %v1454_v17 = vmax.f32 %v1312_v6, 0.0  ;;  %v1323_v12 = vadd.f32 %v1925_v16, %v2593_v22  ;;  %v1945_v20 = vpop.f32.mrf.mxu1  ;;  %v1065_v22 = vadd.f32 %v2581_v63, %v2663_v47 }
 0x197   :  { %v1878_v32 = vpack.c.bf16 %v1476_v24, %v1476_v24  ;;  %v1474_v39 = vmax.f32 %v1392_v56, 0.0  ;;  %v1403_v4 = vadd.f32 %v1945_v20, %v1226_v19  ;;  %v1314_v51 = vpop.f32.mrf.mxu0  ;;  %v1078_v16 = vadd.f32 %v2581_v63, %v2675_v0 }
 0x198   :  { %1637 = vst.msk [vmem:[%s2910_s3 + $0x8] sm:$0xf] %vm1634_vm1, %v1858_v5  ;;  %v1856_v27 = vpack.c.bf16 %v1454_v17, %v1454_v17  ;;  %v1457_v29 = vmax.f32 %v1323_v12, 0.0  ;;  %v1315_v44 = vadd.f32 %v1314_v51, %v2587_v10  ;;  %v1394_v43 = vpop.f32.mrf.mxu1  ;;  %v1242_v17 = vadd.f32 %v2665_v48, %v1065_v22 }
 0x199   :  { %1657 = vst.msk [vmem:[%s2910_s3 + $0x58] sm:$0xf] %vm1634_vm1, %v1878_v32  ;;  %v1876_v13 = vpack.c.bf16 %v1474_v39, %v1474_v39  ;;  %v1477_v3 = vmax.f32 %v1403_v4, 0.0  ;;  %v1395_v42 = vadd.f32 %v1394_v43, %v1218_v41  ;;  %v1928_v50 = vpop.f32.mrf.mxu0  ;;  %v1070_v32 = vadd.f32 %v2581_v63, %v2667_v53 }
 0x19a   :  { %1635 = vst.msk [vmem:[%s2910_s3] sm:$0xf] %vm1634_vm1, %v1856_v27  ;;  %v1859_v10 = vpack.c.bf16 %v1457_v29, %v1457_v29  ;;  %v1455_v55 = vmax.f32 %v1315_v44, 0.0  ;;  %v1336_v47 = vadd.f32 %v1928_v50, %v2602_v40  ;;  %v1948_v6 = vpop.f32.mrf.mxu1  ;;  %v1234_v51 = vadd.f32 %v2659_v36, %v1057_v9 }
 0x19b   :  { %1655 = vst.msk [vmem:[%s2910_s3 + $0x50] sm:$0xf] %vm1634_vm1, %v1876_v13  ;;  %v1879_v19 = vpack.c.bf16 %v1477_v3, %v1477_v3  ;;  %v1475_v31 = vmax.f32 %v1395_v42, 0.0  ;;  %v1416_v24 = vadd.f32 %v1948_v6, %v1239_v25  ;;  %v1327_v56 = vpop.f32.mrf.mxu0  ;;  %v1255_v44 = vadd.f32 %v2677_v2, %v1078_v16 }
 0x19c   :  { %1638 = vst.msk [vmem:[%s2910_s3 + $0xc] sm:$0xf] %vm1634_vm1, %v1859_v10  ;;  %v1857_v40 = vpack.c.bf16 %v1455_v55, %v1455_v55  ;;  %v1460_v7 = vmax.f32 %v1336_v47, 0.0  ;;  %v1328_v35 = vadd.f32 %v1327_v56, %v2596_v28  ;;  %v1407_v5 = vpop.f32.mrf.mxu1  ;;  %v1081_v13 = vadd.f32 %v2581_v63, %v2679_v11 }
 0x19d   :  { %1658 = vst.msk [vmem:[%s2910_s3 + $0x5c] sm:$0xf] %vm1634_vm1, %v1879_v19  ;;  %v1877_v12 = vpack.c.bf16 %v1475_v31, %v1475_v31  ;;  %v1480_v20 = vmax.f32 %v1416_v24, 0.0  ;;  %v1408_v0 = vadd.f32 %v1407_v5, %v1231_v18  ;;  %v1929_v41 = vpop.f32.mrf.mxu0  ;;  %v1247_v18 = vadd.f32 %v2669_v54, %v1070_v32 }
 0x19e   :  { %1636 = vst.msk [vmem:[%s2910_s3 + $0x4] sm:$0xf] %vm1634_vm1, %v1857_v40  ;;  %v1862_v28 = vpack.c.bf16 %v1460_v7, %v1460_v7  ;;  %v1458_v39 = vmax.f32 %v1328_v35, 0.0  ;;  %v1339_v48 = vadd.f32 %v1929_v41, %v2605_v46  ;;  %v1949_v4 = vpop.f32.mrf.mxu1  ;;  %v1073_v47 = vadd.f32 %v2581_v63, %v2671_v57 }
 0x19f   :  { %1656 = vst.msk [vmem:[%s2910_s3 + $0x54] sm:$0xf] %vm1634_vm1, %v1877_v12  ;;  %v1882_v25 = vpack.c.bf16 %v1480_v20, %v1480_v20  ;;  %v1478_v27 = vmax.f32 %v1408_v0, 0.0  ;;  %v1419_v53 = vadd.f32 %v1949_v4, %v1242_v17  ;;  %v1330_v29 = vpop.f32.mrf.mxu0  ;;  %v1094_v31 = vadd.f32 %v2581_v63, %v2691_v45 }
 0x1a0   :  { %1641 = vst.msk [vmem:[%s2910_s3 + $0x18] sm:$0xf] %vm1634_vm1, %v1862_v28  ;;  %v1860_v46 = vpack.c.bf16 %v1458_v39, %v1458_v39  ;;  %v1461_v43 = vmax.f32 %v1339_v48, 0.0  ;;  %v1331_v36 = vadd.f32 %v1330_v29, %v2599_v34  ;;  %v1410_v22 = vpop.f32.mrf.mxu1  ;;  %v1258_v16 = vadd.f32 %v2681_v14, %v1081_v13 }
 0x1a1   :  { %1661 = vst.msk [vmem:[%s2910_s3 + $0x68] sm:$0xf] %vm1634_vm1, %v1882_v25  ;;  %v1880_v3 = vpack.c.bf16 %v1478_v27, %v1478_v27  ;;  %v1481_v2 = vmax.f32 %v1419_v53, 0.0  ;;  %v1411_v42 = vadd.f32 %v1410_v22, %v1234_v51  ;;  %v1932_v50 = vpop.f32.mrf.mxu0  ;;  %v1086_v5 = vadd.f32 %v2581_v63, %v2683_v21 }
 0x1a2   :  { %1639 = vst.msk [vmem:[%s2910_s3 + $0x10] sm:$0xf] %vm1634_vm1, %v1860_v46  ;;  %v1863_v34 = vpack.c.bf16 %v1461_v43, %v1461_v43  ;;  %v1459_v10 = vmax.f32 %v1331_v36, 0.0  ;;  %v1352_v11 = vadd.f32 %v1932_v50, %v2614_v1  ;;  %v1952_v55 = vpop.f32.mrf.mxu1  ;;  %v1250_v20 = vadd.f32 %v2673_v60, %v1073_v47 }
 0x1a3   :  { %1659 = vst.msk [vmem:[%s2910_s3 + $0x60] sm:$0xf] %vm1634_vm1, %v1880_v3  ;;  %v1883_v6 = vpack.c.bf16 %v1481_v2, %v1481_v2  ;;  %v1479_v54 = vmax.f32 %v1411_v42, 0.0  ;;  %v1432_v9 = vadd.f32 %v1952_v55, %v1255_v44  ;;  %v1343_v19 = vpop.f32.mrf.mxu0  ;;  %v1271_v28 = vadd.f32 %v2693_v49, %v1094_v31 }
 0x1a4   :  { %1642 = vst.msk [vmem:[%s2910_s3 + $0x1c] sm:$0xf] %vm1634_vm1, %v1863_v34  ;;  %v1861_v1 = vpack.c.bf16 %v1459_v10, %v1459_v10  ;;  %v1464_v24 = vmax.f32 %v1352_v11, 0.0  ;;  %v1344_v57 = vadd.f32 %v1343_v19, %v2608_v52  ;;  %v1423_v56 = vpop.f32.mrf.mxu1  ;;  %v1097_v4 = vadd.f32 %v2581_v63, %v2696_v61 }
 0x1a5   :  { %1662 = vst.msk [vmem:[%s2910_s3 + $0x6c] sm:$0xf] %vm1634_vm1, %v1883_v6  ;;  %v1881_v40 = vpack.c.bf16 %v1479_v54, %v1479_v54  ;;  %v1484_v7 = vmax.f32 %v1432_v9, 0.0  ;;  %v1424_v45 = vadd.f32 %v1423_v56, %v1247_v18  ;;  %v1933_v35 = vpop.f32.mrf.mxu0  ;;  %v1263_v53 = vadd.f32 %v2685_v26, %v1086_v5 }
 0x1a6   :  { %1640 = vst.msk [vmem:[%s2910_s3 + $0x14] sm:$0xf] %vm1634_vm1, %v1861_v1  ;;  %v1866_v52 = vpack.c.bf16 %v1464_v24, %v1464_v24  ;;  %v1462_v17 = vmax.f32 %v1344_v57, 0.0  ;;  %v1355_v14 = vadd.f32 %v1933_v35, %v2617_v8  ;;  %v1953_v12 = vpop.f32.mrf.mxu1  ;;  %v1089_v46 = vadd.f32 %v2581_v63, %v2687_v33 }
 0x1a7   :  { %1660 = vst.msk [vmem:[%s2910_s3 + $0x64] sm:$0xf] %vm1634_vm1, %v1881_v40  ;;  %v1886_v0 = vpack.c.bf16 %v1484_v7, %v1484_v7  ;;  %v1482_v41 = vmax.f32 %v1424_v45, 0.0  ;;  %v1435_v21 = vadd.f32 %v1953_v12, %v1258_v16  ;;  %v1346_v32 = vpop.f32.mrf.mxu0  ;;  %v1274_v63 = vadd.f32 %v2698_v62, %v1097_v4 }
 0x1a8   :  { %1645 = vst.msk [vmem:[%s2910_s3 + $0x28] sm:$0xf] %vm1634_vm1, %v1866_v52  ;;  %v1864_v8 = vpack.c.bf16 %v1462_v17, %v1462_v17  ;;  %v1465_v39 = vmax.f32 %v1355_v14, 0.0  ;;  %v1347_v60 = vadd.f32 %v1346_v32, %v2611_v58  ;;  %v1426_v48 = vpop.f32.mrf.mxu1  ;;  %v1266_v62 = vadd.f32 %v2689_v38, %v1089_v46  ;;  %v2914_v52 = vld [vmem:[#allocation2_spill] sm:$0xff] }
 0x1a9   :  { %1665 = vst.msk [vmem:[%s2910_s3 + $0x78] sm:$0xf] %vm1634_vm1, %v1886_v0  ;;  %v1884_v51 = vpack.c.bf16 %v1482_v41, %v1482_v41  ;;  %v1485_v49 = vmax.f32 %v1435_v21, 0.0  ;;  %v1427_v25 = vadd.f32 %v1426_v48, %v1250_v20  ;;  %v1936_v27 = vpop.f32.mrf.mxu0  ;;  %v2915_v0 = vld [vmem:[#allocation4_spill] sm:$0xff] }
 0x1aa   :  { %1643 = vst.msk [vmem:[%s2910_s3 + $0x20] sm:$0xf] %vm1634_vm1, %v1864_v8  ;;  %v1867_v58 = vpack.c.bf16 %v1465_v39, %v1465_v39  ;;  %v1463_v29 = vmax.f32 %v1347_v60, 0.0  ;;  %v1368_v61 = vadd.f32 %v1936_v27, %v2626_v30  ;;  %v1956_v44 = vpop.f32.mrf.mxu1  ;;  %v2916_v8 = vld [vmem:[#allocation3_spill] sm:$0xff] }
 0x1ab   :  { %1663 = vst.msk [vmem:[%s2910_s3 + $0x70] sm:$0xf] %vm1634_vm1, %v1884_v51  ;;  %v1887_v43 = vpack.c.bf16 %v1485_v49, %v1485_v49  ;;  %v1483_v26 = vmax.f32 %v1427_v25, 0.0  ;;  %v1448_v36 = vadd.f32 %v1956_v44, %v1271_v28  ;;  %v1359_v22 = vpop.f32.mrf.mxu0 }
 0x1ac   :  { %1646 = vst.msk [vmem:[%s2910_s3 + $0x2c] sm:$0xf] %vm1634_vm1, %v1867_v58  ;;  %v1865_v13 = vpack.c.bf16 %v1463_v29, %v1463_v29  ;;  %v1468_v30 = vmax.f32 %v1368_v61, 0.0  ;;  %v1360_v3 = vadd.f32 %v1359_v22, %v2620_v15  ;;  %v1439_v2 = vpop.f32.mrf.mxu1 }
 0x1ad   :  { %1666 = vst.msk [vmem:[%s2910_s3 + $0x7c] sm:$0xf] %vm1634_vm1, %v1887_v43  ;;  %v1885_v33 = vpack.c.bf16 %v1483_v26, %v1483_v26  ;;  %v1488_v42 = vmax.f32 %v1448_v36, 0.0  ;;  %v1440_v50 = vadd.f32 %v1439_v2, %v1263_v53  ;;  %v1937_v18 = vpop.f32.mrf.mxu0 }
 0x1ae   :  { %1644 = vst.msk [vmem:[%s2910_s3 + $0x24] sm:$0xf] %vm1634_vm1, %v1865_v13  ;;  %v1870_v34 = vpack.c.bf16 %v1468_v30, %v1468_v30  ;;  %v1466_v10 = vmax.f32 %v1360_v3, 0.0  ;;  %v1371_v15 = vadd.f32 %v1937_v18, %v2629_v37  ;;  %v1957_v11 = vpop.f32.mrf.mxu1 }
 0x1af   :  { %1664 = vst.msk [vmem:[%s2910_s3 + $0x74] sm:$0xf] %vm1634_vm1, %v1885_v33  ;;  %v1890_v55 = vpack.c.bf16 %v1488_v42, %v1488_v42  ;;  %v1486_v47 = vmax.f32 %v1440_v50, 0.0  ;;  %v1451_v6 = vadd.f32 %v1957_v11, %v1274_v63  ;;  %v1362_v54 = vpop.f32.mrf.mxu0 }
 0x1b0   :  { %1649 = vst.msk [vmem:[%s2910_s3 + $0x38] sm:$0xf] %vm1634_vm1, %v1870_v34  ;;  %v1868_v9 = vpack.c.bf16 %v1466_v10, %v1466_v10  ;;  %v1469_v19 = vmax.f32 %v1371_v15, 0.0  ;;  %v1363_v37 = vadd.f32 %v1362_v54, %v2623_v23  ;;  %v1442_v31 = vpop.f32.mrf.mxu1 }
 0x1b1   :  { %1669 = vst.msk [vmem:[%s2910_s3 + $0x88] sm:$0xf] %vm1634_vm1, %v1890_v55  ;;  %v1888_v38 = vpack.c.bf16 %v1486_v47, %v1486_v47  ;;  %v1489_v1 = vmax.f32 %v1451_v6, 0.0  ;;  %v1443_v24 = vadd.f32 %v1442_v31, %v1266_v62  ;;  %v1940_v57 = vpop.f32.mrf.mxu0 }
 0x1b2   :  { %1647 = vst.msk [vmem:[%s2910_s3 + $0x30] sm:$0xf] %vm1634_vm1, %v1868_v9  ;;  %v1871_v56 = vpack.c.bf16 %v1469_v19, %v1469_v19  ;;  %v1467_v16 = vmax.f32 %v1363_v37, 0.0  ;;  %v1384_v40 = vadd.f32 %v1940_v57, %v2638_v59 }
 0x1b3   :  { %1667 = vst.msk [vmem:[%s2910_s3 + $0x80] sm:$0xf] %vm1634_vm1, %v1888_v38  ;;  %v1891_v23 = vpack.c.bf16 %v1489_v1, %v1489_v1  ;;  %v1487_v7 = vmax.f32 %v1443_v24, 0.0  ;;  %v1375_v45 = vpop.f32.mrf.mxu0 }
 0x1b4   :  { %1650 = vst.msk [vmem:[%s2910_s3 + $0x3c] sm:$0xf] %vm1634_vm1, %v1871_v56  ;;  %v1869_v35 = vpack.c.bf16 %v1467_v16, %v1467_v16  ;;  %v1472_v5 = vmax.f32 %v1384_v40, 0.0  ;;  %v1376_v17 = vadd.f32 %v1375_v45, %v2914_v52 }
 0x1b5   :  { %1670 = vst.msk [vmem:[%s2910_s3 + $0x8c] sm:$0xf] %vm1634_vm1, %v1891_v23  ;;  %v1889_v59 = vpack.c.bf16 %v1487_v7, %v1487_v7  ;;  %v1941_v14 = vpop.f32.mrf.mxu0 }
 0x1b6   :  { %1648 = vst.msk [vmem:[%s2910_s3 + $0x34] sm:$0xf] %vm1634_vm1, %v1869_v35  ;;  %v1874_v12 = vpack.c.bf16 %v1472_v5, %v1472_v5  ;;  %v1470_v20 = vmax.f32 %v1376_v17, 0.0  ;;  %v1387_v41 = vadd.f32 %v1941_v14, %v2915_v0 }
 0x1b7   :  { %1668 = vst.msk [vmem:[%s2910_s3 + $0x84] sm:$0xf] %vm1634_vm1, %v1889_v59  ;;  %v1378_v21 = vpop.f32.mrf.mxu0 }
 0x1b8   :  { %1653 = vst.msk [vmem:[%s2910_s3 + $0x48] sm:$0xf] %vm1634_vm1, %v1874_v12  ;;  %v1872_v32 = vpack.c.bf16 %v1470_v20, %v1470_v20  ;;  %v1473_v28 = vmax.f32 %v1387_v41, 0.0  ;;  %v1379_v39 = vadd.f32 %v1378_v21, %v2916_v8 }
 0x1ba   :  { %1651 = vst.msk [vmem:[%s2910_s3 + $0x40] sm:$0xf] %vm1634_vm1, %v1872_v32  ;;  %v1875_v60 = vpack.c.bf16 %v1473_v28, %v1473_v28  ;;  %v1471_v48 = vmax.f32 %v1379_v39, 0.0 }
 0x1bc   :  { %1654 = vst.msk [vmem:[%s2910_s3 + $0x4c] sm:$0xf] %vm1634_vm1, %v1875_v60  ;;  %v1873_v4 = vpack.c.bf16 %v1471_v48, %v1471_v48 }
 0x1be   :  { %1652 = vst.msk [vmem:[%s2910_s3 + $0x44] sm:$0xf] %vm1634_vm1, %v1873_v4 }

// kernel: segnet_forward.21
= control target key start
LH: loop header
LB: loop body
LE: loop exit
PB: predicated region body
PF: predicated region fallthrough
CT: control target
= control target key end

     0   :  { %vm372_vm0 = vcmask 523264   ;;  %vm546_vm1 = vcmask 519168   ;;  %s913_s1 = inlined_call_operand.vmem [shape: bf16[576,64], index: 1, kind: input, shape index: {}]   ;;  %s914_s0 = inlined_call_operand.vmem [shape: bf16[32,576], index: 0, kind: input, shape index: {}]   ;;  %s915_s2 = inlined_call_operand.vmem [shape: f32[1,64], index: 2, kind: input, shape index: {}]   ;;  %s916_s3 = inlined_call_operand.vmem [shape: bf16[32,64], index: 3, kind: output, shape index: {}]  }
   0x1   :  { %v686_v0 = vld [vmem:[%s913_s1 + $0x78] sm:$0xff]   ;;  %v690_v4 = vld [vmem:[%s913_s1 + $0x70] sm:$0xff]   ;;  %v694_v8 = vld [vmem:[%s913_s1 + $0x68] sm:$0xff]  }
   0x2   :  { %v687_v1 = vld [vmem:[%s913_s1 + $0xf8] sm:$0xff]   ;;  %612 = vmatprep.subr.bf16.mxu0 %v686_v0  ;;  %v691_v5 = vld [vmem:[%s913_s1 + $0xf0] sm:$0xff]   ;;  %v695_v9 = vld [vmem:[%s913_s1 + $0xe8] sm:$0xff]  }
   0x3   :  { %v688_v2 = vld [vmem:[%s913_s1 + $0x38] sm:$0xff]   ;;  %640 = vmatprep.subr.bf16.mxu1 %v687_v1  ;;  %v692_v6 = vld [vmem:[%s913_s1 + $0x30] sm:$0xff]   ;;  %v696_v10 = vld [vmem:[%s913_s1 + $0x28] sm:$0xff]  }
   0x4   :  { %v689_v3 = vld [vmem:[%s913_s1 + $0xb8] sm:$0xff]   ;;  %613 = vmatpush3.bf16.msra.mxu0 %v688_v2  ;;  %v693_v7 = vld [vmem:[%s913_s1 + $0xb0] sm:$0xff]   ;;  %v697_v11 = vld [vmem:[%s913_s1 + $0xa8] sm:$0xff]  }
   0x5   :  { %641 = vmatpush3.bf16.msra.mxu1 %v689_v3  ;;  %614 = vmatprep.subr.bf16.mxu0 %v690_v4  ;;  %v698_v12 = vld [vmem:[%s913_s1 + $0x60] sm:$0xff]   ;;  %v702_v16 = vld [vmem:[%s913_s1 + $0x58] sm:$0xff]   ;;  %v706_v20 = vld [vmem:[%s913_s1 + $0x50] sm:$0xff]  }
   0x6   :  { %642 = vmatprep.subr.bf16.mxu1 %v691_v5  ;;  %v699_v13 = vld [vmem:[%s913_s1 + $0xe0] sm:$0xff]   ;;  %v703_v17 = vld [vmem:[%s913_s1 + $0xd8] sm:$0xff]   ;;  %v707_v21 = vld [vmem:[%s913_s1 + $0xd0] sm:$0xff]  }
   0x7   :  { %v700_v14 = vld [vmem:[%s913_s1 + $0x20] sm:$0xff]   ;;  %v704_v18 = vld [vmem:[%s913_s1 + $0x18] sm:$0xff]   ;;  %v708_v22 = vld [vmem:[%s913_s1 + $0x10] sm:$0xff]  }
   0x8   :  { %615 = vmatpush3.bf16.msra.mxu0 %v692_v6  ;;  %v701_v15 = vld [vmem:[%s913_s1 + $0xa0] sm:$0xff]   ;;  %v705_v19 = vld [vmem:[%s913_s1 + $0x98] sm:$0xff]   ;;  %v709_v23 = vld [vmem:[%s913_s1 + $0x90] sm:$0xff]  }
   0x9   :  { %643 = vmatpush3.bf16.msra.mxu1 %v693_v7  ;;  %616 = vmatprep.subr.bf16.mxu0 %v694_v8  ;;  %v710_v24 = vld [vmem:[%s913_s1 + $0x48] sm:$0xff]   ;;  %v714_v28 = vld [vmem:[%s913_s1 + $0x40] sm:$0xff]   ;;  %v724_v36 = vld [vmem:[%s913_s1 + $0x118] sm:$0xff]  }
   0xa   :  { %644 = vmatprep.subr.bf16.mxu1 %v695_v9  ;;  %v711_v25 = vld [vmem:[%s913_s1 + $0xc8] sm:$0xff]   ;;  %v715_v29 = vld [vmem:[%s913_s1 + $0xc0] sm:$0xff]   ;;  %v725_v37 = vld [vmem:[%s913_s1 + $0x110] sm:$0xff]  }
   0xb   :  { %v712_v26 = vld [vmem:[%s913_s1 + $0x8] sm:$0xff]   ;;  %v716_v30 = vld [vmem:[%s913_s1] sm:$0xff]  }
   0xc   :  { %617 = vmatpush3.bf16.msra.mxu0 %v696_v10  ;;  %v713_v27 = vld [vmem:[%s913_s1 + $0x88] sm:$0xff]   ;;  %v717_v31 = vld [vmem:[%s913_s1 + $0x80] sm:$0xff]  }
   0xd   :  { %645 = vmatpush3.bf16.msra.mxu1 %v697_v11  ;;  %618 = vmatprep.subr.bf16.mxu0 %v698_v12  ;;  %v718_v32 = vld [vmem:[%s914_s0] ss:$20 sps:$4 sm:$0xff]   ;;  %v720_v33 = vld [vmem:[%s914_s0 + $0x4] ss:$20 sps:$4 sm:$0xff]   ;;  %v721_v34 = vld [vmem:[%s914_s0 + $0x8] ss:$20 sps:$4 sm:$0xff]  }
   0xe   :  { %646 = vmatprep.subr.bf16.mxu1 %v699_v13  ;;  %v723_v35 = vld [vmem:[%s914_s0 + $0xc] ss:$20 sps:$4 sm:$0xff]   ;;  %411 = vmatprep.mubr.bf16.mxu0 %v720_v33  ;;  %v728_v39 = vld [vmem:[%s914_s0 + $0x34] ss:$20 sps:$4 sm:$0xff]   ;;  %v731_v42 = vld [vmem:[%s914_s0 + $0x30] ss:$20 sps:$4 sm:$0xff]  }
   0xf   :  { %460 = vmatprep.mubr.bf16.mxu1 %v723_v35  ;;  %v726_v38 = vld [vmem:[%s914_s0 + $0x2c] ss:$20 sps:$4 sm:$0xff]   ;;  %v730_v40 = vld [vmem:[%s914_s0 + $0x28] ss:$20 sps:$4 sm:$0xff]   ;;  %v734_v43 = vld [vmem:[%s914_s0 + $0x10] ss:$20 sps:$4 sm:$0xff]  }
  0x10   :  { %619 = vmatpush3.bf16.msra.mxu0 %v700_v14  ;;  %v732_v41 = vld [vmem:[%s913_s1 + $0x108] sm:$0xff]   ;;  %v733_v44 = vld [vmem:[%s913_s1 + $0x100] sm:$0xff]  }
  0x11   :  { %647 = vmatpush3.bf16.msra.mxu1 %v701_v15  ;;  %620 = vmatprep.subr.bf16.mxu0 %v702_v16  ;;  %v735_v45 = vld [vmem:[%s914_s0 + $0x38] ss:$20 sps:$4 sm:$0xff]   ;;  %v555_v58 = vld [vmem:[%s915_s2] ss:$0 sm:$0xff] }
  0x12   :  { %648 = vmatprep.subr.bf16.mxu1 %v703_v17 }
  0x14   :  { %621 = vmatpush3.bf16.msra.mxu0 %v704_v18 }
  0x15   :  { %649 = vmatpush3.bf16.msra.mxu1 %v705_v19  ;;  %622 = vmatprep.subr.bf16.mxu0 %v706_v20 }
  0x16   :  { %650 = vmatprep.subr.bf16.mxu1 %v707_v21 }
  0x18   :  { %623 = vmatpush3.bf16.msra.mxu0 %v708_v22 }
  0x19   :  { %651 = vmatpush3.bf16.msra.mxu1 %v709_v23  ;;  %624 = vmatprep.subr.bf16.mxu0 %v710_v24 }
  0x1a   :  { %652 = vmatprep.subr.bf16.mxu1 %v711_v25 }
  0x1c   :  { %625 = vmatpush3.bf16.msra.mxu0 %v712_v26 }
  0x1d   :  { %653 = vmatpush3.bf16.msra.mxu1 %v713_v27  ;;  %626 = vmatprep.subr.bf16.mxu0 %v714_v28 }
  0x1e   :  { %654 = vmatprep.subr.bf16.mxu1 %v715_v29 }
  0x20   :  { %627 = vmatpush3.bf16.msra.mxu0 %v716_v30 }
  0x21   :  { %655 = vmatpush3.bf16.msra.mxu1 %v717_v31  ;;  %674 = vmatprep.subr.bf16.mxu0 %v724_v36 }
  0x23   :  { %412 = vmatmul.mubr.bf16.vlgmr.msra.gmra.mxu0 %v718_v32 }
  0x24   :  { %461 = vmatmul.mubr.bf16.vlgmr.msra.gmra.mxu1 %v721_v34  ;;  %675 = vmatpush3.bf16.msra.mxu0 %v724_v36 }
  0x25   :  { %676 = vmatprep.subr.bf16.mxu0 %v725_v37  ;;  %419 = vmatprep.mubr.bf16.mxu0 %v726_v38 }
  0x26   :  { %468 = vmatprep.mubr.bf16.mxu1 %v728_v39 }
  0x28   :  { %677 = vmatpush3.bf16.msra.mxu0 %v725_v37 }
  0x29   :  { %678 = vmatprep.subr.bf16.mxu0 %v732_v41 }
  0x2b   :  { %420 = vmatmul.mubr.bf16.gmra.mxu0 %v730_v40 }
  0x2c   :  { %469 = vmatmul.mubr.bf16.gmra.mxu1 %v731_v42  ;;  %682 = vmatprep.mubr.msk.bf16.mxu0 %vm372_vm0, %v734_v43 }
  0x2d   :  { %679 = vmatpush3.bf16.msra.mxu0 %v732_v41 }
  0x2e   :  { %680 = vmatprep.subr.bf16.mxu0 %v733_v44 }
  0x31   :  { %681 = vmatpush3.bf16.msra.mxu0 %v733_v44 }
  0x34   :  { %683 = vmatmul.mubr.msk.bf16.vlgmr.msra.gmra.mxu0 %vm372_vm0, %v735_v45 }
  0xe3   :  { %v628_v46 = vpop.f32.mrf.mxu0 }
  0xe4   :  { %v656_v47 = vpop.f32.mrf.mxu1 }
  0xe5   :  { %v629_v48 = vpop.f32.mrf.mxu0 }
  0xe6   :  { %v657_v49 = vpop.f32.mrf.mxu1  ;;  %v630_v56 = vadd.f32 %v629_v48, %v628_v46 }
  0xe7   :  { %v631_v50 = vpop.f32.mrf.mxu0  ;;  %v658_v2 = vadd.f32 %v657_v49, %v656_v47 }
  0xe8   :  { %v659_v51 = vpop.f32.mrf.mxu1  ;;  %v414_v1 = vadd.f32 %v630_v56, %v555_v58 }
  0xe9   :  { %v632_v52 = vpop.f32.mrf.mxu0 }
  0xea   :  { %v660_v53 = vpop.f32.mrf.mxu1  ;;  %v633_v3 = vadd.f32 %v632_v52, %v631_v50  ;;  %v463_v13 = vadd.f32 %v658_v2, %v414_v1 }
  0xeb   :  { %v634_v54 = vpop.f32.mrf.mxu0  ;;  %v661_v16 = vadd.f32 %v660_v53, %v659_v51 }
  0xec   :  { %v662_v55 = vpop.f32.mrf.mxu1  ;;  %v417_v11 = vadd.f32 %v633_v3, %v555_v58 }
  0xed   :  { %v635_v57 = vpop.f32.mrf.mxu0 }
  0xee   :  { %v636_v59 = vadd.f32 %v635_v57, %v634_v54  ;;  %v663_v60 = vpop.f32.mrf.mxu1  ;;  %v466_v23 = vadd.f32 %v661_v16, %v417_v11 }
  0xef   :  { %v664_v61 = vadd.f32 %v663_v60, %v662_v55  ;;  %v637_v62 = vpop.f32.mrf.mxu0 }
  0xf0   :  { %v422_v63 = vadd.f32 %v636_v59, %v555_v58  ;;  %v665_v0 = vpop.f32.mrf.mxu1 }
  0xf1   :  { %v638_v4 = vpop.f32.mrf.mxu0 }
  0xf2   :  { %v639_v5 = vadd.f32 %v638_v4, %v637_v62  ;;  %v666_v6 = vpop.f32.mrf.mxu1  ;;  %v471_v7 = vadd.f32 %v664_v61, %v422_v63 }
  0xf3   :  { %v667_v9 = vadd.f32 %v666_v6, %v665_v0 }
  0xf4   :  { %v425_v8 = vadd.f32 %v639_v5, %v555_v58  ;;  %v684_v10 = vpop.f32.mrf.mxu0 }
  0xf5   :  { %v520_v12 = vadd.f32 %v684_v10, %v471_v7 }
  0xf6   :  { %v511_v14 = vpop.f32.mrf.mxu0  ;;  %v474_v15 = vadd.f32 %v667_v9, %v425_v8 }
  0xf7   :  { %v528_v17 = vmax.f32 %v520_v12, 0.0  ;;  %v512_v18 = vadd.f32 %v511_v14, %v463_v13 }
  0xf8   :  { %v685_v19 = vpop.f32.mrf.mxu0 }
  0xf9   :  { %v610_v20 = vpack.c.bf16 %v528_v17, %v528_v17  ;;  %v526_v21 = vmax.f32 %v512_v18, 0.0  ;;  %v523_v22 = vadd.f32 %v685_v19, %v474_v15 }
  0xfa   :  { %v514_v24 = vpop.f32.mrf.mxu0 }
  0xfb   :  { %549 = vst.msk [vmem:[%s916_s3 + $0x8] sm:$0xf] %vm546_vm1, %v610_v20  ;;  %v608_v25 = vpack.c.bf16 %v526_v21, %v526_v21  ;;  %v529_v26 = vmax.f32 %v523_v22, 0.0  ;;  %v515_v27 = vadd.f32 %v514_v24, %v466_v23 }
  0xfd   :  { %547 = vst.msk [vmem:[%s916_s3] sm:$0xf] %vm546_vm1, %v608_v25  ;;  %v611_v28 = vpack.c.bf16 %v529_v26, %v529_v26  ;;  %v527_v29 = vmax.f32 %v515_v27, 0.0 }
  0xff   :  { %550 = vst.msk [vmem:[%s916_s3 + $0xc] sm:$0xf] %vm546_vm1, %v611_v28  ;;  %v609_v30 = vpack.c.bf16 %v527_v29, %v527_v29 }
 0x101   :  { %548 = vst.msk [vmem:[%s916_s3 + $0x4] sm:$0xf] %vm546_vm1, %v609_v30 }

// kernel: segnet_forward.23
= control target key start
LH: loop header
LB: loop body
LE: loop exit
PB: predicated region body
PF: predicated region fallthrough
CT: control target
= control target key end

     0   :  { %vm372_vm0 = vcmask 523264   ;;  %vm546_vm1 = vcmask 257024   ;;  %s913_s1 = inlined_call_operand.vmem [shape: bf16[576,32], index: 1, kind: input, shape index: {}]   ;;  %s914_s0 = inlined_call_operand.vmem [shape: bf16[32,576], index: 0, kind: input, shape index: {}]   ;;  %s915_s2 = inlined_call_operand.vmem [shape: f32[1,32], index: 2, kind: input, shape index: {}]   ;;  %s916_s3 = inlined_call_operand.vmem [shape: bf16[32,32], index: 3, kind: output, shape index: {}]  }
   0x1   :  { %v686_v0 = vld [vmem:[%s913_s1 + $0x78] sm:$0xff]   ;;  %v690_v4 = vld [vmem:[%s913_s1 + $0x70] sm:$0xff]   ;;  %v694_v8 = vld [vmem:[%s913_s1 + $0x68] sm:$0xff]  }
   0x2   :  { %v687_v1 = vld [vmem:[%s913_s1 + $0xf8] sm:$0xff]   ;;  %612 = vmatprep.subr.bf16.mxu0 %v686_v0  ;;  %v691_v5 = vld [vmem:[%s913_s1 + $0xf0] sm:$0xff]   ;;  %v695_v9 = vld [vmem:[%s913_s1 + $0xe8] sm:$0xff]  }
   0x3   :  { %v688_v2 = vld [vmem:[%s913_s1 + $0x38] sm:$0xff]   ;;  %640 = vmatprep.subr.bf16.mxu1 %v687_v1  ;;  %v692_v6 = vld [vmem:[%s913_s1 + $0x30] sm:$0xff]   ;;  %v696_v10 = vld [vmem:[%s913_s1 + $0x28] sm:$0xff]  }
   0x4   :  { %v689_v3 = vld [vmem:[%s913_s1 + $0xb8] sm:$0xff]   ;;  %613 = vmatpush3.bf16.msra.mxu0 %v688_v2  ;;  %v693_v7 = vld [vmem:[%s913_s1 + $0xb0] sm:$0xff]   ;;  %v697_v11 = vld [vmem:[%s913_s1 + $0xa8] sm:$0xff]  }
   0x5   :  { %641 = vmatpush3.bf16.msra.mxu1 %v689_v3  ;;  %614 = vmatprep.subr.bf16.mxu0 %v690_v4  ;;  %v698_v12 = vld [vmem:[%s913_s1 + $0x60] sm:$0xff]   ;;  %v702_v16 = vld [vmem:[%s913_s1 + $0x58] sm:$0xff]   ;;  %v706_v20 = vld [vmem:[%s913_s1 + $0x50] sm:$0xff]  }
   0x6   :  { %642 = vmatprep.subr.bf16.mxu1 %v691_v5  ;;  %v699_v13 = vld [vmem:[%s913_s1 + $0xe0] sm:$0xff]   ;;  %v703_v17 = vld [vmem:[%s913_s1 + $0xd8] sm:$0xff]   ;;  %v707_v21 = vld [vmem:[%s913_s1 + $0xd0] sm:$0xff]  }
   0x7   :  { %v700_v14 = vld [vmem:[%s913_s1 + $0x20] sm:$0xff]   ;;  %v704_v18 = vld [vmem:[%s913_s1 + $0x18] sm:$0xff]   ;;  %v708_v22 = vld [vmem:[%s913_s1 + $0x10] sm:$0xff]  }
   0x8   :  { %615 = vmatpush3.bf16.msra.mxu0 %v692_v6  ;;  %v701_v15 = vld [vmem:[%s913_s1 + $0xa0] sm:$0xff]   ;;  %v705_v19 = vld [vmem:[%s913_s1 + $0x98] sm:$0xff]   ;;  %v709_v23 = vld [vmem:[%s913_s1 + $0x90] sm:$0xff]  }
   0x9   :  { %643 = vmatpush3.bf16.msra.mxu1 %v693_v7  ;;  %616 = vmatprep.subr.bf16.mxu0 %v694_v8  ;;  %v710_v24 = vld [vmem:[%s913_s1 + $0x48] sm:$0xff]   ;;  %v714_v28 = vld [vmem:[%s913_s1 + $0x40] sm:$0xff]   ;;  %v724_v36 = vld [vmem:[%s913_s1 + $0x118] sm:$0xff]  }
   0xa   :  { %644 = vmatprep.subr.bf16.mxu1 %v695_v9  ;;  %v711_v25 = vld [vmem:[%s913_s1 + $0xc8] sm:$0xff]   ;;  %v715_v29 = vld [vmem:[%s913_s1 + $0xc0] sm:$0xff]   ;;  %v725_v37 = vld [vmem:[%s913_s1 + $0x110] sm:$0xff]  }
   0xb   :  { %v712_v26 = vld [vmem:[%s913_s1 + $0x8] sm:$0xff]   ;;  %v716_v30 = vld [vmem:[%s913_s1] sm:$0xff]  }
   0xc   :  { %617 = vmatpush3.bf16.msra.mxu0 %v696_v10  ;;  %v713_v27 = vld [vmem:[%s913_s1 + $0x88] sm:$0xff]   ;;  %v717_v31 = vld [vmem:[%s913_s1 + $0x80] sm:$0xff]  }
   0xd   :  { %645 = vmatpush3.bf16.msra.mxu1 %v697_v11  ;;  %618 = vmatprep.subr.bf16.mxu0 %v698_v12  ;;  %v718_v32 = vld [vmem:[%s914_s0] ss:$20 sps:$4 sm:$0xff]   ;;  %v720_v33 = vld [vmem:[%s914_s0 + $0x4] ss:$20 sps:$4 sm:$0xff]   ;;  %v721_v34 = vld [vmem:[%s914_s0 + $0x8] ss:$20 sps:$4 sm:$0xff]  }
   0xe   :  { %646 = vmatprep.subr.bf16.mxu1 %v699_v13  ;;  %v723_v35 = vld [vmem:[%s914_s0 + $0xc] ss:$20 sps:$4 sm:$0xff]   ;;  %411 = vmatprep.mubr.bf16.mxu0 %v720_v33  ;;  %v728_v39 = vld [vmem:[%s914_s0 + $0x34] ss:$20 sps:$4 sm:$0xff]   ;;  %v731_v42 = vld [vmem:[%s914_s0 + $0x30] ss:$20 sps:$4 sm:$0xff]  }
   0xf   :  { %460 = vmatprep.mubr.bf16.mxu1 %v723_v35  ;;  %v726_v38 = vld [vmem:[%s914_s0 + $0x2c] ss:$20 sps:$4 sm:$0xff]   ;;  %v730_v40 = vld [vmem:[%s914_s0 + $0x28] ss:$20 sps:$4 sm:$0xff]   ;;  %v734_v43 = vld [vmem:[%s914_s0 + $0x10] ss:$20 sps:$4 sm:$0xff]  }
  0x10   :  { %619 = vmatpush3.bf16.msra.mxu0 %v700_v14  ;;  %v732_v41 = vld [vmem:[%s913_s1 + $0x108] sm:$0xff]   ;;  %v733_v44 = vld [vmem:[%s913_s1 + $0x100] sm:$0xff]  }
  0x11   :  { %647 = vmatpush3.bf16.msra.mxu1 %v701_v15  ;;  %620 = vmatprep.subr.bf16.mxu0 %v702_v16  ;;  %v735_v45 = vld [vmem:[%s914_s0 + $0x38] ss:$20 sps:$4 sm:$0xff]   ;;  %v555_v58 = vld [vmem:[%s915_s2] ss:$0 sm:$0xff] }
  0x12   :  { %648 = vmatprep.subr.bf16.mxu1 %v703_v17 }
  0x14   :  { %621 = vmatpush3.bf16.msra.mxu0 %v704_v18 }
  0x15   :  { %649 = vmatpush3.bf16.msra.mxu1 %v705_v19  ;;  %622 = vmatprep.subr.bf16.mxu0 %v706_v20 }
  0x16   :  { %650 = vmatprep.subr.bf16.mxu1 %v707_v21 }
  0x18   :  { %623 = vmatpush3.bf16.msra.mxu0 %v708_v22 }
  0x19   :  { %651 = vmatpush3.bf16.msra.mxu1 %v709_v23  ;;  %624 = vmatprep.subr.bf16.mxu0 %v710_v24 }
  0x1a   :  { %652 = vmatprep.subr.bf16.mxu1 %v711_v25 }
  0x1c   :  { %625 = vmatpush3.bf16.msra.mxu0 %v712_v26 }
  0x1d   :  { %653 = vmatpush3.bf16.msra.mxu1 %v713_v27  ;;  %626 = vmatprep.subr.bf16.mxu0 %v714_v28 }
  0x1e   :  { %654 = vmatprep.subr.bf16.mxu1 %v715_v29 }
  0x20   :  { %627 = vmatpush3.bf16.msra.mxu0 %v716_v30 }
  0x21   :  { %655 = vmatpush3.bf16.msra.mxu1 %v717_v31  ;;  %674 = vmatprep.subr.bf16.mxu0 %v724_v36 }
  0x23   :  { %412 = vmatmul.mubr.bf16.vlgmr.msra.gmra.mxu0 %v718_v32 }
  0x24   :  { %461 = vmatmul.mubr.bf16.vlgmr.msra.gmra.mxu1 %v721_v34  ;;  %675 = vmatpush3.bf16.msra.mxu0 %v724_v36 }
  0x25   :  { %676 = vmatprep.subr.bf16.mxu0 %v725_v37  ;;  %419 = vmatprep.mubr.bf16.mxu0 %v726_v38 }
  0x26   :  { %468 = vmatprep.mubr.bf16.mxu1 %v728_v39 }
  0x28   :  { %677 = vmatpush3.bf16.msra.mxu0 %v725_v37 }
  0x29   :  { %678 = vmatprep.subr.bf16.mxu0 %v732_v41 }
  0x2b   :  { %420 = vmatmul.mubr.bf16.gmra.mxu0 %v730_v40 }
  0x2c   :  { %469 = vmatmul.mubr.bf16.gmra.mxu1 %v731_v42  ;;  %682 = vmatprep.mubr.msk.bf16.mxu0 %vm372_vm0, %v734_v43 }
  0x2d   :  { %679 = vmatpush3.bf16.msra.mxu0 %v732_v41 }
  0x2e   :  { %680 = vmatprep.subr.bf16.mxu0 %v733_v44 }
  0x31   :  { %681 = vmatpush3.bf16.msra.mxu0 %v733_v44 }
  0x34   :  { %683 = vmatmul.mubr.msk.bf16.vlgmr.msra.gmra.mxu0 %vm372_vm0, %v735_v45 }
  0xe3   :  { %v628_v46 = vpop.f32.mrf.mxu0 }
  0xe4   :  { %v656_v47 = vpop.f32.mrf.mxu1 }
  0xe5   :  { %v629_v48 = vpop.f32.mrf.mxu0 }
  0xe6   :  { %v657_v49 = vpop.f32.mrf.mxu1  ;;  %v630_v56 = vadd.f32 %v629_v48, %v628_v46 }
  0xe7   :  { %v631_v50 = vpop.f32.mrf.mxu0  ;;  %v658_v2 = vadd.f32 %v657_v49, %v656_v47 }
  0xe8   :  { %v659_v51 = vpop.f32.mrf.mxu1  ;;  %v414_v1 = vadd.f32 %v630_v56, %v555_v58 }
  0xe9   :  { %v632_v52 = vpop.f32.mrf.mxu0 }
  0xea   :  { %v660_v53 = vpop.f32.mrf.mxu1  ;;  %v633_v3 = vadd.f32 %v632_v52, %v631_v50  ;;  %v463_v13 = vadd.f32 %v658_v2, %v414_v1 }
  0xeb   :  { %v634_v54 = vpop.f32.mrf.mxu0  ;;  %v661_v16 = vadd.f32 %v660_v53, %v659_v51 }
  0xec   :  { %v662_v55 = vpop.f32.mrf.mxu1  ;;  %v417_v11 = vadd.f32 %v633_v3, %v555_v58 }
  0xed   :  { %v635_v57 = vpop.f32.mrf.mxu0 }
  0xee   :  { %v636_v59 = vadd.f32 %v635_v57, %v634_v54  ;;  %v663_v60 = vpop.f32.mrf.mxu1  ;;  %v466_v23 = vadd.f32 %v661_v16, %v417_v11 }
  0xef   :  { %v664_v61 = vadd.f32 %v663_v60, %v662_v55  ;;  %v637_v62 = vpop.f32.mrf.mxu0 }
  0xf0   :  { %v422_v63 = vadd.f32 %v636_v59, %v555_v58  ;;  %v665_v0 = vpop.f32.mrf.mxu1 }
  0xf1   :  { %v638_v4 = vpop.f32.mrf.mxu0 }
  0xf2   :  { %v639_v5 = vadd.f32 %v638_v4, %v637_v62  ;;  %v666_v6 = vpop.f32.mrf.mxu1  ;;  %v471_v7 = vadd.f32 %v664_v61, %v422_v63 }
  0xf3   :  { %v667_v9 = vadd.f32 %v666_v6, %v665_v0 }
  0xf4   :  { %v425_v8 = vadd.f32 %v639_v5, %v555_v58  ;;  %v684_v10 = vpop.f32.mrf.mxu0 }
  0xf5   :  { %v520_v12 = vadd.f32 %v684_v10, %v471_v7 }
  0xf6   :  { %v511_v14 = vpop.f32.mrf.mxu0  ;;  %v474_v15 = vadd.f32 %v667_v9, %v425_v8 }
  0xf7   :  { %v528_v17 = vmax.f32 %v520_v12, 0.0  ;;  %v512_v18 = vadd.f32 %v511_v14, %v463_v13 }
  0xf8   :  { %v685_v19 = vpop.f32.mrf.mxu0 }
  0xf9   :  { %v610_v20 = vpack.c.bf16 %v528_v17, %v528_v17  ;;  %v526_v21 = vmax.f32 %v512_v18, 0.0  ;;  %v523_v22 = vadd.f32 %v685_v19, %v474_v15 }
  0xfa   :  { %v514_v24 = vpop.f32.mrf.mxu0 }
  0xfb   :  { %549 = vst.msk [vmem:[%s916_s3 + $0x8] sm:$0xf] %vm546_vm1, %v610_v20  ;;  %v608_v25 = vpack.c.bf16 %v526_v21, %v526_v21  ;;  %v529_v26 = vmax.f32 %v523_v22, 0.0  ;;  %v515_v27 = vadd.f32 %v514_v24, %v466_v23 }
  0xfd   :  { %547 = vst.msk [vmem:[%s916_s3] sm:$0xf] %vm546_vm1, %v608_v25  ;;  %v611_v28 = vpack.c.bf16 %v529_v26, %v529_v26  ;;  %v527_v29 = vmax.f32 %v515_v27, 0.0 }
  0xff   :  { %550 = vst.msk [vmem:[%s916_s3 + $0xc] sm:$0xf] %vm546_vm1, %v611_v28  ;;  %v609_v30 = vpack.c.bf16 %v527_v29, %v527_v29 }
 0x101   :  { %548 = vst.msk [vmem:[%s916_s3 + $0x4] sm:$0xf] %vm546_vm1, %v609_v30 }

// kernel: segnet_forward.22
= control target key start
LH: loop header
LB: loop body
LE: loop exit
PB: predicated region body
PF: predicated region fallthrough
CT: control target
= control target key end

     0   :  { %v1039_v34 = vmov 0.0   ;;  %vm1040_vm0 = vmmov 0   ;;  %vm454_vm1 = vcmask 523264   ;;  %vm732_vm2 = vcmask 519168   ;;  %s1331_s1 = inlined_call_operand.vmem [shape: bf16[576,64], index: 1, kind: input, shape index: {}]   ;;  %s1332_s0 = inlined_call_operand.vmem [shape: bf16[72,576], index: 0, kind: input, shape index: {}]   ;;  %s1333_s2 = inlined_call_operand.vmem [shape: f32[1,64], index: 2, kind: input, shape index: {}]   ;;  %s1334_s3 = inlined_call_operand.vmem [shape: bf16[72,64], index: 3, kind: output, shape index: {}]  }
   0x1   :  { %v970_v0 = vld [vmem:[%s1331_s1 + $0x78] sm:$0xff]   ;;  %v974_v4 = vld [vmem:[%s1331_s1 + $0x70] sm:$0xff]   ;;  %v978_v8 = vld [vmem:[%s1331_s1 + $0x68] sm:$0xff]  }
   0x2   :  { %v971_v1 = vld [vmem:[%s1331_s1 + $0xf8] sm:$0xff]   ;;  %831 = vmatprep.subr.bf16.mxu0 %v970_v0  ;;  %v975_v5 = vld [vmem:[%s1331_s1 + $0xf0] sm:$0xff]   ;;  %v979_v9 = vld [vmem:[%s1331_s1 + $0xe8] sm:$0xff]  }
   0x3   :  { %v972_v2 = vld [vmem:[%s1331_s1 + $0x38] sm:$0xff]   ;;  %877 = vmatprep.subr.bf16.mxu1 %v971_v1  ;;  %v976_v6 = vld [vmem:[%s1331_s1 + $0x30] sm:$0xff]   ;;  %v980_v10 = vld [vmem:[%s1331_s1 + $0x28] sm:$0xff]  }
   0x4   :  { %v973_v3 = vld [vmem:[%s1331_s1 + $0xb8] sm:$0xff]   ;;  %832 = vmatpush3.bf16.msra.mxu0 %v972_v2  ;;  %v977_v7 = vld [vmem:[%s1331_s1 + $0xb0] sm:$0xff]   ;;  %v981_v11 = vld [vmem:[%s1331_s1 + $0xa8] sm:$0xff]  }
   0x5   :  { %878 = vmatpush3.bf16.msra.mxu1 %v973_v3  ;;  %833 = vmatprep.subr.bf16.mxu0 %v974_v4  ;;  %v982_v12 = vld [vmem:[%s1331_s1 + $0x60] sm:$0xff]   ;;  %v986_v16 = vld [vmem:[%s1331_s1 + $0x58] sm:$0xff]   ;;  %v990_v20 = vld [vmem:[%s1331_s1 + $0x50] sm:$0xff]  }
   0x6   :  { %879 = vmatprep.subr.bf16.mxu1 %v975_v5  ;;  %v983_v13 = vld [vmem:[%s1331_s1 + $0xe0] sm:$0xff]   ;;  %v987_v17 = vld [vmem:[%s1331_s1 + $0xd8] sm:$0xff]   ;;  %v991_v21 = vld [vmem:[%s1331_s1 + $0xd0] sm:$0xff]  }
   0x7   :  { %v984_v14 = vld [vmem:[%s1331_s1 + $0x20] sm:$0xff]   ;;  %v988_v18 = vld [vmem:[%s1331_s1 + $0x18] sm:$0xff]   ;;  %v992_v22 = vld [vmem:[%s1331_s1 + $0x10] sm:$0xff]  }
   0x8   :  { %834 = vmatpush3.bf16.msra.mxu0 %v976_v6  ;;  %v985_v15 = vld [vmem:[%s1331_s1 + $0xa0] sm:$0xff]   ;;  %v989_v19 = vld [vmem:[%s1331_s1 + $0x98] sm:$0xff]   ;;  %v993_v23 = vld [vmem:[%s1331_s1 + $0x90] sm:$0xff]  }
   0x9   :  { %880 = vmatpush3.bf16.msra.mxu1 %v977_v7  ;;  %835 = vmatprep.subr.bf16.mxu0 %v978_v8  ;;  %v994_v24 = vld [vmem:[%s1331_s1 + $0x48] sm:$0xff]   ;;  %v998_v28 = vld [vmem:[%s1331_s1 + $0x40] sm:$0xff]   ;;  %v1008_v37 = vld [vmem:[%s1331_s1 + $0x118] sm:$0xff]  }
   0xa   :  { %881 = vmatprep.subr.bf16.mxu1 %v979_v9  ;;  %v995_v25 = vld [vmem:[%s1331_s1 + $0xc8] sm:$0xff]   ;;  %v999_v29 = vld [vmem:[%s1331_s1 + $0xc0] sm:$0xff]   ;;  %v1015_v40 = vld [vmem:[%s1331_s1 + $0x110] sm:$0xff]  }
   0xb   :  { %v996_v26 = vld [vmem:[%s1331_s1 + $0x8] sm:$0xff]   ;;  %v1000_v30 = vld [vmem:[%s1331_s1] sm:$0xff]   ;;  %v1018_v44 = vld [vmem:[%s1332_s0 + $0x5c] ss:$20 sps:$4 sm:$0xff]  }
   0xc   :  { %836 = vmatpush3.bf16.msra.mxu0 %v980_v10  ;;  %v997_v27 = vld [vmem:[%s1331_s1 + $0x88] sm:$0xff]   ;;  %v1001_v31 = vld [vmem:[%s1331_s1 + $0x80] sm:$0xff]   ;;  %v1023_v49 = vld [vmem:[%s1332_s0 + $0x7c] ss:$20 sps:$4 sm:$0xff]  }
   0xd   :  { %882 = vmatpush3.bf16.msra.mxu1 %v981_v11  ;;  %837 = vmatprep.subr.bf16.mxu0 %v982_v12  ;;  %v1002_v32 = vld [vmem:[%s1332_s0] ss:$20 sps:$4 sm:$0xff]   ;;  %v1004_v33 = vld [vmem:[%s1332_s0 + $0x4] ss:$20 sps:$4 sm:$0xff]   ;;  %v1005_v35 = vld [vmem:[%s1332_s0 + $0x8] ss:$20 sps:$4 sm:$0xff]  }
   0xe   :  { %883 = vmatprep.subr.bf16.mxu1 %v983_v13  ;;  %v1007_v36 = vld [vmem:[%s1332_s0 + $0xc] ss:$20 sps:$4 sm:$0xff]   ;;  %502 = vmatprep.mubr.bf16.mxu0 %v1004_v33  ;;  %v1011_v39 = vld [vmem:[%s1332_s0 + $0x34] ss:$20 sps:$4 sm:$0xff]   ;;  %v1014_v42 = vld [vmem:[%s1332_s0 + $0x30] ss:$20 sps:$4 sm:$0xff]  }
   0xf   :  { %574 = vmatprep.mubr.bf16.mxu1 %v1007_v36  ;;  %v1009_v38 = vld [vmem:[%s1332_s0 + $0x2c] ss:$20 sps:$4 sm:$0xff]   ;;  %v1013_v41 = vld [vmem:[%s1332_s0 + $0x28] ss:$20 sps:$4 sm:$0xff]   ;;  %v1020_v46 = vld [vmem:[%s1332_s0 + $0x50] ss:$20 sps:$4 sm:$0xff]  }
  0x10   :  { %838 = vmatpush3.bf16.msra.mxu0 %v984_v14  ;;  %v1016_v43 = vld [vmem:[%s1332_s0 + $0x54] ss:$20 sps:$4 sm:$0xff]   ;;  %v1031_v47 = vld [vmem:[%s1331_s1 + $0x100] sm:$0xff]   ;;  %v1021_v48 = vld [vmem:[%s1332_s0 + $0x58] ss:$20 sps:$4 sm:$0xff]  }
  0x11   :  { %884 = vmatpush3.bf16.msra.mxu1 %v985_v15  ;;  %839 = vmatprep.subr.bf16.mxu0 %v986_v16  ;;  %v1022_v45 = vld [vmem:[%s1331_s1 + $0x108] sm:$0xff]   ;;  %v1025_v50 = vld [vmem:[%s1332_s0 + $0x84] ss:$20 sps:$4 sm:$0xff]   ;;  %v1028_v54 = vld [vmem:[%s1332_s0 + $0x80] ss:$20 sps:$4 sm:$0xff]  }
  0x12   :  { %885 = vmatprep.subr.bf16.mxu1 %v987_v17  ;;  %v39_v51 = vld [vmem:[%s1332_s0 + $0xa0] sm:$0xff]  ;;  %v40_v52 = vld [vmem:[%s1332_s0 + $0xa8] sm:$0xff]  ;;  %v1037_v62 = vld [vmem:[%s1332_s0 + $0xb0] ss:$0 sps:$4 sm:$0xff]  }
  0x13   :  { %v1027_v53 = vld [vmem:[%s1332_s0 + $0x78] ss:$20 sps:$4 sm:$0xff]   ;;  %v768_v55 = vcombine.high %v39_v51, %v39_v51  ;;  %v770_v56 = vcombine.high %v40_v52, %v40_v52  ;;  %v767_v57 = vcombine.low %v39_v51, %v39_v51  ;;  %v769_v58 = vcombine.low %v40_v52, %v40_v52  ;;  %v1034_v59 = vld [vmem:[%s1332_s0 + $0x10] ss:$20 sps:$4 sm:$0xff]   ;;  %v1035_v60 = vld [vmem:[%s1332_s0 + $0x88] ss:$20 sps:$4 sm:$0xff]  }
  0x14   :  { %840 = vmatpush3.bf16.msra.mxu0 %v988_v18  ;;  %v1036_v61 = vld [vmem:[%s1332_s0 + $0x38] ss:$20 sps:$4 sm:$0xff]   ;;  %v1038_v63 = vld [vmem:[%s1332_s0 + $0x60] ss:$20 sps:$4 sm:$0xff]  }
  0x15   :  { %886 = vmatpush3.bf16.msra.mxu1 %v989_v19  ;;  %841 = vmatprep.subr.bf16.mxu0 %v990_v20  ;;  %v1274_v33 = vld [vmem:[%s1333_s2] ss:$0 sm:$0xff] }
  0x16   :  { %887 = vmatprep.subr.bf16.mxu1 %v991_v21 }
  0x18   :  { %842 = vmatpush3.bf16.msra.mxu0 %v992_v22 }
  0x19   :  { %888 = vmatpush3.bf16.msra.mxu1 %v993_v23  ;;  %843 = vmatprep.subr.bf16.mxu0 %v994_v24 }
  0x1a   :  { %889 = vmatprep.subr.bf16.mxu1 %v995_v25 }
  0x1c   :  { %844 = vmatpush3.bf16.msra.mxu0 %v996_v26 }
  0x1d   :  { %890 = vmatpush3.bf16.msra.mxu1 %v997_v27  ;;  %845 = vmatprep.subr.bf16.mxu0 %v998_v28 }
  0x1e   :  { %891 = vmatprep.subr.bf16.mxu1 %v999_v29 }
  0x20   :  { %846 = vmatpush3.bf16.msra.mxu0 %v1000_v30 }
  0x21   :  { %892 = vmatpush3.bf16.msra.mxu1 %v1001_v31  ;;  %932 = vmatprep.subr.bf16.mxu0 %v1039_v34 }
  0x22   :  { %960 = vmatprep.subr.bf16.mxu1 %v1039_v34 }
  0x23   :  { %503 = vmatmul.mubr.bf16.vlgmr.msra.gmra.mxu0 %v1002_v32 }
  0x24   :  { %575 = vmatmul.mubr.bf16.vlgmr.msra.gmra.mxu1 %v1005_v35  ;;  %933 = vmatpush3.bf16.msra.mxu0 %v1008_v37 }
  0x25   :  { %510 = vmatprep.mubr.bf16.mxu0 %v1009_v38  ;;  %934 = vmatprep.subr.bf16.mxu0 %v1039_v34 }
  0x26   :  { %582 = vmatprep.mubr.bf16.mxu1 %v1011_v39  ;;  %964 = vmatpush3.bf16.msra.mxu1 %v1008_v37 }
  0x27   :  { %961 = vmatprep.subr.bf16.mxu1 %v1039_v34 }
  0x28   :  { %935 = vmatpush3.bf16.msra.mxu0 %v1015_v40 }
  0x29   :  { %936 = vmatprep.subr.bf16.mxu0 %v1039_v34 }
  0x2a   :  { %965 = vmatpush3.bf16.msra.mxu1 %v1015_v40 }
  0x2b   :  { %511 = vmatmul.mubr.bf16.gmra.mxu0 %v1013_v41  ;;  %962 = vmatprep.subr.bf16.mxu1 %v1039_v34 }
  0x2c   :  { %583 = vmatmul.mubr.bf16.gmra.mxu1 %v1014_v42  ;;  %518 = vmatprep.mubr.bf16.mxu0 %v1016_v43 }
  0x2d   :  { %590 = vmatprep.mubr.bf16.mxu1 %v1018_v44  ;;  %937 = vmatpush3.bf16.msra.mxu0 %v1022_v45 }
  0x2e   :  { %938 = vmatprep.subr.bf16.mxu0 %v1039_v34  ;;  %966 = vmatpush3.bf16.msra.mxu1 %v1022_v45 }
  0x2f   :  { %963 = vmatprep.subr.bf16.mxu1 %v1039_v34 }
  0x31   :  { %939 = vmatpush3.bf16.msra.mxu0 %v1031_v47 }
  0x32   :  { %967 = vmatpush3.bf16.msra.mxu1 %v1031_v47 }
  0x33   :  { %519 = vmatmul.mubr.bf16.gmra.mxu0 %v1020_v46 }
  0x34   :  { %591 = vmatmul.mubr.bf16.gmra.mxu1 %v1021_v48  ;;  %526 = vmatprep.mubr.bf16.mxu0 %v1023_v49 }
  0x35   :  { %598 = vmatprep.mubr.bf16.mxu1 %v1025_v50 }
  0x3b   :  { %527 = vmatmul.mubr.bf16.gmra.mxu0 %v1027_v53 }
  0x3c   :  { %599 = vmatmul.mubr.bf16.gmra.mxu1 %v1028_v54  ;;  %534 = vmatprep.mubr.bf16.mxu0 %v768_v55 }
  0x3d   :  { %606 = vmatprep.mubr.bf16.mxu1 %v770_v56 }
  0x43   :  { %535 = vmatmul.mubr.bf16.gmra.mxu0 %v767_v57 }
  0x44   :  { %607 = vmatmul.mubr.bf16.gmra.mxu1 %v769_v58  ;;  %940 = vmatprep.mubr.msk.bf16.mxu0 %vm1040_vm0, %v1039_v34 }
  0x45   :  { %952 = vmatprep.mubr.msk.bf16.mxu1 %vm1040_vm0, %v1039_v34 }
  0x4b   :  { %941 = vmatmul.mubr.msk.bf16.vlgmr.msra.gmra.mxu0 %vm454_vm1, %v1034_v59 }
  0x4c   :  { %953 = vmatmul.mubr.msk.bf16.vlgmr.msra.gmra.mxu1 %vm454_vm1, %v1035_v60  ;;  %944 = vmatprep.mubr.msk.bf16.mxu0 %vm1040_vm0, %v1039_v34 }
  0x4d   :  { %956 = vmatprep.mubr.msk.bf16.mxu1 %vm1040_vm0, %v1039_v34 }
  0x53   :  { %945 = vmatmul.mubr.msk.bf16.gmra.mxu0 %vm454_vm1, %v1036_v61 }
  0x54   :  { %957 = vmatmul.mubr.msk.bf16.gmra.mxu1 %vm454_vm1, %v1037_v62  ;;  %948 = vmatprep.mubr.msk.bf16.mxu0 %vm1040_vm0, %v1039_v34 }
  0x5b   :  { %949 = vmatmul.mubr.msk.bf16.gmra.mxu0 %vm454_vm1, %v1038_v63 }
  0xe3   :  { %v847_v0 = vpop.f32.mrf.mxu0 }
  0xe4   :  { %v893_v1 = vpop.f32.mrf.mxu1 }
  0xe5   :  { %v848_v2 = vpop.f32.mrf.mxu0 }
  0xe6   :  { %v894_v3 = vpop.f32.mrf.mxu1  ;;  %v849_v31 = vadd.f32 %v848_v2, %v847_v0 }
  0xe7   :  { %v850_v4 = vpop.f32.mrf.mxu0  ;;  %v895_v39 = vadd.f32 %v894_v3, %v893_v1 }
  0xe8   :  { %v896_v5 = vpop.f32.mrf.mxu1  ;;  %v505_v38 = vadd.f32 %v849_v31, %v1274_v33 }
  0xe9   :  { %v851_v6 = vpop.f32.mrf.mxu0 }
  0xea   :  { %v897_v7 = vpop.f32.mrf.mxu1  ;;  %v852_v40 = vadd.f32 %v851_v6, %v850_v4  ;;  %v577_v52 = vadd.f32 %v895_v39, %v505_v38 }
  0xeb   :  { %v853_v8 = vpop.f32.mrf.mxu0  ;;  %v898_v49 = vadd.f32 %v897_v7, %v896_v5 }
  0xec   :  { %v899_v9 = vpop.f32.mrf.mxu1  ;;  %v508_v48 = vadd.f32 %v852_v40, %v1274_v33 }
  0xed   :  { %v854_v10 = vpop.f32.mrf.mxu0 }
  0xee   :  { %v900_v11 = vpop.f32.mrf.mxu1  ;;  %v855_v50 = vadd.f32 %v854_v10, %v853_v8  ;;  %v580_v3 = vadd.f32 %v898_v49, %v508_v48 }
  0xef   :  { %v856_v12 = vpop.f32.mrf.mxu0  ;;  %v901_v0 = vadd.f32 %v900_v11, %v899_v9 }
  0xf0   :  { %v1251_v13 = vpop.f32.mrf.mxu1  ;;  %v513_v63 = vadd.f32 %v855_v50, %v1274_v33 }
  0xf1   :  { %v857_v14 = vpop.f32.mrf.mxu0 }
  0xf2   :  { %v1253_v15 = vpop.f32.mrf.mxu1  ;;  %v858_v60 = vadd.f32 %v857_v14, %v856_v12 }
  0xf3   :  { %v1255_v16 = vpop.f32.mrf.mxu0  ;;  %v904_v14 = vadd.f32 %v1253_v15, %v1251_v13 }
  0xf4   :  { %v1257_v17 = vpop.f32.mrf.mxu1  ;;  %v516_v12 = vadd.f32 %v858_v60, %v1274_v33 }
  0xf5   :  { %v1259_v18 = vpop.f32.mrf.mxu0 }
  0xf6   :  { %v1261_v19 = vpop.f32.mrf.mxu1  ;;  %v861_v11 = vadd.f32 %v1259_v18, %v1255_v16 }
  0xf7   :  { %v1263_v20 = vpop.f32.mrf.mxu0  ;;  %v907_v39 = vadd.f32 %v1261_v19, %v1257_v17 }
  0xf8   :  { %v1265_v21 = vpop.f32.mrf.mxu1  ;;  %v521_v38 = vadd.f32 %v861_v11, %v1274_v33 }
  0xf9   :  { %v1267_v22 = vpop.f32.mrf.mxu0 }
  0xfa   :  { %v1269_v23 = vpop.f32.mrf.mxu1  ;;  %v864_v40 = vadd.f32 %v1267_v22, %v1263_v20  ;;  %v593_v49 = vadd.f32 %v907_v39, %v521_v38 }
  0xfb   :  { %v865_v24 = vpop.f32.mrf.mxu0  ;;  %v910_v22 = vadd.f32 %v1269_v23, %v1265_v21 }
  0xfc   :  { %v911_v25 = vpop.f32.mrf.mxu1  ;;  %v524_v20 = vadd.f32 %v864_v40, %v1274_v33 }
  0xfd   :  { %v866_v26 = vpop.f32.mrf.mxu0 }
  0xfe   :  { %v912_v27 = vpop.f32.mrf.mxu1  ;;  %v867_v34 = vadd.f32 %v866_v26, %v865_v24  ;;  %v596_v23 = vadd.f32 %v910_v22, %v524_v20 }
  0xff   :  { %v868_v28 = vpop.f32.mrf.mxu0  ;;  %v913_v43 = vadd.f32 %v912_v27, %v911_v25 }
 0x100   :  { %v914_v29 = vpop.f32.mrf.mxu1  ;;  %v529_v42 = vadd.f32 %v867_v34, %v1274_v33 }
 0x101   :  { %v869_v30 = vpop.f32.mrf.mxu0 }
 0x102   :  { %v915_v32 = vpop.f32.mrf.mxu1  ;;  %v870_v44 = vadd.f32 %v869_v30, %v868_v28  ;;  %v601_v57 = vadd.f32 %v913_v43, %v529_v42  ;;  %v585_v30 = vadd.f32 %v901_v0, %v513_v63 }
 0x103   :  { %v871_v35 = vpop.f32.mrf.mxu0  ;;  %v916_v54 = vadd.f32 %v915_v32, %v914_v29 }
 0x104   :  { %v917_v36 = vpop.f32.mrf.mxu1  ;;  %v532_v53 = vadd.f32 %v870_v44, %v1274_v33 }
 0x105   :  { %v872_v37 = vpop.f32.mrf.mxu0 }
 0x106   :  { %v918_v41 = vpop.f32.mrf.mxu1  ;;  %v873_v55 = vadd.f32 %v872_v37, %v871_v35  ;;  %v604_v8 = vadd.f32 %v916_v54, %v532_v53  ;;  %v588_v37 = vadd.f32 %v904_v14, %v516_v12 }
 0x107   :  { %v874_v45 = vpop.f32.mrf.mxu0  ;;  %v919_v5 = vadd.f32 %v918_v41, %v917_v36 }
 0x108   :  { %v920_v46 = vpop.f32.mrf.mxu1  ;;  %v537_v4 = vadd.f32 %v873_v55, %v1274_v33 }
 0x109   :  { %v875_v47 = vpop.f32.mrf.mxu0 }
 0x10a   :  { %v921_v51 = vpop.f32.mrf.mxu1  ;;  %v609_v31 = vadd.f32 %v919_v5, %v537_v4 }
 0x10b   :  { %v648_v56 = vpop.f32.mrf.mxu0 }
 0x10c   :  { %v649_v58 = vadd.f32 %v648_v56, %v577_v52  ;;  %v672_v59 = vpop.f32.mrf.mxu1 }
 0x10d   :  { %v673_v61 = vadd.f32 %v672_v59, %v601_v57  ;;  %v942_v62 = vpop.f32.mrf.mxu0 }
 0x10e   :  { %v686_v1 = vmax.f32 %v649_v58, 0.0  ;;  %v954_v2 = vpop.f32.mrf.mxu1 }
 0x10f   :  { %v692_v6 = vmax.f32 %v673_v61, 0.0  ;;  %v651_v7 = vpop.f32.mrf.mxu0 }
 0x110   :  { %v822_v10 = vpack.c.bf16 %v686_v1, %v686_v1  ;;  %v652_v24 = vadd.f32 %v651_v7, %v580_v3  ;;  %v675_v25 = vpop.f32.mrf.mxu1 }
 0x111   :  { %v828_v26 = vpack.c.bf16 %v692_v6, %v692_v6  ;;  %v676_v27 = vadd.f32 %v675_v25, %v604_v8  ;;  %v943_v9 = vpop.f32.mrf.mxu0 }
 0x112   :  { %733 = vst.msk [vmem:[%s1334_s3] sm:$0xf] %vm732_vm2, %v822_v10  ;;  %v687_v28 = vmax.f32 %v652_v24, 0.0  ;;  %v955_v29 = vpop.f32.mrf.mxu1 }
 0x113   :  { %739 = vst.msk [vmem:[%s1334_s3 + $0x18] sm:$0xf] %vm732_vm2, %v828_v26  ;;  %v693_v13 = vmax.f32 %v676_v27, 0.0  ;;  %v656_v15 = vpop.f32.mrf.mxu0 }
 0x114   :  { %v823_v32 = vpack.c.bf16 %v687_v28, %v687_v28  ;;  %v657_v34 = vadd.f32 %v656_v15, %v585_v30  ;;  %v680_v35 = vpop.f32.mrf.mxu1 }
 0x115   :  { %v829_v16 = vpack.c.bf16 %v693_v13, %v693_v13  ;;  %v681_v18 = vadd.f32 %v680_v35, %v609_v31  ;;  %v946_v36 = vpop.f32.mrf.mxu0 }
 0x116   :  { %734 = vst.msk [vmem:[%s1334_s3 + $0x4] sm:$0xf] %vm732_vm2, %v823_v32  ;;  %v688_v41 = vmax.f32 %v657_v34, 0.0  ;;  %v958_v42 = vpop.f32.mrf.mxu1 }
 0x117   :  { %740 = vst.msk [vmem:[%s1334_s3 + $0x1c] sm:$0xf] %vm732_vm2, %v829_v16  ;;  %v694_v43 = vmax.f32 %v681_v18, 0.0  ;;  %v659_v44 = vpop.f32.mrf.mxu0 }
 0x118   :  { %v824_v45 = vpack.c.bf16 %v688_v41, %v688_v41  ;;  %v660_v46 = vadd.f32 %v659_v44, %v588_v37  ;;  %v683_v17 = vpop.f32.mrf.mxu1 }
 0x119   :  { %v830_v19 = vpack.c.bf16 %v694_v43, %v694_v43  ;;  %v947_v47 = vpop.f32.mrf.mxu0 }
 0x11a   :  { %735 = vst.msk [vmem:[%s1334_s3 + $0x8] sm:$0xf] %vm732_vm2, %v824_v45  ;;  %v689_v48 = vmax.f32 %v660_v46, 0.0  ;;  %v959_v50 = vpop.f32.mrf.mxu1 }
 0x11b   :  { %741 = vst.msk [vmem:[%s1334_s3 + $0x20] sm:$0xf] %vm732_vm2, %v830_v19  ;;  %v664_v51 = vpop.f32.mrf.mxu0 }
 0x11c   :  { %v825_v52 = vpack.c.bf16 %v689_v48, %v689_v48  ;;  %v665_v53 = vadd.f32 %v664_v51, %v593_v49 }
 0x11d   :  { %v950_v33 = vpop.f32.mrf.mxu0 }
 0x11e   :  { %736 = vst.msk [vmem:[%s1334_s3 + $0xc] sm:$0xf] %vm732_vm2, %v825_v52  ;;  %v690_v21 = vmax.f32 %v665_v53, 0.0 }
 0x11f   :  { %v667_v54 = vpop.f32.mrf.mxu0 }
 0x120   :  { %v826_v55 = vpack.c.bf16 %v690_v21, %v690_v21  ;;  %v668_v56 = vadd.f32 %v667_v54, %v596_v23 }
 0x121   :  { %v951_v57 = vpop.f32.mrf.mxu0 }
 0x122   :  { %737 = vst.msk [vmem:[%s1334_s3 + $0x10] sm:$0xf] %vm732_vm2, %v826_v55  ;;  %v691_v58 = vmax.f32 %v668_v56, 0.0 }
 0x124   :  { %v827_v59 = vpack.c.bf16 %v691_v58, %v691_v58 }
 0x126   :  { %738 = vst.msk [vmem:[%s1334_s3 + $0x14] sm:$0xf] %vm732_vm2, %v827_v59 }

// kernel: segnet_forward.24
= control target key start
LH: loop header
LB: loop body
LE: loop exit
PB: predicated region body
PF: predicated region fallthrough
CT: control target
= control target key end

     0   :  { %v647_v1 = vmov 0.0   ;;  %vm648_vm0 = vmmov 0   ;;  %vm254_vm1 = vcmask 261120   ;;  %vm460_vm2 = vcmask 257024   ;;  %s832_s1 = inlined_call_operand.vmem [shape: bf16[288,32], index: 1, kind: input, shape index: {}]   ;;  %s833_s0 = inlined_call_operand.vmem [shape: bf16[72,288], index: 0, kind: input, shape index: {}]   ;;  %s834_s2 = inlined_call_operand.vmem [shape: f32[1,32], index: 2, kind: input, shape index: {}]   ;;  %s835_s3 = inlined_call_operand.vmem [shape: bf16[72,32], index: 3, kind: output, shape index: {}]  }
   0x1   :  { %v610_v0 = vld [vmem:[%s832_s1 + $0x78] sm:$0xff]   ;;  %584 = vmatprep.subr.bf16.mxu1 %v647_v1  ;;  %588 = vmatprep.mubr.msk.bf16.mxu1 %vm648_vm0, %v647_v1  ;;  %v612_v3 = vld [vmem:[%s832_s1 + $0x70] sm:$0xff]   ;;  %v614_v5 = vld [vmem:[%s832_s1 + $0x68] sm:$0xff]  }
   0x2   :  { %v611_v2 = vld [vmem:[%s832_s1 + $0x38] sm:$0xff]   ;;  %531 = vmatprep.subr.bf16.mxu0 %v610_v0  ;;  %v613_v4 = vld [vmem:[%s832_s1 + $0x30] sm:$0xff]   ;;  %v615_v6 = vld [vmem:[%s832_s1 + $0x28] sm:$0xff]  }
   0x3   :  { %532 = vmatpush3.bf16.msra.mxu0 %v611_v2  ;;  %v616_v7 = vld [vmem:[%s832_s1 + $0x60] sm:$0xff]   ;;  %v618_v9 = vld [vmem:[%s832_s1 + $0x58] sm:$0xff]   ;;  %v624_v10 = vld [vmem:[%s832_s1 + $0x88] sm:$0xff]  }
   0x4   :  { %533 = vmatprep.subr.bf16.mxu0 %v612_v3  ;;  %v617_v8 = vld [vmem:[%s832_s1 + $0x20] sm:$0xff]   ;;  %v619_v11 = vld [vmem:[%s832_s1 + $0x18] sm:$0xff]   ;;  %v620_v12 = vld [vmem:[%s832_s1 + $0x50] sm:$0xff]   ;;  %585 = vmatpush3.bf16.msra.mxu1 %v624_v10 }
   0x5   :  { %v621_v13 = vld [vmem:[%s832_s1 + $0x10] sm:$0xff]   ;;  %586 = vmatprep.subr.bf16.mxu1 %v647_v1  ;;  %v627_v14 = vld [vmem:[%s832_s1 + $0x80] sm:$0xff]   ;;  %v622_v15 = vld [vmem:[%s832_s1 + $0x48] sm:$0xff]  }
   0x6   :  { %v630_v16 = vld [vmem:[%s833_s0 + $0x4] ss:$12 sps:$4 sm:$0xff]   ;;  %v631_v17 = vld [vmem:[%s833_s0 + $0x8] ss:$12 sps:$4 sm:$0xff]   ;;  %v635_v21 = vld [vmem:[%s833_s0 + $0x20] ss:$12 sps:$4 sm:$0xff]  }
   0x7   :  { %534 = vmatpush3.bf16.msra.mxu0 %v613_v4  ;;  %302 = vmatprep.mubr.bf16.mxu0 %v630_v16  ;;  %v623_v18 = vld [vmem:[%s832_s1 + $0x8] sm:$0xff]   ;;  %v625_v19 = vld [vmem:[%s832_s1 + $0x40] sm:$0xff]   ;;  %v643_v27 = vld [vmem:[%s833_s0 + $0x50] ss:$12 sps:$4 sm:$0xff]  }
   0x8   :  { %535 = vmatprep.subr.bf16.mxu0 %v614_v5  ;;  %587 = vmatpush3.bf16.msra.mxu1 %v627_v14  ;;  %v626_v20 = vld [vmem:[%s832_s1] sm:$0xff]   ;;  %v632_v23 = vld [vmem:[%s833_s0 + $0x1c] ss:$12 sps:$4 sm:$0xff]   ;;  %v640_v29 = vld [vmem:[%s833_s0 + $0x4c] ss:$12 sps:$4 sm:$0xff]  }
   0x9   :  { %v628_v22 = vld [vmem:[%s833_s0] ss:$12 sps:$4 sm:$0xff]   ;;  %v639_v24 = vld [vmem:[%s833_s0 + $0x38] ss:$12 sps:$4 sm:$0xff]   ;;  %v638_v28 = vld [vmem:[%s833_s0 + $0x30] ss:$12 sps:$4 sm:$0xff]  }
   0xa   :  { %v634_v25 = vld [vmem:[%s833_s0 + $0x18] ss:$12 sps:$4 sm:$0xff]   ;;  %v636_v26 = vld [vmem:[%s833_s0 + $0x34] ss:$12 sps:$4 sm:$0xff]   ;;  %v646_v30 = vld [vmem:[%s833_s0 + $0x68] ss:$0 sps:$4 sm:$0xff]  }
   0xb   :  { %536 = vmatpush3.bf16.msra.mxu0 %v615_v6  ;;  %589 = vmatmul.mubr.msk.bf16.vlgmr.msra.gmra.mxu1 %vm254_vm1, %v631_v17  ;;  %v31_v31 = vld [vmem:[%s833_s0 + $0x60] sm:$0xff]  ;;  %v642_v32 = vld [vmem:[%s833_s0 + $0x48] ss:$12 sps:$4 sm:$0xff]  }
   0xc   :  { %537 = vmatprep.subr.bf16.mxu0 %v616_v7  ;;  %592 = vmatprep.mubr.msk.bf16.mxu1 %vm648_vm0, %v647_v1  ;;  %v488_v33 = vcombine.high %v31_v31, %v31_v31  ;;  %v487_v34 = vcombine.low %v31_v31, %v31_v31  ;;  %v785_v43 = vld [vmem:[%s834_s2] ss:$0 sm:$0xff] }
   0xf   :  { %538 = vmatpush3.bf16.msra.mxu0 %v617_v8 }
  0x10   :  { %539 = vmatprep.subr.bf16.mxu0 %v618_v9 }
  0x13   :  { %540 = vmatpush3.bf16.msra.mxu0 %v619_v11  ;;  %593 = vmatmul.mubr.msk.bf16.gmra.mxu1 %vm254_vm1, %v635_v21 }
  0x14   :  { %541 = vmatprep.subr.bf16.mxu0 %v620_v12  ;;  %596 = vmatprep.mubr.msk.bf16.mxu1 %vm648_vm0, %v647_v1 }
  0x17   :  { %542 = vmatpush3.bf16.msra.mxu0 %v621_v13 }
  0x18   :  { %543 = vmatprep.subr.bf16.mxu0 %v622_v15 }
  0x1b   :  { %544 = vmatpush3.bf16.msra.mxu0 %v623_v18  ;;  %597 = vmatmul.mubr.msk.bf16.gmra.mxu1 %vm254_vm1, %v639_v24 }
  0x1c   :  { %545 = vmatprep.subr.bf16.mxu0 %v625_v19  ;;  %600 = vmatprep.mubr.msk.bf16.mxu1 %vm648_vm0, %v647_v1 }
  0x1f   :  { %546 = vmatpush3.bf16.msra.mxu0 %v626_v20 }
  0x22   :  { %303 = vmatmul.mubr.bf16.vlgmr.msra.gmra.mxu0 %v628_v22 }
  0x23   :  { %310 = vmatprep.mubr.bf16.mxu0 %v632_v23  ;;  %601 = vmatmul.mubr.msk.bf16.gmra.mxu1 %vm254_vm1, %v643_v27 }
  0x24   :  { %604 = vmatprep.mubr.msk.bf16.mxu1 %vm648_vm0, %v647_v1 }
  0x2a   :  { %311 = vmatmul.mubr.bf16.gmra.mxu0 %v634_v25 }
  0x2b   :  { %318 = vmatprep.mubr.bf16.mxu0 %v636_v26  ;;  %605 = vmatmul.mubr.msk.bf16.gmra.mxu1 %vm254_vm1, %v646_v30 }
  0x32   :  { %319 = vmatmul.mubr.bf16.gmra.mxu0 %v638_v28 }
  0x33   :  { %326 = vmatprep.mubr.bf16.mxu0 %v640_v29 }
  0x3a   :  { %327 = vmatmul.mubr.bf16.gmra.mxu0 %v642_v32 }
  0x3b   :  { %334 = vmatprep.mubr.bf16.mxu0 %v488_v33 }
  0x42   :  { %335 = vmatmul.mubr.bf16.gmra.mxu0 %v487_v34 }
  0xcb   :  { %v376_v35 = vpop.f32.mrf.mxu1 }
  0xcd   :  { %v590_v36 = vpop.f32.mrf.mxu1 }
  0xcf   :  { %v379_v37 = vpop.f32.mrf.mxu1 }
  0xd1   :  { %v591_v38 = vpop.f32.mrf.mxu1 }
  0xd3   :  { %v384_v39 = vpop.f32.mrf.mxu1 }
  0xd5   :  { %v594_v40 = vpop.f32.mrf.mxu1 }
  0xd7   :  { %v387_v42 = vpop.f32.mrf.mxu1 }
  0xd9   :  { %v595_v46 = vpop.f32.mrf.mxu1 }
  0xdb   :  { %v392_v49 = vpop.f32.mrf.mxu1 }
  0xdd   :  { %v598_v53 = vpop.f32.mrf.mxu1 }
  0xdf   :  { %v395_v57 = vpop.f32.mrf.mxu1 }
  0xe1   :  { %v599_v62 = vpop.f32.mrf.mxu1 }
  0xe2   :  { %v547_v41 = vpop.f32.mrf.mxu0 }
  0xe3   :  { %v400_v2 = vpop.f32.mrf.mxu1 }
  0xe4   :  { %v548_v44 = vpop.f32.mrf.mxu0 }
  0xe5   :  { %v549_v45 = vadd.f32 %v548_v44, %v547_v41  ;;  %v602_v7 = vpop.f32.mrf.mxu1 }
  0xe6   :  { %v550_v47 = vpop.f32.mrf.mxu0 }
  0xe7   :  { %v305_v48 = vadd.f32 %v549_v45, %v785_v43  ;;  %v403_v11 = vpop.f32.mrf.mxu1 }
  0xe8   :  { %v551_v50 = vpop.f32.mrf.mxu0 }
  0xe9   :  { %v377_v51 = vadd.f32 %v376_v35, %v305_v48  ;;  %v552_v52 = vadd.f32 %v551_v50, %v550_v47  ;;  %v603_v16 = vpop.f32.mrf.mxu1 }
  0xea   :  { %v553_v54 = vpop.f32.mrf.mxu0 }
  0xeb   :  { %v414_v55 = vmax.f32 %v377_v51, 0.0  ;;  %v308_v56 = vadd.f32 %v552_v52, %v785_v43  ;;  %v408_v20 = vpop.f32.mrf.mxu1 }
  0xec   :  { %v554_v58 = vpop.f32.mrf.mxu0 }
  0xed   :  { %v522_v59 = vpack.c.bf16 %v414_v55, %v414_v55  ;;  %v380_v60 = vadd.f32 %v379_v37, %v308_v56  ;;  %v555_v61 = vadd.f32 %v554_v58, %v553_v54  ;;  %v606_v25 = vpop.f32.mrf.mxu1 }
  0xee   :  { %v556_v63 = vpop.f32.mrf.mxu0 }
  0xef   :  { %461 = vst.msk [vmem:[%s835_s3] sm:$0xf] %vm460_vm2, %v522_v59  ;;  %v415_v0 = vmax.f32 %v380_v60, 0.0  ;;  %v313_v1 = vadd.f32 %v555_v61, %v785_v43  ;;  %v411_v29 = vpop.f32.mrf.mxu1 }
  0xf0   :  { %v557_v3 = vpop.f32.mrf.mxu0 }
  0xf1   :  { %v523_v4 = vpack.c.bf16 %v415_v0, %v415_v0  ;;  %v385_v5 = vadd.f32 %v384_v39, %v313_v1  ;;  %v558_v6 = vadd.f32 %v557_v3, %v556_v63  ;;  %v607_v34 = vpop.f32.mrf.mxu1 }
  0xf2   :  { %v559_v8 = vpop.f32.mrf.mxu0 }
  0xf3   :  { %462 = vst.msk [vmem:[%s835_s3 + $0x4] sm:$0xf] %vm460_vm2, %v523_v4  ;;  %v416_v9 = vmax.f32 %v385_v5, 0.0  ;;  %v316_v10 = vadd.f32 %v558_v6, %v785_v43 }
  0xf4   :  { %v560_v12 = vpop.f32.mrf.mxu0 }
  0xf5   :  { %v524_v13 = vpack.c.bf16 %v416_v9, %v416_v9  ;;  %v388_v14 = vadd.f32 %v387_v42, %v316_v10  ;;  %v561_v15 = vadd.f32 %v560_v12, %v559_v8 }
  0xf6   :  { %v562_v17 = vpop.f32.mrf.mxu0 }
  0xf7   :  { %463 = vst.msk [vmem:[%s835_s3 + $0x8] sm:$0xf] %vm460_vm2, %v524_v13  ;;  %v417_v18 = vmax.f32 %v388_v14, 0.0  ;;  %v321_v19 = vadd.f32 %v561_v15, %v785_v43 }
  0xf8   :  { %v563_v21 = vpop.f32.mrf.mxu0 }
  0xf9   :  { %v525_v22 = vpack.c.bf16 %v417_v18, %v417_v18  ;;  %v393_v23 = vadd.f32 %v392_v49, %v321_v19  ;;  %v564_v24 = vadd.f32 %v563_v21, %v562_v17 }
  0xfa   :  { %v565_v26 = vpop.f32.mrf.mxu0 }
  0xfb   :  { %464 = vst.msk [vmem:[%s835_s3 + $0xc] sm:$0xf] %vm460_vm2, %v525_v22  ;;  %v418_v27 = vmax.f32 %v393_v23, 0.0  ;;  %v324_v28 = vadd.f32 %v564_v24, %v785_v43 }
  0xfc   :  { %v566_v30 = vpop.f32.mrf.mxu0 }
  0xfd   :  { %v526_v31 = vpack.c.bf16 %v418_v27, %v418_v27  ;;  %v396_v32 = vadd.f32 %v395_v57, %v324_v28  ;;  %v567_v33 = vadd.f32 %v566_v30, %v565_v26 }
  0xfe   :  { %v568_v35 = vpop.f32.mrf.mxu0 }
  0xff   :  { %465 = vst.msk [vmem:[%s835_s3 + $0x10] sm:$0xf] %vm460_vm2, %v526_v31  ;;  %v419_v36 = vmax.f32 %v396_v32, 0.0  ;;  %v329_v37 = vadd.f32 %v567_v33, %v785_v43 }
 0x100   :  { %v569_v38 = vpop.f32.mrf.mxu0 }
 0x101   :  { %v527_v39 = vpack.c.bf16 %v419_v36, %v419_v36  ;;  %v401_v40 = vadd.f32 %v400_v2, %v329_v37  ;;  %v570_v41 = vadd.f32 %v569_v38, %v568_v35 }
 0x102   :  { %v571_v42 = vpop.f32.mrf.mxu0 }
 0x103   :  { %466 = vst.msk [vmem:[%s835_s3 + $0x14] sm:$0xf] %vm460_vm2, %v527_v39  ;;  %v420_v44 = vmax.f32 %v401_v40, 0.0  ;;  %v332_v45 = vadd.f32 %v570_v41, %v785_v43 }
 0x104   :  { %v572_v46 = vpop.f32.mrf.mxu0 }
 0x105   :  { %v528_v47 = vpack.c.bf16 %v420_v44, %v420_v44  ;;  %v404_v48 = vadd.f32 %v403_v11, %v332_v45  ;;  %v573_v49 = vadd.f32 %v572_v46, %v571_v42 }
 0x106   :  { %v574_v50 = vpop.f32.mrf.mxu0 }
 0x107   :  { %467 = vst.msk [vmem:[%s835_s3 + $0x18] sm:$0xf] %vm460_vm2, %v528_v47  ;;  %v421_v51 = vmax.f32 %v404_v48, 0.0  ;;  %v337_v52 = vadd.f32 %v573_v49, %v785_v43 }
 0x108   :  { %v575_v53 = vpop.f32.mrf.mxu0 }
 0x109   :  { %v529_v54 = vpack.c.bf16 %v421_v51, %v421_v51  ;;  %v409_v55 = vadd.f32 %v408_v20, %v337_v52 }
 0x10b   :  { %468 = vst.msk [vmem:[%s835_s3 + $0x1c] sm:$0xf] %vm460_vm2, %v529_v54  ;;  %v422_v56 = vmax.f32 %v409_v55, 0.0 }
 0x10d   :  { %v530_v57 = vpack.c.bf16 %v422_v56, %v422_v56 }
 0x10f   :  { %469 = vst.msk [vmem:[%s835_s3 + $0x20] sm:$0xf] %vm460_vm2, %v530_v57 }

// kernel: segnet_forward.25
= control target key start
LH: loop header
LB: loop body
LE: loop exit
PB: predicated region body
PF: predicated region fallthrough
CT: control target
= control target key end

     0   :  { %vm318_vm0 = vcmask 261120   ;;  %vm617_vm1 = vcmask 125952   ;;  %s1144_s1 = inlined_call_operand.vmem [shape: bf16[288,16], index: 1, kind: input, shape index: {}]   ;;  %s1145_s0 = inlined_call_operand.vmem [shape: bf16[128,288], index: 0, kind: input, shape index: {}]   ;;  %s1146_s2 = inlined_call_operand.vmem [shape: f32[1,16], index: 2, kind: input, shape index: {}]   ;;  %s1147_s3 = inlined_call_operand.vmem [shape: bf16[128,16], index: 3, kind: output, shape index: {}]  }
   0x1   :  { %v831_v0 = vld [vmem:[%s1144_s1 + $0x78] sm:$0xff]   ;;  %v833_v2 = vld [vmem:[%s1144_s1 + $0x70] sm:$0xff]   ;;  %v835_v4 = vld [vmem:[%s1144_s1 + $0x68] sm:$0xff]  }
   0x2   :  { %v832_v1 = vld [vmem:[%s1144_s1 + $0x38] sm:$0xff]   ;;  %721 = vmatprep.subr.bf16.mxu0 %v831_v0  ;;  %815 = vmatprep.subr.bf16.mxu1 %v831_v0  ;;  %v834_v3 = vld [vmem:[%s1144_s1 + $0x30] sm:$0xff]   ;;  %v836_v5 = vld [vmem:[%s1144_s1 + $0x28] sm:$0xff]  }
   0x3   :  { %722 = vmatpush3.bf16.msra.mxu0 %v832_v1  ;;  %823 = vmatpush3.bf16.msra.mxu1 %v832_v1  ;;  %v837_v6 = vld [vmem:[%s1144_s1 + $0x60] sm:$0xff]   ;;  %v839_v8 = vld [vmem:[%s1144_s1 + $0x58] sm:$0xff]   ;;  %v841_v10 = vld [vmem:[%s1144_s1 + $0x50] sm:$0xff]  }
   0x4   :  { %723 = vmatprep.subr.bf16.mxu0 %v833_v2  ;;  %816 = vmatprep.subr.bf16.mxu1 %v833_v2  ;;  %v838_v7 = vld [vmem:[%s1144_s1 + $0x20] sm:$0xff]   ;;  %v840_v9 = vld [vmem:[%s1144_s1 + $0x18] sm:$0xff]   ;;  %v842_v13 = vld [vmem:[%s1144_s1 + $0x10] sm:$0xff]  }
   0x5   :  { %v849_v11 = vld [vmem:[%s1145_s0 + $0x4] ss:$12 sps:$4 sm:$0xff]   ;;  %v852_v12 = vld [vmem:[%s1145_s0 + $0x94] ss:$12 sps:$4 sm:$0xff]   ;;  %v843_v14 = vld [vmem:[%s1144_s1 + $0x48] sm:$0xff]  }
   0x6   :  { %375 = vmatprep.mubr.bf16.mxu0 %v849_v11  ;;  %423 = vmatprep.mubr.bf16.mxu1 %v852_v12  ;;  %v844_v15 = vld [vmem:[%s1144_s1 + $0x8] sm:$0xff]   ;;  %v845_v16 = vld [vmem:[%s1144_s1 + $0x40] sm:$0xff]   ;;  %v850_v20 = vld [vmem:[%s1145_s0 + $0x90] ss:$12 sps:$4 sm:$0xff]  }
   0x7   :  { %724 = vmatpush3.bf16.msra.mxu0 %v834_v3  ;;  %824 = vmatpush3.bf16.msra.mxu1 %v834_v3  ;;  %v846_v17 = vld [vmem:[%s1144_s1] sm:$0xff]   ;;  %v853_v19 = vld [vmem:[%s1144_s1 + $0x88] sm:$0xff]   ;;  %v864_v28 = vld [vmem:[%s1145_s0 + $0x30] ss:$12 sps:$4 sm:$0xff]  }
   0x8   :  { %725 = vmatprep.subr.bf16.mxu0 %v835_v4  ;;  %817 = vmatprep.subr.bf16.mxu1 %v835_v4  ;;  %v847_v18 = vld [vmem:[%s1145_s0] ss:$12 sps:$4 sm:$0xff]   ;;  %v854_v21 = vld [vmem:[%s1145_s0 + $0x1c] ss:$12 sps:$4 sm:$0xff]   ;;  %v858_v24 = vld [vmem:[%s1145_s0 + $0x18] ss:$12 sps:$4 sm:$0xff]  }
   0x9   :  { %v856_v22 = vld [vmem:[%s1145_s0 + $0xac] ss:$12 sps:$4 sm:$0xff]   ;;  %v860_v23 = vld [vmem:[%s1144_s1 + $0x80] sm:$0xff]   ;;  %v859_v25 = vld [vmem:[%s1145_s0 + $0xa8] ss:$12 sps:$4 sm:$0xff]  }
   0xa   :  { %v861_v26 = vld [vmem:[%s1145_s0 + $0x34] ss:$12 sps:$4 sm:$0xff]   ;;  %v866_v30 = vld [vmem:[%s1145_s0 + $0x4c] ss:$12 sps:$4 sm:$0xff]   ;;  %v870_v33 = vld [vmem:[%s1145_s0 + $0x50] ss:$12 sps:$4 sm:$0xff]  }
   0xb   :  { %726 = vmatpush3.bf16.msra.mxu0 %v836_v5  ;;  %825 = vmatpush3.bf16.msra.mxu1 %v836_v5  ;;  %v863_v27 = vld [vmem:[%s1145_s0 + $0x8] ss:$12 sps:$4 sm:$0xff]   ;;  %v865_v29 = vld [vmem:[%s1145_s0 + $0x20] ss:$12 sps:$4 sm:$0xff]   ;;  %v868_v31 = vld [vmem:[%s1145_s0 + $0x38] ss:$12 sps:$4 sm:$0xff]  }
   0xc   :  { %727 = vmatprep.subr.bf16.mxu0 %v837_v6  ;;  %818 = vmatprep.subr.bf16.mxu1 %v837_v6  ;;  %v869_v32 = vld [vmem:[%s1145_s0 + $0x48] ss:$12 sps:$4 sm:$0xff]   ;;  %v871_v34 = vld [vmem:[%s1145_s0 + $0x64] ss:$12 sps:$4 sm:$0xff]   ;;  %v874_v36 = vld [vmem:[%s1145_s0 + $0x60] ss:$12 sps:$4 sm:$0xff]  }
   0xd   :  { %v873_v35 = vld [vmem:[%s1145_s0 + $0x68] ss:$12 sps:$4 sm:$0xff]   ;;  %v875_v37 = vld [vmem:[%s1145_s0 + $0x80] ss:$12 sps:$4 sm:$0xff]   ;;  %v878_v39 = vld [vmem:[%s1145_s0 + $0x98] ss:$12 sps:$4 sm:$0xff]  }
   0xe   :  { %v876_v38 = vld [vmem:[%s1145_s0 + $0x7c] ss:$12 sps:$4 sm:$0xff]   ;;  %v879_v40 = vld [vmem:[%s1145_s0 + $0x78] ss:$12 sps:$4 sm:$0xff]   ;;  %v1054_v60 = vld [vmem:[%s1146_s2] ss:$0 sm:$0xff] }
   0xf   :  { %728 = vmatpush3.bf16.msra.mxu0 %v838_v7  ;;  %826 = vmatpush3.bf16.msra.mxu1 %v838_v7  ;;  %v880_v41 = vld [vmem:[%s1145_s0 + $0xb0] ss:$12 sps:$4 sm:$0xff]  }
  0x10   :  { %729 = vmatprep.subr.bf16.mxu0 %v839_v8  ;;  %819 = vmatprep.subr.bf16.mxu1 %v839_v8 }
  0x13   :  { %730 = vmatpush3.bf16.msra.mxu0 %v840_v9  ;;  %827 = vmatpush3.bf16.msra.mxu1 %v840_v9 }
  0x14   :  { %731 = vmatprep.subr.bf16.mxu0 %v841_v10  ;;  %820 = vmatprep.subr.bf16.mxu1 %v841_v10 }
  0x17   :  { %732 = vmatpush3.bf16.msra.mxu0 %v842_v13  ;;  %828 = vmatpush3.bf16.msra.mxu1 %v842_v13 }
  0x18   :  { %733 = vmatprep.subr.bf16.mxu0 %v843_v14  ;;  %821 = vmatprep.subr.bf16.mxu1 %v843_v14 }
  0x1b   :  { %734 = vmatpush3.bf16.msra.mxu0 %v844_v15  ;;  %829 = vmatpush3.bf16.msra.mxu1 %v844_v15 }
  0x1c   :  { %735 = vmatprep.subr.bf16.mxu0 %v845_v16  ;;  %822 = vmatprep.subr.bf16.mxu1 %v845_v16 }
  0x1f   :  { %736 = vmatpush3.bf16.msra.mxu0 %v846_v17  ;;  %830 = vmatpush3.bf16.msra.mxu1 %v846_v17 }
  0x20   :  { %795 = vmatprep.subr.bf16.mxu1 %v853_v19 }
  0x22   :  { %376 = vmatmul.mubr.bf16.vlgmr.msra.gmra.mxu0 %v847_v18  ;;  %424 = vmatmul.mubr.bf16.vlgmr.msra.gmra.mxu1 %v850_v20 }
  0x23   :  { %796 = vmatpush3.bf16.msra.mxu1 %v853_v19  ;;  %383 = vmatprep.mubr.bf16.mxu0 %v854_v21 }
  0x24   :  { %431 = vmatprep.mubr.bf16.mxu1 %v856_v22  ;;  %797 = vmatprep.subr.bf16.mxu1 %v860_v23 }
  0x27   :  { %798 = vmatpush3.bf16.msra.mxu1 %v860_v23 }
  0x2a   :  { %384 = vmatmul.mubr.bf16.gmra.mxu0 %v858_v24  ;;  %432 = vmatmul.mubr.bf16.gmra.mxu1 %v859_v25 }
  0x2b   :  { %391 = vmatprep.mubr.bf16.mxu0 %v861_v26  ;;  %799 = vmatprep.mubr.msk.bf16.mxu1 %vm318_vm0, %v863_v27 }
  0x32   :  { %392 = vmatmul.mubr.bf16.gmra.mxu0 %v864_v28  ;;  %800 = vmatmul.mubr.msk.bf16.vlgmr.msra.gmra.mxu1 %vm318_vm0, %v865_v29 }
  0x33   :  { %399 = vmatprep.mubr.bf16.mxu0 %v866_v30  ;;  %803 = vmatprep.mubr.msk.bf16.mxu1 %vm318_vm0, %v868_v31 }
  0x3a   :  { %400 = vmatmul.mubr.bf16.gmra.mxu0 %v869_v32  ;;  %804 = vmatmul.mubr.msk.bf16.gmra.mxu1 %vm318_vm0, %v870_v33 }
  0x3b   :  { %407 = vmatprep.mubr.bf16.mxu0 %v871_v34  ;;  %807 = vmatprep.mubr.msk.bf16.mxu1 %vm318_vm0, %v873_v35 }
  0x42   :  { %408 = vmatmul.mubr.bf16.gmra.mxu0 %v874_v36  ;;  %808 = vmatmul.mubr.msk.bf16.gmra.mxu1 %vm318_vm0, %v875_v37 }
  0x43   :  { %415 = vmatprep.mubr.bf16.mxu0 %v876_v38  ;;  %811 = vmatprep.mubr.msk.bf16.mxu1 %vm318_vm0, %v878_v39 }
  0x4a   :  { %416 = vmatmul.mubr.bf16.gmra.mxu0 %v879_v40  ;;  %812 = vmatmul.mubr.msk.bf16.gmra.mxu1 %vm318_vm0, %v880_v41 }
  0xe2   :  { %v737_v42 = vpop.f32.mrf.mxu0  ;;  %v1035_v43 = vpop.f32.mrf.mxu1 }
  0xe4   :  { %v738_v44 = vpop.f32.mrf.mxu0  ;;  %v1037_v45 = vpop.f32.mrf.mxu1 }
  0xe5   :  { %v739_v57 = vadd.f32 %v738_v44, %v737_v42 }
  0xe6   :  { %v740_v46 = vpop.f32.mrf.mxu0  ;;  %v1039_v47 = vpop.f32.mrf.mxu1 }
  0xe7   :  { %v378_v3 = vadd.f32 %v739_v57, %v1054_v60 }
  0xe8   :  { %v741_v48 = vpop.f32.mrf.mxu0  ;;  %v1041_v49 = vpop.f32.mrf.mxu1 }
  0xe9   :  { %v742_v63 = vadd.f32 %v741_v48, %v740_v46 }
  0xea   :  { %v743_v50 = vpop.f32.mrf.mxu0  ;;  %v1043_v51 = vpop.f32.mrf.mxu1 }
  0xeb   :  { %v381_v11 = vadd.f32 %v742_v63, %v1054_v60 }
  0xec   :  { %v744_v52 = vpop.f32.mrf.mxu0  ;;  %v1045_v53 = vpop.f32.mrf.mxu1 }
  0xed   :  { %v745_v54 = vadd.f32 %v744_v52, %v743_v50 }
  0xee   :  { %v746_v55 = vpop.f32.mrf.mxu0  ;;  %v1047_v56 = vpop.f32.mrf.mxu1 }
  0xef   :  { %v386_v62 = vadd.f32 %v745_v54, %v1054_v60  ;;  %v781_v54 = vadd.f32 %v1045_v53, %v1043_v51  ;;  %v775_v53 = vadd.f32 %v1037_v45, %v1035_v43 }
  0xf0   :  { %v747_v58 = vpop.f32.mrf.mxu0  ;;  %v1049_v59 = vpop.f32.mrf.mxu1 }
  0xf1   :  { %v748_v61 = vadd.f32 %v747_v58, %v746_v55 }
  0xf2   :  { %v749_v0 = vpop.f32.mrf.mxu0  ;;  %v801_v1 = vpop.f32.mrf.mxu1 }
  0xf3   :  { %v483_v2 = vadd.f32 %v801_v1, %v386_v62  ;;  %v389_v8 = vadd.f32 %v748_v61, %v1054_v60 }
  0xf4   :  { %v750_v4 = vpop.f32.mrf.mxu0  ;;  %v474_v5 = vpop.f32.mrf.mxu1 }
  0xf5   :  { %v539_v6 = vmax.f32 %v483_v2, 0.0  ;;  %v475_v7 = vadd.f32 %v474_v5, %v378_v3  ;;  %v751_v13 = vadd.f32 %v750_v4, %v749_v0  ;;  %v784_v3 = vadd.f32 %v1049_v59, %v1047_v56 }
  0xf6   :  { %v752_v9 = vpop.f32.mrf.mxu0  ;;  %v802_v10 = vpop.f32.mrf.mxu1  ;;  %v778_v56 = vadd.f32 %v1041_v49, %v1039_v47 }
  0xf7   :  { %v707_v12 = vpack.c.bf16 %v539_v6, %v539_v6  ;;  %v537_v14 = vmax.f32 %v475_v7, 0.0  ;;  %v486_v15 = vadd.f32 %v802_v10, %v389_v8  ;;  %v394_v26 = vadd.f32 %v751_v13, %v1054_v60 }
  0xf8   :  { %v753_v16 = vpop.f32.mrf.mxu0  ;;  %v477_v17 = vpop.f32.mrf.mxu1  ;;  %v426_v13 = vadd.f32 %v775_v53, %v1054_v60 }
  0xf9   :  { %620 = vst.msk [vmem:[%s1147_s3 + $0x8] sm:$0xf] %vm617_vm1, %v707_v12  ;;  %v705_v18 = vpack.c.bf16 %v537_v14, %v537_v14  ;;  %v540_v19 = vmax.f32 %v486_v15, 0.0  ;;  %v478_v20 = vadd.f32 %v477_v17, %v381_v11  ;;  %v754_v24 = vadd.f32 %v753_v16, %v752_v9 }
  0xfa   :  { %v755_v21 = vpop.f32.mrf.mxu0  ;;  %v805_v22 = vpop.f32.mrf.mxu1  ;;  %v434_v9 = vadd.f32 %v781_v54, %v1054_v60  ;;  %v437_v15 = vadd.f32 %v784_v3, %v1054_v60 }
  0xfb   :  { %618 = vst.msk [vmem:[%s1147_s3] sm:$0xf] %vm617_vm1, %v705_v18  ;;  %v708_v23 = vpack.c.bf16 %v540_v19, %v540_v19  ;;  %v538_v25 = vmax.f32 %v478_v20, 0.0  ;;  %v397_v36 = vadd.f32 %v754_v24, %v1054_v60 }
  0xfc   :  { %v756_v27 = vpop.f32.mrf.mxu0  ;;  %v490_v28 = vpop.f32.mrf.mxu1 }
  0xfd   :  { %621 = vst.msk [vmem:[%s1147_s3 + $0xc] sm:$0xf] %vm617_vm1, %v708_v23  ;;  %v706_v29 = vpack.c.bf16 %v538_v25, %v538_v25  ;;  %v757_v30 = vadd.f32 %v756_v27, %v755_v21  ;;  %v491_v31 = vadd.f32 %v490_v28, %v394_v26  ;;  %v429_v27 = vadd.f32 %v778_v56, %v1054_v60 }
  0xfe   :  { %v758_v32 = vpop.f32.mrf.mxu0  ;;  %v806_v33 = vpop.f32.mrf.mxu1 }
  0xff   :  { %619 = vst.msk [vmem:[%s1147_s3 + $0x4] sm:$0xf] %vm617_vm1, %v706_v29  ;;  %v402_v34 = vadd.f32 %v757_v30, %v1054_v60  ;;  %v541_v35 = vmax.f32 %v491_v31, 0.0 }
 0x100   :  { %v759_v37 = vpop.f32.mrf.mxu0  ;;  %v493_v38 = vpop.f32.mrf.mxu1 }
 0x101   :  { %v499_v39 = vadd.f32 %v805_v22, %v402_v34  ;;  %v709_v40 = vpack.c.bf16 %v541_v35, %v541_v35  ;;  %v760_v41 = vadd.f32 %v759_v37, %v758_v32  ;;  %v494_v42 = vadd.f32 %v493_v38, %v397_v36 }
 0x102   :  { %v761_v44 = vpop.f32.mrf.mxu0  ;;  %v809_v46 = vpop.f32.mrf.mxu1 }
 0x103   :  { %v543_v48 = vmax.f32 %v499_v39, 0.0  ;;  %622 = vst.msk [vmem:[%s1147_s3 + $0x10] sm:$0xf] %vm617_vm1, %v709_v40  ;;  %v405_v50 = vadd.f32 %v760_v41, %v1054_v60  ;;  %v542_v52 = vmax.f32 %v494_v42, 0.0 }
 0x104   :  { %v762_v55 = vpop.f32.mrf.mxu0  ;;  %v506_v57 = vpop.f32.mrf.mxu1 }
 0x105   :  { %v711_v58 = vpack.c.bf16 %v543_v48, %v543_v48  ;;  %v502_v61 = vadd.f32 %v806_v33, %v405_v50  ;;  %v710_v62 = vpack.c.bf16 %v542_v52, %v542_v52  ;;  %v763_v63 = vadd.f32 %v762_v55, %v761_v44 }
 0x106   :  { %v764_v0 = vpop.f32.mrf.mxu0  ;;  %v810_v1 = vpop.f32.mrf.mxu1 }
 0x107   :  { %624 = vst.msk [vmem:[%s1147_s3 + $0x18] sm:$0xf] %vm617_vm1, %v711_v58  ;;  %v544_v2 = vmax.f32 %v502_v61, 0.0  ;;  %623 = vst.msk [vmem:[%s1147_s3 + $0x14] sm:$0xf] %vm617_vm1, %v710_v62  ;;  %v410_v51 = vadd.f32 %v763_v63, %v1054_v60 }
 0x108   :  { %v765_v4 = vpop.f32.mrf.mxu0  ;;  %v509_v5 = vpop.f32.mrf.mxu1 }
 0x109   :  { %v712_v6 = vpack.c.bf16 %v544_v2, %v544_v2  ;;  %v507_v7 = vadd.f32 %v506_v57, %v410_v51  ;;  %v766_v8 = vadd.f32 %v765_v4, %v764_v0 }
 0x10a   :  { %v767_v10 = vpop.f32.mrf.mxu0  ;;  %v813_v11 = vpop.f32.mrf.mxu1 }
 0x10b   :  { %625 = vst.msk [vmem:[%s1147_s3 + $0x1c] sm:$0xf] %vm617_vm1, %v712_v6  ;;  %v545_v12 = vmax.f32 %v507_v7, 0.0  ;;  %v413_v43 = vadd.f32 %v766_v8, %v1054_v60  ;;  %v531_v45 = vadd.f32 %v813_v11, %v434_v9 }
 0x10c   :  { %v768_v59 = vpop.f32.mrf.mxu0  ;;  %v522_v14 = vpop.f32.mrf.mxu1 }
 0x10d   :  { %v713_v16 = vpack.c.bf16 %v545_v12, %v545_v12  ;;  %v510_v17 = vadd.f32 %v509_v5, %v413_v43  ;;  %v551_v18 = vmax.f32 %v531_v45, 0.0  ;;  %v769_v19 = vadd.f32 %v768_v59, %v767_v10 }
 0x10e   :  { %v523_v20 = vadd.f32 %v522_v14, %v426_v13  ;;  %v770_v21 = vpop.f32.mrf.mxu0  ;;  %v814_v22 = vpop.f32.mrf.mxu1 }
 0x10f   :  { %626 = vst.msk [vmem:[%s1147_s3 + $0x20] sm:$0xf] %vm617_vm1, %v713_v16  ;;  %v546_v23 = vmax.f32 %v510_v17, 0.0  ;;  %v719_v47 = vpack.c.bf16 %v551_v18, %v551_v18  ;;  %v418_v49 = vadd.f32 %v769_v19, %v1054_v60  ;;  %v534_v24 = vadd.f32 %v814_v22, %v437_v15 }
 0x110   :  { %v549_v25 = vmax.f32 %v523_v20, 0.0  ;;  %v771_v26 = vpop.f32.mrf.mxu0  ;;  %v525_v28 = vpop.f32.mrf.mxu1 }
 0x111   :  { %v714_v29 = vpack.c.bf16 %v546_v23, %v546_v23  ;;  %632 = vst.msk [vmem:[%s1147_s3 + $0x38] sm:$0xf] %vm617_vm1, %v719_v47  ;;  %v515_v30 = vadd.f32 %v809_v46, %v418_v49  ;;  %v552_v31 = vmax.f32 %v534_v24, 0.0  ;;  %v772_v32 = vadd.f32 %v771_v26, %v770_v21 }
 0x112   :  { %v717_v33 = vpack.c.bf16 %v549_v25, %v549_v25  ;;  %v526_v34 = vadd.f32 %v525_v28, %v429_v27 }
 0x113   :  { %627 = vst.msk [vmem:[%s1147_s3 + $0x24] sm:$0xf] %vm617_vm1, %v714_v29  ;;  %v547_v35 = vmax.f32 %v515_v30, 0.0  ;;  %v720_v36 = vpack.c.bf16 %v552_v31, %v552_v31  ;;  %v421_v37 = vadd.f32 %v772_v32, %v1054_v60 }
 0x114   :  { %630 = vst.msk [vmem:[%s1147_s3 + $0x30] sm:$0xf] %vm617_vm1, %v717_v33  ;;  %v550_v38 = vmax.f32 %v526_v34, 0.0 }
 0x115   :  { %v715_v39 = vpack.c.bf16 %v547_v35, %v547_v35  ;;  %633 = vst.msk [vmem:[%s1147_s3 + $0x3c] sm:$0xf] %vm617_vm1, %v720_v36  ;;  %v518_v40 = vadd.f32 %v810_v1, %v421_v37 }
 0x116   :  { %v718_v41 = vpack.c.bf16 %v550_v38, %v550_v38 }
 0x117   :  { %628 = vst.msk [vmem:[%s1147_s3 + $0x28] sm:$0xf] %vm617_vm1, %v715_v39  ;;  %v548_v60 = vmax.f32 %v518_v40, 0.0 }
 0x118   :  { %631 = vst.msk [vmem:[%s1147_s3 + $0x34] sm:$0xf] %vm617_vm1, %v718_v41 }
 0x119   :  { %v716_v42 = vpack.c.bf16 %v548_v60, %v548_v60 }
 0x11b   :  { %629 = vst.msk [vmem:[%s1147_s3 + $0x2c] sm:$0xf] %vm617_vm1, %v716_v42 }

// kernel: segnet_forward.26
= control target key start
LH: loop header
LB: loop body
LE: loop exit
PB: predicated region body
PF: predicated region fallthrough
CT: control target
= control target key end

     0   :  { %v259_v0 = vmov 0   ;;  %vm116_vm0 = vcmask 130048   ;;  %vm192_vm1 = vcmask 125952   ;;  %s338_s1 = inlined_call_operand.vmem [shape: bf16[144,16], index: 1, kind: input, shape index: {}]   ;;  %s339_s0 = inlined_call_operand.vmem [shape: bf16[32,144], index: 0, kind: input, shape index: {}]   ;;  %s340_s2 = inlined_call_operand.vmem [shape: f32[1,16], index: 2, kind: input, shape index: {}]   ;;  %s341_s3 = inlined_call_operand.vmem [shape: bf16[32,16], index: 3, kind: output, shape index: {}]  }
   0x1   :  { %123 = vmatprep.subr.bf16.mxu0 %v259_v0  ;;  %225 = vmatprep.subr.bf16.mxu1 %v259_v0  ;;  %v244_v1 = vld [vmem:[%s338_s1 + $0x38] sm:$0xff]   ;;  %v245_v2 = vld [vmem:[%s338_s1 + $0x30] sm:$0xff]   ;;  %v246_v3 = vld [vmem:[%s338_s1 + $0x28] sm:$0xff]  }
   0x2   :  { %124 = vmatpush1.bf16.msra.mxu0 %v244_v1  ;;  %234 = vmatpush1.bf16.msra.mxu1 %v244_v1  ;;  %v247_v4 = vld [vmem:[%s338_s1 + $0x20] sm:$0xff]   ;;  %v258_v6 = vld [vmem:[%s339_s0 + $0x14] ss:$8 sps:$4 sm:$0xff]   ;;  %v250_v9 = vld [vmem:[%s338_s1 + $0x8] sm:$0xff]  }
   0x3   :  { %125 = vmatprep.subr.bf16.mxu0 %v259_v0  ;;  %226 = vmatprep.subr.bf16.mxu1 %v259_v0  ;;  %v255_v5 = vld [vmem:[%s339_s0 + $0x4] ss:$8 sps:$4 sm:$0xff]   ;;  %v248_v7 = vld [vmem:[%s338_s1 + $0x18] sm:$0xff]   ;;  %v249_v8 = vld [vmem:[%s338_s1 + $0x10] sm:$0xff]  }
   0x4   :  { %215 = vmatprep.mubr.msk.bf16.mxu0 %vm116_vm0, %v255_v5  ;;  %216 = vmatprep.mubr.msk.bf16.mxu1 %vm116_vm0, %v258_v6  ;;  %v251_v10 = vld [vmem:[%s338_s1] sm:$0xff]   ;;  %v256_v13 = vld [vmem:[%s339_s0 + $0x10] ss:$8 sps:$4 sm:$0xff]  }
   0x5   :  { %v252_v11 = vld [vmem:[%s338_s1 + $0x40] sm:$0xff]  }
   0x6   :  { %126 = vmatpush1.bf16.msra.mxu0 %v245_v2  ;;  %235 = vmatpush1.bf16.msra.mxu1 %v245_v2  ;;  %v253_v12 = vld [vmem:[%s339_s0] ss:$8 sps:$4 sm:$0xff]  }
   0x7   :  { %127 = vmatprep.subr.bf16.mxu0 %v259_v0  ;;  %227 = vmatprep.subr.bf16.mxu1 %v259_v0  ;;  %v201_v14 = vld [vmem:[%s340_s2] ss:$0 sm:$0xff] }
   0xa   :  { %128 = vmatpush1.bf16.msra.mxu0 %v246_v3  ;;  %236 = vmatpush1.bf16.msra.mxu1 %v246_v3 }
   0xb   :  { %129 = vmatprep.subr.bf16.mxu0 %v259_v0  ;;  %228 = vmatprep.subr.bf16.mxu1 %v259_v0 }
   0xe   :  { %130 = vmatpush1.bf16.msra.mxu0 %v247_v4  ;;  %237 = vmatpush1.bf16.msra.mxu1 %v247_v4 }
   0xf   :  { %131 = vmatprep.subr.bf16.mxu0 %v259_v0  ;;  %229 = vmatprep.subr.bf16.mxu1 %v259_v0 }
  0x12   :  { %132 = vmatpush1.bf16.msra.mxu0 %v248_v7  ;;  %238 = vmatpush1.bf16.msra.mxu1 %v248_v7 }
  0x13   :  { %133 = vmatprep.subr.bf16.mxu0 %v259_v0  ;;  %230 = vmatprep.subr.bf16.mxu1 %v259_v0 }
  0x16   :  { %134 = vmatpush1.bf16.msra.mxu0 %v249_v8  ;;  %239 = vmatpush1.bf16.msra.mxu1 %v249_v8 }
  0x17   :  { %135 = vmatprep.subr.bf16.mxu0 %v259_v0  ;;  %231 = vmatprep.subr.bf16.mxu1 %v259_v0 }
  0x1a   :  { %136 = vmatpush1.bf16.msra.mxu0 %v250_v9  ;;  %240 = vmatpush1.bf16.msra.mxu1 %v250_v9 }
  0x1b   :  { %137 = vmatprep.subr.bf16.mxu0 %v259_v0  ;;  %232 = vmatprep.subr.bf16.mxu1 %v259_v0 }
  0x1e   :  { %138 = vmatpush1.bf16.msra.mxu0 %v251_v10  ;;  %241 = vmatpush1.bf16.msra.mxu1 %v251_v10 }
  0x1f   :  { %153 = vmatprep.subr.bf16.mxu0 %v259_v0  ;;  %233 = vmatprep.subr.bf16.mxu1 %v259_v0 }
  0x22   :  { %154 = vmatpush2.bf16.msra.mxu0 %v252_v11  ;;  %242 = vmatpush2.bf16.msra.mxu1 %v252_v11 }
  0x25   :  { %156 = vmatmul.mubr.bf16.vlgmr.msra.gmra.mxu0 %v253_v12  ;;  %164 = vmatmul.mubr.bf16.vlgmr.msra.gmra.mxu1 %v256_v13 }
  0xe5   :  { %v157_v15 = vpop.f32.mrf.mxu0  ;;  %v165_v16 = vpop.f32.mrf.mxu1 }
  0xe6   :  { %v158_v17 = vadd.f32 %v201_v14, %v157_v15  ;;  %v166_v18 = vadd.f32 %v201_v14, %v165_v16 }
  0xe7   :  { %v159_v19 = vpop.f32.mrf.mxu0  ;;  %v167_v20 = vpop.f32.mrf.mxu1 }
  0xe8   :  { %v172_v21 = vmax.f32 %v158_v17, 0.0  ;;  %v174_v22 = vmax.f32 %v166_v18, 0.0 }
  0xe9   :  { %v160_v23 = vpop.f32.mrf.mxu0  ;;  %v168_v24 = vpop.f32.mrf.mxu1 }
  0xea   :  { %v221_v25 = vpack.c.bf16 %v172_v21, %v172_v21  ;;  %v223_v26 = vpack.c.bf16 %v174_v22, %v174_v22  ;;  %v161_v27 = vadd.f32 %v201_v14, %v160_v23  ;;  %v169_v28 = vadd.f32 %v201_v14, %v168_v24 }
  0xeb   :  { %v162_v29 = vpop.f32.mrf.mxu0  ;;  %v170_v30 = vpop.f32.mrf.mxu1 }
  0xec   :  { %193 = vst.msk [vmem:[%s341_s3] sm:$0xf] %vm192_vm1, %v221_v25  ;;  %195 = vst.msk [vmem:[%s341_s3 + $0x8] sm:$0xf] %vm192_vm1, %v223_v26  ;;  %v173_v31 = vmax.f32 %v161_v27, 0.0  ;;  %v175_v32 = vmax.f32 %v169_v28, 0.0 }
  0xee   :  { %v222_v33 = vpack.c.bf16 %v173_v31, %v173_v31  ;;  %v224_v34 = vpack.c.bf16 %v175_v32, %v175_v32 }
  0xf0   :  { %194 = vst.msk [vmem:[%s341_s3 + $0x4] sm:$0xf] %vm192_vm1, %v222_v33  ;;  %196 = vst.msk [vmem:[%s341_s3 + $0xc] sm:$0xf] %vm192_vm1, %v224_v34 }

// kernel: segnet_forward.27
= control target key start
LH: loop header
LB: loop body
LE: loop exit
PB: predicated region body
PF: predicated region fallthrough
CT: control target
= control target key end

     0   :  { %v380_v0 = vmov 0   ;;  %vm147_vm0 = vcmask 130048   ;;  %vm281_vm1 = vcmask 3072   ;;  %s499_s1 = inlined_call_operand.vmem [shape: bf16[144,1], index: 1, kind: input, shape index: {}]   ;;  %s500_s2 = inlined_call_operand.<no memory space> [shape: f32[1,1], index: 2, kind: input, shape index: {}]   ;;  %s501_s0 = inlined_call_operand.vmem [shape: bf16[72,144], index: 0, kind: input, shape index: {}]   ;;  %s502_s3 = inlined_call_operand.vmem [shape: bf16[72,1], index: 3, kind: output, shape index: {}]  }
   0x1   :  { %163 = vmatprep.subr.bf16.mxu0 %v380_v0  ;;  %v357_v1 = vld [vmem:[%s499_s1 + $0x38] sm:$0xff]   ;;  %338 = vmatprep.subr.bf16.mxu1 %v380_v0  ;;  %v8_v2 = vstv %s500_s2  ;;  %v358_v3 = vld [vmem:[%s499_s1 + $0x30] sm:$0xff]   ;;  %v359_v4 = vld [vmem:[%s499_s1 + $0x28] sm:$0xff]  }
   0x2   :  { %9 = vst [vmem:[#allocation2] sm:$0x1] %v8_v2  ;;  %164 = vmatpush1.bf16.msra.mxu0 %v357_v1  ;;  %347 = vmatpush1.bf16.msra.mxu1 %v357_v1  ;;  %v360_v5 = vld [vmem:[%s499_s1 + $0x20] sm:$0xff]   ;;  %v371_v7 = vld [vmem:[%s501_s0 + $0x34] ss:$8 sps:$4 sm:$0xff]   ;;  %v363_v10 = vld [vmem:[%s499_s1 + $0x8] sm:$0xff]  }
   0x3   :  { %165 = vmatprep.subr.bf16.mxu0 %v380_v0  ;;  %339 = vmatprep.subr.bf16.mxu1 %v380_v0  ;;  %v368_v6 = vld [vmem:[%s501_s0 + $0x4] ss:$8 sps:$4 sm:$0xff]   ;;  %v361_v8 = vld [vmem:[%s499_s1 + $0x18] sm:$0xff]   ;;  %v362_v9 = vld [vmem:[%s499_s1 + $0x10] sm:$0xff]  }
   0x4   :  { %315 = vmatprep.mubr.msk.bf16.mxu0 %vm147_vm0, %v368_v6  ;;  %318 = vmatprep.mubr.msk.bf16.mxu1 %vm147_vm0, %v371_v7  ;;  %v364_v11 = vld [vmem:[%s499_s1] sm:$0xff]   ;;  %v369_v15 = vld [vmem:[%s501_s0 + $0x30] ss:$8 sps:$4 sm:$0xff]   ;;  %v372_v16 = vld [vmem:[%s501_s0 + $0x14] ss:$8 sps:$4 sm:$0xff]  }
   0x5   :  { %v365_v12 = vld [vmem:[%s499_s1 + $0x40] sm:$0xff]   ;;  %v374_v18 = vld [vmem:[%s501_s0 + $0x10] ss:$8 sps:$4 sm:$0xff]  }
   0x6   :  { %166 = vmatpush1.bf16.msra.mxu0 %v358_v3  ;;  %348 = vmatpush1.bf16.msra.mxu1 %v358_v3  ;;  %v25_v13 = vld [vmem:[%s501_s0 + $0x40] sm:$0xff] }
   0x7   :  { %167 = vmatprep.subr.bf16.mxu0 %v380_v0  ;;  %340 = vmatprep.subr.bf16.mxu1 %v380_v0  ;;  %v366_v14 = vld [vmem:[%s501_s0] ss:$8 sps:$4 sm:$0xff]   ;;  %v305_v17 = vcombine.high %v25_v13, %v25_v13  ;;  %v304_v19 = vcombine.low %v25_v13, %v25_v13  ;;  %v377_v20 = vld [vmem:[%s501_s0 + $0x24] ss:$8 sps:$4 sm:$0xff]  }
   0x8   :  { %v379_v21 = vld [vmem:[%s501_s0 + $0x20] ss:$8 sps:$4 sm:$0xff]  }
   0x9   :  { %v295_v22 = vld [vmem:[#allocation2] ss:$0 sm:$0xff] }
   0xa   :  { %168 = vmatpush1.bf16.msra.mxu0 %v359_v4  ;;  %349 = vmatpush1.bf16.msra.mxu1 %v359_v4 }
   0xb   :  { %169 = vmatprep.subr.bf16.mxu0 %v380_v0  ;;  %341 = vmatprep.subr.bf16.mxu1 %v380_v0 }
   0xe   :  { %170 = vmatpush1.bf16.msra.mxu0 %v360_v5  ;;  %350 = vmatpush1.bf16.msra.mxu1 %v360_v5 }
   0xf   :  { %171 = vmatprep.subr.bf16.mxu0 %v380_v0  ;;  %342 = vmatprep.subr.bf16.mxu1 %v380_v0 }
  0x12   :  { %172 = vmatpush1.bf16.msra.mxu0 %v361_v8  ;;  %351 = vmatpush1.bf16.msra.mxu1 %v361_v8 }
  0x13   :  { %173 = vmatprep.subr.bf16.mxu0 %v380_v0  ;;  %343 = vmatprep.subr.bf16.mxu1 %v380_v0 }
  0x16   :  { %174 = vmatpush1.bf16.msra.mxu0 %v362_v9  ;;  %352 = vmatpush1.bf16.msra.mxu1 %v362_v9 }
  0x17   :  { %175 = vmatprep.subr.bf16.mxu0 %v380_v0  ;;  %344 = vmatprep.subr.bf16.mxu1 %v380_v0 }
  0x1a   :  { %176 = vmatpush1.bf16.msra.mxu0 %v363_v10  ;;  %353 = vmatpush1.bf16.msra.mxu1 %v363_v10 }
  0x1b   :  { %177 = vmatprep.subr.bf16.mxu0 %v380_v0  ;;  %345 = vmatprep.subr.bf16.mxu1 %v380_v0 }
  0x1e   :  { %178 = vmatpush1.bf16.msra.mxu0 %v364_v11  ;;  %354 = vmatpush1.bf16.msra.mxu1 %v364_v11 }
  0x1f   :  { %193 = vmatprep.subr.bf16.mxu0 %v380_v0  ;;  %346 = vmatprep.subr.bf16.mxu1 %v380_v0 }
  0x22   :  { %194 = vmatpush2.bf16.msra.mxu0 %v365_v12  ;;  %355 = vmatpush2.bf16.msra.mxu1 %v365_v12 }
  0x25   :  { %196 = vmatmul.mubr.bf16.vlgmr.msra.gmra.mxu0 %v366_v14  ;;  %220 = vmatmul.mubr.bf16.vlgmr.msra.gmra.mxu1 %v369_v15 }
  0x26   :  { %316 = vmatprep.mubr.msk.bf16.mxu0 %vm147_vm0, %v372_v16  ;;  %319 = vmatprep.mubr.msk.bf16.mxu1 %vm147_vm0, %v305_v17 }
  0x2d   :  { %204 = vmatmul.mubr.bf16.gmra.mxu0 %v374_v18  ;;  %228 = vmatmul.mubr.bf16.gmra.mxu1 %v304_v19 }
  0x2e   :  { %317 = vmatprep.mubr.msk.bf16.mxu0 %vm147_vm0, %v377_v20 }
  0x35   :  { %212 = vmatmul.mubr.bf16.gmra.mxu0 %v379_v21 }
  0xe5   :  { %v197_v23 = vpop.f32.mrf.mxu0  ;;  %v221_v24 = vpop.f32.mrf.mxu1 }
  0xe6   :  { %v198_v25 = vadd.f32 %v295_v22, %v197_v23  ;;  %v222_v26 = vadd.f32 %v295_v22, %v221_v24 }
  0xe7   :  { %v199_v27 = vpop.f32.mrf.mxu0  ;;  %v223_v28 = vpop.f32.mrf.mxu1 }
  0xe8   :  { %v235_v29 = vmax.f32 %v198_v25, 0.0  ;;  %v241_v30 = vmax.f32 %v222_v26, 0.0 }
  0xe9   :  { %v200_v31 = vpop.f32.mrf.mxu0  ;;  %v224_v32 = vpop.f32.mrf.mxu1 }
  0xea   :  { %v329_v33 = vpack.c.bf16 %v235_v29, %v235_v29  ;;  %v201_v34 = vadd.f32 %v295_v22, %v200_v31  ;;  %v335_v35 = vpack.c.bf16 %v241_v30, %v241_v30  ;;  %v225_v36 = vadd.f32 %v295_v22, %v224_v32 }
  0xeb   :  { %v202_v37 = vpop.f32.mrf.mxu0  ;;  %v226_v38 = vpop.f32.mrf.mxu1 }
  0xec   :  { %282 = vst.msk [vmem:[%s502_s3] sm:$0xf] %vm281_vm1, %v329_v33  ;;  %v236_v39 = vmax.f32 %v201_v34, 0.0  ;;  %288 = vst.msk [vmem:[%s502_s3 + $0x18] sm:$0xf] %vm281_vm1, %v335_v35  ;;  %v242_v40 = vmax.f32 %v225_v36, 0.0 }
  0xed   :  { %v205_v41 = vpop.f32.mrf.mxu0  ;;  %v229_v42 = vpop.f32.mrf.mxu1 }
  0xee   :  { %v330_v43 = vpack.c.bf16 %v236_v39, %v236_v39  ;;  %v206_v44 = vadd.f32 %v295_v22, %v205_v41  ;;  %v336_v45 = vpack.c.bf16 %v242_v40, %v242_v40  ;;  %v230_v46 = vadd.f32 %v295_v22, %v229_v42 }
  0xef   :  { %v207_v47 = vpop.f32.mrf.mxu0  ;;  %v231_v48 = vpop.f32.mrf.mxu1 }
  0xf0   :  { %283 = vst.msk [vmem:[%s502_s3 + $0x4] sm:$0xf] %vm281_vm1, %v330_v43  ;;  %v237_v49 = vmax.f32 %v206_v44, 0.0  ;;  %289 = vst.msk [vmem:[%s502_s3 + $0x1c] sm:$0xf] %vm281_vm1, %v336_v45  ;;  %v243_v50 = vmax.f32 %v230_v46, 0.0 }
  0xf1   :  { %v208_v51 = vpop.f32.mrf.mxu0  ;;  %v232_v52 = vpop.f32.mrf.mxu1 }
  0xf2   :  { %v331_v53 = vpack.c.bf16 %v237_v49, %v237_v49  ;;  %v209_v54 = vadd.f32 %v295_v22, %v208_v51  ;;  %v337_v55 = vpack.c.bf16 %v243_v50, %v243_v50 }
  0xf3   :  { %v210_v56 = vpop.f32.mrf.mxu0  ;;  %v233_v57 = vpop.f32.mrf.mxu1 }
  0xf4   :  { %284 = vst.msk [vmem:[%s502_s3 + $0x8] sm:$0xf] %vm281_vm1, %v331_v53  ;;  %v238_v58 = vmax.f32 %v209_v54, 0.0  ;;  %290 = vst.msk [vmem:[%s502_s3 + $0x20] sm:$0xf] %vm281_vm1, %v337_v55 }
  0xf5   :  { %v213_v59 = vpop.f32.mrf.mxu0 }
  0xf6   :  { %v332_v60 = vpack.c.bf16 %v238_v58, %v238_v58  ;;  %v214_v61 = vadd.f32 %v295_v22, %v213_v59 }
  0xf7   :  { %v215_v62 = vpop.f32.mrf.mxu0 }
  0xf8   :  { %285 = vst.msk [vmem:[%s502_s3 + $0xc] sm:$0xf] %vm281_vm1, %v332_v60  ;;  %v239_v63 = vmax.f32 %v214_v61, 0.0 }
  0xf9   :  { %v216_v0 = vpop.f32.mrf.mxu0 }
  0xfa   :  { %v333_v1 = vpack.c.bf16 %v239_v63, %v239_v63  ;;  %v217_v2 = vadd.f32 %v295_v22, %v216_v0 }
  0xfb   :  { %v218_v3 = vpop.f32.mrf.mxu0 }
  0xfc   :  { %286 = vst.msk [vmem:[%s502_s3 + $0x10] sm:$0xf] %vm281_vm1, %v333_v1  ;;  %v240_v4 = vmax.f32 %v217_v2, 0.0 }
  0xfe   :  { %v334_v5 = vpack.c.bf16 %v240_v4, %v240_v4 }
 0x100   :  { %287 = vst.msk [vmem:[%s502_s3 + $0x14] sm:$0xf] %vm281_vm1, %v334_v5 }

</bundles_post_ra>
